<compile_context>
chip_gen: v7x
topology: tpu7x:2x2x1
jax: 0.10.0
libtpu: 0.0.40
codegen_flags: <defaults>
</compile_context>

<pallas_src>
import functools

import jax
import jax.numpy as jnp
from jax import lax
from jax.experimental import pallas as pl
from jax.experimental.pallas import tpu as pltpu


# ---------------------------------------------------------------------------
# Helpers: chip-aware VMEM limit, d-aware tile size, megacore split
# ---------------------------------------------------------------------------
def _vmem_limit_bytes(requested: int) -> int:
    cap = 64 << 20                      # conservative fallback (v7x physical VMEM)
    try:
        cap = int(pltpu.get_tpu_info().vmem_capacity_bytes)
    except Exception:
        pass
    ceiling = max(cap // 2, 16 << 20)   # 32 MiB on v7x, 64 MiB on v5e/v6e
    return int(min(max(requested + (2 << 20), 16 << 20), ceiling))


def _choose_tile_n(n: int, d: int, target_bytes: int = 4 << 20) -> int:
    """Rows per tile so the f32 nodes tile is ~target_bytes, lane-aligned (/128)."""
    if n * d * 4 <= target_bytes or n % 128 != 0:
        return n                        # single tile (also fallback for ragged n)
    tn = max(128, (target_bytes // (4 * d)) // 128 * 128)
    tn = min(tn, n)
    while n % tn != 0:                  # keep the grid exact
        tn -= 128
    return tn


def _num_parallel(n_tiles: int, num_clusters: int) -> int:
    # Megacore split of the node axis (no-op on single-TC v5e/v6e).
    return 2 if (n_tiles >= 2 and n_tiles % 2 == 0 and num_clusters % 8 == 0) else 1


# ---------------------------------------------------------------------------
# Shared in-kernel pieces
# ---------------------------------------------------------------------------
def _assign_and_accumulate(nodes, centers2, c_norms, acc_ref, num_clusters):
    """Nearest-center assignment + per-cluster sum into acc_ref (K, d)."""
    # argmin_k ||x - c_k||^2 == argmin_k (||c_k||^2 - x.(2 c_k)); one MXU matmul.
    dots2 = lax.dot_general(
        nodes, centers2,
        dimension_numbers=(((1,), (1,)), ((), ())),           # nodes @ (2C)^T
        preferred_element_type=jnp.float32,
    )                                                          # (tn, K)
    adj = c_norms - dots2                                      # (tn, K)

    # First-min tie-break argmin (matches torch.argmin).
    min_adj = jnp.min(adj, axis=-1, keepdims=True)             # (tn, 1)
    k_ids = lax.broadcasted_iota(jnp.int32, (1, num_clusters), 1)   # (1, K)
    best_k = jnp.min(jnp.where(adj == min_adj, k_ids, num_clusters),
                     axis=-1, keepdims=True)                   # (tn, 1)

    # Scatter-add via one-hot matmul on the MXU: acc[k,:] += sum_i [a_i==k] x_i
    one_hot = (k_ids == best_k).astype(jnp.float32)            # (tn, K)
    acc_ref[...] += lax.dot_general(
        one_hot, nodes,
        dimension_numbers=(((0,), (0,)), ((), ())),            # contract over tn
        preferred_element_type=jnp.float32,
    )                                                          # (K, d)


def _importance_row(nodes, graph):
    """max_k <node_i, graph_k> as a lane-dense (1, tn) row."""
    scores_t = lax.dot_general(
        graph, nodes,
        dimension_numbers=(((1,), (1,)), ((), ())),            # graph @ nodes^T
        preferred_element_type=jnp.float32,
    )                                                          # (K, tn)
    return jnp.max(scores_t, axis=0, keepdims=True)            # (1, tn)


# ---------------------------------------------------------------------------
# Kernel 1: k-means-style aggregation only (used for match_nodes)
# ---------------------------------------------------------------------------
def _agg_kernel(nodes_ref, centers2_ref, c_norms_ref, out_ref, acc_ref,
                *, num_clusters: int):
    @pl.when(pl.program_id(1) == 0)
    def _():
        acc_ref[...] = jnp.zeros_like(acc_ref)

    _assign_and_accumulate(nodes_ref[...], centers2_ref[...], c_norms_ref[...],
                           acc_ref, num_clusters)

    @pl.when(pl.program_id(1) == pl.num_programs(1) - 1)
    def _():
        out_ref[...] = acc_ref[...]


# ---------------------------------------------------------------------------
# Kernel 2: fused aggregation(ref_nodes) + importance(ref_nodes vs match_graph)
# ---------------------------------------------------------------------------
def _fused_agg_importance_kernel(nodes_ref, centers2_ref, c_norms_ref, graph_ref,
                                 agg_out_ref, imp_out_ref, acc_ref,
                                 *, num_clusters: int):
    @pl.when(pl.program_id(1) == 0)
    def _():
        acc_ref[...] = jnp.zeros_like(acc_ref)

    nodes = nodes_ref[...]                                     # single HBM read

    _assign_and_accumulate(nodes, centers2_ref[...], c_norms_ref[...],
                           acc_ref, num_clusters)

    @pl.when(pl.program_id(1) == pl.num_programs(1) - 1)
    def _():
        agg_out_ref[...] = acc_ref[...]

    imp_out_ref[...] = _importance_row(nodes, graph_ref[...])  # lane-dense (1, tn)


# ---------------------------------------------------------------------------
# Kernel 3: importance only (used for match_nodes vs ref_graph)
# ---------------------------------------------------------------------------
def _importance_kernel(nodes_ref, graph_ref, out_ref):
    out_ref[...] = _importance_row(nodes_ref[...], graph_ref[...])


# ---------------------------------------------------------------------------
# Wrappers
# ---------------------------------------------------------------------------
def _prep_centers(nodes, num_clusters, key):
    d = nodes.shape[1]
    # TODO(synk): the original module samples initial-center indices from
    # [0, d) (the feature dimension, torch.randint(d, (K,))); this requires
    # d <= n and only ever selects among the first d rows. Reproduced faithfully.
    center_ind = jax.random.randint(key, (num_clusters,), 0, d)
    centers = nodes[center_ind]                                # (K, d)
    centers2 = 2.0 * centers                                   # hoisted *2
    c_norms = jnp.sum(centers * centers, axis=-1)[None, :]     # (1, K)
    return centers2, c_norms


def kmeans_cluster_aggregator(nodes, num_clusters, key, *, tile_bytes=4 << 20):
    """JAX/Pallas equivalent of KMeansClusterAggregator.forward -> (K, d)."""
    n, d = nodes.shape
    nodes = nodes.astype(jnp.float32)
    centers2, c_norms = _prep_centers(nodes, num_clusters, key)

    tn = _choose_tile_n(n, d, tile_bytes)
    n_tiles = n // tn
    p = _num_parallel(n_tiles, num_clusters)
    steps = n_tiles // p

    req = 4 * (2 * tn * d + 4 * num_clusters * d + 2 * num_clusters
               + 2 * p * num_clusters * d + num_clusters * d + 4 * tn * num_clusters)

    kernel = functools.partial(_agg_kernel, num_clusters=num_clusters)
    partials = pl.pallas_call(
        kernel,
        out_shape=jax.ShapeDtypeStruct((p * num_clusters, d), jnp.float32),
        grid_spec=pltpu.PrefetchScalarGridSpec(
            num_scalar_prefetch=0,
            grid=(p, steps),
            in_specs=[
                pl.BlockSpec((tn, d), lambda pi, j: (pi * steps + j, 0)),
                pl.BlockSpec((num_clusters, d), lambda pi, j: (0, 0)),
                pl.BlockSpec((1, num_clusters), lambda pi, j: (0, 0)),
            ],
            out_specs=pl.BlockSpec((num_clusters, d), lambda pi, j: (pi, 0)),
            scratch_shapes=[pltpu.VMEM((num_clusters, d), jnp.float32)],
        ),
        compiler_params=pltpu.CompilerParams(
            dimension_semantics=("parallel", "arbitrary"),
            vmem_limit_bytes=_vmem_limit_bytes(req),
        ),
    )(nodes, centers2, c_norms)
    # Tiny per-core partial reduction (no-op cost when p == 1).
    return partials.reshape(p, num_clusters, d).sum(axis=0)


def fused_ref_agg_and_importance(nodes, num_clusters, key, graph,
                                 *, tile_bytes=4 << 20):
    """One pass over `nodes`: returns (ref_graph (K,d), importance (n,1))."""
    n, d = nodes.shape
    k, d2 = graph.shape
    assert d == d2
    nodes = nodes.astype(jnp.float32)
    graph = graph.astype(jnp.float32)
    centers2, c_norms = _prep_centers(nodes, num_clusters, key)

    tn = _choose_tile_n(n, d, tile_bytes)
    n_tiles = n // tn
    p = _num_parallel(n_tiles, num_clusters)
    steps = n_tiles // p

    req = 4 * (2 * tn * d + 6 * num_clusters * d + 2 * num_clusters
               + 2 * p * num_clusters * d + num_clusters * d
               + 2 * tn + 6 * tn * num_clusters)

    kernel = functools.partial(_fused_agg_importance_kernel,
                               num_clusters=num_clusters)
    partials, imp_row = pl.pallas_call(
        kernel,
        out_shape=(jax.ShapeDtypeStruct((p * num_clusters, d), jnp.float32),
                   jax.ShapeDtypeStruct((1, n), jnp.float32)),
        grid_spec=pltpu.PrefetchScalarGridSpec(
            num_scalar_prefetch=0,
            grid=(p, steps),
            in_specs=[
                pl.BlockSpec((tn, d), lambda pi, j: (pi * steps + j, 0)),
                pl.BlockSpec((num_clusters, d), lambda pi, j: (0, 0)),
                pl.BlockSpec((1, num_clusters), lambda pi, j: (0, 0)),
                pl.BlockSpec((num_clusters, d), lambda pi, j: (0, 0)),   # match_graph
            ],
            out_specs=(
                pl.BlockSpec((num_clusters, d), lambda pi, j: (pi, 0)),
                pl.BlockSpec((1, tn), lambda pi, j: (0, pi * steps + j)),
            ),
            scratch_shapes=[pltpu.VMEM((num_clusters, d), jnp.float32)],
        ),
        compiler_params=pltpu.CompilerParams(
            dimension_semantics=("parallel", "arbitrary"),
            vmem_limit_bytes=_vmem_limit_bytes(req),
        ),
    )(nodes, centers2, c_norms, graph)

    ref_graph = partials.reshape(p, num_clusters, d).sum(axis=0)
    return ref_graph, jnp.reshape(imp_row, (n, 1))    # free layout plumbing


def node_to_graph_importance(nodes, graph, *, tile_bytes=4 << 20):
    """importance_i = max_k <node_i, graph_k>  -> (n, 1)."""
    n, d = nodes.shape
    k, d2 = graph.shape
    assert d == d2
    nodes = nodes.astype(jnp.float32)
    graph = graph.astype(jnp.float32)

    tn = _choose_tile_n(n, d, tile_bytes)
    n_tiles = n // tn

    req = 4 * (2 * tn * d + 2 * k * d + 2 * tn + 2 * tn * k)

    imp_row = pl.pallas_call(
        _importance_kernel,
        out_shape=jax.ShapeDtypeStruct((1, n), jnp.float32),
        grid_spec=pltpu.PrefetchScalarGridSpec(
            num_scalar_prefetch=0,
            grid=(n_tiles,),
            in_specs=[
                pl.BlockSpec((tn, d), lambda i: (i, 0)),
                pl.BlockSpec((k, d), lambda i: (0, 0)),
            ],
            out_specs=pl.BlockSpec((1, tn), lambda i: (0, i)),
        ),
        compiler_params=pltpu.CompilerParams(
            dimension_semantics=("parallel",),
            vmem_limit_bytes=_vmem_limit_bytes(req),
        ),
    )(nodes, graph)
    return jnp.reshape(imp_row, (n, 1))


# ---------------------------------------------------------------------------
# Full Node2GraphImportance.forward
# ---------------------------------------------------------------------------
def node2graph_importance_forward(match_nodes, ref_nodes, num_clusters, key,
                                  *, tile_bytes=4 << 20):
    n1, d1 = match_nodes.shape
    n2, d2 = ref_nodes.shape
    assert d1 == d2
    k_match, k_ref = jax.random.split(key)

    # Pass 1: match_graph = agg(match_nodes)
    match_graph = kmeans_cluster_aggregator(match_nodes, num_clusters, k_match,
                                            tile_bytes=tile_bytes)       # (K, d)
    # Pass 2 (fused): ref_graph = agg(ref_nodes) AND
    #                 ref_node_importance = max_k <ref_node, match_graph_k>
    ref_graph, ref_node_importance = fused_ref_agg_and_importance(
        ref_nodes, num_clusters, k_ref, match_graph, tile_bytes=tile_bytes)
    # Pass 3: match_node_importance = max_k <match_node, ref_graph_k>
    match_node_importance = node_to_graph_importance(match_nodes, ref_graph,
                                                     tile_bytes=tile_bytes)
    return match_node_importance, ref_node_importance


# ---------------------------------------------------------------------------
# Pure-JAX reference (same random centers, exact-distance argmin)
# ---------------------------------------------------------------------------
def _reference_aggregate(nodes, key, num_clusters):
    center_ind = jax.random.randint(key, (num_clusters,), 0, nodes.shape[1])
    centers = nodes[center_ind]
    dist = jnp.linalg.norm(nodes[:, None, :] - centers[None, :, :], axis=-1)
    assignment = jnp.argmin(dist, axis=1)
    one_hot = jax.nn.one_hot(assignment, num_clusters, dtype=nodes.dtype)
    return one_hot.T @ nodes


def _reference_forward(match_nodes, ref_nodes, num_clusters, key):
    k_match, k_ref = jax.random.split(key)
    match_graph = _reference_aggregate(match_nodes, k_match, num_clusters)
    ref_graph = _reference_aggregate(ref_nodes, k_ref, num_clusters)
    ref_imp = jnp.max(ref_nodes @ match_graph.T, axis=1, keepdims=True)
    match_imp = jnp.max(match_nodes @ ref_graph.T, axis=1, keepdims=True)
    return match_imp, ref_imp


if __name__ == "__main__":
    num_clusters = 8
    n1, n2, d = 1024, 512, 32     # small shapes; d <= n so row indices are valid

    key = jax.random.PRNGKey(0)
    k_match_nodes, k_ref_nodes, k_agg = jax.random.split(key, 3)
    match_nodes = jax.random.normal(k_match_nodes, (n1, d), dtype=jnp.float32)
    ref_nodes = jax.random.normal(k_ref_nodes, (n2, d), dtype=jnp.float32)

    match_imp, ref_imp = node2graph_importance_forward(
        match_nodes, ref_nodes, num_clusters, k_agg)
    match_imp = jax.block_until_ready(match_imp)
    ref_imp = jax.block_until_ready(ref_imp)

    exp_match_imp, exp_ref_imp = _reference_forward(
        match_nodes, ref_nodes, num_clusters, k_agg)

    assert match_imp.shape == (n1, 1) and ref_imp.shape == (n2, 1)
    assert jnp.allclose(match_imp, exp_match_imp, atol=1e-2, rtol=1e-4), \
        "match_node_importance mismatch vs reference"
    assert jnp.allclose(ref_imp, exp_ref_imp, atol=1e-2, rtol=1e-4), \
        "ref_node_importance mismatch vs reference"

    print("KERNEL_OK")
</pallas_src>

<mosaic_0001>
module attributes {stable_mosaic.version = 11 : i64} {
  func.func @_agg_kernel(%arg0: i32, %arg1: i32, %arg2: memref<1024x32xf32, #tpu.memory_space<vmem>>, %arg3: memref<8x32xf32, #tpu.memory_space<vmem>>, %arg4: memref<1x8xf32, #tpu.memory_space<vmem>>, %arg5: memref<8x32xf32, #tpu.memory_space<vmem>>, %arg6: memref<8x32xf32, #tpu.memory_space<vmem>>) attributes {dimension_semantics = [#tpu.dimension_semantics<parallel>, #tpu.dimension_semantics<arbitrary>], iteration_bounds = array<i64: 1, 1>, scalar_prefetch = 0 : i64, scratch_operands = 1 : i64, tpu.core_type = #tpu.core_type<tc>, window_params = [{transform_indices = @transform_0, window_bounds = array<i64: 1024, 32>}, {pipeline_mode = #tpu.pipeline_mode<synchronous>, transform_indices = @transform_1, window_bounds = array<i64: 8, 32>}, {pipeline_mode = #tpu.pipeline_mode<synchronous>, transform_indices = @transform_2, window_bounds = array<i64: 1, 8>}, {transform_indices = @transform_3, window_bounds = array<i64: 8, 32>}]} {
    %c0_i32 = arith.constant 0 : i32
    %0 = arith.cmpi eq, %arg1, %c0_i32 : i32
    %1 = arith.extui %0 : i1 to i32
    %c0_i32_0 = arith.constant 0 : i32
    %2 = arith.cmpi ne, %1, %c0_i32_0 : i32
    scf.if %2 {
      %cst_15 = arith.constant 0.000000e+00 : f32
      %32 = vector.broadcast %cst_15 : f32 to vector<8x32xf32>
      %c0_16 = arith.constant 0 : index
      %c0_17 = arith.constant 0 : index
      %33 = vector.load %arg6[%c0_16, %c0_17] : memref<8x32xf32, #tpu.memory_space<vmem>>, vector<8x32xf32>
      tpu.vector_store %arg6[%c0_16, %c0_17], %32 {strides = array<i32>} : memref<8x32xf32, #tpu.memory_space<vmem>>, vector<8x32xf32>,
    } else {
    }
    %c0 = arith.constant 0 : index
    %c0_1 = arith.constant 0 : index
    %3 = vector.load %arg2[%c0, %c0_1] : memref<1024x32xf32, #tpu.memory_space<vmem>>, vector<1024x32xf32>
    %c0_2 = arith.constant 0 : index
    %c0_3 = arith.constant 0 : index
    %4 = vector.load %arg3[%c0_2, %c0_3] : memref<8x32xf32, #tpu.memory_space<vmem>>, vector<8x32xf32>
    %c0_4 = arith.constant 0 : index
    %c0_5 = arith.constant 0 : index
    %5 = vector.load %arg4[%c0_4, %c0_5] : memref<1x8xf32, #tpu.memory_space<vmem>>, vector<1x8xf32>
    %cst = arith.constant dense<0.000000e+00> : vector<1024x8xf32>
    %6 = tpu.matmul %3, %4, %cst {dimension_numbers = #tpu.dot_dimension_numbers<[1], [1], [0], [0], [0, 0, 1, 0], [], []>} : vector<1024x32xf32>, vector<8x32xf32>, vector<1024x8xf32> -> vector<1024x8xf32>
    %7 = vector.broadcast %5 : vector<1x8xf32> to vector<1024x8xf32>
    %8 = arith.subf %7, %6 : vector<1024x8xf32>
    %cst_6 = arith.constant dense<0x7F800000> : vector<1024xf32>
    %9 = vector.multi_reduction <minimumf>, %8, %cst_6 [1] : vector<1024x8xf32> to vector<1024xf32>
    %10 = vector.shape_cast %9 : vector<1024xf32> to vector<1024x1xf32>
    %11 = tpu.iota {dimensions = array<i32: 1>} : vector<1x8xi32>
    %12 = vector.broadcast %10 : vector<1024x1xf32> to vector<1024x8xf32>
    %13 = arith.cmpf oeq, %8, %12 : vector<1024x8xf32>
    %c8_i32 = arith.constant 8 : i32
    %14 = vector.shape_cast %11 : vector<1x8xi32> to vector<1x8xi32>
    %15 = vector.broadcast %14 : vector<1x8xi32> to vector<1024x8xi32>
    %16 = vector.broadcast %c8_i32 : i32 to vector<1024x8xi32>
    %17 = arith.select %13, %15, %16 : vector<1024x8xi1>, vector<1024x8xi32>
    %cst_7 = arith.constant dense<2147483647> : vector<1024xi32>
    %18 = vector.multi_reduction <minsi>, %17, %cst_7 [1] : vector<1024x8xi32> to vector<1024xi32>
    %19 = vector.shape_cast %18 : vector<1024xi32> to vector<1024x1xi32>
    %20 = vector.broadcast %11 : vector<1x8xi32> to vector<1024x8xi32>
    %21 = vector.broadcast %19 : vector<1024x1xi32> to vector<1024x8xi32>
    %22 = arith.cmpi eq, %20, %21 : vector<1024x8xi32>
    %23 = arith.extui %22 : vector<1024x8xi1> to vector<1024x8xi32>
    %24 = arith.sitofp %23 : vector<1024x8xi32> to vector<1024x8xf32>
    %c0_8 = arith.constant 0 : index
    %c0_9 = arith.constant 0 : index
    %25 = vector.load %arg6[%c0_8, %c0_9] : memref<8x32xf32, #tpu.memory_space<vmem>>, vector<8x32xf32>
    %cst_10 = arith.constant dense<0.000000e+00> : vector<8x32xf32>
    %26 = tpu.matmul %24, %3, %cst_10 {dimension_numbers = #tpu.dot_dimension_numbers<[0], [0], [1], [1], [0, 1, 1, 1], [], []>} : vector<1024x8xf32>, vector<1024x32xf32>, vector<8x32xf32> -> vector<8x32xf32>
    %27 = arith.addf %25, %26 : vector<8x32xf32>
    %c0_11 = arith.constant 0 : index
    %c0_12 = arith.constant 0 : index
    %28 = vector.load %arg6[%c0_11, %c0_12] : memref<8x32xf32, #tpu.memory_space<vmem>>, vector<8x32xf32>
    tpu.vector_store %arg6[%c0_11, %c0_12], %27 {strides = array<i32>} : memref<8x32xf32, #tpu.memory_space<vmem>>, vector<8x32xf32>,
    %c0_i32_13 = arith.constant 0 : i32
    %29 = arith.cmpi eq, %arg1, %c0_i32_13 : i32
    %30 = arith.extui %29 : i1 to i32
    %c0_i32_14 = arith.constant 0 : i32
    %31 = arith.cmpi ne, %30, %c0_i32_14 : i32
    scf.if %31 {
      %c0_15 = arith.constant 0 : index
      %c0_16 = arith.constant 0 : index
      %32 = vector.load %arg6[%c0_15, %c0_16] : memref<8x32xf32, #tpu.memory_space<vmem>>, vector<8x32xf32>
      %c0_17 = arith.constant 0 : index
      %c0_18 = arith.constant 0 : index
      %33 = vector.load %arg5[%c0_17, %c0_18] : memref<8x32xf32, #tpu.memory_space<vmem>>, vector<8x32xf32>
      tpu.vector_store %arg5[%c0_17, %c0_18], %32 {strides = array<i32>} : memref<8x32xf32, #tpu.memory_space<vmem>>, vector<8x32xf32>,
    } else {
    }
    return
  }
  func.func @transform_0(%arg0: i32, %arg1: i32) -> (i32, i32) {
    %c1_i32 = arith.constant 1 : i32
    %0 = arith.muli %arg0, %c1_i32 : i32
    %1 = arith.addi %0, %arg1 : i32
    %c0_i32 = arith.constant 0 : i32
    %c0_i32_0 = arith.constant 0 : i32
    return %1, %c0_i32 : i32, i32
  }
  func.func @transform_1(%arg0: i32, %arg1: i32) -> (i32, i32) {
    %c0_i32 = arith.constant 0 : i32
    %c0_i32_0 = arith.constant 0 : i32
    %c0_i32_1 = arith.constant 0 : i32
    return %c0_i32, %c0_i32_0 : i32, i32
  }
  func.func @transform_2(%arg0: i32, %arg1: i32) -> (i32, i32) {
    %c0_i32 = arith.constant 0 : i32
    %c0_i32_0 = arith.constant 0 : i32
    %c0_i32_1 = arith.constant 0 : i32
    return %c0_i32, %c0_i32_0 : i32, i32
  }
  func.func @transform_3(%arg0: i32, %arg1: i32) -> (i32, i32) {
    %c0_i32 = arith.constant 0 : i32
    %c0_i32_0 = arith.constant 0 : i32
    return %arg0, %c0_i32 : i32, i32
  }
}

</mosaic_0001>

<bundles_post_ra>
// kernel: tpu_custom_call.1
= control target key start
LH: loop header
LB: loop body
LE: loop exit
PB: predicated region body
PF: predicated region fallthrough
CT: control target
= control target key end

     0   :  { %vm41_vm0 = vcmask 261120   ;;  %s11585_s0 = inlined_call_operand.vmem [shape: f32[1024,32], index: 0, kind: input, shape index: {}]   ;;  %s11586_s1 = inlined_call_operand.vmem [shape: f32[8,32], index: 1, kind: input, shape index: {}]   ;;  %s11587_s2 = inlined_call_operand.vmem [shape: f32[1,8], index: 2, kind: input, shape index: {}]   ;;  %s11588_s3 = inlined_call_operand.hbm [shape: f32[8,32], index: 3, kind: output, shape index: {}]  }
   0x1   :  { %v171_v0 = vld [vmem:[%s11586_s1] sm:$0xff]  ;;  %v6040_v2 = vld [vmem:[%s11585_s0 + $0x8] sm:$0xff]  ;;  %v6049_v4 = vld [vmem:[%s11585_s0 + $0x2d0] sm:$0xff] }
   0x2   :  { %v6035_v1 = vld [vmem:[%s11585_s0] sm:$0xff]  ;;  %12165 = vst [vmem:[#allocation7_spill] sm:$0xff] %v6040_v2  ;;  %5438 = vmatprep.subr.msk.mxu0 %vm41_vm0, %v171_v0  ;;  %5760 = vmatprep.subr.msk.mxu1 %vm41_vm0, %v171_v0  ;;  %12166 = vst [vmem:[#allocation8_spill] sm:$0xff] %v6049_v4  ;;  %v6054_v5 = vld [vmem:[%s11585_s0 + $0x2d8] sm:$0xff] }
   0x3   :  { %12164 = vst [vmem:[#allocation6_spill] sm:$0xff] %v6035_v1  ;;  %12167 = vst [vmem:[#allocation9_spill] sm:$0xff] %v6054_v5  ;;  %5439 = vmatpush3.xpose.msk.msra.mxu0 %vm41_vm0, %v171_v0  ;;  %5761 = vmatpush3.xpose.msk.msra.mxu1 %vm41_vm0, %v171_v0  ;;  %v6063_v7 = vld [vmem:[%s11585_s0 + $0x10] sm:$0xff]  ;;  %v6068_v8 = vld [vmem:[%s11585_s0 + $0x18] sm:$0xff] }
   0x4   :  { %12168 = vst [vmem:[#allocation10_spill] sm:$0xff] %v6063_v7  ;;  %12169 = vst [vmem:[#allocation11_spill] sm:$0xff] %v6068_v8  ;;  %5440 = vmatprep.mubr.msk.f32.mxu0 %vm41_vm0, %v6035_v1  ;;  %5575 = vmatprep.mubr.msk.f32.mxu1 %vm41_vm0, %v6049_v4  ;;  %v135_v10 = vld [vmem:[%s11585_s0 + $0x2e0] sm:$0xff]  ;;  %v6087_v12 = vld [vmem:[%s11585_s0 + $0x28] sm:$0xff] }
   0x5   :  { %v6082_v11 = vld [vmem:[%s11585_s0 + $0x20] sm:$0xff]  ;;  %12171 = vst [vmem:[#allocation13_spill] sm:$0xff] %v6087_v12  ;;  %v136_v13 = vld [vmem:[%s11585_s0 + $0x2e8] sm:$0xff]  ;;  %v6097_v15 = vld [vmem:[%s11585_s0 + $0x30] sm:$0xff] }
   0x6   :  { %12170 = vst [vmem:[#allocation12_spill] sm:$0xff] %v6082_v11  ;;  %12172 = vst [vmem:[#allocation14_spill] sm:$0xff] %v6097_v15  ;;  %v6102_v16 = vld [vmem:[%s11585_s0 + $0x38] sm:$0xff]  ;;  %5441 = vmatmul.mubr.msk.f32.vlgmr.msra.gmra.mrb[0].mxu0 %vm41_vm0, %v6040_v2  ;;  %5576 = vmatmul.mubr.msk.f32.vlgmr.msra.gmra.mrb[0].mxu1 %vm41_vm0, %v6054_v5  ;;  %v137_v17 = vld [vmem:[%s11585_s0 + $0x2f0] sm:$0xff] }
   0x7   :  { %12173 = vst [vmem:[#allocation15_spill] sm:$0xff] %v6102_v16  ;;  %v6116_v19 = vld [vmem:[%s11585_s0 + $0x300] sm:$0xff]  ;;  %v6121_v20 = vld [vmem:[%s11585_s0 + $0x308] sm:$0xff]  ;;  %5443 = vmatprep.mubr.msk.f32.mxu0 %vm41_vm0, %v6063_v7  ;;  %5578 = vmatprep.mubr.msk.f32.mxu1 %vm41_vm0, %v135_v10  ;;  %v6141_v24 = vld [vmem:[%s11585_s0 + $0x310] sm:$0xff] }
   0x8   :  { %12174 = vst [vmem:[#allocation16_spill] sm:$0xff] %v6116_v19  ;;  %12175 = vst [vmem:[#allocation17_spill] sm:$0xff] %v6121_v20  ;;  %v6126_v21 = vld [vmem:[%s11585_s0 + $0x40] sm:$0xff]  ;;  %v6136_v23 = vld [vmem:[%s11585_s0 + $0x48] sm:$0xff] }
   0x9   :  { %12176 = vst [vmem:[#allocation18_spill] sm:$0xff] %v6126_v21  ;;  %12177 = vst [vmem:[#allocation19_spill] sm:$0xff] %v6136_v23  ;;  %v6146_v25 = vld [vmem:[%s11585_s0 + $0x318] sm:$0xff]  ;;  %v6155_v28 = vld [vmem:[%s11585_s0 + $0x50] sm:$0xff] }
   0xa   :  { %12178 = vst [vmem:[#allocation20_spill] sm:$0xff] %v6141_v24  ;;  %12179 = vst [vmem:[#allocation21_spill] sm:$0xff] %v6146_v25  ;;  %v6160_v29 = vld [vmem:[%s11585_s0 + $0x58] sm:$0xff]  ;;  %v6165_v30 = vld [vmem:[%s11585_s0 + $0x320] sm:$0xff]  ;;  %5444 = vmatmul.mubr.msk.f32.gmra.mrb[2].mxu0 %vm41_vm0, %v6068_v8  ;;  %5579 = vmatmul.mubr.msk.f32.gmra.mrb[2].mxu1 %vm41_vm0, %v136_v13 }
   0xb   :  { %12180 = vst [vmem:[#allocation22_spill] sm:$0xff] %v6155_v28  ;;  %12181 = vst [vmem:[#allocation23_spill] sm:$0xff] %v6160_v29  ;;  %v138_v31 = vld [vmem:[%s11585_s0 + $0x2f8] sm:$0xff]  ;;  %v6175_v33 = vld [vmem:[%s11585_s0 + $0x328] sm:$0xff]  ;;  %5446 = vmatprep.mubr.msk.f32.mxu0 %vm41_vm0, %v6082_v11  ;;  %5581 = vmatprep.mubr.msk.f32.mxu1 %vm41_vm0, %v137_v17 }
   0xc   :  { %12182 = vst [vmem:[#allocation24_spill] sm:$0xff] %v6165_v30  ;;  %12183 = vst [vmem:[#allocation25_spill] sm:$0xff] %v6175_v33  ;;  %v6180_v34 = vld [vmem:[%s11585_s0 + $0x60] sm:$0xff]  ;;  %v6185_v35 = vld [vmem:[%s11585_s0 + $0x68] sm:$0xff] }
   0xd   :  { %12184 = vst [vmem:[#allocation26_spill] sm:$0xff] %v6180_v34  ;;  %12185 = vst [vmem:[#allocation27_spill] sm:$0xff] %v6185_v35  ;;  %v6197_v38 = vld [vmem:[%s11585_s0 + $0x330] sm:$0xff]  ;;  %v6202_v39 = vld [vmem:[%s11585_s0 + $0x338] sm:$0xff] }
   0xe   :  { %12186 = vst [vmem:[#allocation28_spill] sm:$0xff] %v6197_v38  ;;  %12187 = vst [vmem:[#allocation29_spill] sm:$0xff] %v6202_v39  ;;  %v6207_v40 = vld [vmem:[%s11585_s0 + $0x70] sm:$0xff]  ;;  %v6217_v42 = vld [vmem:[%s11585_s0 + $0x78] sm:$0xff]  ;;  %5447 = vmatmul.mubr.msk.f32.gmra.mrb[4].mxu0 %vm41_vm0, %v6087_v12  ;;  %5582 = vmatmul.mubr.msk.f32.gmra.mrb[4].mxu1 %vm41_vm0, %v138_v31 }
   0xf   :  { %12188 = vst [vmem:[#allocation30_spill] sm:$0xff] %v6207_v40  ;;  %12189 = vst [vmem:[#allocation31_spill] sm:$0xff] %v6217_v42  ;;  %v6222_v43 = vld [vmem:[%s11585_s0 + $0x340] sm:$0xff]  ;;  %v6227_v44 = vld [vmem:[%s11585_s0 + $0x348] sm:$0xff]  ;;  %5449 = vmatprep.mubr.msk.f32.mxu0 %vm41_vm0, %v6097_v15  ;;  %5584 = vmatprep.mubr.msk.f32.mxu1 %vm41_vm0, %v6116_v19 }
  0x10   :  { %12190 = vst [vmem:[#allocation32_spill] sm:$0xff] %v6222_v43  ;;  %12191 = vst [vmem:[#allocation33_spill] sm:$0xff] %v6227_v44  ;;  %v6236_v47 = vld [vmem:[%s11585_s0 + $0x350] sm:$0xff]  ;;  %v6241_v48 = vld [vmem:[%s11585_s0 + $0x358] sm:$0xff] }
  0x11   :  { %12192 = vst [vmem:[#allocation34_spill] sm:$0xff] %v6236_v47  ;;  %12193 = vst [vmem:[#allocation35_spill] sm:$0xff] %v6241_v48  ;;  %v6251_v50 = vld [vmem:[%s11585_s0 + $0x360] sm:$0xff]  ;;  %v6256_v51 = vld [vmem:[%s11585_s0 + $0x368] sm:$0xff] }
  0x12   :  { %12194 = vst [vmem:[#allocation36_spill] sm:$0xff] %v6251_v50  ;;  %12195 = vst [vmem:[#allocation37_spill] sm:$0xff] %v6256_v51  ;;  %v6267_v53 = vld [vmem:[%s11585_s0 + $0x370] sm:$0xff]  ;;  %v6272_v54 = vld [vmem:[%s11585_s0 + $0x378] sm:$0xff]  ;;  %5450 = vmatmul.mubr.msk.f32.gmra.mrb[6].mxu0 %vm41_vm0, %v6102_v16  ;;  %5585 = vmatmul.mubr.msk.f32.gmra.mrb[6].mxu1 %vm41_vm0, %v6121_v20 }
  0x13   :  { %12196 = vst [vmem:[#allocation38_spill] sm:$0xff] %v6267_v53  ;;  %12197 = vst [vmem:[#allocation39_spill] sm:$0xff] %v6272_v54  ;;  %5452 = vmatprep.mubr.msk.f32.mxu0 %vm41_vm0, %v6126_v21  ;;  %5587 = vmatprep.mubr.msk.f32.mxu1 %vm41_vm0, %v6141_v24  ;;  %v6295_v56 = vld [vmem:[%s11585_s0 + $0x100] sm:$0xff]  ;;  %v6300_v57 = vld [vmem:[%s11585_s0 + $0x108] sm:$0xff] }
  0x14   :  { %12198 = vst [vmem:[#allocation40_spill] sm:$0xff] %v6295_v56  ;;  %12199 = vst [vmem:[#allocation41_spill] sm:$0xff] %v6300_v57  ;;  %v6307_v59 = vld [vmem:[%s11585_s0 + $0x110] sm:$0xff]  ;;  %v6312_v60 = vld [vmem:[%s11585_s0 + $0x118] sm:$0xff] }
  0x15   :  { %12200 = vst [vmem:[#allocation42_spill] sm:$0xff] %v6307_v59  ;;  %12201 = vst [vmem:[#allocation43_spill] sm:$0xff] %v6312_v60  ;;  %v6319_v62 = vld [vmem:[%s11585_s0 + $0x120] sm:$0xff]  ;;  %v6324_v63 = vld [vmem:[%s11585_s0 + $0x128] sm:$0xff] }
  0x16   :  { %5453 = vmatmul.mubr.msk.f32.gmra.mrb[8].mxu0 %vm41_vm0, %v6136_v23  ;;  %5588 = vmatmul.mubr.msk.f32.gmra.mrb[8].mxu1 %vm41_vm0, %v6146_v25  ;;  %12202 = vst [vmem:[#allocation44_spill] sm:$0xff] %v6319_v62  ;;  %12203 = vst [vmem:[#allocation45_spill] sm:$0xff] %v6324_v63  ;;  %v6335_v10 = vld [vmem:[%s11585_s0 + $0x130] sm:$0xff]  ;;  %v6344_v13 = vld [vmem:[%s11585_s0 + $0x138] sm:$0xff] }
  0x17   :  { %5455 = vmatprep.mubr.msk.f32.mxu0 %vm41_vm0, %v6155_v28  ;;  %5590 = vmatprep.mubr.msk.f32.mxu1 %vm41_vm0, %v6165_v30  ;;  %12204 = vst [vmem:[#allocation46_spill] sm:$0xff] %v6335_v10  ;;  %12205 = vst [vmem:[#allocation47_spill] sm:$0xff] %v6344_v13  ;;  %v6349_v17 = vld [vmem:[%s11585_s0 + $0x140] sm:$0xff]  ;;  %v6354_v31 = vld [vmem:[%s11585_s0 + $0x148] sm:$0xff] }
  0x18   :  { %12206 = vst [vmem:[#allocation48_spill] sm:$0xff] %v6349_v17  ;;  %12207 = vst [vmem:[#allocation49_spill] sm:$0xff] %v6354_v31  ;;  %v6363_v49 = vld [vmem:[%s11585_s0 + $0x150] sm:$0xff]  ;;  %v6368_v46 = vld [vmem:[%s11585_s0 + $0x158] sm:$0xff] }
  0x19   :  { %12208 = vst [vmem:[#allocation50_spill] sm:$0xff] %v6363_v49  ;;  %12209 = vst [vmem:[#allocation51_spill] sm:$0xff] %v6368_v46  ;;  %v6375_v36 = vld [vmem:[%s11585_s0 + $0x160] sm:$0xff]  ;;  %v6380_v27 = vld [vmem:[%s11585_s0 + $0x168] sm:$0xff] }
  0x1a   :  { %5456 = vmatmul.mubr.msk.f32.gmra.mrb[10].mxu0 %vm41_vm0, %v6160_v29  ;;  %5591 = vmatmul.mubr.msk.f32.gmra.mrb[10].mxu1 %vm41_vm0, %v6175_v33  ;;  %12210 = vst [vmem:[#allocation52_spill] sm:$0xff] %v6375_v36  ;;  %12211 = vst [vmem:[#allocation53_spill] sm:$0xff] %v6380_v27  ;;  %v59_v6 = vld [vmem:[%s11585_s0 + $0x80] sm:$0xff]  ;;  %v60_v22 = vld [vmem:[%s11585_s0 + $0x88] sm:$0xff] }
  0x1b   :  { %5458 = vmatprep.mubr.msk.f32.mxu0 %vm41_vm0, %v6180_v34  ;;  %5593 = vmatprep.mubr.msk.f32.mxu1 %vm41_vm0, %v6197_v38  ;;  %v61_v41 = vld [vmem:[%s11585_s0 + $0x90] sm:$0xff] }
  0x1e   :  { %5459 = vmatmul.mubr.msk.f32.gmra.mrb[12].mxu0 %vm41_vm0, %v6185_v35  ;;  %5594 = vmatmul.mubr.msk.f32.gmra.mrb[12].mxu1 %vm41_vm0, %v6202_v39 }
  0x1f   :  { %5461 = vmatprep.mubr.msk.f32.mxu0 %vm41_vm0, %v6207_v40  ;;  %5596 = vmatprep.mubr.msk.f32.mxu1 %vm41_vm0, %v6222_v43 }
  0x22   :  { %5462 = vmatmul.mubr.msk.f32.gmra.mrb[14].mxu0 %vm41_vm0, %v6217_v42  ;;  %5597 = vmatmul.mubr.msk.f32.gmra.mrb[14].mxu1 %vm41_vm0, %v6227_v44 }
  0x23   :  { %5464 = vmatprep.mubr.msk.f32.mxu0 %vm41_vm0, %v59_v6  ;;  %5599 = vmatprep.mubr.msk.f32.mxu1 %vm41_vm0, %v6236_v47 }
  0x24   :  { %8 = vsyncpa [#allocation4], 0  ;;  %v62_v6 = vld [vmem:[%s11585_s0 + $0x98] sm:$0xff]  ;;  %v63_v52 = vld [vmem:[%s11585_s0 + $0xa0] sm:$0xff]  ;;  %vm1400_vm1 = vcmask 64512  }
  0x25   :  { %v156_v55 = vld [vmem:[%s11585_s0 + $0x388] sm:$0xff]  ;;  %v67_v0 = vld [vmem:[%s11585_s0 + $0xc0] sm:$0xff]  ;;  %v69_v61 = vld [vmem:[%s11585_s0 + $0xd0] sm:$0xff] }
  0x26   :  { %5465 = vmatmul.mubr.msk.f32.gmra.mrb[16].mxu0 %vm41_vm0, %v60_v22  ;;  %5600 = vmatmul.mubr.msk.f32.gmra.mrb[16].mxu1 %vm41_vm0, %v6241_v48  ;;  %v64_v22 = vld [vmem:[%s11585_s0 + $0xa8] sm:$0xff]  ;;  %v91_v58 = vld [vmem:[%s11585_s0 + $0x180] sm:$0xff]  ;;  %v6601_v45 = vld [vmem:[%s11585_s0 + $0x250] sm:$0xff] }
  0x27   :  { %5467 = vmatprep.mubr.msk.f32.mxu0 %vm41_vm0, %v61_v41  ;;  %5602 = vmatprep.mubr.msk.f32.mxu1 %vm41_vm0, %v6251_v50  ;;  %v65_v41 = vld [vmem:[%s11585_s0 + $0xb0] sm:$0xff]  ;;  %12216 = vst [vmem:[#allocation58_spill] sm:$0xff] %v6601_v45  ;;  %v6629_v37 = vld [vmem:[%s11585_s0 + $0x260] sm:$0xff]  ;;  %v6634_v26 = vld [vmem:[%s11585_s0 + $0x268] sm:$0xff] }
  0x28   :  { %v93_v32 = vld [vmem:[%s11585_s0 + $0x190] sm:$0xff]  ;;  %12218 = vst [vmem:[#allocation60_spill] sm:$0xff] %v6629_v37  ;;  %12219 = vst [vmem:[#allocation61_spill] sm:$0xff] %v6634_v26  ;;  %v99_v9 = vld [vmem:[%s11585_s0 + $0x1c0] sm:$0xff] }
  0x29   :  { %v97_v18 = vld [vmem:[%s11585_s0 + $0x1b0] sm:$0xff] }
  0x2a   :  { %5468 = vmatmul.mubr.msk.f32.gmra.mrb[18].mxu0 %vm41_vm0, %v62_v6  ;;  %5603 = vmatmul.mubr.msk.f32.gmra.mrb[18].mxu1 %vm41_vm0, %v6256_v51  ;;  %v155_v6 = vld [vmem:[%s11585_s0 + $0x380] sm:$0xff]  ;;  %v6649_v14 = vld [vmem:[%s11585_s0 + $0x270] sm:$0xff] }
  0x2b   :  { %5470 = vmatprep.mubr.msk.f32.mxu0 %vm41_vm0, %v63_v52  ;;  %5605 = vmatprep.mubr.msk.f32.mxu1 %vm41_vm0, %v6267_v53  ;;  %v66_v52 = vld [vmem:[%s11585_s0 + $0xb8] sm:$0xff]  ;;  %12220 = vst [vmem:[#allocation62_spill] sm:$0xff] %v6649_v14 }
  0x2e   :  { %5471 = vmatmul.mubr.msk.f32.gmra.mrb[20].mxu0 %vm41_vm0, %v64_v22  ;;  %5606 = vmatmul.mubr.msk.f32.gmra.mrb[20].mxu1 %vm41_vm0, %v6272_v54  ;;  %v157_v22 = vld [vmem:[%s11585_s0 + $0x390] sm:$0xff] }
  0x2f   :  { %5473 = vmatprep.mubr.msk.f32.mxu0 %vm41_vm0, %v65_v41  ;;  %5608 = vmatprep.mubr.msk.f32.mxu1 %vm41_vm0, %v155_v6  ;;  %v68_v41 = vld [vmem:[%s11585_s0 + $0xc8] sm:$0xff]  ;;  %v158_v6 = vld [vmem:[%s11585_s0 + $0x398] sm:$0xff] }
  0x32   :  { %5474 = vmatmul.mubr.msk.f32.gmra.mrb[22].mxu0 %vm41_vm0, %v66_v52  ;;  %5609 = vmatmul.mubr.msk.f32.gmra.mrb[22].mxu1 %vm41_vm0, %v156_v55  ;;  %v159_v55 = vld [vmem:[%s11585_s0 + $0x3a0] sm:$0xff]  ;;  %v160_v52 = vld [vmem:[%s11585_s0 + $0x3a8] sm:$0xff] }
  0x33   :  { %5476 = vmatprep.mubr.msk.f32.mxu0 %vm41_vm0, %v67_v0  ;;  %5611 = vmatprep.mubr.msk.f32.mxu1 %vm41_vm0, %v157_v22  ;;  %v70_v0 = vld [vmem:[%s11585_s0 + $0xd8] sm:$0xff]  ;;  %v71_v22 = vld [vmem:[%s11585_s0 + $0xe0] sm:$0xff] }
  0x36   :  { %5477 = vmatmul.mubr.msk.f32.gmra.mrb[24].mxu0 %vm41_vm0, %v68_v41  ;;  %5612 = vmatmul.mubr.msk.f32.gmra.mrb[24].mxu1 %vm41_vm0, %v158_v6  ;;  %v161_v41 = vld [vmem:[%s11585_s0 + $0x3b0] sm:$0xff]  ;;  %v162_v6 = vld [vmem:[%s11585_s0 + $0x3b8] sm:$0xff] }
  0x37   :  { %5479 = vmatprep.mubr.msk.f32.mxu0 %vm41_vm0, %v69_v61  ;;  %5614 = vmatprep.mubr.msk.f32.mxu1 %vm41_vm0, %v159_v55  ;;  %v72_v61 = vld [vmem:[%s11585_s0 + $0xe8] sm:$0xff]  ;;  %v73_v55 = vld [vmem:[%s11585_s0 + $0xf0] sm:$0xff] }
  0x3a   :  { %5480 = vmatmul.mubr.msk.f32.gmra.mrb[26].mxu0 %vm41_vm0, %v70_v0  ;;  %5615 = vmatmul.mubr.msk.f32.gmra.mrb[26].mxu1 %vm41_vm0, %v160_v52  ;;  %v163_v0 = vld [vmem:[%s11585_s0 + $0x3c0] sm:$0xff]  ;;  %v74_v52 = vld [vmem:[%s11585_s0 + $0xf8] sm:$0xff] }
  0x3b   :  { %5482 = vmatprep.mubr.msk.f32.mxu0 %vm41_vm0, %v71_v22  ;;  %5617 = vmatprep.mubr.msk.f32.mxu1 %vm41_vm0, %v161_v41  ;;  %v164_v22 = vld [vmem:[%s11585_s0 + $0x3c8] sm:$0xff]  ;;  %v165_v41 = vld [vmem:[%s11585_s0 + $0x3d0] sm:$0xff] }
  0x3e   :  { %5483 = vmatmul.mubr.msk.f32.gmra.mrb[28].mxu0 %vm41_vm0, %v72_v61  ;;  %5618 = vmatmul.mubr.msk.f32.gmra.mrb[28].mxu1 %vm41_vm0, %v162_v6  ;;  %v166_v61 = vld [vmem:[%s11585_s0 + $0x3d8] sm:$0xff]  ;;  %v167_v6 = vld [vmem:[%s11585_s0 + $0x3e0] sm:$0xff] }
  0x3f   :  { %5485 = vmatprep.mubr.msk.f32.mxu0 %vm41_vm0, %v73_v55  ;;  %5620 = vmatprep.mubr.msk.f32.mxu1 %vm41_vm0, %v163_v0  ;;  %v168_v55 = vld [vmem:[%s11585_s0 + $0x3e8] sm:$0xff]  ;;  %v169_v0 = vld [vmem:[%s11585_s0 + $0x3f0] sm:$0xff] }
  0x42   :  { %5486 = vmatmul.mubr.msk.f32.gmra.mrb[30].mxu0 %vm41_vm0, %v74_v52  ;;  %5621 = vmatmul.mubr.msk.f32.gmra.mrb[30].mxu1 %vm41_vm0, %v164_v22  ;;  %v170_v52 = vld [vmem:[%s11585_s0 + $0x3f8] sm:$0xff]  ;;  %v6565_v22 = vld [vmem:[%s11585_s0 + $0x230] sm:$0xff] }
  0x43   :  { %5488 = vmatprep.mubr.msk.f32.mxu0 %vm41_vm0, %v6295_v56  ;;  %5623 = vmatprep.mubr.msk.f32.mxu1 %vm41_vm0, %v165_v41  ;;  %12212 = vst [vmem:[#allocation54_spill] sm:$0xff] %v6565_v22  ;;  %v6570_v41 = vld [vmem:[%s11585_s0 + $0x238] sm:$0xff] }
  0x44   :  { %12213 = vst [vmem:[#allocation55_spill] sm:$0xff] %v6570_v41 }
  0x46   :  { %5489 = vmatmul.mubr.msk.f32.gmra.mrb[32].mxu0 %vm41_vm0, %v6300_v57  ;;  %5624 = vmatmul.mubr.msk.f32.gmra.mrb[32].mxu1 %vm41_vm0, %v166_v61  ;;  %v89_v61 = vld [vmem:[%s11585_s0 + $0x170] sm:$0xff] }
  0x47   :  { %5491 = vmatprep.mubr.msk.f32.mxu0 %vm41_vm0, %v6307_v59  ;;  %5626 = vmatprep.mubr.msk.f32.mxu1 %vm41_vm0, %v167_v6  ;;  %v92_v6 = vld [vmem:[%s11585_s0 + $0x188] sm:$0xff] }
  0x4a   :  { %5492 = vmatmul.mubr.msk.f32.gmra.mrb[34].mxu0 %vm41_vm0, %v6312_v60  ;;  %5627 = vmatmul.mubr.msk.f32.gmra.mrb[34].mxu1 %vm41_vm0, %v168_v55  ;;  %v6582_v55 = vld [vmem:[%s11585_s0 + $0x240] sm:$0xff] }
  0x4b   :  { %5494 = vmatprep.mubr.msk.f32.mxu0 %vm41_vm0, %v6319_v62  ;;  %5629 = vmatprep.mubr.msk.f32.mxu1 %vm41_vm0, %v169_v0  ;;  %12214 = vst [vmem:[#allocation56_spill] sm:$0xff] %v6582_v55  ;;  %v6587_v0 = vld [vmem:[%s11585_s0 + $0x248] sm:$0xff] }
  0x4c   :  { %12215 = vst [vmem:[#allocation57_spill] sm:$0xff] %v6587_v0 }
  0x4e   :  { %5495 = vmatmul.mubr.msk.f32.gmra.mrb[36].mxu0 %vm41_vm0, %v6324_v63  ;;  %5630 = vmatmul.mubr.msk.f32.gmra.mrb[36].mxu1 %vm41_vm0, %v170_v52  ;;  %v90_v52 = vld [vmem:[%s11585_s0 + $0x178] sm:$0xff] }
  0x4f   :  { %5497 = vmatprep.mubr.msk.f32.mxu0 %vm41_vm0, %v6335_v10 }
  0x52   :  { %5498 = vmatmul.mubr.msk.f32.gmra.mrb[38].mxu0 %vm41_vm0, %v6344_v13 }
  0x53   :  { %5500 = vmatprep.mubr.msk.f32.mxu0 %vm41_vm0, %v6349_v17 }
  0x56   :  { %5501 = vmatmul.mubr.msk.f32.gmra.mrb[40].mxu0 %vm41_vm0, %v6354_v31 }
  0x57   :  { %5503 = vmatprep.mubr.msk.f32.mxu0 %vm41_vm0, %v6363_v49 }
  0x5a   :  { %5504 = vmatmul.mubr.msk.f32.gmra.mrb[42].mxu0 %vm41_vm0, %v6368_v46 }
  0x5b   :  { %5506 = vmatprep.mubr.msk.f32.mxu0 %vm41_vm0, %v6375_v36 }
  0x5e   :  { %5507 = vmatmul.mubr.msk.f32.gmra.mrb[44].mxu0 %vm41_vm0, %v6380_v27 }
  0x5f   :  { %5509 = vmatprep.mubr.msk.f32.mxu0 %vm41_vm0, %v89_v61  ;;  %v6606_v61 = vld [vmem:[%s11585_s0 + $0x258] sm:$0xff] }
  0x60   :  { %12217 = vst [vmem:[#allocation59_spill] sm:$0xff] %v6606_v61 }
  0x62   :  { %5510 = vmatmul.mubr.msk.f32.gmra.mrb[46].mxu0 %vm41_vm0, %v90_v52  ;;  %v94_v52 = vld [vmem:[%s11585_s0 + $0x198] sm:$0xff] }
  0x63   :  { %5512 = vmatprep.mubr.msk.f32.mxu0 %vm41_vm0, %v91_v58  ;;  %v95_v58 = vld [vmem:[%s11585_s0 + $0x1a0] sm:$0xff] }
  0x66   :  { %5513 = vmatmul.mubr.msk.f32.gmra.mrb[48].mxu0 %vm41_vm0, %v92_v6  ;;  %v96_v6 = vld [vmem:[%s11585_s0 + $0x1a8] sm:$0xff] }
  0x67   :  { %5515 = vmatprep.mubr.msk.f32.mxu0 %vm41_vm0, %v93_v32  ;;  %v98_v32 = vld [vmem:[%s11585_s0 + $0x1b8] sm:$0xff] }
  0x6a   :  { %5516 = vmatmul.mubr.msk.f32.gmra.mrb[50].mxu0 %vm41_vm0, %v94_v52  ;;  %v6654_v52 = vld [vmem:[%s11585_s0 + $0x278] sm:$0xff] }
  0x6b   :  { %5518 = vmatprep.mubr.msk.f32.mxu0 %vm41_vm0, %v95_v58  ;;  %12221 = vst [vmem:[#allocation63_spill] sm:$0xff] %v6654_v52  ;;  %v102_v58 = vld [vmem:[%s11585_s0 + $0x1d8] sm:$0xff] }
  0x6e   :  { %5519 = vmatmul.mubr.msk.f32.gmra.mrb[52].mxu0 %vm41_vm0, %v96_v6  ;;  %v100_v6 = vld [vmem:[%s11585_s0 + $0x1c8] sm:$0xff] }
  0x6f   :  { %5521 = vmatprep.mubr.msk.f32.mxu0 %vm41_vm0, %v97_v18  ;;  %v101_v18 = vld [vmem:[%s11585_s0 + $0x1d0] sm:$0xff] }
  0x72   :  { %5522 = vmatmul.mubr.msk.f32.gmra.mrb[54].mxu0 %vm41_vm0, %v98_v32  ;;  %v104_v32 = vld [vmem:[%s11585_s0 + $0x1e8] sm:$0xff] }
  0x73   :  { %5524 = vmatprep.mubr.msk.f32.mxu0 %vm41_vm0, %v99_v9  ;;  %v103_v9 = vld [vmem:[%s11585_s0 + $0x1e0] sm:$0xff] }
  0x76   :  { %5525 = vmatmul.mubr.msk.f32.gmra.mrb[56].mxu0 %vm41_vm0, %v100_v6  ;;  %v105_v6 = vld [vmem:[%s11585_s0 + $0x1f0] sm:$0xff] }
  0x77   :  { %5527 = vmatprep.mubr.msk.f32.mxu0 %vm41_vm0, %v101_v18  ;;  %v106_v18 = vld [vmem:[%s11585_s0 + $0x1f8] sm:$0xff] }
  0x7a   :  { %5528 = vmatmul.mubr.msk.f32.gmra.mrb[58].mxu0 %vm41_vm0, %v102_v58  ;;  %v107_v58 = vld [vmem:[%s11585_s0 + $0x200] sm:$0xff] }
  0x7b   :  { %5530 = vmatprep.mubr.msk.f32.mxu0 %vm41_vm0, %v103_v9  ;;  %v108_v9 = vld [vmem:[%s11585_s0 + $0x208] sm:$0xff] }
  0x7e   :  { %5531 = vmatmul.mubr.msk.f32.gmra.mrb[60].mxu0 %vm41_vm0, %v104_v32  ;;  %v109_v32 = vld [vmem:[%s11585_s0 + $0x210] sm:$0xff] }
  0x7f   :  { %5533 = vmatprep.mubr.msk.f32.mxu0 %vm41_vm0, %v105_v6  ;;  %v110_v6 = vld [vmem:[%s11585_s0 + $0x218] sm:$0xff] }
  0x82   :  { %5534 = vmatmul.mubr.msk.f32.gmra.mrb[62].mxu0 %vm41_vm0, %v106_v18  ;;  %v111_v18 = vld [vmem:[%s11585_s0 + $0x220] sm:$0xff] }
  0x83   :  { %5536 = vmatprep.mubr.msk.f32.mxu0 %vm41_vm0, %v107_v58  ;;  %v112_v58 = vld [vmem:[%s11585_s0 + $0x228] sm:$0xff] }
  0x86   :  { %5537 = vmatmul.mubr.msk.f32.gmra.mrb[64].mxu0 %vm41_vm0, %v108_v9  ;;  %v123_v9 = vld [vmem:[%s11585_s0 + $0x280] sm:$0xff] }
  0x87   :  { %5539 = vmatprep.mubr.msk.f32.mxu0 %vm41_vm0, %v109_v32  ;;  %v124_v32 = vld [vmem:[%s11585_s0 + $0x288] sm:$0xff] }
  0x8a   :  { %5540 = vmatmul.mubr.msk.f32.gmra.mrb[66].mxu0 %vm41_vm0, %v110_v6  ;;  %v125_v6 = vld [vmem:[%s11585_s0 + $0x290] sm:$0xff] }
  0x8b   :  { %5542 = vmatprep.mubr.msk.f32.mxu0 %vm41_vm0, %v111_v18  ;;  %v126_v18 = vld [vmem:[%s11585_s0 + $0x298] sm:$0xff] }
  0x8e   :  { %5543 = vmatmul.mubr.msk.f32.gmra.mrb[68].mxu0 %vm41_vm0, %v112_v58  ;;  %v127_v58 = vld [vmem:[%s11585_s0 + $0x2a0] sm:$0xff] }
  0x8f   :  { %5545 = vmatprep.mubr.msk.f32.mxu0 %vm41_vm0, %v6565_v22 }
  0x92   :  { %5546 = vmatmul.mubr.msk.f32.gmra.mrb[70].mxu0 %vm41_vm0, %v6570_v41 }
  0x93   :  { %5548 = vmatprep.mubr.msk.f32.mxu0 %vm41_vm0, %v6582_v55 }
  0x96   :  { %5549 = vmatmul.mubr.msk.f32.gmra.mrb[72].mxu0 %vm41_vm0, %v6587_v0 }
  0x97   :  { %5551 = vmatprep.mubr.msk.f32.mxu0 %vm41_vm0, %v6601_v45 }
  0x9a   :  { %5552 = vmatmul.mubr.msk.f32.gmra.mrb[74].mxu0 %vm41_vm0, %v6606_v61 }
  0x9b   :  { %5554 = vmatprep.mubr.msk.f32.mxu0 %vm41_vm0, %v6629_v37 }
  0x9e   :  { %5555 = vmatmul.mubr.msk.f32.gmra.mrb[76].mxu0 %vm41_vm0, %v6634_v26 }
  0x9f   :  { %5557 = vmatprep.mubr.msk.f32.mxu0 %vm41_vm0, %v6649_v14 }
  0xa2   :  { %5558 = vmatmul.mubr.msk.f32.gmra.mrb[78].mxu0 %vm41_vm0, %v6654_v52 }
  0xa3   :  { %5560 = vmatprep.mubr.msk.f32.mxu0 %vm41_vm0, %v123_v9  ;;  %v128_v9 = vld [vmem:[%s11585_s0 + $0x2a8] sm:$0xff] }
  0xa6   :  { %5561 = vmatmul.mubr.msk.f32.gmra.mrb[80].mxu0 %vm41_vm0, %v124_v32  ;;  %v129_v32 = vld [vmem:[%s11585_s0 + $0x2b0] sm:$0xff] }
  0xa7   :  { %5563 = vmatprep.mubr.msk.f32.mxu0 %vm41_vm0, %v125_v6  ;;  %v130_v6 = vld [vmem:[%s11585_s0 + $0x2b8] sm:$0xff] }
  0xaa   :  { %5564 = vmatmul.mubr.msk.f32.gmra.mrb[82].mxu0 %vm41_vm0, %v126_v18  ;;  %v131_v18 = vld [vmem:[%s11585_s0 + $0x2c0] sm:$0xff] }
  0xab   :  { %5566 = vmatprep.mubr.msk.f32.mxu0 %vm41_vm0, %v127_v58  ;;  %v132_v58 = vld [vmem:[%s11585_s0 + $0x2c8] sm:$0xff] }
  0xae   :  { %5567 = vmatmul.mubr.msk.f32.gmra.mrb[84].mxu0 %vm41_vm0, %v128_v9  ;;  %v6783_v9 = vld [vmem:[%s11587_s2] ss:$0 sm:$0xff] }
  0xaf   :  { %5569 = vmatprep.mubr.msk.f32.mxu0 %vm41_vm0, %v129_v32 }
  0xb2   :  { %5570 = vmatmul.mubr.msk.f32.gmra.mrb[86].mxu0 %vm41_vm0, %v130_v6 }
  0xb3   :  { %5572 = vmatprep.mubr.msk.f32.mxu0 %vm41_vm0, %v131_v18 }
  0xb6   :  { %5573 = vmatmul.mubr.msk.f32.gmra.mrb[88].mxu0 %vm41_vm0, %v132_v58 }
  0xd9   :  { %v5442_v32 = vpop.f32.mrb[0].mxu0  ;;  %v5577_v3 = vpop.f32.mrb[0].mxu1 }
  0xda   :  { %v6786_v53 = vsub.f32 %v6783_v9, %v5442_v32  ;;  %v6789_v6 = vsub.f32 %v6783_v9, %v5577_v3  ;;  %v627_v18 = vpop.f32.mrb[1].mxu0  ;;  %v1077_v54 = vpop.f32.mrb[1].mxu1 }
  0xdb   :  { %v6792_v50 = vsub.f32 %v6783_v9, %v627_v18  ;;  %v6802_v3 = vsub.f32 %v6783_v9, %v1077_v54 }
  0xdc   :  { %12222 = vst [vmem:[#allocation64_spill] sm:$0xff] %v6789_v6  ;;  %v1674_v58 = vsel %vm1400_vm1, %v6789_v6, inf  ;;  %v1404_v51 = vsel %vm1400_vm1, %v6786_v53, inf }
  0xdd   :  { %1675 = vmin.xlane.f32.xlu1 %v1674_v58  ;;  %1405 = vmin.xlane.f32.xlu0 %v1404_v51  ;;  %v5445_v47 = vpop.f32.mrb[2].mxu0  ;;  %v5580_v48 = vpop.f32.mrb[2].mxu1  ;;  %12223 = vst [vmem:[#allocation65_spill] sm:$0xff] %v6802_v3  ;;  %v1401_v38 = vsel %vm1400_vm1, %v6792_v50, inf }
  0xde   :  { %v6799_v32 = vsub.f32 %v6783_v9, %v5445_v47  ;;  %v6805_v43 = vsub.f32 %v6783_v9, %v5580_v48  ;;  %v637_v18 = vpop.f32.mrb[3].mxu0  ;;  %v1087_v44 = vpop.f32.mrb[3].mxu1  ;;  %v1671_v48 = vsel %vm1400_vm1, %v6802_v3, inf }
  0xdf   :  { %v6812_v47 = vsub.f32 %v6783_v9, %v637_v18  ;;  %v6815_v54 = vsub.f32 %v6783_v9, %v1087_v44 }
  0xe0   :  { %12224 = vst [vmem:[#allocation66_spill] sm:$0xff] %v6805_v43  ;;  %v1410_v58 = vsel %vm1400_vm1, %v6799_v32, inf  ;;  %v1680_v30 = vsel %vm1400_vm1, %v6805_v43, inf }
  0xe1   :  { %1402 = vmin.xlane.f32.xlu0 %v1401_v38  ;;  %1411 = vmin.xlane.f32.xlu1 %v1410_v58  ;;  %v5448_v51 = vpop.f32.mrb[4].mxu0  ;;  %v5583_v39 = vpop.f32.mrb[4].mxu1  ;;  %12225 = vst [vmem:[#allocation67_spill] sm:$0xff] %v6815_v54  ;;  %v1677_v44 = vsel %vm1400_vm1, %v6815_v54, inf  ;;  %v1407_v19 = vsel %vm1400_vm1, %v6812_v47, inf }
  0xe2   :  { %v647_v33 = vpop.f32.mrb[5].mxu0  ;;  %v1097_v24 = vpop.f32.mrb[5].mxu1  ;;  %v6822_v25 = vsub.f32 %v6783_v9, %v5448_v51  ;;  %v6832_v52 = vsub.f32 %v6783_v9, %v5583_v39 }
  0xe3   :  { %v6825_v18 = vsub.f32 %v6783_v9, %v647_v33  ;;  %v6835_v51 = vsub.f32 %v6783_v9, %v1097_v24 }
  0xe4   :  { %12226 = vst [vmem:[#allocation68_spill] sm:$0xff] %v6832_v52  ;;  %v1416_v33 = vsel %vm1400_vm1, %v6822_v25, inf  ;;  %v1686_v24 = vsel %vm1400_vm1, %v6832_v52, inf }
  0xe5   :  { %1672 = vmin.xlane.f32.xlu0 %v1671_v48  ;;  %1681 = vmin.xlane.f32.xlu1 %v1680_v30  ;;  %v5451_v38 = vpop.f32.mrb[6].mxu0  ;;  %v5586_v58 = vpop.f32.mrb[6].mxu1  ;;  %12227 = vst [vmem:[#allocation69_spill] sm:$0xff] %v6835_v51  ;;  %v1413_v37 = vsel %vm1400_vm1, %v6825_v18, inf  ;;  %v1683_v4 = vsel %vm1400_vm1, %v6835_v51, inf }
  0xe6   :  { %v657_v20 = vpop.f32.mrb[7].mxu0  ;;  %v1107_v14 = vpop.f32.mrb[7].mxu1  ;;  %v6842_v61 = vsub.f32 %v6783_v9, %v5451_v38  ;;  %v6852_v0 = vsub.f32 %v6783_v9, %v5586_v58 }
  0xe7   :  { %v6845_v39 = vsub.f32 %v6783_v9, %v657_v20  ;;  %v6855_v38 = vsub.f32 %v6783_v9, %v1107_v14 }
  0xe8   :  { %12228 = vst [vmem:[#allocation70_spill] sm:$0xff] %v6852_v0  ;;  %v1422_v20 = vsel %vm1400_vm1, %v6842_v61, inf  ;;  %v1692_v14 = vsel %vm1400_vm1, %v6852_v0, inf }
  0xe9   :  { %1678 = vmin.xlane.f32.xlu0 %v1677_v44  ;;  %1408 = vmin.xlane.f32.xlu1 %v1407_v19  ;;  %v5454_v48 = vpop.f32.mrb[8].mxu0  ;;  %v5589_v30 = vpop.f32.mrb[8].mxu1  ;;  %12229 = vst [vmem:[#allocation71_spill] sm:$0xff] %v6855_v38  ;;  %v1419_v22 = vsel %vm1400_vm1, %v6845_v39, inf  ;;  %v1689_v49 = vsel %vm1400_vm1, %v6855_v38, inf }
  0xea   :  { %v667_v26 = vpop.f32.mrb[9].mxu0  ;;  %v1117_v45 = vpop.f32.mrb[9].mxu1  ;;  %v6864_v27 = vsub.f32 %v6783_v9, %v5454_v48  ;;  %v6880_v48 = vsub.f32 %v6783_v9, %v5589_v30 }
  0xeb   :  { %v6867_v58 = vsub.f32 %v6783_v9, %v667_v26  ;;  %v6883_v26 = vsub.f32 %v6783_v9, %v1117_v45 }
  0xec   :  { %12230 = vst [vmem:[#allocation72_spill] sm:$0xff] %v6880_v48  ;;  %v1428_v31 = vsel %vm1400_vm1, %v6864_v27, inf  ;;  %v1698_v63 = vsel %vm1400_vm1, %v6880_v48, inf }
  0xed   :  { %1417 = vmin.xlane.f32.xlu1 %v1416_v33  ;;  %1414 = vmin.xlane.f32.xlu0 %v1413_v37  ;;  %v5457_v44 = vpop.f32.mrb[10].mxu0  ;;  %v5592_v19 = vpop.f32.mrb[10].mxu1  ;;  %12231 = vst [vmem:[#allocation73_spill] sm:$0xff] %v6883_v26  ;;  %v1425_v10 = vsel %vm1400_vm1, %v6867_v58, inf  ;;  %v1695_v59 = vsel %vm1400_vm1, %v6883_v26, inf }
  0xee   :  { %v677_v5 = vpop.f32.mrb[11].mxu0  ;;  %v1127_v55 = vpop.f32.mrb[11].mxu1  ;;  %v6898_v30 = vsub.f32 %v6783_v9, %v5457_v44  ;;  %v6916_v44 = vsub.f32 %v6783_v9, %v5592_v19 }
  0xef   :  { %v6901_v45 = vsub.f32 %v6783_v9, %v677_v5  ;;  %v6919_v5 = vsub.f32 %v6783_v9, %v1127_v55 }
  0xf0   :  { %12232 = vst [vmem:[#allocation74_spill] sm:$0xff] %v6898_v30  ;;  %12234 = vst [vmem:[#allocation76_spill] sm:$0xff] %v6916_v44  ;;  %v1434_v57 = vsel %vm1400_vm1, %v6898_v30, inf  ;;  %v1704_v35 = vsel %vm1400_vm1, %v6916_v44, inf }
  0xf1   :  { %1687 = vmin.xlane.f32.xlu1 %v1686_v24  ;;  %1684 = vmin.xlane.f32.xlu0 %v1683_v4  ;;  %v5460_v33 = vpop.f32.mrb[12].mxu0  ;;  %v5595_v37 = vpop.f32.mrb[12].mxu1  ;;  %12233 = vst [vmem:[#allocation75_spill] sm:$0xff] %v6901_v45  ;;  %12235 = vst [vmem:[#allocation77_spill] sm:$0xff] %v6919_v5  ;;  %v1431_v40 = vsel %vm1400_vm1, %v6901_v45, inf  ;;  %v1701_v28 = vsel %vm1400_vm1, %v6919_v5, inf }
  0xf2   :  { %v687_v41 = vpop.f32.mrb[13].mxu0  ;;  %v1137_v36 = vpop.f32.mrb[13].mxu1  ;;  %v6934_v19 = vsub.f32 %v6783_v9, %v5460_v33  ;;  %v6952_v33 = vsub.f32 %v6783_v9, %v5595_v37 }
  0xf3   :  { %v6937_v55 = vsub.f32 %v6783_v9, %v687_v41  ;;  %v6955_v41 = vsub.f32 %v6783_v9, %v1137_v36 }
  0xf4   :  { %12236 = vst [vmem:[#allocation78_spill] sm:$0xff] %v6934_v19  ;;  %12238 = vst [vmem:[#allocation80_spill] sm:$0xff] %v6952_v33  ;;  %v1440_v23 = vsel %vm1400_vm1, %v6934_v19, inf  ;;  %v1710_v12 = vsel %vm1400_vm1, %v6952_v33, inf }
  0xf5   :  { %1423 = vmin.xlane.f32.xlu1 %v1422_v20  ;;  %1420 = vmin.xlane.f32.xlu0 %v1419_v22  ;;  %v5463_v24 = vpop.f32.mrb[14].mxu0  ;;  %v6861_v4 = vpop.f32.mrb[14].mxu1  ;;  %12237 = vst [vmem:[#allocation79_spill] sm:$0xff] %v6937_v55  ;;  %12239 = vst [vmem:[#allocation81_spill] sm:$0xff] %v6955_v41  ;;  %v1437_v15 = vsel %vm1400_vm1, %v6937_v55, inf  ;;  %v1707_v7 = vsel %vm1400_vm1, %v6955_v41, inf }
  0xf6   :  { %v697_v46 = vpop.f32.mrb[15].mxu0  ;;  %v6873_v17 = vpop.f32.mrb[15].mxu1  ;;  %v6970_v37 = vsub.f32 %v6783_v9, %v5463_v24 }
  0xf7   :  { %v6973_v36 = vsub.f32 %v6783_v9, %v697_v46  ;;  %v6989_v46 = vsub.f32 %v6783_v9, %v6861_v4  ;;  %v6993_v24 = vsub.f32 %v6783_v9, %v6873_v17 }
  0xf8   :  { %12240 = vst [vmem:[#allocation82_spill] sm:$0xff] %v6970_v37  ;;  %v1446_v2 = vsel %vm1400_vm1, %v6970_v37, inf }
  0xf9   :  { %1693 = vmin.xlane.f32.xlu1 %v1692_v14  ;;  %1690 = vmin.xlane.f32.xlu0 %v1689_v49  ;;  %v6875_v22 = vpop.f32.mrb[16].mxu0  ;;  %v6877_v20 = vpop.f32.mrb[16].mxu1  ;;  %12241 = vst [vmem:[#allocation83_spill] sm:$0xff] %v6973_v36  ;;  %12242 = vst [vmem:[#allocation84_spill] sm:$0xff] %v6989_v46  ;;  %v1443_v52 = vsel %vm1400_vm1, %v6973_v36, inf  ;;  %v1716_v3 = vsel %vm1400_vm1, %v6989_v46, inf }
  0xfa   :  { %v6889_v13 = vpop.f32.mrb[17].mxu0  ;;  %v6891_v14 = vpop.f32.mrb[17].mxu1  ;;  %12243 = vst [vmem:[#allocation85_spill] sm:$0xff] %v6993_v24  ;;  %v7009_v17 = vsub.f32 %v6783_v9, %v6875_v22  ;;  %v1713_v33 = vsel %vm1400_vm1, %v6993_v24, inf }
  0xfb   :  { %v7013_v54 = vsub.f32 %v6783_v9, %v6889_v13  ;;  %v7029_v13 = vsub.f32 %v6783_v9, %v6877_v20  ;;  %v7033_v46 = vsub.f32 %v6783_v9, %v6891_v14 }
  0xfc   :  { %12244 = vst [vmem:[#allocation86_spill] sm:$0xff] %v7009_v17  ;;  %v1452_v24 = vsel %vm1400_vm1, %v7009_v17, inf }
  0xfd   :  { %1429 = vmin.xlane.f32.xlu1 %v1428_v31  ;;  %1426 = vmin.xlane.f32.xlu0 %v1425_v10  ;;  %v6893_v49 = vpop.f32.mrb[18].mxu0  ;;  %v6895_v62 = vpop.f32.mrb[18].mxu1  ;;  %12245 = vst [vmem:[#allocation87_spill] sm:$0xff] %v7013_v54  ;;  %12246 = vst [vmem:[#allocation88_spill] sm:$0xff] %v7029_v13  ;;  %v1449_v44 = vsel %vm1400_vm1, %v7013_v54, inf  ;;  %v1722_v26 = vsel %vm1400_vm1, %v7029_v13, inf }
  0xfe   :  { %v6907_v60 = vpop.f32.mrb[19].mxu0  ;;  %v6909_v31 = vpop.f32.mrb[19].mxu1  ;;  %12247 = vst [vmem:[#allocation89_spill] sm:$0xff] %v7033_v46  ;;  %v7049_v14 = vsub.f32 %v6783_v9, %v6893_v49  ;;  %v1719_v0 = vsel %vm1400_vm1, %v7033_v46, inf }
  0xff   :  { %v7053_v48 = vsub.f32 %v6783_v9, %v6907_v60  ;;  %v7069_v60 = vsub.f32 %v6783_v9, %v6895_v62  ;;  %v7073_v13 = vsub.f32 %v6783_v9, %v6909_v31 }
 0x100   :  { %12248 = vst [vmem:[#allocation90_spill] sm:$0xff] %v7049_v14  ;;  %v1458_v46 = vsel %vm1400_vm1, %v7049_v14, inf }
 0x101   :  { %1699 = vmin.xlane.f32.xlu1 %v1698_v63  ;;  %1696 = vmin.xlane.f32.xlu0 %v1695_v59  ;;  %v6911_v10 = vpop.f32.mrb[20].mxu0  ;;  %v6913_v56 = vpop.f32.mrb[20].mxu1  ;;  %12249 = vst [vmem:[#allocation91_spill] sm:$0xff] %v7053_v48  ;;  %12250 = vst [vmem:[#allocation92_spill] sm:$0xff] %v7069_v60  ;;  %v1455_v43 = vsel %vm1400_vm1, %v7053_v48, inf  ;;  %v1728_v14 = vsel %vm1400_vm1, %v7069_v60, inf }
 0x102   :  { %v6925_v42 = vpop.f32.mrb[21].mxu0  ;;  %v6927_v63 = vpop.f32.mrb[21].mxu1  ;;  %12251 = vst [vmem:[#allocation93_spill] sm:$0xff] %v7073_v13  ;;  %v7087_v62 = vsub.f32 %v6783_v9, %v6911_v10  ;;  %v1725_v48 = vsel %vm1400_vm1, %v7073_v13, inf  ;;  %v7103_v10 = vsub.f32 %v6783_v9, %v6913_v56 }
 0x103   :  { %v7091_v31 = vsub.f32 %v6783_v9, %v6925_v42  ;;  %v7107_v42 = vsub.f32 %v6783_v9, %v6927_v63 }
 0x104   :  { %12252 = vst [vmem:[#allocation94_spill] sm:$0xff] %v7087_v62  ;;  %12254 = vst [vmem:[#allocation96_spill] sm:$0xff] %v7103_v10 }
 0x105   :  { %1435 = vmin.xlane.f32.xlu1 %v1434_v57  ;;  %1432 = vmin.xlane.f32.xlu0 %v1431_v40  ;;  %v6929_v59 = vpop.f32.mrb[22].mxu0  ;;  %v6931_v34 = vpop.f32.mrb[22].mxu1  ;;  %12253 = vst [vmem:[#allocation95_spill] sm:$0xff] %v7091_v31  ;;  %12255 = vst [vmem:[#allocation97_spill] sm:$0xff] %v7107_v42  ;;  %v1461_v60 = vsel %vm1400_vm1, %v7091_v31, inf  ;;  %v1731_v31 = vsel %vm1400_vm1, %v7107_v42, inf }
 0x106   :  { %v6943_v29 = vpop.f32.mrb[23].mxu0  ;;  %v6945_v57 = vpop.f32.mrb[23].mxu1  ;;  %v7119_v56 = vsub.f32 %v6783_v9, %v6929_v59  ;;  %v7135_v59 = vsub.f32 %v6783_v9, %v6931_v34 }
 0x107   :  { %v7123_v63 = vsub.f32 %v6783_v9, %v6943_v29  ;;  %v7139_v29 = vsub.f32 %v6783_v9, %v6945_v57 }
 0x108   :  { %12256 = vst [vmem:[#allocation98_spill] sm:$0xff] %v7119_v56  ;;  %12258 = vst [vmem:[#allocation100_spill] sm:$0xff] %v7135_v59 }
 0x109   :  { %1705 = vmin.xlane.f32.xlu1 %v1704_v35  ;;  %1702 = vmin.xlane.f32.xlu0 %v1701_v28  ;;  %v6947_v40 = vpop.f32.mrb[24].mxu0  ;;  %v6949_v21 = vpop.f32.mrb[24].mxu1  ;;  %12257 = vst [vmem:[#allocation99_spill] sm:$0xff] %v7123_v63  ;;  %12259 = vst [vmem:[#allocation101_spill] sm:$0xff] %v7139_v29 }
 0x10a   :  { %v6961_v16 = vpop.f32.mrb[25].mxu0  ;;  %v6963_v35 = vpop.f32.mrb[25].mxu1  ;;  %v7151_v34 = vsub.f32 %v6783_v9, %v6947_v40  ;;  %v7167_v40 = vsub.f32 %v6783_v9, %v6949_v21 }
 0x10b   :  { %v7155_v57 = vsub.f32 %v6783_v9, %v6961_v16  ;;  %v7171_v16 = vsub.f32 %v6783_v9, %v6963_v35 }
 0x10c   :  { %12260 = vst [vmem:[#allocation102_spill] sm:$0xff] %v7151_v34  ;;  %12262 = vst [vmem:[#allocation104_spill] sm:$0xff] %v7167_v40 }
 0x10d   :  { %1441 = vmin.xlane.f32.xlu1 %v1440_v23  ;;  %1438 = vmin.xlane.f32.xlu0 %v1437_v15  ;;  %v6965_v28 = vpop.f32.mrb[26].mxu0  ;;  %v6967_v11 = vpop.f32.mrb[26].mxu1  ;;  %12261 = vst [vmem:[#allocation103_spill] sm:$0xff] %v7155_v57  ;;  %12263 = vst [vmem:[#allocation105_spill] sm:$0xff] %v7171_v16 }
 0x10e   :  { %v6979_v8 = vpop.f32.mrb[27].mxu0  ;;  %v6981_v23 = vpop.f32.mrb[27].mxu1  ;;  %v7183_v21 = vsub.f32 %v6783_v9, %v6965_v28  ;;  %v7199_v28 = vsub.f32 %v6783_v9, %v6967_v11 }
 0x10f   :  { %v7187_v35 = vsub.f32 %v6783_v9, %v6979_v8  ;;  %v7203_v8 = vsub.f32 %v6783_v9, %v6981_v23 }
 0x110   :  { %12264 = vst [vmem:[#allocation106_spill] sm:$0xff] %v7183_v21  ;;  %12266 = vst [vmem:[#allocation108_spill] sm:$0xff] %v7199_v28 }
 0x111   :  { %1711 = vmin.xlane.f32.xlu1 %v1710_v12  ;;  %1708 = vmin.xlane.f32.xlu0 %v1707_v7  ;;  %v6983_v15 = vpop.f32.mrb[28].mxu0  ;;  %v6985_v1 = vpop.f32.mrb[28].mxu1  ;;  %12265 = vst [vmem:[#allocation107_spill] sm:$0xff] %v7187_v35  ;;  %12267 = vst [vmem:[#allocation109_spill] sm:$0xff] %v7203_v8 }
 0x112   :  { %v6999_v12 = vpop.f32.mrb[29].mxu0  ;;  %v7001_v7 = vpop.f32.mrb[29].mxu1  ;;  %v7215_v11 = vsub.f32 %v6783_v9, %v6983_v15  ;;  %v7231_v15 = vsub.f32 %v6783_v9, %v6985_v1 }
 0x113   :  { %v7219_v23 = vsub.f32 %v6783_v9, %v6999_v12  ;;  %v7235_v12 = vsub.f32 %v6783_v9, %v7001_v7 }
 0x114   :  { %12268 = vst [vmem:[#allocation110_spill] sm:$0xff] %v7215_v11  ;;  %12270 = vst [vmem:[#allocation112_spill] sm:$0xff] %v7231_v15 }
 0x115   :  { %1447 = vmin.xlane.f32.xlu1 %v1446_v2  ;;  %1444 = vmin.xlane.f32.xlu0 %v1443_v52  ;;  %v7003_v51 = vpop.f32.mrb[30].mxu0  ;;  %v7005_v4 = vpop.f32.mrb[30].mxu1  ;;  %12269 = vst [vmem:[#allocation111_spill] sm:$0xff] %v7219_v23  ;;  %12271 = vst [vmem:[#allocation113_spill] sm:$0xff] %v7235_v12 }
 0x116   :  { %v7019_v2 = vpop.f32.mrb[31].mxu0  ;;  %v7021_v52 = vpop.f32.mrb[31].mxu1  ;;  %v7247_v1 = vsub.f32 %v6783_v9, %v7003_v51  ;;  %v7263_v51 = vsub.f32 %v6783_v9, %v7005_v4 }
 0x117   :  { %v7251_v7 = vsub.f32 %v6783_v9, %v7019_v2  ;;  %v7267_v2 = vsub.f32 %v6783_v9, %v7021_v52 }
 0x118   :  { %12272 = vst [vmem:[#allocation114_spill] sm:$0xff] %v7247_v1  ;;  %12274 = vst [vmem:[#allocation116_spill] sm:$0xff] %v7263_v51 }
 0x119   :  { %1717 = vmin.xlane.f32.xlu1 %v1716_v3  ;;  %1714 = vmin.xlane.f32.xlu0 %v1713_v33  ;;  %v7023_v41 = vpop.f32.mrb[32].mxu0  ;;  %v7025_v22 = vpop.f32.mrb[32].mxu1  ;;  %12273 = vst [vmem:[#allocation115_spill] sm:$0xff] %v7251_v7  ;;  %12275 = vst [vmem:[#allocation117_spill] sm:$0xff] %v7267_v2 }
 0x11a   :  { %v7039_v3 = vpop.f32.mrb[33].mxu0  ;;  %v7041_v33 = vpop.f32.mrb[33].mxu1  ;;  %v7279_v4 = vsub.f32 %v6783_v9, %v7023_v41  ;;  %v7295_v41 = vsub.f32 %v6783_v9, %v7025_v22 }
 0x11b   :  { %v7283_v52 = vsub.f32 %v6783_v9, %v7039_v3  ;;  %v7299_v3 = vsub.f32 %v6783_v9, %v7041_v33 }
 0x11c   :  { %12276 = vst [vmem:[#allocation118_spill] sm:$0xff] %v7279_v4  ;;  %12278 = vst [vmem:[#allocation120_spill] sm:$0xff] %v7295_v41 }
 0x11d   :  { %1453 = vmin.xlane.f32.xlu1 %v1452_v24  ;;  %1450 = vmin.xlane.f32.xlu0 %v1449_v44  ;;  %v7043_v5 = vpop.f32.mrb[34].mxu0  ;;  %v7045_v20 = vpop.f32.mrb[34].mxu1  ;;  %12277 = vst [vmem:[#allocation119_spill] sm:$0xff] %v7283_v52  ;;  %12279 = vst [vmem:[#allocation121_spill] sm:$0xff] %v7299_v3 }
 0x11e   :  { %v7059_v24 = vpop.f32.mrb[35].mxu0  ;;  %v7061_v44 = vpop.f32.mrb[35].mxu1  ;;  %v7311_v22 = vsub.f32 %v6783_v9, %v7043_v5  ;;  %v7327_v5 = vsub.f32 %v6783_v9, %v7045_v20 }
 0x11f   :  { %v7315_v33 = vsub.f32 %v6783_v9, %v7059_v24  ;;  %v7331_v24 = vsub.f32 %v6783_v9, %v7061_v44 }
 0x120   :  { %12280 = vst [vmem:[#allocation122_spill] sm:$0xff] %v7311_v22  ;;  %12282 = vst [vmem:[#allocation124_spill] sm:$0xff] %v7327_v5 }
 0x121   :  { %1723 = vmin.xlane.f32.xlu1 %v1722_v26  ;;  %1720 = vmin.xlane.f32.xlu0 %v1719_v0  ;;  %v7063_v38 = vpop.f32.mrb[36].mxu0  ;;  %v7065_v49 = vpop.f32.mrb[36].mxu1  ;;  %12281 = vst [vmem:[#allocation123_spill] sm:$0xff] %v7315_v33  ;;  %12283 = vst [vmem:[#allocation125_spill] sm:$0xff] %v7331_v24 }
 0x122   :  { %v7079_v26 = vpop.f32.mrb[37].mxu0  ;;  %v7081_v0 = vpop.f32.mrb[37].mxu1  ;;  %v7343_v20 = vsub.f32 %v6783_v9, %v7063_v38 }
 0x123   :  { %v7347_v44 = vsub.f32 %v6783_v9, %v7079_v26  ;;  %v7363_v26 = vsub.f32 %v6783_v9, %v7065_v49 }
 0x124   :  { %12284 = vst [vmem:[#allocation126_spill] sm:$0xff] %v7343_v20 }
 0x125   :  { %1459 = vmin.xlane.f32.xlu1 %v1458_v46  ;;  %1456 = vmin.xlane.f32.xlu0 %v1455_v43  ;;  %v7083_v6 = vpop.f32.mrb[38].mxu0  ;;  %v1464_v46 = vsel %vm1400_vm1, %v7087_v62, inf  ;;  %12285 = vst [vmem:[#allocation127_spill] sm:$0xff] %v7347_v44  ;;  %12287 = vst [vmem:[#allocation129_spill] sm:$0xff] %v7363_v26 }
 0x126   :  { %v7097_v54 = vpop.f32.mrb[39].mxu0 }
 0x129   :  { %1729 = vmin.xlane.f32.xlu1 %v1728_v14  ;;  %1726 = vmin.xlane.f32.xlu0 %v1725_v48  ;;  %v7099_v43 = vpop.f32.mrb[40].mxu0  ;;  %v1734_v14 = vsel %vm1400_vm1, %v7103_v10, inf  ;;  %v1467_v10 = vsel %vm1400_vm1, %v7123_v63, inf  ;;  %v1737_v63 = vsel %vm1400_vm1, %v7139_v29, inf }
 0x12a   :  { %v7113_v13 = vpop.f32.mrb[41].mxu0 }
 0x12d   :  { %1465 = vmin.xlane.f32.xlu1 %v1464_v46  ;;  %1462 = vmin.xlane.f32.xlu0 %v1461_v60  ;;  %v7115_v48 = vpop.f32.mrb[42].mxu0  ;;  %v1470_v46 = vsel %vm1400_vm1, %v7119_v56, inf }
 0x12e   :  { %v7129_v62 = vpop.f32.mrb[43].mxu0 }
 0x131   :  { %1735 = vmin.xlane.f32.xlu1 %v1734_v14  ;;  %1732 = vmin.xlane.f32.xlu0 %v1731_v31  ;;  %v7131_v60 = vpop.f32.mrb[44].mxu0  ;;  %v1740_v14 = vsel %vm1400_vm1, %v7135_v59, inf  ;;  %v1473_v59 = vsel %vm1400_vm1, %v7155_v57, inf  ;;  %v1743_v57 = vsel %vm1400_vm1, %v7171_v16, inf }
 0x132   :  { %v7145_v42 = vpop.f32.mrb[45].mxu0 }
 0x135   :  { %1471 = vmin.xlane.f32.xlu1 %v1470_v46  ;;  %1468 = vmin.xlane.f32.xlu0 %v1467_v10  ;;  %v7147_v31 = vpop.f32.mrb[46].mxu0  ;;  %v1476_v46 = vsel %vm1400_vm1, %v7151_v34, inf }
 0x136   :  { %v7161_v56 = vpop.f32.mrb[47].mxu0 }
 0x139   :  { %1741 = vmin.xlane.f32.xlu1 %v1740_v14  ;;  %1738 = vmin.xlane.f32.xlu0 %v1737_v63  ;;  %v7163_v10 = vpop.f32.mrb[48].mxu0  ;;  %v1746_v14 = vsel %vm1400_vm1, %v7167_v40, inf  ;;  %v1479_v40 = vsel %vm1400_vm1, %v7187_v35, inf  ;;  %v1749_v35 = vsel %vm1400_vm1, %v7203_v8, inf }
 0x13a   :  { %v7177_v29 = vpop.f32.mrb[49].mxu0 }
 0x13d   :  { %1477 = vmin.xlane.f32.xlu1 %v1476_v46  ;;  %1474 = vmin.xlane.f32.xlu0 %v1473_v59  ;;  %v7179_v63 = vpop.f32.mrb[50].mxu0  ;;  %v1482_v46 = vsel %vm1400_vm1, %v7183_v21, inf }
 0x13e   :  { %v7193_v34 = vpop.f32.mrb[51].mxu0 }
 0x141   :  { %1747 = vmin.xlane.f32.xlu1 %v1746_v14  ;;  %1744 = vmin.xlane.f32.xlu0 %v1743_v57  ;;  %v7195_v59 = vpop.f32.mrb[52].mxu0  ;;  %v1752_v14 = vsel %vm1400_vm1, %v7199_v28, inf  ;;  %v1485_v28 = vsel %vm1400_vm1, %v7219_v23, inf  ;;  %v1755_v23 = vsel %vm1400_vm1, %v7235_v12, inf }
 0x142   :  { %v7209_v16 = vpop.f32.mrb[53].mxu0 }
 0x145   :  { %1483 = vmin.xlane.f32.xlu1 %v1482_v46  ;;  %1480 = vmin.xlane.f32.xlu0 %v1479_v40  ;;  %v7211_v57 = vpop.f32.mrb[54].mxu0  ;;  %v1488_v46 = vsel %vm1400_vm1, %v7215_v11, inf }
 0x146   :  { %v7225_v21 = vpop.f32.mrb[55].mxu0 }
 0x149   :  { %1753 = vmin.xlane.f32.xlu1 %v1752_v14  ;;  %1750 = vmin.xlane.f32.xlu0 %v1749_v35  ;;  %v7227_v40 = vpop.f32.mrb[56].mxu0  ;;  %v1758_v14 = vsel %vm1400_vm1, %v7231_v15, inf  ;;  %v1491_v15 = vsel %vm1400_vm1, %v7251_v7, inf  ;;  %v1761_v7 = vsel %vm1400_vm1, %v7267_v2, inf }
 0x14a   :  { %v7241_v8 = vpop.f32.mrb[57].mxu0 }
 0x14d   :  { %1489 = vmin.xlane.f32.xlu1 %v1488_v46  ;;  %1486 = vmin.xlane.f32.xlu0 %v1485_v28  ;;  %v7243_v35 = vpop.f32.mrb[58].mxu0  ;;  %v1494_v46 = vsel %vm1400_vm1, %v7247_v1, inf }
 0x14e   :  { %v7257_v11 = vpop.f32.mrb[59].mxu0 }
 0x151   :  { %1759 = vmin.xlane.f32.xlu1 %v1758_v14  ;;  %1756 = vmin.xlane.f32.xlu0 %v1755_v23  ;;  %v7259_v28 = vpop.f32.mrb[60].mxu0  ;;  %v1764_v14 = vsel %vm1400_vm1, %v7263_v51, inf  ;;  %v1497_v51 = vsel %vm1400_vm1, %v7283_v52, inf  ;;  %v1767_v52 = vsel %vm1400_vm1, %v7299_v3, inf }
 0x152   :  { %v7273_v12 = vpop.f32.mrb[61].mxu0 }
 0x155   :  { %1495 = vmin.xlane.f32.xlu1 %v1494_v46  ;;  %1492 = vmin.xlane.f32.xlu0 %v1491_v15  ;;  %v7275_v23 = vpop.f32.mrb[62].mxu0  ;;  %v1500_v46 = vsel %vm1400_vm1, %v7279_v4, inf }
 0x156   :  { %v7289_v1 = vpop.f32.mrb[63].mxu0 }
 0x159   :  { %1765 = vmin.xlane.f32.xlu1 %v1764_v14  ;;  %1762 = vmin.xlane.f32.xlu0 %v1761_v7  ;;  %v7291_v15 = vpop.f32.mrb[64].mxu0  ;;  %v1770_v14 = vsel %vm1400_vm1, %v7295_v41, inf  ;;  %v1503_v41 = vsel %vm1400_vm1, %v7315_v33, inf  ;;  %v1773_v33 = vsel %vm1400_vm1, %v7331_v24, inf  ;;  %v1512_v24 = vsel %vm1400_vm1, %v7343_v20, inf }
 0x15a   :  { %v7305_v2 = vpop.f32.mrb[65].mxu0  ;;  %v7387_v20 = vsub.f32 %v6783_v9, %v7097_v54  ;;  %v7403_v54 = vsub.f32 %v6783_v9, %v7099_v43 }
 0x15c   :  { %12290 = vst [vmem:[#allocation132_spill] sm:$0xff] %v7387_v20  ;;  %12293 = vst [vmem:[#allocation135_spill] sm:$0xff] %v7403_v54 }
 0x15d   :  { %1501 = vmin.xlane.f32.xlu1 %v1500_v46  ;;  %1498 = vmin.xlane.f32.xlu0 %v1497_v51  ;;  %v7307_v7 = vpop.f32.mrb[66].mxu0  ;;  %v1506_v46 = vsel %vm1400_vm1, %v7311_v22, inf }
 0x15e   :  { %v7321_v4 = vpop.f32.mrb[67].mxu0 }
 0x161   :  { %1771 = vmin.xlane.f32.xlu1 %v1770_v14  ;;  %1768 = vmin.xlane.f32.xlu0 %v1767_v52  ;;  %v7323_v51 = vpop.f32.mrb[68].mxu0  ;;  %v1776_v14 = vsel %vm1400_vm1, %v7327_v5, inf  ;;  %v7367_v5 = vsub.f32 %v6783_v9, %v7081_v0  ;;  %v7383_v0 = vsub.f32 %v6783_v9, %v7083_v6 }
 0x162   :  { %v7337_v3 = vpop.f32.mrb[69].mxu0 }
 0x163   :  { %12288 = vst [vmem:[#allocation130_spill] sm:$0xff] %v7367_v5  ;;  %12289 = vst [vmem:[#allocation131_spill] sm:$0xff] %v7383_v0 }
 0x165   :  { %1507 = vmin.xlane.f32.xlu1 %v1506_v46  ;;  %1504 = vmin.xlane.f32.xlu0 %v1503_v41  ;;  %v7339_v52 = vpop.f32.mrb[70].mxu0 }
 0x166   :  { %v7353_v22 = vpop.f32.mrb[71].mxu0 }
 0x169   :  { %1777 = vmin.xlane.f32.xlu1 %v1776_v14  ;;  %1774 = vmin.xlane.f32.xlu0 %v1773_v33  ;;  %v7355_v41 = vpop.f32.mrb[72].mxu0  ;;  %v1509_v33 = vsel %vm1400_vm1, %v7347_v44, inf  ;;  %v1782_v44 = vsel %vm1400_vm1, %v7363_v26, inf  ;;  %v7407_v26 = vsub.f32 %v6783_v9, %v7113_v13  ;;  %v7423_v13 = vsub.f32 %v6783_v9, %v7115_v48 }
 0x16a   :  { %v7357_v46 = vpop.xlane.xlu1 %1675  ;;  %v7359_v38 = vpop.xlane.xlu0 %1405 }
 0x16b   :  { %12286 = vst [vmem:[#allocation128_spill] sm:$0xff] %v7357_v46  ;;  %v7373_v14 = vpop.f32.mrb[73].mxu0  ;;  %12294 = vst [vmem:[#allocation136_spill] sm:$0xff] %v7407_v26  ;;  %vm1788_vm2 = vcmp.eq.f32.partialorder %v6786_v53, %v7359_v38 }
 0x16c   :  { %12296 = vst [vmem:[#allocation138_spill] sm:$0xff] %v7423_v13 }
 0x16d   :  { %1513 = vmin.xlane.f32.xlu1 %v1512_v24  ;;  %1510 = vmin.xlane.f32.xlu0 %v1509_v33  ;;  %v7375_v46 = vpop.f32.mrb[74].mxu0  ;;  %v1779_v24 = vsel %vm1400_vm1, %v7367_v5, inf  ;;  %v1518_v5 = vsel %vm1400_vm1, %v7383_v0, inf  ;;  %v7427_v0 = vsub.f32 %v6783_v9, %v7129_v62  ;;  %v7443_v62 = vsub.f32 %v6783_v9, %v7131_v60 }
 0x16e   :  { %v7377_v17 = vpop.xlane.xlu0 %1402  ;;  %v7379_v49 = vpop.xlane.xlu1 %1411 }
 0x16f   :  { %v7393_v33 = vpop.f32.mrb[75].mxu0  ;;  %12297 = vst [vmem:[#allocation139_spill] sm:$0xff] %v7427_v0  ;;  %12298 = vst [vmem:[#allocation140_spill] sm:$0xff] %v7443_v62  ;;  %vm1787_vm3 = vcmp.eq.f32.partialorder %v6792_v50, %v7377_v17  ;;  %vm1790_vm4 = vcmp.eq.f32.partialorder %v6799_v32, %v7379_v49 }
 0x171   :  { %1783 = vmin.xlane.f32.xlu1 %v1782_v44  ;;  %1780 = vmin.xlane.f32.xlu0 %v1779_v24  ;;  %v7395_v36 = vpop.f32.mrb[76].mxu0  ;;  %v1515_v44 = vsel %vm1400_vm1, %v7387_v20, inf  ;;  %v1524_v20 = vsel %vm1400_vm1, %v7403_v54, inf  ;;  %v7447_v54 = vsub.f32 %v6783_v9, %v7145_v42  ;;  %v7463_v42 = vsub.f32 %v6783_v9, %v7147_v31 }
 0x172   :  { %v7397_v37 = vpop.xlane.xlu0 %1672  ;;  %v7399_v6 = vpop.xlane.xlu1 %1681 }
 0x173   :  { %12291 = vst [vmem:[#allocation133_spill] sm:$0xff] %v7397_v37  ;;  %12292 = vst [vmem:[#allocation134_spill] sm:$0xff] %v7399_v6  ;;  %v7413_v24 = vpop.f32.mrb[77].mxu0 }
 0x174   :  { %12299 = vst [vmem:[#allocation141_spill] sm:$0xff] %v7447_v54  ;;  %12302 = vst [vmem:[#allocation144_spill] sm:$0xff] %v7463_v42 }
 0x175   :  { %1519 = vmin.xlane.f32.xlu1 %v1518_v5  ;;  %1516 = vmin.xlane.f32.xlu0 %v1515_v44  ;;  %v7415_v37 = vpop.f32.mrb[78].mxu0  ;;  %v1521_v5 = vsel %vm1400_vm1, %v7407_v26, inf  ;;  %v1530_v26 = vsel %vm1400_vm1, %v7423_v13, inf  ;;  %v7467_v13 = vsub.f32 %v6783_v9, %v7161_v56  ;;  %v7483_v56 = vsub.f32 %v6783_v9, %v7163_v10 }
 0x176   :  { %v7417_v6 = vpop.xlane.xlu0 %1678  ;;  %v7419_v43 = vpop.xlane.xlu1 %1408 }
 0x177   :  { %12295 = vst [vmem:[#allocation137_spill] sm:$0xff] %v7417_v6  ;;  %v7433_v44 = vpop.f32.mrb[79].mxu0  ;;  %12303 = vst [vmem:[#allocation145_spill] sm:$0xff] %v7467_v13  ;;  %vm1789_vm5 = vcmp.eq.f32.partialorder %v6812_v47, %v7419_v43 }
 0x178   :  { %12305 = vst [vmem:[#allocation147_spill] sm:$0xff] %v7483_v56 }
 0x179   :  { %1525 = vmin.xlane.f32.xlu1 %v1524_v20  ;;  %1522 = vmin.xlane.f32.xlu0 %v1521_v5  ;;  %v7435_v6 = vpop.f32.mrb[80].mxu0  ;;  %v1527_v20 = vsel %vm1400_vm1, %v7427_v0, inf  ;;  %v1536_v0 = vsel %vm1400_vm1, %v7443_v62, inf  ;;  %v7487_v62 = vsub.f32 %v6783_v9, %v7177_v29  ;;  %v7503_v29 = vsub.f32 %v6783_v9, %v7179_v63 }
 0x17a   :  { %v7437_v55 = vpop.xlane.xlu1 %1417  ;;  %v7439_v48 = vpop.xlane.xlu0 %1414 }
 0x17b   :  { %v7453_v5 = vpop.f32.mrb[81].mxu0  ;;  %12306 = vst [vmem:[#allocation148_spill] sm:$0xff] %v7487_v62  ;;  %12310 = vst [vmem:[#allocation152_spill] sm:$0xff] %v7503_v29  ;;  %vm1792_vm6 = vcmp.eq.f32.partialorder %v6822_v25, %v7437_v55  ;;  %vm1791_vm7 = vcmp.eq.f32.partialorder %v6825_v18, %v7439_v48 }
 0x17d   :  { %1531 = vmin.xlane.f32.xlu1 %v1530_v26  ;;  %1528 = vmin.xlane.f32.xlu0 %v1527_v20  ;;  %v7455_v19 = vpop.f32.mrb[82].mxu0  ;;  %v1533_v26 = vsel %vm1400_vm1, %v7447_v54, inf  ;;  %v1542_v54 = vsel %vm1400_vm1, %v7463_v42, inf  ;;  %v7507_v42 = vsub.f32 %v6783_v9, %v7193_v34  ;;  %v7523_v34 = vsub.f32 %v6783_v9, %v7195_v59 }
 0x17e   :  { %v7457_v45 = vpop.xlane.xlu1 %1687  ;;  %v7459_v60 = vpop.xlane.xlu0 %1684  ;;  %v7541_v59 = vsub.f32 %v6783_v9, %v7211_v57  ;;  %v7557_v57 = vsub.f32 %v6783_v9, %v7227_v40  ;;  %v7573_v40 = vsub.f32 %v6783_v9, %v7243_v35  ;;  %v7589_v35 = vsub.f32 %v6783_v9, %v7259_v28 }
 0x17f   :  { %12300 = vst [vmem:[#allocation142_spill] sm:$0xff] %v7457_v45  ;;  %12301 = vst [vmem:[#allocation143_spill] sm:$0xff] %v7459_v60  ;;  %v7473_v20 = vpop.f32.mrb[83].mxu0  ;;  %v7605_v28 = vsub.f32 %v6783_v9, %v7275_v23  ;;  %v7621_v23 = vsub.f32 %v6783_v9, %v7291_v15  ;;  %v7637_v15 = vsub.f32 %v6783_v9, %v7307_v7 }
 0x180   :  { %12304 = vst [vmem:[#allocation146_spill] sm:$0xff] %v7473_v20  ;;  %12311 = vst [vmem:[#allocation153_spill] sm:$0xff] %v7507_v42  ;;  %v7653_v7 = vsub.f32 %v6783_v9, %v7323_v51  ;;  %v7669_v51 = vsub.f32 %v6783_v9, %v7339_v52 }
 0x181   :  { %1537 = vmin.xlane.f32.xlu1 %v1536_v0  ;;  %1534 = vmin.xlane.f32.xlu0 %v1533_v26  ;;  %v7475_v45 = vpop.f32.mrb[84].mxu0  ;;  %v1539_v0 = vsel %vm1400_vm1, %v7467_v13, inf  ;;  %v1548_v13 = vsel %vm1400_vm1, %v7483_v56, inf  ;;  %12313 = vst [vmem:[#allocation155_spill] sm:$0xff] %v7523_v34  ;;  %v7527_v56 = vsub.f32 %v6783_v9, %v7209_v16  ;;  %12317 = vst [vmem:[#allocation159_spill] sm:$0xff] %v7541_v59 }
 0x182   :  { %v7477_v60 = vpop.xlane.xlu1 %1423  ;;  %v7479_v31 = vpop.xlane.xlu0 %1420  ;;  %v7545_v16 = vsub.f32 %v6783_v9, %v7225_v21  ;;  %12319 = vst [vmem:[#allocation161_spill] sm:$0xff] %v7557_v57  ;;  %v7561_v21 = vsub.f32 %v6783_v9, %v7241_v8  ;;  %12323 = vst [vmem:[#allocation165_spill] sm:$0xff] %v7573_v40  ;;  %v7577_v8 = vsub.f32 %v6783_v9, %v7257_v11 }
 0x183   :  { %v7493_v26 = vpop.f32.mrb[85].mxu0  ;;  %12314 = vst [vmem:[#allocation156_spill] sm:$0xff] %v7527_v56  ;;  %12325 = vst [vmem:[#allocation167_spill] sm:$0xff] %v7589_v35  ;;  %v7593_v11 = vsub.f32 %v6783_v9, %v7273_v12  ;;  %v7609_v12 = vsub.f32 %v6783_v9, %v7289_v1  ;;  %v7625_v1 = vsub.f32 %v6783_v9, %v7305_v2 }
 0x184   :  { %12307 = vst [vmem:[#allocation149_spill] sm:$0xff] %v7493_v26  ;;  %12318 = vst [vmem:[#allocation160_spill] sm:$0xff] %v7545_v16  ;;  %v7641_v2 = vsub.f32 %v6783_v9, %v7321_v4  ;;  %v7657_v4 = vsub.f32 %v6783_v9, %v7337_v3  ;;  %v7673_v3 = vsub.f32 %v6783_v9, %v7353_v22 }
 0x185   :  { %1543 = vmin.xlane.f32.xlu1 %v1542_v54  ;;  %1540 = vmin.xlane.f32.xlu0 %v1539_v0  ;;  %v7495_v30 = vpop.f32.mrb[86].mxu0  ;;  %v1545_v54 = vsel %vm1400_vm1, %v7487_v62, inf  ;;  %v1554_v62 = vsel %vm1400_vm1, %v7503_v29, inf  ;;  %v1560_v29 = vsel %vm1400_vm1, %v7523_v34, inf  ;;  %12320 = vst [vmem:[#allocation162_spill] sm:$0xff] %v7561_v21  ;;  %12324 = vst [vmem:[#allocation166_spill] sm:$0xff] %v7577_v8  ;;  %vm1794_vm8 = vcmp.eq.f32.partialorder %v6842_v61, %v7477_v60 }
 0x186   :  { %v7497_v20 = vpop.xlane.xlu1 %1693  ;;  %v7499_v10 = vpop.xlane.xlu0 %1690  ;;  %12326 = vst [vmem:[#allocation168_spill] sm:$0xff] %v7593_v11  ;;  %12329 = vst [vmem:[#allocation171_spill] sm:$0xff] %v7605_v28  ;;  %vm1793_vm9 = vcmp.eq.f32.partialorder %v6845_v39, %v7479_v31 }
 0x187   :  { %12308 = vst [vmem:[#allocation150_spill] sm:$0xff] %v7497_v20  ;;  %12309 = vst [vmem:[#allocation151_spill] sm:$0xff] %v7499_v10  ;;  %v7513_v0 = vpop.f32.mrb[87].mxu0 }
 0x188   :  { %12312 = vst [vmem:[#allocation154_spill] sm:$0xff] %v7513_v0  ;;  %12330 = vst [vmem:[#allocation172_spill] sm:$0xff] %v7609_v12 }
 0x189   :  { %1549 = vmin.xlane.f32.xlu1 %v1548_v13  ;;  %1546 = vmin.xlane.f32.xlu0 %v1545_v54  ;;  %v7515_v20 = vpop.f32.mrb[88].mxu0  ;;  %v1551_v13 = vsel %vm1400_vm1, %v7507_v42, inf  ;;  %12331 = vst [vmem:[#allocation173_spill] sm:$0xff] %v7621_v23  ;;  %12332 = vst [vmem:[#allocation174_spill] sm:$0xff] %v7625_v1 }
 0x18a   :  { %v7517_v10 = vpop.xlane.xlu1 %1429  ;;  %v7519_v63 = vpop.xlane.xlu0 %1426  ;;  %12335 = vst [vmem:[#allocation177_spill] sm:$0xff] %v7637_v15  ;;  %12336 = vst [vmem:[#allocation178_spill] sm:$0xff] %v7641_v2 }
 0x18b   :  { %v7533_v54 = vpop.f32.mrb[89].mxu0  ;;  %12337 = vst [vmem:[#allocation179_spill] sm:$0xff] %v7653_v7  ;;  %12338 = vst [vmem:[#allocation180_spill] sm:$0xff] %v7657_v4  ;;  %vm1796_vm10 = vcmp.eq.f32.partialorder %v6864_v27, %v7517_v10  ;;  %vm1795_vm11 = vcmp.eq.f32.partialorder %v6867_v58, %v7519_v63 }
 0x18c   :  { %12341 = vst [vmem:[#allocation183_spill] sm:$0xff] %v7669_v51  ;;  %12342 = vst [vmem:[#allocation184_spill] sm:$0xff] %v7673_v3 }
 0x18d   :  { %1555 = vmin.xlane.f32.xlu1 %v1554_v62  ;;  %1552 = vmin.xlane.f32.xlu0 %v1551_v13  ;;  %v1557_v62 = vsel %vm1400_vm1, %v7527_v56, inf  ;;  %v1563_v56 = vsel %vm1400_vm1, %v7545_v16, inf  ;;  %v1569_v16 = vsel %vm1400_vm1, %v7561_v21, inf }
 0x18e   :  { %v7535_v0 = vpop.xlane.xlu1 %1699  ;;  %v7537_v26 = vpop.xlane.xlu0 %1696 }
 0x18f   :  { %12315 = vst [vmem:[#allocation157_spill] sm:$0xff] %v7535_v0  ;;  %12316 = vst [vmem:[#allocation158_spill] sm:$0xff] %v7537_v26  ;;  %v1566_v26 = vsel %vm1400_vm1, %v7541_v59, inf  ;;  %v1572_v59 = vsel %vm1400_vm1, %v7557_v57, inf }
 0x191   :  { %1561 = vmin.xlane.f32.xlu1 %v1560_v29  ;;  %1558 = vmin.xlane.f32.xlu0 %v1557_v62 }
 0x192   :  { %v7551_v13 = vpop.xlane.xlu1 %1435  ;;  %v7553_v0 = vpop.xlane.xlu0 %1432 }
 0x195   :  { %1567 = vmin.xlane.f32.xlu1 %v1566_v26  ;;  %1564 = vmin.xlane.f32.xlu0 %v1563_v56 }
 0x196   :  { %v7567_v29 = vpop.xlane.xlu1 %1705  ;;  %v7569_v62 = vpop.xlane.xlu0 %1702 }
 0x197   :  { %12321 = vst [vmem:[#allocation163_spill] sm:$0xff] %v7567_v29  ;;  %12322 = vst [vmem:[#allocation164_spill] sm:$0xff] %v7569_v62  ;;  %v1578_v29 = vsel %vm1400_vm1, %v7573_v40, inf  ;;  %v1575_v62 = vsel %vm1400_vm1, %v7577_v8, inf  ;;  %v1584_v40 = vsel %vm1400_vm1, %v7589_v35, inf  ;;  %v1581_v8 = vsel %vm1400_vm1, %v7593_v11, inf }
 0x199   :  { %1573 = vmin.xlane.f32.xlu1 %v1572_v59  ;;  %1570 = vmin.xlane.f32.xlu0 %v1569_v16 }
 0x19a   :  { %v7583_v56 = vpop.xlane.xlu1 %1441  ;;  %v7585_v26 = vpop.xlane.xlu0 %1438 }
 0x19d   :  { %1579 = vmin.xlane.f32.xlu1 %v1578_v29  ;;  %1576 = vmin.xlane.f32.xlu0 %v1575_v62 }
 0x19e   :  { %v7599_v59 = vpop.xlane.xlu1 %1711  ;;  %v7601_v16 = vpop.xlane.xlu0 %1708 }
 0x19f   :  { %12327 = vst [vmem:[#allocation169_spill] sm:$0xff] %v7599_v59  ;;  %12328 = vst [vmem:[#allocation170_spill] sm:$0xff] %v7601_v16  ;;  %v1590_v59 = vsel %vm1400_vm1, %v7605_v28, inf  ;;  %v1587_v16 = vsel %vm1400_vm1, %v7609_v12, inf  ;;  %v1596_v28 = vsel %vm1400_vm1, %v7621_v23, inf  ;;  %v1593_v12 = vsel %vm1400_vm1, %v7625_v1, inf }
 0x1a1   :  { %1585 = vmin.xlane.f32.xlu1 %v1584_v40  ;;  %1582 = vmin.xlane.f32.xlu0 %v1581_v8 }
 0x1a2   :  { %v7615_v29 = vpop.xlane.xlu1 %1447  ;;  %v7617_v62 = vpop.xlane.xlu0 %1444 }
 0x1a5   :  { %1591 = vmin.xlane.f32.xlu1 %v1590_v59  ;;  %1588 = vmin.xlane.f32.xlu0 %v1587_v16 }
 0x1a6   :  { %v7631_v40 = vpop.xlane.xlu1 %1717  ;;  %v7633_v8 = vpop.xlane.xlu0 %1714 }
 0x1a7   :  { %12333 = vst [vmem:[#allocation175_spill] sm:$0xff] %v7631_v40  ;;  %12334 = vst [vmem:[#allocation176_spill] sm:$0xff] %v7633_v8  ;;  %v1602_v40 = vsel %vm1400_vm1, %v7637_v15, inf  ;;  %v1599_v8 = vsel %vm1400_vm1, %v7641_v2, inf  ;;  %v1608_v15 = vsel %vm1400_vm1, %v7653_v7, inf  ;;  %v1605_v2 = vsel %vm1400_vm1, %v7657_v4, inf }
 0x1a9   :  { %1597 = vmin.xlane.f32.xlu1 %v1596_v28  ;;  %1594 = vmin.xlane.f32.xlu0 %v1593_v12  ;;  %v1785_v28 = vlaneseq }
 0x1aa   :  { %v7647_v59 = vpop.xlane.xlu1 %1453  ;;  %v7649_v16 = vpop.xlane.xlu0 %1450 }
 0x1ad   :  { %1603 = vmin.xlane.f32.xlu1 %v1602_v40  ;;  %1600 = vmin.xlane.f32.xlu0 %v1599_v8  ;;  %v7679_v40 = vand.u32 127, %v1785_v28  ;;  %v7683_v8 = vsub.f32 %v6783_v9, %v7355_v41  ;;  %v1614_v28 = vsel %vm1400_vm1, %v7669_v51, inf  ;;  %v7714_v51 = vsub.f32 %v6783_v9, %v7393_v33  ;;  %v7733_v33 = vld [vmem:[%s11587_s2] ss:$0 sm:$0xff] }
 0x1ae   :  { %v7663_v12 = vpop.xlane.xlu1 %1723  ;;  %v7665_v23 = vpop.xlane.xlu0 %1720  ;;  %v7764_v32 = vsub.f32 %v7733_v33, %v7413_v24  ;;  %v7820_v25 = vsub.f32 %v7733_v33, %v7433_v44  ;;  %v7872_v61 = vsub.f32 %v7733_v33, %v7453_v5 }
 0x1af   :  { %12339 = vst [vmem:[#allocation181_spill] sm:$0xff] %v7663_v12  ;;  %12340 = vst [vmem:[#allocation182_spill] sm:$0xff] %v7665_v23  ;;  %v7693_v12 = vsub.f32 %v6783_v9, %v7373_v14  ;;  %v1916_v41 = vsel %vm1788_vm2, %v7679_v40, 8  ;;  %v1620_v53 = vsel %vm1400_vm1, %v7683_v8, inf  ;;  %v1915_v50 = vsel %vm1787_vm3, %v7679_v40, 8 }
 0x1b0   :  { %12343 = vst [vmem:[#allocation185_spill] sm:$0xff] %v7683_v8  ;;  %12348 = vst [vmem:[#allocation190_spill] sm:$0xff] %v7714_v51  ;;  %v1917_v47 = vsel %vm1789_vm5, %v7679_v40, 8  ;;  %v1919_v18 = vsel %vm1791_vm7, %v7679_v40, 8  ;;  %v1922_v4 = vsel %vm1794_vm8, %v7679_v40, 8  ;;  %v1641_v5 = vsel %vm1400_vm1, %v7872_v61, inf }
 0x1b1   :  { %1609 = vmin.xlane.f32.xlu1 %v1608_v15  ;;  %1606 = vmin.xlane.f32.xlu0 %v1605_v2  ;;  %12344 = vst [vmem:[#allocation186_spill] sm:$0xff] %v7693_v12  ;;  %v1611_v15 = vsel %vm1400_vm1, %v7673_v3, inf  ;;  %v7710_v2 = vsub.f32 %v6783_v9, %v7375_v46  ;;  %v1623_v9 = vsel %vm1400_vm1, %v7714_v51, inf  ;;  %12353 = vst [vmem:[#allocation195_spill] sm:$0xff] %v7764_v32  ;;  %v1923_v1 = vsel %vm1795_vm11, %v7679_v40, 8 }
 0x1b2   :  { %v7687_v52 = vpop.xlane.xlu1 %1459  ;;  %v7689_v22 = vpop.xlane.xlu0 %1456  ;;  %12357 = vst [vmem:[#allocation199_spill] sm:$0xff] %v7820_v25  ;;  %12364 = vst [vmem:[#allocation206_spill] sm:$0xff] %v7872_v61 }
 0x1b3   :  { %12347 = vst [vmem:[#allocation189_spill] sm:$0xff] %v7710_v2  ;;  %v1626_v46 = vsel %vm1400_vm1, %v7710_v2, inf }
 0x1b5   :  { %1615 = vmin.xlane.f32.xlu1 %v1614_v28  ;;  %1612 = vmin.xlane.f32.xlu0 %v1611_v15  ;;  %v1617_v28 = vsel %vm1400_vm1, %v7693_v12, inf  ;;  %v7719_v15 = vsel %vm1400_vm1, %v1916_v41, 2147483647  ;;  %v7737_v41 = vsub.f32 %v7733_v33, %v7395_v36  ;;  %v7753_v36 = vsub.f32 %v7733_v33, %v7415_v37 }
 0x1b6   :  { %v7704_v38 = vpop.xlane.xlu1 %1729  ;;  %v7706_v14 = vpop.xlane.xlu0 %1726 }
 0x1b7   :  { %12345 = vst [vmem:[#allocation187_spill] sm:$0xff] %v7704_v38  ;;  %12346 = vst [vmem:[#allocation188_spill] sm:$0xff] %v7706_v14  ;;  %v1632_v12 = vsel %vm1400_vm1, %v7737_v41, inf }
 0x1b8   :  { %12349 = vst [vmem:[#allocation191_spill] sm:$0xff] %v7737_v41  ;;  %12352 = vst [vmem:[#allocation194_spill] sm:$0xff] %v7753_v36 }
 0x1b9   :  { %1621 = vmin.xlane.f32.xlu1 %v1620_v53  ;;  %1618 = vmin.xlane.f32.xlu0 %v1617_v28  ;;  %v2060_v53 = vshra.s32 %v7719_v15, 16  ;;  %v7741_v28 = vsel %vm1400_vm1, %v1915_v50, 2147483647 }
 0x1ba   :  { %v7722_v17 = vpop.xlane.xlu1 %1465  ;;  %v7724_v8 = vpop.xlane.xlu0 %1462  ;;  %v2045_v50 = vshra.s32 %v7741_v28, 16 }
 0x1bb   :  { %v7755_v38 = vcvt.s32.f32 %v2060_v53  ;;  %v7774_v53 = vsub.f32 %v7733_v33, %v7435_v6 }
 0x1bc   :  { %v7776_v41 = vcvt.s32.f32 %v2045_v50  ;;  %v7793_v50 = vsub.f32 %v7733_v33, %v7455_v19  ;;  %v7809_v19 = vsub.f32 %v7733_v33, %v7475_v45 }
 0x1bd   :  { %1627 = vmin.xlane.f32.xlu1 %v1626_v46  ;;  %1624 = vmin.xlane.f32.xlu0 %v1623_v9  ;;  %v1918_v46 = vsel %vm1790_vm4, %v7679_v40, 8  ;;  %v1638_v9 = vsel %vm1400_vm1, %v7753_v36, inf  ;;  %v1644_v6 = vsel %vm1400_vm1, %v7774_v53, inf }
 0x1be   :  { %v7745_v2 = vpop.xlane.xlu1 %1735  ;;  %v7747_v51 = vpop.xlane.xlu0 %1732  ;;  %12356 = vst [vmem:[#allocation198_spill] sm:$0xff] %v7809_v19 }
 0x1bf   :  { %12350 = vst [vmem:[#allocation192_spill] sm:$0xff] %v7745_v2  ;;  %12351 = vst [vmem:[#allocation193_spill] sm:$0xff] %v7747_v51  ;;  %v1629_v2 = vsel %vm1400_vm1, %v7764_v32, inf  ;;  %v7797_v51 = vsel %vm1400_vm1, %v1917_v47, 2147483647 }
 0x1c0   :  { %v2075_v47 = vshra.s32 %v7797_v51, 16 }
 0x1c1   :  { %2063 = vmin.xlane.f32.xlu0 %v7755_v38  ;;  %1633 = vmin.xlane.f32.xlu1 %v1632_v12  ;;  %v7779_v12 = vsel %vm1400_vm1, %v1918_v46, 2147483647 }
 0x1c2   :  { %v7766_v49 = vpop.xlane.xlu1 %1471  ;;  %v7768_v37 = vpop.xlane.xlu0 %1468  ;;  %v2090_v46 = vshra.s32 %v7779_v12, 16  ;;  %v7832_v14 = vcvt.s32.f32 %v2075_v47  ;;  %v7849_v47 = vsub.f32 %v7733_v33, %v7515_v20 }
 0x1c4   :  { %v7811_v32 = vcvt.s32.f32 %v2090_v46  ;;  %v7830_v46 = vsub.f32 %v7733_v33, %v7495_v30  ;;  %12361 = vst [vmem:[#allocation203_spill] sm:$0xff] %v7849_v47  ;;  %v1668_v23 = vsel %vm1400_vm1, %v7849_v47, inf }
 0x1c5   :  { %2048 = vmin.xlane.f32.xlu0 %v7776_v41  ;;  %1639 = vmin.xlane.f32.xlu1 %v1638_v9 }
 0x1c6   :  { %v7783_v24 = vpop.xlane.xlu1 %1741  ;;  %v7785_v43 = vpop.xlane.xlu0 %1738  ;;  %12360 = vst [vmem:[#allocation202_spill] sm:$0xff] %v7830_v46  ;;  %v1662_v30 = vsel %vm1400_vm1, %v7830_v46, inf }
 0x1c7   :  { %12354 = vst [vmem:[#allocation196_spill] sm:$0xff] %v7783_v24  ;;  %12355 = vst [vmem:[#allocation197_spill] sm:$0xff] %v7785_v43  ;;  %v1650_v43 = vsel %vm1400_vm1, %v7793_v50, inf }
 0x1c9   :  { %1630 = vmin.xlane.f32.xlu0 %v1629_v2  ;;  %1645 = vmin.xlane.f32.xlu1 %v1644_v6  ;;  %v1920_v2 = vsel %vm1792_vm6, %v7679_v40, 8  ;;  %v1656_v6 = vsel %vm1400_vm1, %v7809_v19, inf }
 0x1ca   :  { %v7801_v9 = vpop.xlane.xlu1 %1477  ;;  %v7803_v24 = vpop.xlane.xlu0 %1474 }
 0x1cd   :  { %2093 = vmin.xlane.f32.xlu0 %v7811_v32  ;;  %1651 = vmin.xlane.f32.xlu1 %v1650_v43  ;;  %v7835_v43 = vsel %vm1400_vm1, %v1920_v2, 2147483647 }
 0x1ce   :  { %v7822_v55 = vpop.xlane.xlu1 %1747  ;;  %v7824_v45 = vpop.xlane.xlu0 %1744  ;;  %v2120_v2 = vshra.s32 %v7835_v43, 16 }
 0x1cf   :  { %12358 = vst [vmem:[#allocation200_spill] sm:$0xff] %v7822_v55  ;;  %12359 = vst [vmem:[#allocation201_spill] sm:$0xff] %v7824_v45  ;;  %v1635_v55 = vsel %vm1400_vm1, %v7820_v25, inf  ;;  %v7853_v45 = vsel %vm1400_vm1, %v1919_v18, 2147483647 }
 0x1d0   :  { %v7863_v7 = vcvt.s32.f32 %v2120_v2  ;;  %v2105_v20 = vshra.s32 %v7853_v45, 16  ;;  %v1921_v2 = vsel %vm1793_vm9, %v7679_v40, 8 }
 0x1d1   :  { %2078 = vmin.xlane.f32.xlu0 %v7832_v14  ;;  %1657 = vmin.xlane.f32.xlu1 %v1656_v6 }
 0x1d2   :  { %v7839_v44 = vpop.xlane.xlu1 %1483  ;;  %v7841_v48 = vpop.xlane.xlu0 %1480  ;;  %v7878_v18 = vcvt.s32.f32 %v2105_v20 }
 0x1d5   :  { %1636 = vmin.xlane.f32.xlu0 %v1635_v55  ;;  %1663 = vmin.xlane.f32.xlu1 %v1662_v30  ;;  %v7881_v30 = vsel %vm1400_vm1, %v1922_v4, 2147483647 }
 0x1d6   :  { %v7857_v6 = vpop.xlane.xlu1 %1753  ;;  %v7859_v3 = vpop.xlane.xlu0 %1750  ;;  %v2150_v31 = vshra.s32 %v7881_v30, 16 }
 0x1d7   :  { %12362 = vst [vmem:[#allocation204_spill] sm:$0xff] %v7857_v6  ;;  %12363 = vst [vmem:[#allocation205_spill] sm:$0xff] %v7859_v3  ;;  %v7893_v6 = vsel %vm1400_vm1, %v1921_v2, 2147483647  ;;  %v12367_v2 = vld [vmem:[#allocation146_spill] sm:$0xff] }
 0x1d8   :  { %v7901_v3 = vcvt.s32.f32 %v2150_v31 }
 0x1d9   :  { %2123 = vmin.xlane.f32.xlu0 %v7863_v7  ;;  %1669 = vmin.xlane.f32.xlu1 %v1668_v23 }
 0x1da   :  { %v7874_v60 = vpop.xlane.xlu1 %1489  ;;  %v7876_v55 = vpop.xlane.xlu0 %1486 }
 0x1dd   :  { %2108 = vmin.xlane.f32.xlu0 %v7878_v18 }
 0x1de   :  { %v7885_v23 = vpop.xlane.xlu1 %1759  ;;  %v7887_v39 = vpop.xlane.xlu0 %1756 }
 0x1df   :  { %12365 = vst [vmem:[#allocation207_spill] sm:$0xff] %v7885_v23  ;;  %12366 = vst [vmem:[#allocation208_spill] sm:$0xff] %v7887_v39  ;;  %v2135_v23 = vshra.s32 %v7893_v6, 16  ;;  %v1924_v39 = vsel %vm1796_vm10, %v7679_v40, 8 }
 0x1e0   :  { %v7919_v31 = vsel %vm1400_vm1, %v1924_v39, 2147483647 }
 0x1e1   :  { %1642 = vmin.xlane.f32.xlu0 %v1641_v5  ;;  %v7910_v5 = vsub.f32 %v7733_v33, %v12367_v2  ;;  %v7916_v61 = vcvt.s32.f32 %v2135_v23  ;;  %v2180_v2 = vshra.s32 %v7919_v31, 16  ;;  %v12371_v23 = vld [vmem:[#allocation74_spill] sm:$0xff] }
 0x1e2   :  { %v7897_v4 = vpop.xlane.xlu1 %1495  ;;  %v7899_v20 = vpop.xlane.xlu0 %1492  ;;  %vm1798_vm12 = vcmp.eq.f32.partialorder %v12371_v23, %v7551_v13 }
 0x1e3   :  { %12368 = vst [vmem:[#allocation146_spill] sm:$0xff] %v7910_v5  ;;  %v1647_v63 = vsel %vm1400_vm1, %v7910_v5, inf  ;;  %v7939_v11 = vcvt.s32.f32 %v2180_v2  ;;  %v1926_v25 = vsel %vm1798_vm12, %v7679_v40, 8  ;;  %v12374_v5 = vld [vmem:[#allocation75_spill] sm:$0xff] }
 0x1e4   :  { %vm1797_vm13 = vcmp.eq.f32.partialorder %v12374_v5, %v7553_v0  ;;  %v7957_v2 = vsel %vm1400_vm1, %v1926_v25, 2147483647 }
 0x1e5   :  { %2153 = vmin.xlane.f32.xlu0 %v7901_v3 }
 0x1e6   :  { %v7912_v27 = vpop.xlane.xlu1 %1765  ;;  %v7914_v10 = vpop.xlane.xlu0 %1762 }
 0x1e7   :  { %12369 = vst [vmem:[#allocation209_spill] sm:$0xff] %v7912_v27  ;;  %12370 = vst [vmem:[#allocation210_spill] sm:$0xff] %v7914_v10  ;;  %v7931_v27 = vsel %vm1400_vm1, %v1923_v1, 2147483647  ;;  %v12375_v1 = vld [vmem:[#allocation149_spill] sm:$0xff] }
 0x1e8   :  { %v2165_v36 = vshra.s32 %v7931_v27, 16  ;;  %12377 = vst [vmem:[#allocation149_spill] sm:$0xff] %v7957_v2 }
 0x1e9   :  { %2138 = vmin.xlane.f32.xlu0 %v7916_v61 }
 0x1ea   :  { %v7923_v35 = vpop.xlane.xlu1 %1501  ;;  %v7925_v58 = vpop.xlane.xlu0 %1498 }
 0x1ed   :  { %1648 = vmin.xlane.f32.xlu0 %v1647_v63  ;;  %v7948_v63 = vsub.f32 %v7733_v33, %v12375_v1  ;;  %v2210_v1 = vshra.s32 %v7957_v2, 16 }
 0x1ee   :  { %v7935_v39 = vpop.xlane.xlu1 %1771  ;;  %v7937_v10 = vpop.xlane.xlu0 %1768 }
 0x1ef   :  { %12372 = vst [vmem:[#allocation74_spill] sm:$0xff] %v7935_v39  ;;  %12373 = vst [vmem:[#allocation211_spill] sm:$0xff] %v7937_v10  ;;  %v7954_v39 = vcvt.s32.f32 %v2165_v36  ;;  %v1925_v10 = vsel %vm1797_vm13, %v7679_v40, 8  ;;  %v1653_v5 = vsel %vm1400_vm1, %v7948_v63, inf  ;;  %v12381_v36 = vld [vmem:[#allocation78_spill] sm:$0xff]  ;;  %v7977_v46 = vcvt.s32.f32 %v2210_v1 }
 0x1f0   :  { %12376 = vst [vmem:[#allocation75_spill] sm:$0xff] %v7948_v63  ;;  %v7969_v21 = vsel %vm1400_vm1, %v1925_v10, 2147483647  ;;  %vm1800_vm14 = vcmp.eq.f32.partialorder %v12381_v36, %v7583_v56  ;;  %v12383_v63 = vld [vmem:[#allocation79_spill] sm:$0xff]  ;;  %v12384_v10 = vld [vmem:[#allocation154_spill] sm:$0xff] }
 0x1f1   :  { %2183 = vmin.xlane.f32.xlu0 %v7939_v11  ;;  %12380 = vst [vmem:[#allocation214_spill] sm:$0xff] %v7969_v21  ;;  %12382 = vst [vmem:[#allocation78_spill] sm:$0xff] %v7977_v46  ;;  %vm1799_vm15 = vcmp.eq.f32.partialorder %v12383_v63, %v7585_v26 }
 0x1f2   :  { %v7950_v13 = vpop.xlane.xlu1 %1507  ;;  %v7952_v23 = vpop.xlane.xlu0 %1504  ;;  %v1927_v42 = vsel %vm1799_vm15, %v7679_v40, 8 }
 0x1f5   :  { %2168 = vmin.xlane.f32.xlu0 %v7954_v39 }
 0x1f6   :  { %v7961_v57 = vpop.xlane.xlu1 %1777  ;;  %v7963_v0 = vpop.xlane.xlu0 %1774 }
 0x1f7   :  { %12378 = vst [vmem:[#allocation212_spill] sm:$0xff] %v7961_v57  ;;  %12379 = vst [vmem:[#allocation213_spill] sm:$0xff] %v7963_v0  ;;  %v2195_v57 = vshra.s32 %v7969_v21, 16  ;;  %v1928_v0 = vsel %vm1800_vm14, %v7679_v40, 8 }
 0x1f8   :  { %v7995_v1 = vsel %vm1400_vm1, %v1928_v0, 2147483647 }
 0x1f9   :  { %1654 = vmin.xlane.f32.xlu0 %v1653_v5  ;;  %v7986_v5 = vsub.f32 %v7733_v33, %v12384_v10  ;;  %v7992_v34 = vcvt.s32.f32 %v2195_v57  ;;  %12389 = vst [vmem:[#allocation217_spill] sm:$0xff] %v7995_v1  ;;  %v2240_v10 = vshra.s32 %v7995_v1, 16  ;;  %v12391_v57 = vld [vmem:[#allocation82_spill] sm:$0xff] }
 0x1fa   :  { %v7973_v25 = vpop.xlane.xlu1 %1513  ;;  %v7975_v47 = vpop.xlane.xlu0 %1510  ;;  %vm1802_vm2 = vcmp.eq.f32.partialorder %v12391_v57, %v7615_v29  ;;  %v8028_v29 = vsub.f32 %v7733_v33, %v7533_v54 }
 0x1fb   :  { %12385 = vst [vmem:[#allocation79_spill] sm:$0xff] %v7986_v5  ;;  %12388 = vst [vmem:[#allocation216_spill] sm:$0xff] %v7992_v34  ;;  %v1659_v63 = vsel %vm1400_vm1, %v7986_v5, inf  ;;  %v1930_v21 = vsel %vm1802_vm2, %v7679_v40, 8  ;;  %v12393_v5 = vld [vmem:[#allocation83_spill] sm:$0xff] }
 0x1fc   :  { %vm1801_vm3 = vcmp.eq.f32.partialorder %v12393_v5, %v7617_v62  ;;  %12394 = vst [vmem:[#allocation83_spill] sm:$0xff] %v8028_v29  ;;  %v1665_v54 = vsel %vm1400_vm1, %v8028_v29, inf }
 0x1fd   :  { %2213 = vmin.xlane.f32.xlu0 %v7977_v46 }
 0x1fe   :  { %v7988_v56 = vpop.xlane.xlu1 %1783  ;;  %v7990_v36 = vpop.xlane.xlu0 %1780 }
 0x1ff   :  { %12386 = vst [vmem:[#allocation154_spill] sm:$0xff] %v7988_v56  ;;  %12387 = vst [vmem:[#allocation215_spill] sm:$0xff] %v7990_v36  ;;  %v8007_v56 = vsel %vm1400_vm1, %v1927_v42, 2147483647 }
 0x200   :  { %12390 = vst [vmem:[#allocation218_spill] sm:$0xff] %v8007_v56  ;;  %v2225_v46 = vshra.s32 %v8007_v56, 16  ;;  %v1929_v56 = vsel %vm1801_vm3, %v7679_v40, 8 }
 0x201   :  { %2198 = vmin.xlane.f32.xlu0 %v7992_v34  ;;  %v8015_v34 = vcvt.s32.f32 %v2240_v10  ;;  %v8033_v10 = vsel %vm1400_vm1, %v1930_v21, 2147483647 }
 0x202   :  { %v7999_v19 = vpop.xlane.xlu1 %1519  ;;  %v8001_v26 = vpop.xlane.xlu0 %1516  ;;  %v8030_v57 = vcvt.s32.f32 %v2225_v46  ;;  %12396 = vst [vmem:[#allocation220_spill] sm:$0xff] %v8033_v10  ;;  %v2270_v33 = vshra.s32 %v8033_v10, 16  ;;  %v8047_v46 = vsel %vm1400_vm1, %v1929_v56, 2147483647 }
 0x203   :  { %12392 = vst [vmem:[#allocation82_spill] sm:$0xff] %v8015_v34  ;;  %v2255_v2 = vshra.s32 %v8047_v46, 16 }
 0x204   :  { %12395 = vst [vmem:[#allocation219_spill] sm:$0xff] %v8030_v57 }
 0x205   :  { %1660 = vmin.xlane.f32.xlu0 %v1659_v63 }
 0x206   :  { %v8011_v0 = vpop.xlane.xlu1 %1525  ;;  %v8013_v36 = vpop.xlane.xlu0 %1522 }
 0x209   :  { %2243 = vmin.xlane.f32.xlu0 %v8015_v34  ;;  %v12397_v34 = vld [vmem:[#allocation86_spill] sm:$0xff] }
 0x20a   :  { %v8022_v42 = vpop.xlane.xlu1 %1531  ;;  %v8024_v63 = vpop.xlane.xlu0 %1528  ;;  %vm1804_vm4 = vcmp.eq.f32.partialorder %v12397_v34, %v7647_v59  ;;  %12398 = vst [vmem:[#allocation86_spill] sm:$0xff] %v8047_v46  ;;  %v8056_v59 = vcvt.s32.f32 %v2270_v33 }
 0x20b   :  { %v1932_v21 = vsel %vm1804_vm4, %v7679_v40, 8 }
 0x20c   :  { %12401 = vst [vmem:[#allocation221_spill] sm:$0xff] %v8056_v59  ;;  %v8060_v29 = vsel %vm1400_vm1, %v1932_v21, 2147483647 }
 0x20d   :  { %2228 = vmin.xlane.f32.xlu0 %v8030_v57  ;;  %v12399_v57 = vld [vmem:[#allocation87_spill] sm:$0xff]  ;;  %12402 = vst [vmem:[#allocation222_spill] sm:$0xff] %v8060_v29  ;;  %v2300_v33 = vshra.s32 %v8060_v29, 16 }
 0x20e   :  { %v8039_v62 = vpop.xlane.xlu1 %1537  ;;  %v8041_v5 = vpop.xlane.xlu0 %1534  ;;  %vm1803_vm5 = vcmp.eq.f32.partialorder %v12399_v57, %v7649_v16  ;;  %v8070_v57 = vcvt.s32.f32 %v2255_v2 }
 0x20f   :  { %v1931_v56 = vsel %vm1803_vm5, %v7679_v40, 8 }
 0x210   :  { %12405 = vst [vmem:[#allocation223_spill] sm:$0xff] %v8070_v57  ;;  %v8074_v46 = vsel %vm1400_vm1, %v1931_v56, 2147483647 }
 0x211   :  { %1666 = vmin.xlane.f32.xlu0 %v1665_v54  ;;  %v12403_v54 = vld [vmem:[#allocation90_spill] sm:$0xff]  ;;  %12406 = vst [vmem:[#allocation224_spill] sm:$0xff] %v8074_v46 }
 0x212   :  { %v8052_v1 = vpop.xlane.xlu1 %1543  ;;  %v8054_v34 = vpop.xlane.xlu0 %1540  ;;  %vm1806_vm6 = vcmp.eq.f32.partialorder %v12403_v54, %v7687_v52  ;;  %v8082_v52 = vcvt.s32.f32 %v2300_v33  ;;  %v2285_v54 = vshra.s32 %v8074_v46, 16  ;;  %v12414_v46 = vld [vmem:[#allocation95_spill] sm:$0xff] }
 0x213   :  { %12400 = vst [vmem:[#allocation87_spill] sm:$0xff] %v8054_v34  ;;  %v1934_v21 = vsel %vm1806_vm6, %v7679_v40, 8  ;;  %vm1807_vm9 = vcmp.eq.f32.partialorder %v12414_v46, %v7724_v8 }
 0x214   :  { %12409 = vst [vmem:[#allocation225_spill] sm:$0xff] %v8082_v52  ;;  %v8086_v2 = vsel %vm1400_vm1, %v1934_v21, 2147483647 }
 0x215   :  { %2273 = vmin.xlane.f32.xlu0 %v8056_v59  ;;  %v12407_v59 = vld [vmem:[#allocation91_spill] sm:$0xff]  ;;  %12410 = vst [vmem:[#allocation226_spill] sm:$0xff] %v8086_v2 }
 0x216   :  { %v8066_v10 = vpop.xlane.xlu0 %1546  ;;  %v8068_v16 = vpop.xlane.xlu1 %1549  ;;  %vm1805_vm7 = vcmp.eq.f32.partialorder %v12407_v59, %v7689_v22  ;;  %v8096_v22 = vcvt.s32.f32 %v2285_v54  ;;  %v2330_v59 = vshra.s32 %v8086_v2, 16 }
 0x217   :  { %12404 = vst [vmem:[#allocation90_spill] sm:$0xff] %v8066_v10  ;;  %v1933_v29 = vsel %vm1805_vm7, %v7679_v40, 8 }
 0x218   :  { %v8100_v33 = vsel %vm1400_vm1, %v1933_v29, 2147483647  ;;  %v1935_v29 = vsel %vm1807_vm9, %v7679_v40, 8 }
 0x219   :  { %2258 = vmin.xlane.f32.xlu0 %v8070_v57  ;;  %v12411_v57 = vld [vmem:[#allocation94_spill] sm:$0xff]  ;;  %12413 = vst [vmem:[#allocation227_spill] sm:$0xff] %v8100_v33 }
 0x21a   :  { %v8080_v34 = vpop.xlane.xlu0 %1552  ;;  %v8089_v56 = vpop.xlane.xlu1 %1555  ;;  %vm1808_vm8 = vcmp.eq.f32.partialorder %v12411_v57, %v7722_v17  ;;  %12412 = vst [vmem:[#allocation94_spill] sm:$0xff] %v8096_v22  ;;  %v8110_v17 = vcvt.s32.f32 %v2330_v59  ;;  %v2315_v57 = vshra.s32 %v8100_v33, 16  ;;  %v8126_v59 = vsel %vm1400_vm1, %v1935_v29, 2147483647 }
 0x21b   :  { %12408 = vst [vmem:[#allocation91_spill] sm:$0xff] %v8080_v34  ;;  %v1936_v21 = vsel %vm1808_vm8, %v7679_v40, 8  ;;  %12421 = vst [vmem:[#allocation231_spill] sm:$0xff] %v8126_v59 }
 0x21c   :  { %12416 = vst [vmem:[#allocation228_spill] sm:$0xff] %v8110_v17  ;;  %v8114_v54 = vsel %vm1400_vm1, %v1936_v21, 2147483647  ;;  %v8122_v8 = vcvt.s32.f32 %v2315_v57 }
 0x21d   :  { %2303 = vmin.xlane.f32.xlu0 %v8082_v52  ;;  %12417 = vst [vmem:[#allocation229_spill] sm:$0xff] %v8114_v54  ;;  %v2360_v46 = vshra.s32 %v8114_v54, 16  ;;  %v12425_v54 = vld [vmem:[#allocation102_spill] sm:$0xff] }
 0x21e   :  { %v8094_v10 = vpop.xlane.xlu0 %1558  ;;  %v8108_v34 = vpop.xlane.xlu1 %1561  ;;  %12420 = vst [vmem:[#allocation230_spill] sm:$0xff] %v8122_v8  ;;  %vm1812_vm12 = vcmp.eq.f32.partialorder %v12425_v54, %v7801_v9 }
 0x221   :  { %2288 = vmin.xlane.f32.xlu0 %v8096_v22  ;;  %v12418_v22 = vld [vmem:[#allocation98_spill] sm:$0xff] }
 0x222   :  { %v8106_v52 = vpop.xlane.xlu0 %1564  ;;  %vm1810_vm10 = vcmp.eq.f32.partialorder %v12418_v22, %v7766_v49  ;;  %v8129_v21 = vpop.xlane.xlu1 %1567  ;;  %v8136_v49 = vcvt.s32.f32 %v2360_v46  ;;  %v2345_v22 = vshra.s32 %v8126_v59, 16 }
 0x223   :  { %12415 = vst [vmem:[#allocation95_spill] sm:$0xff] %v8106_v52  ;;  %v1938_v33 = vsel %vm1810_vm10, %v7679_v40, 8 }
 0x224   :  { %v8140_v57 = vsel %vm1400_vm1, %v1938_v33, 2147483647  ;;  %v1940_v33 = vsel %vm1812_vm12, %v7679_v40, 8 }
 0x225   :  { %2333 = vmin.xlane.f32.xlu0 %v8110_v17  ;;  %v12422_v17 = vld [vmem:[#allocation99_spill] sm:$0xff]  ;;  %12424 = vst [vmem:[#allocation232_spill] sm:$0xff] %v8140_v57 }
 0x226   :  { %v8120_v2 = vpop.xlane.xlu0 %1570  ;;  %vm1809_vm11 = vcmp.eq.f32.partialorder %v12422_v17, %v7768_v37  ;;  %12423 = vst [vmem:[#allocation99_spill] sm:$0xff] %v8136_v49  ;;  %v8150_v37 = vcvt.s32.f32 %v2345_v22  ;;  %v2390_v17 = vshra.s32 %v8140_v57, 16  ;;  %v8166_v22 = vsel %vm1400_vm1, %v1940_v33, 2147483647 }
 0x227   :  { %12419 = vst [vmem:[#allocation98_spill] sm:$0xff] %v8120_v2  ;;  %v1937_v29 = vsel %vm1809_vm11, %v7679_v40, 8  ;;  %v8148_v2 = vpop.xlane.xlu1 %1573 }
 0x228   :  { %12427 = vst [vmem:[#allocation233_spill] sm:$0xff] %v8150_v37  ;;  %v8154_v46 = vsel %vm1400_vm1, %v1937_v29, 2147483647  ;;  %v8162_v9 = vcvt.s32.f32 %v2390_v17 }
 0x229   :  { %2318 = vmin.xlane.f32.xlu0 %v8122_v8  ;;  %12428 = vst [vmem:[#allocation234_spill] sm:$0xff] %v8154_v46  ;;  %v2375_v54 = vshra.s32 %v8154_v46, 16 }
 0x22a   :  { %v8134_v52 = vpop.xlane.xlu0 %1576  ;;  %12431 = vst [vmem:[#allocation235_spill] sm:$0xff] %v8162_v9 }
 0x22b   :  { %v8169_v29 = vpop.xlane.xlu1 %1579 }
 0x22d   :  { %2363 = vmin.xlane.f32.xlu0 %v8136_v49  ;;  %v12429_v49 = vld [vmem:[#allocation103_spill] sm:$0xff] }
 0x22e   :  { %v8146_v8 = vpop.xlane.xlu0 %1582  ;;  %vm1811_vm13 = vcmp.eq.f32.partialorder %v12429_v49, %v7803_v24  ;;  %v8176_v24 = vcvt.s32.f32 %v2375_v54  ;;  %v2420_v49 = vshra.s32 %v8166_v22, 16 }
 0x22f   :  { %12426 = vst [vmem:[#allocation102_spill] sm:$0xff] %v8146_v8  ;;  %v1939_v57 = vsel %vm1811_vm13, %v7679_v40, 8  ;;  %v8188_v46 = vpop.xlane.xlu1 %1585 }
 0x230   :  { %12434 = vst [vmem:[#allocation236_spill] sm:$0xff] %v8176_v24  ;;  %v8180_v17 = vsel %vm1400_vm1, %v1939_v57, 2147483647 }
 0x231   :  { %2348 = vmin.xlane.f32.xlu0 %v8150_v37  ;;  %v12432_v37 = vld [vmem:[#allocation106_spill] sm:$0xff]  ;;  %12435 = vst [vmem:[#allocation237_spill] sm:$0xff] %v8180_v17 }
 0x232   :  { %v8160_v59 = vpop.xlane.xlu0 %1588  ;;  %vm1814_vm14 = vcmp.eq.f32.partialorder %v12432_v37, %v7839_v44  ;;  %v8190_v44 = vcvt.s32.f32 %v2420_v49  ;;  %v2405_v37 = vshra.s32 %v8180_v17, 16 }
 0x233   :  { %12430 = vst [vmem:[#allocation103_spill] sm:$0xff] %v8160_v59  ;;  %v1942_v33 = vsel %vm1814_vm14, %v7679_v40, 8  ;;  %v12436_v59 = vld [vmem:[#allocation107_spill] sm:$0xff] }
 0x234   :  { %vm1813_vm15 = vcmp.eq.f32.partialorder %v12436_v59, %v7841_v48  ;;  %12438 = vst [vmem:[#allocation238_spill] sm:$0xff] %v8190_v44  ;;  %v8194_v54 = vsel %vm1400_vm1, %v1942_v33, 2147483647  ;;  %v8202_v48 = vcvt.s32.f32 %v2405_v37  ;;  %v8209_v33 = vpop.xlane.xlu1 %1591 }
 0x235   :  { %2393 = vmin.xlane.f32.xlu0 %v8162_v9  ;;  %12439 = vst [vmem:[#allocation239_spill] sm:$0xff] %v8194_v54  ;;  %v1941_v57 = vsel %vm1813_vm15, %v7679_v40, 8  ;;  %v2450_v59 = vshra.s32 %v8194_v54, 16 }
 0x236   :  { %v8174_v8 = vpop.xlane.xlu0 %1594  ;;  %12442 = vst [vmem:[#allocation240_spill] sm:$0xff] %v8202_v48  ;;  %v8206_v49 = vsel %vm1400_vm1, %v1941_v57, 2147483647 }
 0x237   :  { %12433 = vst [vmem:[#allocation106_spill] sm:$0xff] %v8174_v8  ;;  %v12440_v8 = vld [vmem:[#allocation110_spill] sm:$0xff] }
 0x238   :  { %vm1816_vm2 = vcmp.eq.f32.partialorder %v12440_v8, %v7874_v60  ;;  %v8216_v60 = vcvt.s32.f32 %v2450_v59  ;;  %v2435_v8 = vshra.s32 %v8206_v49, 16  ;;  %v8228_v54 = vpop.xlane.xlu1 %1597 }
 0x239   :  { %2378 = vmin.xlane.f32.xlu0 %v8176_v24 }
 0x23a   :  { %v8186_v9 = vpop.xlane.xlu0 %1600  ;;  %12445 = vst [vmem:[#allocation241_spill] sm:$0xff] %v8216_v60 }
 0x23b   :  { %12437 = vst [vmem:[#allocation107_spill] sm:$0xff] %v8186_v9  ;;  %v1944_v9 = vsel %vm1816_vm2, %v7679_v40, 8 }
 0x23c   :  { %v8220_v37 = vsel %vm1400_vm1, %v1944_v9, 2147483647 }
 0x23d   :  { %2423 = vmin.xlane.f32.xlu0 %v8190_v44  ;;  %v12443_v44 = vld [vmem:[#allocation111_spill] sm:$0xff]  ;;  %12446 = vst [vmem:[#allocation242_spill] sm:$0xff] %v8220_v37 }
 0x23e   :  { %v8200_v24 = vpop.xlane.xlu0 %1606  ;;  %vm1815_vm3 = vcmp.eq.f32.partialorder %v12443_v44, %v7876_v55  ;;  %v8230_v55 = vcvt.s32.f32 %v2435_v8  ;;  %v2480_v44 = vshra.s32 %v8220_v37, 16  ;;  %v8250_v37 = vpop.xlane.xlu1 %1603 }
 0x23f   :  { %12441 = vst [vmem:[#allocation110_spill] sm:$0xff] %v8200_v24  ;;  %v1943_v57 = vsel %vm1815_vm3, %v7679_v40, 8  ;;  %v12447_v24 = vld [vmem:[#allocation114_spill] sm:$0xff] }
 0x240   :  { %vm1818_vm4 = vcmp.eq.f32.partialorder %v12447_v24, %v7897_v4  ;;  %12449 = vst [vmem:[#allocation243_spill] sm:$0xff] %v8230_v55  ;;  %v8234_v59 = vsel %vm1400_vm1, %v1943_v57, 2147483647  ;;  %v2059_v4 = vand.u32 65535, %v7719_v15  ;;  %v8243_v24 = vcvt.s32.f32 %v2480_v44 }
 0x241   :  { %2408 = vmin.xlane.f32.xlu0 %v8202_v48  ;;  %12450 = vst [vmem:[#allocation244_spill] sm:$0xff] %v8234_v59  ;;  %v1946_v9 = vsel %vm1818_vm4, %v7679_v40, 8  ;;  %v2465_v8 = vshra.s32 %v8234_v59, 16  ;;  %v2044_v15 = vand.u32 65535, %v7741_v28 }
 0x242   :  { %v8214_v17 = vpop.xlane.xlu0 %1612  ;;  %12453 = vst [vmem:[#allocation245_spill] sm:$0xff] %v8243_v24 }
 0x243   :  { %12444 = vst [vmem:[#allocation111_spill] sm:$0xff] %v8214_v17  ;;  %v12451_v17 = vld [vmem:[#allocation115_spill] sm:$0xff]  ;;  %v8260_v44 = vcvt.s32.f32 %v2465_v8 }
 0x244   :  { %vm1817_vm5 = vcmp.eq.f32.partialorder %v12451_v17, %v7899_v20  ;;  %v2061_v17 = vcvt.s32.f32 %v2059_v4 }
 0x245   :  { %2453 = vmin.xlane.f32.xlu0 %v8216_v60  ;;  %v1945_v57 = vsel %vm1817_vm5, %v7679_v40, 8 }
 0x246   :  { %v8226_v48 = vpop.xlane.xlu0 %1618 }
 0x247   :  { %12448 = vst [vmem:[#allocation114_spill] sm:$0xff] %v8226_v48  ;;  %v8247_v48 = vsel %vm1400_vm1, %v1946_v9, 2147483647 }
 0x248   :  { %v2510_v9 = vshra.s32 %v8247_v48, 16 }
 0x249   :  { %2438 = vmin.xlane.f32.xlu0 %v8230_v55  ;;  %v12454_v55 = vld [vmem:[#allocation118_spill] sm:$0xff] }
 0x24a   :  { %v8240_v60 = vpop.xlane.xlu0 %1624  ;;  %vm1820_vm6 = vcmp.eq.f32.partialorder %v12454_v55, %v7923_v35  ;;  %v12456_v35 = vld [vmem:[#allocation119_spill] sm:$0xff]  ;;  %v2046_v55 = vcvt.s32.f32 %v2044_v15  ;;  %v8276_v4 = vcvt.s32.f32 %v2510_v9 }
 0x24b   :  { %12452 = vst [vmem:[#allocation115_spill] sm:$0xff] %v8240_v60  ;;  %v8264_v60 = vsel %vm1400_vm1, %v1945_v57, 2147483647  ;;  %vm1819_vm8 = vcmp.eq.f32.partialorder %v12456_v35, %v7925_v58  ;;  %v12458_v58 = vld [vmem:[#allocation122_spill] sm:$0xff] }
 0x24c   :  { %v2495_v8 = vshra.s32 %v8264_v60, 16  ;;  %vm1822_vm10 = vcmp.eq.f32.partialorder %v12458_v58, %v7950_v13 }
 0x24d   :  { %2483 = vmin.xlane.f32.xlu0 %v8243_v24  ;;  %v1948_v24 = vsel %vm1820_vm6, %v7679_v40, 8 }
 0x24e   :  { %v8255_v20 = vpop.xlane.xlu0 %2063  ;;  %v8280_v57 = vsel %vm1400_vm1, %v1948_v24, 2147483647  ;;  %v8289_v9 = vcvt.s32.f32 %v2495_v8 }
 0x24f   :  { %12455 = vst [vmem:[#allocation118_spill] sm:$0xff] %v8255_v20  ;;  %vm2065_vm7 = vcmp.eq.f32.partialorder %v7755_v38, %v8255_v20  ;;  %v8272_v38 = vpop.xlane.xlu1 %1609  ;;  %v2540_v35 = vshra.s32 %v8280_v57, 16 }
 0x250   :  { %v2066_v59 = vsel %vm2065_vm7, %v2061_v17, inf  ;;  %v1947_v17 = vsel %vm1819_vm8, %v7679_v40, 8 }
 0x251   :  { %2067 = vmin.xlane.f32.xlu1 %v2066_v59  ;;  %2468 = vmin.xlane.f32.xlu0 %v8260_v44  ;;  %v8293_v24 = vsel %vm1400_vm1, %v1947_v17, 2147483647  ;;  %v8306_v8 = vcvt.s32.f32 %v2540_v35 }
 0x252   :  { %v8270_v28 = vpop.xlane.xlu0 %2048  ;;  %v2525_v17 = vshra.s32 %v8293_v24, 16 }
 0x253   :  { %12457 = vst [vmem:[#allocation119_spill] sm:$0xff] %v8270_v28  ;;  %vm2050_vm9 = vcmp.eq.f32.partialorder %v7776_v41, %v8270_v28  ;;  %v2089_v41 = vand.u32 65535, %v7779_v12  ;;  %v8296_v28 = vpop.xlane.xlu1 %1615  ;;  %v2074_v12 = vand.u32 65535, %v7797_v51 }
 0x254   :  { %v2051_v59 = vsel %vm2050_vm9, %v2046_v55, inf  ;;  %v1950_v55 = vsel %vm1822_vm10, %v7679_v40, 8  ;;  %12460 = vst [vmem:[#allocation246_spill] sm:$0xff] %v8296_v28  ;;  %v8322_v35 = vcvt.s32.f32 %v2525_v17 }
 0x255   :  { %2052 = vmin.xlane.f32.xlu1 %v2051_v59  ;;  %2513 = vmin.xlane.f32.xlu0 %v8276_v4  ;;  %v12461_v59 = vld [vmem:[#allocation123_spill] sm:$0xff]  ;;  %v2091_v58 = vcvt.s32.f32 %v2089_v41  ;;  %v8310_v20 = vsel %vm1400_vm1, %v1950_v55, 2147483647  ;;  %v2076_v41 = vcvt.s32.f32 %v2074_v12 }
 0x256   :  { %v8286_v15 = vpop.xlane.xlu0 %1630  ;;  %vm1821_vm11 = vcmp.eq.f32.partialorder %v12461_v59, %v7952_v23  ;;  %v12463_v23 = vld [vmem:[#allocation126_spill] sm:$0xff]  ;;  %v2570_v55 = vshra.s32 %v8310_v20, 16 }
 0x257   :  { %12459 = vst [vmem:[#allocation122_spill] sm:$0xff] %v8286_v15  ;;  %v1949_v28 = vsel %vm1821_vm11, %v7679_v40, 8  ;;  %vm1824_vm13 = vcmp.eq.f32.partialorder %v12463_v23, %v7973_v25  ;;  %v12465_v25 = vld [vmem:[#allocation127_spill] sm:$0xff] }
 0x258   :  { %v8326_v59 = vsel %vm1400_vm1, %v1949_v28, 2147483647  ;;  %vm1823_vm15 = vcmp.eq.f32.partialorder %v12465_v25, %v7975_v47  ;;  %v8335_v17 = vcvt.s32.f32 %v2570_v55 }
 0x259   :  { %2498 = vmin.xlane.f32.xlu0 %v8289_v9  ;;  %v2555_v23 = vshra.s32 %v8326_v59, 16 }
 0x25a   :  { %v8301_v13 = vpop.xlane.xlu0 %2093  ;;  %12466 = vst [vmem:[#allocation127_spill] sm:$0xff] %v8335_v17 }
 0x25b   :  { %12462 = vst [vmem:[#allocation123_spill] sm:$0xff] %v8301_v13  ;;  %vm2095_vm12 = vcmp.eq.f32.partialorder %v7811_v32, %v8301_v13  ;;  %v8318_v32 = vpop.xlane.xlu1 %1621  ;;  %v8352_v55 = vcvt.s32.f32 %v2555_v23 }
 0x25c   :  { %v2096_v15 = vsel %vm2095_vm12, %v2091_v58, inf  ;;  %v1952_v58 = vsel %vm1824_vm13, %v7679_v40, 8 }
 0x25d   :  { %2097 = vmin.xlane.f32.xlu1 %v2096_v15  ;;  %2543 = vmin.xlane.f32.xlu0 %v8306_v8  ;;  %v8339_v28 = vsel %vm1400_vm1, %v1952_v58, 2147483647 }
 0x25e   :  { %v8316_v51 = vpop.xlane.xlu0 %2078  ;;  %v2600_v58 = vshra.s32 %v8339_v28, 16 }
 0x25f   :  { %12464 = vst [vmem:[#allocation126_spill] sm:$0xff] %v8316_v51  ;;  %vm2080_vm14 = vcmp.eq.f32.partialorder %v7832_v14, %v8316_v51  ;;  %v2119_v14 = vand.u32 65535, %v7835_v43  ;;  %v8342_v51 = vpop.xlane.xlu1 %1627  ;;  %v2104_v43 = vand.u32 65535, %v7853_v45 }
 0x260   :  { %v2081_v15 = vsel %vm2080_vm14, %v2076_v41, inf  ;;  %v1951_v41 = vsel %vm1823_vm15, %v7679_v40, 8  ;;  %12467 = vst [vmem:[#allocation247_spill] sm:$0xff] %v8342_v51  ;;  %v8368_v23 = vcvt.s32.f32 %v2600_v58 }
 0x261   :  { %2082 = vmin.xlane.f32.xlu1 %v2081_v15  ;;  %2528 = vmin.xlane.f32.xlu0 %v8322_v35  ;;  %v12468_v15 = vld [vmem:[#allocation131_spill] sm:$0xff]  ;;  %v2121_v25 = vcvt.s32.f32 %v2119_v14  ;;  %v8356_v13 = vsel %vm1400_vm1, %v1951_v41, 2147483647  ;;  %v2106_v14 = vcvt.s32.f32 %v2104_v43 }
 0x262   :  { %v8332_v12 = vpop.xlane.xlu0 %1636  ;;  %vm1826_vm2 = vcmp.eq.f32.partialorder %v12468_v15, %v7999_v19  ;;  %v12469_v19 = vld [vmem:[#allocation132_spill] sm:$0xff]  ;;  %v2585_v41 = vshra.s32 %v8356_v13, 16 }
 0x263   :  { %vm1825_vm4 = vcmp.eq.f32.partialorder %v12469_v19, %v8001_v26  ;;  %v12472_v26 = vld [vmem:[#allocation135_spill] sm:$0xff] }
 0x264   :  { %vm1828_vm6 = vcmp.eq.f32.partialorder %v12472_v26, %v8011_v0  ;;  %v8381_v58 = vcvt.s32.f32 %v2585_v41 }
 0x265   :  { %2573 = vmin.xlane.f32.xlu0 %v8335_v17  ;;  %v1954_v17 = vsel %vm1826_vm2, %v7679_v40, 8 }
 0x266   :  { %v8347_v47 = vpop.xlane.xlu0 %2123  ;;  %v8372_v15 = vsel %vm1400_vm1, %v1954_v17, 2147483647  ;;  %12474 = vst [vmem:[#allocation248_spill] sm:$0xff] %v8381_v58 }
 0x267   :  { %vm2125_vm3 = vcmp.eq.f32.partialorder %v7863_v7, %v8347_v47  ;;  %v8364_v7 = vpop.xlane.xlu1 %1633  ;;  %12471 = vst [vmem:[#allocation132_spill] sm:$0xff] %v8372_v15  ;;  %v2630_v19 = vshra.s32 %v8372_v15, 16 }
 0x268   :  { %v2126_v51 = vsel %vm2125_vm3, %v2121_v25, inf  ;;  %12470 = vst [vmem:[#allocation131_spill] sm:$0xff] %v8364_v7  ;;  %v1953_v25 = vsel %vm1825_vm4, %v7679_v40, 8 }
 0x269   :  { %2127 = vmin.xlane.f32.xlu1 %v2126_v51  ;;  %2558 = vmin.xlane.f32.xlu0 %v8352_v55  ;;  %v8385_v17 = vsel %vm1400_vm1, %v1953_v25, 2147483647  ;;  %v8398_v41 = vcvt.s32.f32 %v2630_v19 }
 0x26a   :  { %v8362_v45 = vpop.xlane.xlu0 %2108  ;;  %v2615_v25 = vshra.s32 %v8385_v17, 16 }
 0x26b   :  { %vm2110_vm5 = vcmp.eq.f32.partialorder %v7878_v18, %v8362_v45  ;;  %v2149_v18 = vand.u32 65535, %v7881_v30  ;;  %v8388_v7 = vpop.xlane.xlu1 %1639  ;;  %v2134_v30 = vand.u32 65535, %v7893_v6 }
 0x26c   :  { %v2111_v51 = vsel %vm2110_vm5, %v2106_v14, inf  ;;  %v1956_v14 = vsel %vm1828_vm6, %v7679_v40, 8  ;;  %v8412_v19 = vcvt.s32.f32 %v2615_v25 }
 0x26d   :  { %2112 = vmin.xlane.f32.xlu1 %v2111_v51  ;;  %2603 = vmin.xlane.f32.xlu0 %v8368_v23  ;;  %v12475_v51 = vld [vmem:[#allocation136_spill] sm:$0xff]  ;;  %v2151_v26 = vcvt.s32.f32 %v2149_v18  ;;  %v2136_v18 = vcvt.s32.f32 %v2134_v30 }
 0x26e   :  { %v8378_v43 = vpop.xlane.xlu0 %1642  ;;  %vm1827_vm7 = vcmp.eq.f32.partialorder %v12475_v51, %v8013_v36  ;;  %v12476_v36 = vld [vmem:[#allocation138_spill] sm:$0xff] }
 0x26f   :  { %12473 = vst [vmem:[#allocation135_spill] sm:$0xff] %v8378_v43  ;;  %v8402_v43 = vsel %vm1400_vm1, %v1956_v14, 2147483647  ;;  %vm1830_vm9 = vcmp.eq.f32.partialorder %v12476_v36, %v8022_v42  ;;  %v12478_v42 = vld [vmem:[#allocation139_spill] sm:$0xff] }
 0x270   :  { %v2660_v14 = vshra.s32 %v8402_v43, 16  ;;  %vm1829_vm11 = vcmp.eq.f32.partialorder %v12478_v42, %v8024_v63  ;;  %v12480_v63 = vld [vmem:[#allocation140_spill] sm:$0xff] }
 0x271   :  { %2588 = vmin.xlane.f32.xlu0 %v8381_v58  ;;  %v1955_v58 = vsel %vm1827_vm7, %v7679_v40, 8  ;;  %vm1832_vm13 = vcmp.eq.f32.partialorder %v12480_v63, %v8039_v62 }
 0x272   :  { %v8393_v0 = vpop.xlane.xlu0 %2153  ;;  %v8416_v51 = vsel %vm1400_vm1, %v1955_v58, 2147483647  ;;  %v8426_v25 = vcvt.s32.f32 %v2660_v14  ;;  %v1960_v62 = vsel %vm1832_vm13, %v7679_v40, 8 }
 0x273   :  { %vm2155_vm8 = vcmp.eq.f32.partialorder %v7901_v3, %v8393_v0  ;;  %v1646_v3 = vpop.xlane.xlu1 %1645  ;;  %12477 = vst [vmem:[#allocation136_spill] sm:$0xff] %v8416_v51  ;;  %v2645_v58 = vshra.s32 %v8416_v51, 16 }
 0x274   :  { %v2156_v15 = vsel %vm2155_vm8, %v2151_v26, inf  ;;  %v1958_v26 = vsel %vm1830_vm9, %v7679_v40, 8  ;;  %vm1868_vm12 = vcmp.eq.f32.partialorder %v7774_v53, %v1646_v3  ;;  %12479 = vst [vmem:[#allocation138_spill] sm:$0xff] %v8426_v25 }
 0x275   :  { %2157 = vmin.xlane.f32.xlu1 %v2156_v15  ;;  %2633 = vmin.xlane.f32.xlu0 %v8398_v41  ;;  %v8430_v36 = vsel %vm1400_vm1, %v1958_v26, 2147483647  ;;  %v8442_v14 = vcvt.s32.f32 %v2645_v58 }
 0x276   :  { %v8408_v6 = vpop.xlane.xlu0 %2138  ;;  %v2690_v26 = vshra.s32 %v8430_v36, 16 }
 0x277   :  { %vm2140_vm10 = vcmp.eq.f32.partialorder %v7916_v61, %v8408_v6  ;;  %v2179_v61 = vand.u32 65535, %v7919_v31  ;;  %v2164_v31 = vand.u32 65535, %v7931_v27  ;;  %12481 = vst [vmem:[#allocation139_spill] sm:$0xff] %v8442_v14  ;;  %v12484_v27 = vld [vmem:[#allocation141_spill] sm:$0xff]  ;;  %v1652_v58 = vpop.xlane.xlu1 %1651 }
 0x278   :  { %v2141_v15 = vsel %vm2140_vm10, %v2136_v18, inf  ;;  %v1957_v18 = vsel %vm1829_vm11, %v7679_v40, 8  ;;  %vm1831_vm15 = vcmp.eq.f32.partialorder %v12484_v27, %v8041_v5  ;;  %v12487_v5 = vld [vmem:[#allocation144_spill] sm:$0xff]  ;;  %vm1870_vm4 = vcmp.eq.f32.partialorder %v7793_v50, %v1652_v58  ;;  %v12492_v50 = vld [vmem:[#allocation87_spill] sm:$0xff] }
 0x279   :  { %2142 = vmin.xlane.f32.xlu1 %v2141_v15  ;;  %2618 = vmin.xlane.f32.xlu0 %v8412_v19  ;;  %v1996_v15 = vsel %vm1868_vm12, %v7679_v40, 8  ;;  %v2181_v3 = vcvt.s32.f32 %v2179_v61  ;;  %v8446_v42 = vsel %vm1400_vm1, %v1957_v18, 2147483647  ;;  %v2166_v61 = vcvt.s32.f32 %v2164_v31  ;;  %v12488_v31 = vld [vmem:[#allocation149_spill] sm:$0xff] }
 0x27a   :  { %v8423_v30 = vpop.xlane.xlu0 %1648  ;;  %12482 = vst [vmem:[#allocation140_spill] sm:$0xff] %v8446_v42  ;;  %v8459_v18 = vcvt.s32.f32 %v2690_v26  ;;  %v2675_v63 = vshra.s32 %v8446_v42, 16  ;;  %vm1834_vm3 = vcmp.eq.f32.partialorder %v12487_v5, %v8052_v1  ;;  %v2209_v26 = vand.u32 65535, %v12488_v31  ;;  %v12493_v1 = vld [vmem:[#allocation145_spill] sm:$0xff]  ;;  %v12496_v31 = vld [vmem:[#allocation78_spill] sm:$0xff] }
 0x27b   :  { %vm1833_vm5 = vcmp.eq.f32.partialorder %v12493_v1, %v12492_v50  ;;  %v11847_v42 = vmov 0.0  }
 0x27c   :  { %12485 = vst [vmem:[#allocation141_spill] sm:$0xff] %v8459_v18  ;;  %42 = vst.msk [vmem:[#allocation2] sm:$0xff] %vm41_vm0, %v11847_v42  ;;  %v1961_v1 = vsel %vm1833_vm5, %v7679_v40, 8  ;;  %v12502_v42 = vld [vmem:[#allocation216_spill] sm:$0xff] }
 0x27d   :  { %2663 = vmin.xlane.f32.xlu0 %v8426_v25  ;;  %v8449_v25 = vsel %vm1400_vm1, %v1996_v15, 2147483647 }
 0x27e   :  { %v8437_v53 = vpop.xlane.xlu0 %2183  ;;  %12483 = vst [vmem:[#allocation249_spill] sm:$0xff] %v8449_v25  ;;  %v3260_v15 = vshra.s32 %v8449_v25, 16  ;;  %v8476_v25 = vcvt.s32.f32 %v2675_v63  ;;  %v12495_v63 = vld [vmem:[#allocation214_spill] sm:$0xff] }
 0x27f   :  { %vm2185_vm14 = vcmp.eq.f32.partialorder %v7939_v11, %v8437_v53  ;;  %v2194_v5 = vand.u32 65535, %v12495_v63 }
 0x280   :  { %v2186_v51 = vsel %vm2185_vm14, %v2181_v3, inf  ;;  %v8474_v27 = vcvt.s32.f32 %v3260_v15  ;;  %12490 = vst [vmem:[#allocation149_spill] sm:$0xff] %v8476_v25  ;;  %v2211_v15 = vcvt.s32.f32 %v2209_v26 }
 0x281   :  { %2187 = vmin.xlane.f32.xlu1 %v2186_v51  ;;  %2648 = vmin.xlane.f32.xlu0 %v8442_v14  ;;  %v8464_v51 = vsel %vm1400_vm1, %v1960_v62, 2147483647  ;;  %v1959_v14 = vsel %vm1831_vm15, %v7679_v40, 8 }
 0x282   :  { %v8455_v11 = vpop.xlane.xlu0 %2168  ;;  %12486 = vst [vmem:[#allocation250_spill] sm:$0xff] %v8464_v51  ;;  %12489 = vst [vmem:[#allocation144_spill] sm:$0xff] %v8474_v27  ;;  %v2720_v62 = vshra.s32 %v8464_v51, 16 }
 0x283   :  { %vm2170_vm2 = vcmp.eq.f32.partialorder %v7954_v39, %v8455_v11 }
 0x284   :  { %v2171_v3 = vsel %vm2170_vm2, %v2166_v61, inf  ;;  %v8480_v61 = vsel %vm1400_vm1, %v1959_v14, 2147483647  ;;  %v8493_v14 = vcvt.s32.f32 %v2720_v62  ;;  %v12500_v62 = vld [vmem:[#allocation147_spill] sm:$0xff] }
 0x285   :  { %2172 = vmin.xlane.f32.xlu1 %v2171_v3  ;;  %2693 = vmin.xlane.f32.xlu0 %v8459_v18  ;;  %12491 = vst [vmem:[#allocation251_spill] sm:$0xff] %v8480_v61  ;;  %v1962_v3 = vsel %vm1834_vm3, %v7679_v40, 8  ;;  %v1998_v18 = vsel %vm1870_vm4, %v7679_v40, 8  ;;  %v2705_v51 = vshra.s32 %v8480_v61, 16  ;;  %vm1836_vm7 = vcmp.eq.f32.partialorder %v12500_v62, %v8068_v16  ;;  %v1658_v61 = vpop.xlane.xlu1 %1657  ;;  %v12505_v16 = vld [vmem:[#allocation90_spill] sm:$0xff] }
 0x286   :  { %v8471_v39 = vpop.xlane.xlu0 %1654  ;;  %12497 = vst [vmem:[#allocation145_spill] sm:$0xff] %v8493_v14  ;;  %v8502_v50 = vsel %vm1400_vm1, %v1998_v18, 2147483647  ;;  %v12507_v62 = vld [vmem:[#allocation198_spill] sm:$0xff] }
 0x287   :  { %12499 = vst [vmem:[#allocation78_spill] sm:$0xff] %v8502_v50  ;;  %v3290_v18 = vshra.s32 %v8502_v50, 16  ;;  %vm1872_vm10 = vcmp.eq.f32.partialorder %v12507_v62, %v1658_v61  ;;  %v12512_v61 = vld [vmem:[#allocation152_spill] sm:$0xff]  ;;  %v12515_v62 = vld [vmem:[#allocation82_spill] sm:$0xff] }
 0x288   :  { %vm1838_vm11 = vcmp.eq.f32.partialorder %v12512_v61, %v8089_v56  ;;  %v12520_v61 = vld [vmem:[#allocation153_spill] sm:$0xff] }
 0x289   :  { %3263 = vmin.xlane.f32.xlu1 %v8474_v27  ;;  %2678 = vmin.xlane.f32.xlu0 %v8476_v25  ;;  %v8499_v27 = vsel %vm1400_vm1, %v1962_v3, 2147483647  ;;  %v8512_v3 = vcvt.s32.f32 %v2705_v51  ;;  %v1964_v25 = vsel %vm1836_vm7, %v7679_v40, 8  ;;  %v12508_v51 = vld [vmem:[#allocation217_spill] sm:$0xff]  ;;  %v1966_v56 = vsel %vm1838_vm11, %v7679_v40, 8 }
 0x28a   :  { %v8488_v58 = vpop.xlane.xlu0 %2213  ;;  %12498 = vst [vmem:[#allocation214_spill] sm:$0xff] %v8499_v27  ;;  %v2239_v50 = vand.u32 65535, %v12508_v51 }
 0x28b   :  { %12494 = vst [vmem:[#allocation87_spill] sm:$0xff] %v8488_v58  ;;  %vm2215_vm6 = vcmp.eq.f32.partialorder %v12496_v31, %v8488_v58  ;;  %v2196_v31 = vcvt.s32.f32 %v2194_v5  ;;  %12503 = vst [vmem:[#allocation216_spill] sm:$0xff] %v8512_v3  ;;  %v12506_v5 = vld [vmem:[#allocation148_spill] sm:$0xff]  ;;  %v12560_v58 = vld [vmem:[#allocation66_spill] sm:$0xff] }
 0x28c   :  { %v2216_v26 = vsel %vm2215_vm6, %v2211_v15, inf  ;;  %v2750_v15 = vshra.s32 %v8499_v27, 16  ;;  %vm1835_vm9 = vcmp.eq.f32.partialorder %v12506_v5, %v12505_v16  ;;  %v12514_v16 = vld [vmem:[#allocation218_spill] sm:$0xff] }
 0x28d   :  { %2217 = vmin.xlane.f32.xlu1 %v2216_v26  ;;  %2723 = vmin.xlane.f32.xlu0 %v8493_v14  ;;  %v8517_v26 = vsel %vm1400_vm1, %v1961_v1, 2147483647  ;;  %v2224_v5 = vand.u32 65535, %v12514_v16 }
 0x28e   :  { %v8508_v63 = vpop.xlane.xlu0 %2198  ;;  %12504 = vst [vmem:[#allocation252_spill] sm:$0xff] %v8517_v26  ;;  %v8529_v27 = vcvt.s32.f32 %v2750_v15  ;;  %v2735_v1 = vshra.s32 %v8517_v26, 16  ;;  %v2241_v15 = vcvt.s32.f32 %v2239_v50  ;;  %v12519_v50 = vld [vmem:[#allocation91_spill] sm:$0xff] }
 0x28f   :  { %12501 = vst [vmem:[#allocation147_spill] sm:$0xff] %v8508_v63  ;;  %vm2200_vm8 = vcmp.eq.f32.partialorder %v12502_v42, %v8508_v63  ;;  %v8527_v63 = vcvt.s32.f32 %v3290_v18  ;;  %vm1837_vm13 = vcmp.eq.f32.partialorder %v12520_v61, %v12519_v50  ;;  %v12526_v50 = vld [vmem:[#allocation202_spill] sm:$0xff] }
 0x290   :  { %v2201_v14 = vsel %vm2200_vm8, %v2196_v31, inf  ;;  %12510 = vst [vmem:[#allocation148_spill] sm:$0xff] %v8529_v27  ;;  %v8533_v31 = vsel %vm1400_vm1, %v1964_v25, 2147483647  ;;  %v8546_v25 = vcvt.s32.f32 %v2735_v1  ;;  %v2226_v1 = vcvt.s32.f32 %v2224_v5  ;;  %v12525_v5 = vld [vmem:[#allocation155_spill] sm:$0xff] }
 0x291   :  { %2202 = vmin.xlane.f32.xlu1 %v2201_v14  ;;  %2708 = vmin.xlane.f32.xlu0 %v8512_v3  ;;  %12509 = vst [vmem:[#allocation90_spill] sm:$0xff] %v8527_v63  ;;  %12511 = vst [vmem:[#allocation198_spill] sm:$0xff] %v8533_v31  ;;  %v1963_v14 = vsel %vm1835_vm9, %v7679_v40, 8  ;;  %v2000_v3 = vsel %vm1872_vm10, %v7679_v40, 8  ;;  %v2780_v51 = vshra.s32 %v8533_v31, 16  ;;  %v12522_v31 = vld [vmem:[#allocation219_spill] sm:$0xff]  ;;  %vm1840_vm15 = vcmp.eq.f32.partialorder %v12525_v5, %v8108_v34 }
 0x292   :  { %v8524_v42 = vpop.xlane.xlu0 %1660  ;;  %12516 = vst [vmem:[#allocation152_spill] sm:$0xff] %v8546_v25  ;;  %v8550_v26 = vsel %vm1400_vm1, %v1963_v14, 2147483647  ;;  %v12531_v34 = vld [vmem:[#allocation156_spill] sm:$0xff] }
 0x293   :  { %12517 = vst [vmem:[#allocation218_spill] sm:$0xff] %v8550_v26  ;;  %v8563_v14 = vcvt.s32.f32 %v2780_v51  ;;  %v12527_v51 = vld [vmem:[#allocation220_spill] sm:$0xff]  ;;  %vm1839_vm3 = vcmp.eq.f32.partialorder %v12531_v34, %v8094_v10 }
 0x294   :  { %v2269_v61 = vand.u32 65535, %v12527_v51  ;;  %v1967_v10 = vsel %vm1839_vm3, %v7679_v40, 8 }
 0x295   :  { %3293 = vmin.xlane.f32.xlu1 %v8527_v63  ;;  %2753 = vmin.xlane.f32.xlu0 %v8529_v27  ;;  %v8553_v63 = vsel %vm1400_vm1, %v2000_v3, 2147483647  ;;  %12523 = vst [vmem:[#allocation153_spill] sm:$0xff] %v8563_v14 }
 0x296   :  { %v8541_v18 = vpop.xlane.xlu0 %2243  ;;  %12518 = vst [vmem:[#allocation82_spill] sm:$0xff] %v8553_v63  ;;  %v3320_v3 = vshra.s32 %v8553_v63, 16 }
 0x297   :  { %12513 = vst [vmem:[#allocation217_spill] sm:$0xff] %v8541_v18  ;;  %vm2245_vm12 = vcmp.eq.f32.partialorder %v12515_v62, %v8541_v18  ;;  %v1664_v62 = vpop.xlane.xlu1 %1663  ;;  %v1965_v18 = vsel %vm1837_vm13, %v7679_v40, 8 }
 0x298   :  { %v2246_v27 = vsel %vm2245_vm12, %v2241_v15, inf  ;;  %v2765_v15 = vshra.s32 %v8550_v26, 16  ;;  %vm1874_vm2 = vcmp.eq.f32.partialorder %v12526_v50, %v1664_v62  ;;  %v8578_v63 = vcvt.s32.f32 %v3320_v3 }
 0x299   :  { %2247 = vmin.xlane.f32.xlu1 %v2246_v27  ;;  %2738 = vmin.xlane.f32.xlu0 %v8546_v25  ;;  %v8568_v27 = vsel %vm1400_vm1, %v1966_v56, 2147483647  ;;  %v2271_v3 = vcvt.s32.f32 %v2269_v61  ;;  %v12538_v61 = vld [vmem:[#allocation159_spill] sm:$0xff] }
 0x29a   :  { %v8559_v16 = vpop.xlane.xlu0 %2228  ;;  %12524 = vst [vmem:[#allocation219_spill] sm:$0xff] %v8568_v27  ;;  %12528 = vst [vmem:[#allocation155_spill] sm:$0xff] %v8578_v63  ;;  %v8580_v26 = vcvt.s32.f32 %v2765_v15  ;;  %v2810_v56 = vshra.s32 %v8568_v27, 16  ;;  %v12533_v15 = vld [vmem:[#allocation86_spill] sm:$0xff]  ;;  %vm1842_vm5 = vcmp.eq.f32.partialorder %v12538_v61, %v8129_v21  ;;  %v12543_v21 = vld [vmem:[#allocation95_spill] sm:$0xff] }
 0x29b   :  { %12521 = vst [vmem:[#allocation91_spill] sm:$0xff] %v8559_v16  ;;  %vm2230_vm14 = vcmp.eq.f32.partialorder %v12522_v31, %v8559_v16  ;;  %v2254_v5 = vand.u32 65535, %v12533_v15  ;;  %v1670_v15 = vpop.xlane.xlu1 %1669  ;;  %v12544_v61 = vld [vmem:[#allocation160_spill] sm:$0xff]  ;;  %v12559_v16 = vld [vmem:[#allocation134_spill] sm:$0xff] }
 0x29c   :  { %v2231_v25 = vsel %vm2230_vm14, %v2226_v1, inf  ;;  %12529 = vst [vmem:[#allocation202_spill] sm:$0xff] %v8580_v26  ;;  %v8584_v1 = vsel %vm1400_vm1, %v1965_v18, 2147483647  ;;  %v8595_v50 = vcvt.s32.f32 %v2810_v56  ;;  %v12535_v18 = vld [vmem:[#allocation221_spill] sm:$0xff]  ;;  %vm1841_vm7 = vcmp.eq.f32.partialorder %v12544_v61, %v12543_v21 }
 0x29d   :  { %2232 = vmin.xlane.f32.xlu1 %v2231_v25  ;;  %2783 = vmin.xlane.f32.xlu0 %v8563_v14  ;;  %12530 = vst [vmem:[#allocation220_spill] sm:$0xff] %v8584_v1  ;;  %v1968_v25 = vsel %vm1840_vm15, %v7679_v40, 8  ;;  %v2002_v14 = vsel %vm1874_vm2, %v7679_v40, 8  ;;  %v2795_v51 = vshra.s32 %v8584_v1, 16  ;;  %v2256_v34 = vcvt.s32.f32 %v2254_v5  ;;  %v12545_v5 = vld [vmem:[#allocation128_spill] sm:$0xff] }
 0x29e   :  { %v8575_v31 = vpop.xlane.xlu0 %1666  ;;  %12534 = vst [vmem:[#allocation86_spill] sm:$0xff] %v8595_v50  ;;  %v8601_v27 = vsel %vm1400_vm1, %v1968_v25, 2147483647  ;;  %v12541_v25 = vld [vmem:[#allocation223_spill] sm:$0xff]  ;;  %v8619_v1 = vsel %vm1400_vm1, %v1967_v10, 2147483647  ;;  %vm1880_vm12 = vcmp.eq.f32.partialorder %v12560_v58, %v12559_v16 }
 0x29f   :  { %12536 = vst [vmem:[#allocation221_spill] sm:$0xff] %v8601_v27  ;;  %12542 = vst [vmem:[#allocation223_spill] sm:$0xff] %v8619_v1  ;;  %v12566_v58 = vld [vmem:[#allocation94_spill] sm:$0xff]  ;;  %v12567_v16 = vld [vmem:[#allocation227_spill] sm:$0xff] }
 0x2a1   :  { %3323 = vmin.xlane.f32.xlu1 %v8578_v63  ;;  %2768 = vmin.xlane.f32.xlu0 %v8580_v26  ;;  %v8604_v63 = vsel %vm1400_vm1, %v2002_v14, 2147483647  ;;  %v2840_v14 = vshra.s32 %v8601_v27, 16 }
 0x2a2   :  { %v8592_v62 = vpop.xlane.xlu0 %2273  ;;  %12537 = vst [vmem:[#allocation253_spill] sm:$0xff] %v8604_v63 }
 0x2a3   :  { %12532 = vst [vmem:[#allocation156_spill] sm:$0xff] %v8592_v62  ;;  %vm2275_vm4 = vcmp.eq.f32.partialorder %v12535_v18, %v8592_v62  ;;  %v8612_v18 = vcvt.s32.f32 %v2795_v51  ;;  %v12546_v51 = vld [vmem:[#allocation64_spill] sm:$0xff]  ;;  %v8631_v10 = vcvt.s32.f32 %v2840_v14  ;;  %v2825_v62 = vshra.s32 %v8619_v1, 16  ;;  %v12555_v14 = vld [vmem:[#allocation162_spill] sm:$0xff] }
 0x2a4   :  { %v2276_v26 = vsel %vm2275_vm4, %v2271_v3, inf  ;;  %v3350_v3 = vshra.s32 %v8604_v63, 16  ;;  %vm1878_vm8 = vcmp.eq.f32.partialorder %v12546_v51, %v12545_v5  ;;  %v12549_v63 = vld [vmem:[#allocation222_spill] sm:$0xff]  ;;  %v12557_v51 = vld [vmem:[#allocation224_spill] sm:$0xff] }
 0x2a5   :  { %2813 = vmin.xlane.f32.xlu0 %v8595_v50  ;;  %2277 = vmin.xlane.f32.xlu1 %v2276_v26  ;;  %12540 = vst [vmem:[#allocation254_spill] sm:$0xff] %v8612_v18  ;;  %v1970_v50 = vsel %vm1842_vm5, %v7679_v40, 8  ;;  %12550 = vst [vmem:[#allocation160_spill] sm:$0xff] %v8631_v10  ;;  %v2006_v61 = vsel %vm1878_vm8, %v7679_v40, 8  ;;  %v12558_v1 = vld [vmem:[#allocation226_spill] sm:$0xff] }
 0x2a6   :  { %v8610_v56 = vpop.xlane.xlu0 %2258  ;;  %v8637_v21 = vsel %vm1400_vm1, %v1970_v50, 2147483647 }
 0x2a7   :  { %12539 = vst [vmem:[#allocation159_spill] sm:$0xff] %v8610_v56  ;;  %vm2260_vm6 = vcmp.eq.f32.partialorder %v12541_v25, %v8610_v56  ;;  %v12547_v25 = vld [vmem:[#allocation203_spill] sm:$0xff]  ;;  %v2299_v56 = vand.u32 65535, %v12549_v63  ;;  %12552 = vst [vmem:[#allocation64_spill] sm:$0xff] %v8637_v21  ;;  %v12553_v63 = vld [vmem:[#allocation225_spill] sm:$0xff] }
 0x2a8   :  { %v2261_v26 = vsel %vm2260_vm6, %v2256_v34, inf  ;;  %vm1876_vm9 = vcmp.eq.f32.partialorder %v12547_v25, %v1670_v15  ;;  %v8633_v34 = vcvt.s32.f32 %v3350_v3  ;;  %v12554_v15 = vld [vmem:[#allocation98_spill] sm:$0xff]  ;;  %v2284_v25 = vand.u32 65535, %v12557_v51 }
 0x2a9   :  { %2798 = vmin.xlane.f32.xlu0 %v8612_v18  ;;  %2262 = vmin.xlane.f32.xlu1 %v2261_v26  ;;  %v1969_v26 = vsel %vm1841_vm7, %v7679_v40, 8  ;;  %v2004_v5 = vsel %vm1876_vm9, %v7679_v40, 8  ;;  %vm1843_vm11 = vcmp.eq.f32.partialorder %v12555_v14, %v12554_v15  ;;  %v2301_v50 = vcvt.s32.f32 %v2299_v56  ;;  %v12565_v14 = vld [vmem:[#allocation161_spill] sm:$0xff] }
 0x2aa   :  { %v8628_v27 = vpop.xlane.xlu0 %2303  ;;  %12551 = vst [vmem:[#allocation128_spill] sm:$0xff] %v8633_v34  ;;  %v2329_v18 = vand.u32 65535, %v12558_v1  ;;  %v8664_v15 = vsel %vm1400_vm1, %v2004_v5, 2147483647  ;;  %vm1844_vm13 = vcmp.eq.f32.partialorder %v12565_v14, %v8148_v2  ;;  %v1971_v1 = vsel %vm1843_vm11, %v7679_v40, 8  ;;  %v12570_v14 = vld [vmem:[#allocation228_spill] sm:$0xff] }
 0x2ab   :  { %12548 = vst [vmem:[#allocation95_spill] sm:$0xff] %v8628_v27  ;;  %vm2305_vm10 = vcmp.eq.f32.partialorder %v12553_v63, %v8628_v27  ;;  %v2870_v63 = vshra.s32 %v8637_v21, 16  ;;  %v8661_v27 = vsel %vm1400_vm1, %v2006_v61, 2147483647  ;;  %12564 = vst [vmem:[#allocation162_spill] sm:$0xff] %v8664_v15  ;;  %v2286_v5 = vcvt.s32.f32 %v2284_v25 }
 0x2ac   :  { %12563 = vst [vmem:[#allocation98_spill] sm:$0xff] %v8661_v27  ;;  %v2306_v56 = vsel %vm2305_vm10, %v2301_v50, inf  ;;  %v2331_v51 = vcvt.s32.f32 %v2329_v18  ;;  %v3380_v2 = vshra.s32 %v8664_v15, 16  ;;  %v3410_v18 = vshra.s32 %v8661_v27, 16  ;;  %v12599_v15 = vld [vmem:[#allocation232_spill] sm:$0xff] }
 0x2ad   :  { %2843 = vmin.xlane.f32.xlu0 %v8631_v10  ;;  %3353 = vmin.xlane.f32.xlu1 %v8633_v34  ;;  %v8655_v10 = vsel %vm1400_vm1, %v1969_v26, 2147483647  ;;  %v8657_v34 = vcvt.s32.f32 %v2825_v62  ;;  %v2314_v62 = vand.u32 65535, %v12567_v16  ;;  %v2008_v26 = vsel %vm1880_vm12, %v7679_v40, 8 }
 0x2ae   :  { %v8648_v3 = vpop.xlane.xlu0 %2288  ;;  %12561 = vst [vmem:[#allocation222_spill] sm:$0xff] %v8655_v10  ;;  %v2855_v50 = vshra.s32 %v8655_v10, 16  ;;  %v8677_v21 = vcvt.s32.f32 %v2870_v63  ;;  %v8689_v25 = vsel %vm1400_vm1, %v2008_v26, 2147483647  ;;  %v12573_v10 = vld [vmem:[#allocation166_spill] sm:$0xff] }
 0x2af   :  { %12556 = vst [vmem:[#allocation203_spill] sm:$0xff] %v8648_v3  ;;  %12562 = vst [vmem:[#allocation225_spill] sm:$0xff] %v8657_v34  ;;  %vm2290_vm14 = vcmp.eq.f32.partialorder %v12566_v58, %v8648_v3  ;;  %v8684_v58 = vsel %vm1400_vm1, %v1971_v1, 2147483647  ;;  %v2316_v63 = vcvt.s32.f32 %v2314_v62  ;;  %vm1845_vm2 = vcmp.eq.f32.partialorder %v12573_v10, %v8134_v52  ;;  %v12580_v62 = vld [vmem:[#allocation230_spill] sm:$0xff] }
 0x2b0   :  { %12569 = vst [vmem:[#allocation226_spill] sm:$0xff] %v8677_v21  ;;  %12571 = vst [vmem:[#allocation134_spill] sm:$0xff] %v8684_v58  ;;  %v2291_v16 = vsel %vm2290_vm14, %v2286_v5, inf  ;;  %v8699_v5 = vcvt.s32.f32 %v2855_v50  ;;  %v3440_v52 = vshra.s32 %v8689_v25, 16  ;;  %v12583_v50 = vld [vmem:[#allocation165_spill] sm:$0xff]  ;;  %v2389_v3 = vand.u32 65535, %v12599_v15 }
 0x2b1   :  { %2828 = vmin.xlane.f32.xlu0 %v8657_v34  ;;  %2307 = vmin.xlane.f32.xlu1 %v2306_v56  ;;  %v1972_v56 = vsel %vm1844_vm13, %v7679_v40, 8  ;;  %12572 = vst [vmem:[#allocation66_spill] sm:$0xff] %v8689_v25  ;;  %vm1846_vm6 = vcmp.eq.f32.partialorder %v12583_v50, %v8169_v29  ;;  %v8729_v29 = vcvt.s32.f32 %v3410_v18  ;;  %v12589_v50 = vld [vmem:[#allocation99_spill] sm:$0xff] }
 0x2b2   :  { %v8674_v61 = vpop.xlane.xlu0 %2333  ;;  %12576 = vst [vmem:[#allocation94_spill] sm:$0xff] %v8699_v5  ;;  %v8703_v26 = vsel %vm1400_vm1, %v1972_v56, 2147483647  ;;  %v1973_v56 = vsel %vm1845_vm2, %v7679_v40, 8 }
 0x2b3   :  { %12568 = vst [vmem:[#allocation224_spill] sm:$0xff] %v8674_v61  ;;  %vm2335_vm15 = vcmp.eq.f32.partialorder %v12570_v14, %v8674_v61  ;;  %v12574_v14 = vld [vmem:[#allocation199_spill] sm:$0xff]  ;;  %12578 = vst [vmem:[#allocation227_spill] sm:$0xff] %v8703_v26 }
 0x2b4   :  { %v8686_v34 = vsel %vm2335_vm15, %v2331_v51, inf  ;;  %vm1865_vm3 = vcmp.eq.f32.partialorder %v12574_v14, %v8332_v12  ;;  %v12577_v51 = vld [vmem:[#allocation229_spill] sm:$0xff]  ;;  %v12581_v12 = vld [vmem:[#allocation151_spill] sm:$0xff] }
 0x2b5   :  { %2873 = vmin.xlane.f32.xlu0 %v8677_v21  ;;  %2292 = vmin.xlane.f32.xlu1 %v2291_v16  ;;  %v2359_v61 = vand.u32 65535, %v12577_v51  ;;  %v8705_v21 = vcvt.s32.f32 %v3380_v2  ;;  %v2885_v16 = vshra.s32 %v8684_v58, 16  ;;  %v12582_v14 = vld [vmem:[#allocation71_spill] sm:$0xff]  ;;  %v1993_v2 = vsel %vm1865_vm3, %v7679_v40, 8  ;;  %v12584_v51 = vld [vmem:[#allocation194_spill] sm:$0xff]  ;;  %12588 = vst [vmem:[#allocation229_spill] sm:$0xff] %v8729_v29 }
 0x2b6   :  { %v8697_v1 = vpop.xlane.xlu0 %2318  ;;  %vm1883_vm5 = vcmp.eq.f32.partialorder %v12582_v14, %v12581_v12  ;;  %vm1866_vm7 = vcmp.eq.f32.partialorder %v12584_v51, %v8388_v7  ;;  %v8738_v7 = vsel %vm1400_vm1, %v1993_v2, 2147483647  ;;  %v12596_v2 = vld [vmem:[#allocation168_spill] sm:$0xff] }
 0x2b7   :  { %12575 = vst [vmem:[#allocation161_spill] sm:$0xff] %v8697_v1  ;;  %12579 = vst [vmem:[#allocation228_spill] sm:$0xff] %v8705_v21  ;;  %vm2320_vm4 = vcmp.eq.f32.partialorder %v12580_v62, %v8697_v1  ;;  %v2361_v58 = vcvt.s32.f32 %v2359_v61  ;;  %v12586_v1 = vld [vmem:[#allocation231_spill] sm:$0xff]  ;;  %v8727_v27 = vcvt.s32.f32 %v2885_v16  ;;  %v12592_v61 = vld [vmem:[#allocation150_spill] sm:$0xff]  ;;  %v2011_v18 = vsel %vm1883_vm5, %v7679_v40, 8 }
 0x2b8   :  { %v8711_v10 = vsel %vm2320_vm4, %v2316_v63, inf  ;;  %v2900_v63 = vshra.s32 %v8703_v26, 16  ;;  %v2344_v25 = vand.u32 65535, %v12586_v1  ;;  %12591 = vst [vmem:[#allocation151_spill] sm:$0xff] %v8738_v7  ;;  %v12593_v26 = vld [vmem:[#allocation70_spill] sm:$0xff]  ;;  %v1994_v1 = vsel %vm1866_vm7, %v7679_v40, 8 }
 0x2b9   :  { %2858 = vmin.xlane.f32.xlu0 %v8699_v5  ;;  %3383 = vmin.xlane.f32.xlu1 %v8705_v21  ;;  %12587 = vst [vmem:[#allocation199_spill] sm:$0xff] %v8727_v27  ;;  %v1974_v5 = vsel %vm1846_vm6, %v7679_v40, 8  ;;  %v8735_v21 = vsel %vm1400_vm1, %v1973_v56, 2147483647  ;;  %vm1884_vm9 = vcmp.eq.f32.partialorder %v12593_v26, %v12592_v61  ;;  %v8751_v16 = vcvt.s32.f32 %v3440_v52  ;;  %v12595_v56 = vld [vmem:[#allocation102_spill] sm:$0xff]  ;;  %v12601_v52 = vld [vmem:[#allocation233_spill] sm:$0xff] }
 0x2ba   :  { %v8723_v62 = vpop.xlane.xlu0 %2363  ;;  %12590 = vst [vmem:[#allocation230_spill] sm:$0xff] %v8735_v21  ;;  %vm1847_vm10 = vcmp.eq.f32.partialorder %v12596_v2, %v12595_v56  ;;  %v8761_v12 = vsel %vm1400_vm1, %v1974_v5, 2147483647  ;;  %v2915_v14 = vshra.s32 %v8735_v21, 16  ;;  %v2012_v15 = vsel %vm1884_vm9, %v7679_v40, 8  ;;  %v12604_v5 = vld [vmem:[#allocation158_spill] sm:$0xff] }
 0x2bb   :  { %12585 = vst [vmem:[#allocation166_spill] sm:$0xff] %v8723_v62  ;;  %vm2365_vm8 = vcmp.eq.f32.partialorder %v12589_v50, %v8723_v62  ;;  %12594 = vst [vmem:[#allocation71_spill] sm:$0xff] %v8751_v16  ;;  %v8757_v50 = vcvt.s32.f32 %v2900_v63  ;;  %v2346_v62 = vcvt.s32.f32 %v2344_v25  ;;  %v8777_v25 = vsel %vm1400_vm1, %v2011_v18, 2147483647  ;;  %v12605_v63 = vld [vmem:[#allocation73_spill] sm:$0xff] }
 0x2bc   :  { %v8740_v51 = vsel %vm2365_vm8, %v2361_v58, inf  ;;  %12600 = vst [vmem:[#allocation231_spill] sm:$0xff] %v8761_v12  ;;  %12603 = vst [vmem:[#allocation150_spill] sm:$0xff] %v8777_v25  ;;  %vm1885_vm12 = vcmp.eq.f32.partialorder %v12605_v63, %v12604_v5  ;;  %v1975_v2 = vsel %vm1847_vm10, %v7679_v40, 8  ;;  %v2930_v26 = vshra.s32 %v8761_v12, 16  ;;  %v12615_v12 = vld [vmem:[#allocation72_spill] sm:$0xff] }
 0x2bd   :  { %2888 = vmin.xlane.f32.xlu0 %v8727_v27  ;;  %3413 = vmin.xlane.f32.xlu1 %v8729_v29  ;;  %12598 = vst [vmem:[#allocation194_spill] sm:$0xff] %v8757_v50  ;;  %v3215_v27 = vshra.s32 %v8738_v7, 16  ;;  %v8768_v29 = vsel %vm1400_vm1, %v1994_v1, 2147483647  ;;  %v2391_v61 = vcvt.s32.f32 %v2389_v3  ;;  %v8790_v21 = vcvt.s32.f32 %v2915_v14  ;;  %v12614_v3 = vld [vmem:[#allocation157_spill] sm:$0xff] }
 0x2be   :  { %v8755_v58 = vpop.xlane.xlu0 %2348  ;;  %12602 = vst [vmem:[#allocation99_spill] sm:$0xff] %v8768_v29  ;;  %v3230_v7 = vshra.s32 %v8768_v29, 16  ;;  %vm1886_vm15 = vcmp.eq.f32.partialorder %v12615_v12, %v12614_v3  ;;  %v8820_v29 = vcvt.s32.f32 %v2930_v26  ;;  %v12624_v26 = vld [vmem:[#allocation171_spill] sm:$0xff] }
 0x2bf   :  { %12597 = vst [vmem:[#allocation165_spill] sm:$0xff] %v8755_v58  ;;  %vm2350_vm11 = vcmp.eq.f32.partialorder %v12601_v52, %v8755_v58  ;;  %v12608_v52 = vld [vmem:[#allocation234_spill] sm:$0xff]  ;;  %12609 = vst [vmem:[#allocation102_spill] sm:$0xff] %v8790_v21  ;;  %v8792_v58 = vcvt.s32.f32 %v3215_v27  ;;  %v3485_v27 = vshra.s32 %v8777_v25, 16  ;;  %v12621_v25 = vld [vmem:[#allocation236_spill] sm:$0xff]  ;;  %vm1850_vm4 = vcmp.eq.f32.partialorder %v12624_v26, %v8209_v33 }
 0x2c0   :  { %v8770_v56 = vsel %vm2350_vm11, %v2346_v62, inf  ;;  %v12606_v62 = vld [vmem:[#allocation167_spill] sm:$0xff]  ;;  %v2374_v18 = vand.u32 65535, %v12608_v52  ;;  %12619 = vst [vmem:[#allocation73_spill] sm:$0xff] %v8820_v29 }
 0x2c1   :  { %2903 = vmin.xlane.f32.xlu0 %v8757_v50  ;;  %3443 = vmin.xlane.f32.xlu1 %v8751_v16  ;;  %vm1848_vm13 = vcmp.eq.f32.partialorder %v12606_v62, %v8188_v46  ;;  %12610 = vst [vmem:[#allocation168_spill] sm:$0xff] %v8792_v58  ;;  %v12611_v50 = vld [vmem:[#allocation235_spill] sm:$0xff]  ;;  %v8798_v16 = vsel %vm1400_vm1, %v1975_v2, 2147483647  ;;  %v8803_v62 = vsel %vm1400_vm1, %v2012_v15, 2147483647 }
 0x2c2   :  { %v8786_v1 = vpop.xlane.xlu0 %2393  ;;  %12612 = vst [vmem:[#allocation232_spill] sm:$0xff] %v8798_v16  ;;  %12613 = vst [vmem:[#allocation233_spill] sm:$0xff] %v8803_v62  ;;  %v1976_v14 = vsel %vm1848_vm13, %v7679_v40, 8  ;;  %v12616_v2 = vld [vmem:[#allocation103_spill] sm:$0xff]  ;;  %v2376_v52 = vcvt.s32.f32 %v2374_v18  ;;  %v2014_v18 = vsel %vm1886_vm15, %v7679_v40, 8 }
 0x2c3   :  { %12607 = vst [vmem:[#allocation70_spill] sm:$0xff] %v8786_v1  ;;  %vm2395_vm14 = vcmp.eq.f32.partialorder %v12611_v50, %v8786_v1  ;;  %v2013_v50 = vsel %vm1885_vm12, %v7679_v40, 8  ;;  %v2419_v1 = vand.u32 65535, %v8166_v22  ;;  %v8828_v5 = vsel %vm1400_vm1, %v1976_v14, 2147483647  ;;  %v12635_v26 = vld [vmem:[#allocation163_spill] sm:$0xff] }
 0x2c4   :  { %v8800_v46 = vsel %vm2395_vm14, %v2391_v61, inf  ;;  %v12617_v61 = vld [vmem:[#allocation172_spill] sm:$0xff]  ;;  %12622 = vst [vmem:[#allocation234_spill] sm:$0xff] %v8828_v5 }
 0x2c5   :  { %2918 = vmin.xlane.f32.xlu0 %v8790_v21  ;;  %3218 = vmin.xlane.f32.xlu1 %v8792_v58  ;;  %vm1849_vm2 = vcmp.eq.f32.partialorder %v12617_v61, %v12616_v2  ;;  %v8822_v21 = vcvt.s32.f32 %v3230_v7  ;;  %v2945_v58 = vshra.s32 %v8798_v16, 16  ;;  %v3500_v7 = vshra.s32 %v8803_v62, 16  ;;  %v12626_v61 = vld [vmem:[#allocation237_spill] sm:$0xff] }
 0x2c6   :  { %v8817_v15 = vpop.xlane.xlu0 %2378  ;;  %v1977_v22 = vsel %vm1849_vm2, %v7679_v40, 8  ;;  %v2421_v2 = vcvt.s32.f32 %v2419_v1  ;;  %v2404_v12 = vand.u32 65535, %v12626_v61  ;;  %v2960_v16 = vshra.s32 %v8828_v5, 16  ;;  %v12638_v61 = vld [vmem:[#allocation174_spill] sm:$0xff] }
 0x2c7   :  { %12618 = vst [vmem:[#allocation158_spill] sm:$0xff] %v8817_v15  ;;  %12620 = vst [vmem:[#allocation167_spill] sm:$0xff] %v8822_v21  ;;  %vm2380_vm3 = vcmp.eq.f32.partialorder %v12621_v25, %v8817_v15  ;;  %v8841_v25 = vsel %vm1400_vm1, %v2013_v50, 2147483647  ;;  %v8848_v3 = vcvt.s32.f32 %v2945_v58  ;;  %v12629_v15 = vld [vmem:[#allocation238_spill] sm:$0xff]  ;;  %v12631_v50 = vld [vmem:[#allocation77_spill] sm:$0xff] }
 0x2c8   :  { %v8830_v63 = vsel %vm2380_vm3, %v2376_v52, inf  ;;  %12623 = vst [vmem:[#allocation235_spill] sm:$0xff] %v8841_v25  ;;  %v8850_v52 = vcvt.s32.f32 %v3485_v27  ;;  %v8858_v62 = vsel %vm1400_vm1, %v1977_v22, 2147483647  ;;  %v8863_v1 = vsel %vm1400_vm1, %v2014_v18, 2147483647 }
 0x2c9   :  { %2933 = vmin.xlane.f32.xlu0 %v8820_v29  ;;  %3233 = vmin.xlane.f32.xlu1 %v8822_v21  ;;  %12627 = vst [vmem:[#allocation72_spill] sm:$0xff] %v8848_v3  ;;  %v12630_v29 = vld [vmem:[#allocation164_spill] sm:$0xff]  ;;  %12632 = vst [vmem:[#allocation172_spill] sm:$0xff] %v8858_v62  ;;  %v1978_v58 = vsel %vm1850_vm4, %v7679_v40, 8  ;;  %v8868_v27 = vcvt.s32.f32 %v3500_v7  ;;  %v12637_v22 = vld [vmem:[#allocation106_spill] sm:$0xff]  ;;  %v2406_v18 = vcvt.s32.f32 %v2404_v12  ;;  %v2975_v7 = vshra.s32 %v8858_v62, 16 }
 0x2ca   :  { %v8845_v14 = vpop.xlane.xlu0 %2423  ;;  %12628 = vst [vmem:[#allocation103_spill] sm:$0xff] %v8850_v52  ;;  %vm1887_vm6 = vcmp.eq.f32.partialorder %v12631_v50, %v12630_v29  ;;  %12633 = vst [vmem:[#allocation236_spill] sm:$0xff] %v8863_v1  ;;  %v12636_v29 = vld [vmem:[#allocation76_spill] sm:$0xff]  ;;  %vm1851_vm8 = vcmp.eq.f32.partialorder %v12638_v61, %v12637_v22  ;;  %v12640_v50 = vld [vmem:[#allocation239_spill] sm:$0xff] }
 0x2cb   :  { %12625 = vst [vmem:[#allocation157_spill] sm:$0xff] %v8845_v14  ;;  %vm2425_vm5 = vcmp.eq.f32.partialorder %v12629_v15, %v8845_v14  ;;  %12634 = vst [vmem:[#allocation171_spill] sm:$0xff] %v8868_v27  ;;  %v3515_v15 = vshra.s32 %v8841_v25, 16  ;;  %vm1888_vm7 = vcmp.eq.f32.partialorder %v12636_v29, %v12635_v26  ;;  %v2449_v14 = vand.u32 65535, %v12640_v50  ;;  %v12649_v62 = vld [vmem:[#allocation241_spill] sm:$0xff] }
 0x2cc   :  { %v8860_v33 = vsel %vm2425_vm5, %v2421_v2, inf  ;;  %v2015_v5 = vsel %vm1887_vm6, %v7679_v40, 8  ;;  %v8885_v25 = vsel %vm1400_vm1, %v1978_v58, 2147483647  ;;  %v2016_v29 = vsel %vm1888_vm7, %v7679_v40, 8 }
 0x2cd   :  { %2948 = vmin.xlane.f32.xlu0 %v8848_v3  ;;  %3488 = vmin.xlane.f32.xlu1 %v8850_v52  ;;  %v8879_v3 = vcvt.s32.f32 %v2960_v16  ;;  %v12642_v52 = vld [vmem:[#allocation240_spill] sm:$0xff]  ;;  %12643 = vst [vmem:[#allocation164_spill] sm:$0xff] %v8885_v25  ;;  %v1979_v12 = vsel %vm1851_vm8, %v7679_v40, 8  ;;  %v3530_v16 = vshra.s32 %v8863_v1, 16  ;;  %v8895_v22 = vsel %vm1400_vm1, %v2015_v5, 2147483647 }
 0x2ce   :  { %v8875_v2 = vpop.xlane.xlu0 %2408  ;;  %12644 = vst [vmem:[#allocation77_spill] sm:$0xff] %v8895_v22  ;;  %v2451_v61 = vcvt.s32.f32 %v2449_v14  ;;  %v8902_v50 = vcvt.s32.f32 %v2975_v7  ;;  %v12650_v1 = vld [vmem:[#allocation170_spill] sm:$0xff]  ;;  %v12651_v5 = vld [vmem:[#allocation81_spill] sm:$0xff]  ;;  %v8917_v14 = vsel %vm1400_vm1, %v2016_v29, 2147483647 }
 0x2cf   :  { %12639 = vst [vmem:[#allocation237_spill] sm:$0xff] %v8875_v2  ;;  %12641 = vst [vmem:[#allocation238_spill] sm:$0xff] %v8879_v3  ;;  %vm2410_vm9 = vcmp.eq.f32.partialorder %v12642_v52, %v8875_v2  ;;  %v12645_v52 = vld [vmem:[#allocation173_spill] sm:$0xff]  ;;  %v8904_v2 = vcvt.s32.f32 %v3515_v15  ;;  %vm1889_vm12 = vcmp.eq.f32.partialorder %v12651_v5, %v12650_v1  ;;  %v8922_v15 = vcvt.s32.f32 %v3530_v16  ;;  %v12656_v1 = vld [vmem:[#allocation80_spill] sm:$0xff] }
 0x2d0   :  { %v8887_v26 = vsel %vm2410_vm9, %v2406_v18, inf  ;;  %vm1852_vm10 = vcmp.eq.f32.partialorder %v12645_v52, %v8228_v54  ;;  %v2434_v18 = vand.u32 65535, %v8206_v49  ;;  %12647 = vst [vmem:[#allocation76_spill] sm:$0xff] %v8902_v50  ;;  %12653 = vst [vmem:[#allocation239_spill] sm:$0xff] %v8917_v14  ;;  %v12655_v7 = vld [vmem:[#allocation169_spill] sm:$0xff]  ;;  %v12658_v52 = vld [vmem:[#allocation178_spill] sm:$0xff] }
 0x2d1   :  { %2963 = vmin.xlane.f32.xlu0 %v8879_v3  ;;  %3503 = vmin.xlane.f32.xlu1 %v8868_v27  ;;  %12648 = vst [vmem:[#allocation106_spill] sm:$0xff] %v8904_v2  ;;  %v2990_v3 = vshra.s32 %v8885_v25, 16  ;;  %v8912_v27 = vsel %vm1400_vm1, %v1979_v12, 2147483647  ;;  %v1980_v49 = vsel %vm1852_vm10, %v7679_v40, 8  ;;  %12654 = vst [vmem:[#allocation240_spill] sm:$0xff] %v8922_v15  ;;  %vm1890_vm13 = vcmp.eq.f32.partialorder %v12656_v1, %v12655_v7 }
 0x2d2   :  { %v8899_v58 = vpop.xlane.xlu0 %2453  ;;  %12652 = vst [vmem:[#allocation174_spill] sm:$0xff] %v8912_v27  ;;  %v12657_v12 = vld [vmem:[#allocation107_spill] sm:$0xff]  ;;  %v2436_v29 = vcvt.s32.f32 %v2434_v18  ;;  %v12660_v5 = vld [vmem:[#allocation242_spill] sm:$0xff]  ;;  %v2017_v25 = vsel %vm1889_vm12, %v7679_v40, 8  ;;  %v3005_v16 = vshra.s32 %v8912_v27, 16  ;;  %v2018_v1 = vsel %vm1890_vm13, %v7679_v40, 8 }
 0x2d3   :  { %12646 = vst [vmem:[#allocation163_spill] sm:$0xff] %v8899_v58  ;;  %vm2455_vm11 = vcmp.eq.f32.partialorder %v12649_v62, %v8899_v58  ;;  %v3545_v62 = vshra.s32 %v8895_v22, 16  ;;  %vm1853_vm14 = vcmp.eq.f32.partialorder %v12658_v52, %v12657_v12  ;;  %v2479_v58 = vand.u32 65535, %v12660_v5 }
 0x2d4   :  { %v8914_v54 = vsel %vm2455_vm11, %v2451_v61, inf  ;;  %v8939_v22 = vsel %vm1400_vm1, %v1980_v49, 2147483647  ;;  %v1981_v18 = vsel %vm1853_vm14, %v7679_v40, 8  ;;  %v8949_v12 = vsel %vm1400_vm1, %v2017_v25, 2147483647 }
 0x2d5   :  { %2978 = vmin.xlane.f32.xlu0 %v8902_v50  ;;  %3518 = vmin.xlane.f32.xlu1 %v8904_v2  ;;  %v8933_v50 = vcvt.s32.f32 %v2990_v3  ;;  %v12662_v2 = vld [vmem:[#allocation243_spill] sm:$0xff]  ;;  %12663 = vst [vmem:[#allocation170_spill] sm:$0xff] %v8939_v22  ;;  %v3560_v3 = vshra.s32 %v8917_v14, 16  ;;  %12664 = vst [vmem:[#allocation81_spill] sm:$0xff] %v8949_v12  ;;  %v2481_v52 = vcvt.s32.f32 %v2479_v58  ;;  %v8958_v27 = vcvt.s32.f32 %v3545_v62  ;;  %v12670_v14 = vld [vmem:[#allocation176_spill] sm:$0xff] }
 0x2d6   :  { %v8929_v61 = vpop.xlane.xlu0 %2438  ;;  %v12671_v25 = vld [vmem:[#allocation85_spill] sm:$0xff]  ;;  %v8966_v21 = vsel %vm1400_vm1, %v1981_v18, 2147483647  ;;  %v8971_v58 = vsel %vm1400_vm1, %v2018_v1, 2147483647  ;;  %v12677_v18 = vld [vmem:[#allocation110_spill] sm:$0xff] }
 0x2d7   :  { %12659 = vst [vmem:[#allocation173_spill] sm:$0xff] %v8929_v61  ;;  %12661 = vst [vmem:[#allocation241_spill] sm:$0xff] %v8933_v50  ;;  %vm2440_vm15 = vcmp.eq.f32.partialorder %v12662_v2, %v8929_v61  ;;  %v12665_v2 = vld [vmem:[#allocation177_spill] sm:$0xff]  ;;  %v8956_v61 = vcvt.s32.f32 %v3005_v16  ;;  %vm1891_vm4 = vcmp.eq.f32.partialorder %v12671_v25, %v12670_v14  ;;  %v8976_v62 = vcvt.s32.f32 %v3560_v3  ;;  %v12676_v14 = vld [vmem:[#allocation84_spill] sm:$0xff] }
 0x2d8   :  { %v8941_v7 = vsel %vm2440_vm15, %v2436_v29, inf  ;;  %vm1854_vm2 = vcmp.eq.f32.partialorder %v12665_v2, %v8250_v37  ;;  %v12667_v29 = vld [vmem:[#allocation244_spill] sm:$0xff]  ;;  %12672 = vst [vmem:[#allocation107_spill] sm:$0xff] %v8966_v21  ;;  %12673 = vst [vmem:[#allocation178_spill] sm:$0xff] %v8971_v58  ;;  %v12675_v2 = vld [vmem:[#allocation175_spill] sm:$0xff]  ;;  %v2509_v25 = vand.u32 65535, %v8247_v48 }
 0x2d9   :  { %2993 = vmin.xlane.f32.xlu0 %v8933_v50  ;;  %3533 = vmin.xlane.f32.xlu1 %v8922_v15  ;;  %v2464_v5 = vand.u32 65535, %v12667_v29  ;;  %12668 = vst [vmem:[#allocation80_spill] sm:$0xff] %v8956_v61  ;;  %v3020_v50 = vshra.s32 %v8939_v22, 16  ;;  %v12669_v15 = vld [vmem:[#allocation245_spill] sm:$0xff]  ;;  %v1982_v16 = vsel %vm1854_vm2, %v7679_v40, 8  ;;  %12674 = vst [vmem:[#allocation242_spill] sm:$0xff] %v8976_v62  ;;  %vm1892_vm5 = vcmp.eq.f32.partialorder %v12676_v14, %v12675_v2 }
 0x2da   :  { %v8953_v49 = vpop.xlane.xlu0 %2483  ;;  %v12678_v29 = vld [vmem:[#allocation180_spill] sm:$0xff]  ;;  %v3035_v3 = vshra.s32 %v8966_v21, 16  ;;  %v8993_v22 = vsel %vm1400_vm1, %v1982_v16, 2147483647  ;;  %v2511_v21 = vcvt.s32.f32 %v2509_v25 }
 0x2db   :  { %12666 = vst [vmem:[#allocation169_spill] sm:$0xff] %v8953_v49  ;;  %vm2485_vm3 = vcmp.eq.f32.partialorder %v12669_v15, %v8953_v49  ;;  %v3575_v15 = vshra.s32 %v8949_v12, 16  ;;  %vm1855_vm6 = vcmp.eq.f32.partialorder %v12678_v29, %v12677_v18  ;;  %v2466_v1 = vcvt.s32.f32 %v2464_v5  ;;  %12681 = vst [vmem:[#allocation244_spill] sm:$0xff] %v8993_v22  ;;  %v12682_v18 = vld [vmem:[#allocation179_spill] sm:$0xff]  ;;  %v12691_v25 = vld [vmem:[#allocation88_spill] sm:$0xff] }
 0x2dc   :  { %v8968_v37 = vsel %vm2485_vm3, %v2481_v52, inf  ;;  %v2019_v49 = vsel %vm1891_vm4, %v7679_v40, 8  ;;  %vm1856_vm8 = vcmp.eq.f32.partialorder %v12682_v18, %v8272_v38  ;;  %v1983_v5 = vsel %vm1855_vm6, %v7679_v40, 8  ;;  %v12692_v18 = vld [vmem:[#allocation111_spill] sm:$0xff] }
 0x2dd   :  { %3008 = vmin.xlane.f32.xlu0 %v8956_v61  ;;  %3548 = vmin.xlane.f32.xlu1 %v8958_v27  ;;  %v8987_v61 = vcvt.s32.f32 %v3020_v50  ;;  %v9002_v48 = vcvt.s32.f32 %v3575_v15  ;;  %v3590_v50 = vshra.s32 %v8971_v58, 16  ;;  %v9010_v16 = vsel %vm1400_vm1, %v2019_v49, 2147483647  ;;  %v12686_v15 = vld [vmem:[#allocation89_spill] sm:$0xff] }
 0x2de   :  { %v8983_v52 = vpop.xlane.xlu0 %2468  ;;  %12683 = vst [vmem:[#allocation245_spill] sm:$0xff] %v9010_v16  ;;  %v9012_v29 = vpop.xlane.xlu1 %2067  ;;  %v3050_v58 = vshra.s32 %v8993_v22, 16  ;;  %v1984_v49 = vsel %vm1856_vm8, %v7679_v40, 8  ;;  %v9029_v2 = vsel %vm1400_vm1, %v1983_v5, 2147483647  ;;  %v3605_v38 = vshra.s32 %v9010_v16, 16 }
 0x2df   :  { %12679 = vst [vmem:[#allocation243_spill] sm:$0xff] %v8983_v52  ;;  %12680 = vst [vmem:[#allocation177_spill] sm:$0xff] %v8987_v61  ;;  %vm2470_vm7 = vcmp.eq.f32.partialorder %v8260_v44, %v8983_v52  ;;  %v2020_v44 = vsel %vm1892_vm5, %v7679_v40, 8  ;;  %v2494_v52 = vand.u32 65535, %v8264_v60  ;;  %v12693_v5 = vld [vmem:[#allocation184_spill] sm:$0xff] }
 0x2e0   :  { %v8995_v12 = vsel %vm2470_vm7, %v2466_v1, inf  ;;  %12688 = vst [vmem:[#allocation175_spill] sm:$0xff] %v9029_v2  ;;  %v9034_v60 = vsel %vm1400_vm1, %v2020_v44, 2147483647  ;;  %vm1857_vm12 = vcmp.eq.f32.partialorder %v12693_v5, %v12692_v18  ;;  %v9052_v22 = vcvt.s32.f32 %v3050_v58 }
 0x2e1   :  { %3023 = vmin.xlane.f32.xlu0 %v8987_v61  ;;  %3563 = vmin.xlane.f32.xlu1 %v8976_v62  ;;  %v12685_v61 = vld [vmem:[#allocation182_spill] sm:$0xff]  ;;  %v9019_v62 = vcvt.s32.f32 %v3035_v3  ;;  %12689 = vst [vmem:[#allocation84_spill] sm:$0xff] %v9034_v60  ;;  %v2496_v44 = vcvt.s32.f32 %v2494_v52  ;;  %v3620_v16 = vshra.s32 %v9034_v60, 16  ;;  %v1985_v58 = vsel %vm1857_vm12, %v7679_v40, 8 }
 0x2e2   :  { %v9014_v1 = vpop.xlane.xlu0 %2513  ;;  %vm1893_vm9 = vcmp.eq.f32.partialorder %v12686_v15, %v12685_v61  ;;  %v12690_v61 = vld [vmem:[#allocation181_spill] sm:$0xff]  ;;  %v2539_v15 = vand.u32 65535, %v8280_v57  ;;  %12696 = vst [vmem:[#allocation179_spill] sm:$0xff] %v9052_v22  ;;  %v12697_v52 = vld [vmem:[#allocation246_spill] sm:$0xff] }
 0x2e3   :  { %12684 = vst [vmem:[#allocation176_spill] sm:$0xff] %v9014_v1  ;;  %12687 = vst [vmem:[#allocation85_spill] sm:$0xff] %v9019_v62  ;;  %vm2515_vm10 = vcmp.eq.f32.partialorder %v8276_v4, %v9014_v1  ;;  %vm1894_vm11 = vcmp.eq.f32.partialorder %v12691_v25, %v12690_v61  ;;  %v9040_v4 = vcvt.s32.f32 %v3590_v50  ;;  %v2021_v3 = vsel %vm1893_vm9, %v7679_v40, 8  ;;  %v12701_v25 = vld [vmem:[#allocation188_spill] sm:$0xff] }
 0x2e4   :  { %v9031_v14 = vsel %vm2515_vm10, %v2511_v21, inf  ;;  %v9050_v1 = vsel %vm1400_vm1, %v1984_v49, 2147483647  ;;  %v3065_v50 = vshra.s32 %v9029_v2, 16  ;;  %v2022_v57 = vsel %vm1894_vm11, %v7679_v40, 8  ;;  %v12698_v49 = vld [vmem:[#allocation183_spill] sm:$0xff] }
 0x2e5   :  { %3578 = vmin.xlane.f32.xlu1 %v9002_v48  ;;  %3038 = vmin.xlane.f32.xlu0 %v9019_v62  ;;  %12695 = vst [vmem:[#allocation180_spill] sm:$0xff] %v9050_v1  ;;  %v9057_v62 = vpop.xlane.xlu1 %2052  ;;  %vm1858_vm14 = vcmp.eq.f32.partialorder %v12698_v49, %v12697_v52  ;;  %v2541_v2 = vcvt.s32.f32 %v2539_v15  ;;  %v2524_v61 = vand.u32 65535, %v8293_v24  ;;  %v9080_v52 = vcvt.s32.f32 %v3605_v38  ;;  %v12709_v38 = vld [vmem:[#allocation187_spill] sm:$0xff] }
 0x2e6   :  { %v9046_v21 = vpop.xlane.xlu0 %2498  ;;  %v9082_v49 = vcvt.s32.f32 %v3065_v50  ;;  %v9092_v15 = vcvt.s32.f32 %v3620_v16  ;;  %v12710_v50 = vld [vmem:[#allocation92_spill] sm:$0xff] }
 0x2e7   :  { %12694 = vst [vmem:[#allocation110_spill] sm:$0xff] %v9046_v21  ;;  %vm2500_vm13 = vcmp.eq.f32.partialorder %v8289_v9, %v9046_v21  ;;  %v9072_v9 = vsel %vm1400_vm1, %v2021_v3, 2147483647  ;;  %v12702_v21 = vld [vmem:[#allocation93_spill] sm:$0xff]  ;;  %12703 = vst [vmem:[#allocation181_spill] sm:$0xff] %v9080_v52  ;;  %v1986_v3 = vsel %vm1858_vm14, %v7679_v40, 8  ;;  %vm1896_vm3 = vcmp.eq.f32.partialorder %v12710_v50, %v12709_v38 }
 0x2e8   :  { %v9060_v18 = vsel %vm2500_vm13, %v2496_v44, inf  ;;  %12699 = vst [vmem:[#allocation182_spill] sm:$0xff] %v9072_v9  ;;  %v3080_v44 = vshra.s32 %v9050_v1, 16  ;;  %vm1895_vm15 = vcmp.eq.f32.partialorder %v12702_v21, %v12701_v25  ;;  %12704 = vst [vmem:[#allocation88_spill] sm:$0xff] %v9082_v49  ;;  %v9097_v21 = vsel %vm1400_vm1, %v2022_v57, 2147483647 }
 0x2e9   :  { %3593 = vmin.xlane.f32.xlu1 %v9040_v4  ;;  %3053 = vmin.xlane.f32.xlu0 %v9052_v22  ;;  %v9088_v22 = vsel %vm1400_vm1, %v1985_v58, 2147483647  ;;  %12707 = vst [vmem:[#allocation246_spill] sm:$0xff] %v9092_v15  ;;  %12708 = vst [vmem:[#allocation183_spill] sm:$0xff] %v9097_v21  ;;  %v12711_v25 = vld [vmem:[#allocation114_spill] sm:$0xff]  ;;  %v2023_v16 = vsel %vm1895_vm15, %v7679_v40, 8  ;;  %v2526_v57 = vcvt.s32.f32 %v2524_v61 }
 0x2ea   :  { %v9074_v5 = vpop.xlane.xlu0 %2543  ;;  %12705 = vst [vmem:[#allocation111_spill] sm:$0xff] %v9088_v22  ;;  %v9090_v60 = vpop.xlane.xlu1 %2097  ;;  %v12712_v1 = vld [vmem:[#allocation186_spill] sm:$0xff]  ;;  %v9129_v61 = vsel %vm1400_vm1, %v2023_v16, 2147483647 }
 0x2eb   :  { %12700 = vst [vmem:[#allocation89_spill] sm:$0xff] %v9074_v5  ;;  %vm2545_vm2 = vcmp.eq.f32.partialorder %v8306_v8, %v9074_v5  ;;  %12706 = vst [vmem:[#allocation184_spill] sm:$0xff] %v9090_v60  ;;  %vm1859_vm4 = vcmp.eq.f32.partialorder %v12712_v1, %v12711_v25  ;;  %v3635_v8 = vshra.s32 %v9072_v9, 16  ;;  %v2569_v5 = vand.u32 65535, %v8310_v20  ;;  %v12716_v1 = vld [vmem:[#allocation185_spill] sm:$0xff] }
 0x2ec   :  { %v9094_v24 = vsel %vm2545_vm2, %v2541_v2, inf  ;;  %v9109_v2 = vcvt.s32.f32 %v3080_v44  ;;  %v9113_v60 = vsel %vm1400_vm1, %v1986_v3, 2147483647  ;;  %vm1860_vm5 = vcmp.eq.f32.partialorder %v12716_v1, %v8318_v32  ;;  %12717 = vst [vmem:[#allocation92_spill] sm:$0xff] %v9129_v61  ;;  %v12719_v3 = vld [vmem:[#allocation193_spill] sm:$0xff] }
 0x2ed   :  { %3608 = vmin.xlane.f32.xlu1 %v9080_v52  ;;  %3068 = vmin.xlane.f32.xlu0 %v9082_v49  ;;  %12715 = vst [vmem:[#allocation187_spill] sm:$0xff] %v9113_v60  ;;  %v3095_v25 = vshra.s32 %v9088_v22, 16  ;;  %v1987_v49 = vsel %vm1859_vm4, %v7679_v40, 8  ;;  %v3650_v9 = vshra.s32 %v9097_v21, 16  ;;  %v2024_v20 = vsel %vm1896_vm3, %v7679_v40, 8  ;;  %v12720_v1 = vld [vmem:[#allocation97_spill] sm:$0xff] }
 0x2ee   :  { %v9107_v58 = vpop.xlane.xlu0 %2528  ;;  %12714 = vst [vmem:[#allocation93_spill] sm:$0xff] %v9109_v2  ;;  %v9133_v32 = vcvt.s32.f32 %v3635_v8  ;;  %vm1897_vm7 = vcmp.eq.f32.partialorder %v12720_v1, %v12719_v3  ;;  %v9139_v22 = vpop.xlane.xlu1 %2082  ;;  %v3110_v50 = vshra.s32 %v9113_v60, 16  ;;  %v2571_v16 = vcvt.s32.f32 %v2569_v5  ;;  %v12726_v5 = vld [vmem:[#allocation192_spill] sm:$0xff] }
 0x2ef   :  { %12713 = vst [vmem:[#allocation188_spill] sm:$0xff] %v9107_v58  ;;  %vm2530_vm6 = vcmp.eq.f32.partialorder %v8322_v35, %v9107_v58  ;;  %v2554_v35 = vand.u32 65535, %v8326_v59  ;;  %12721 = vst [vmem:[#allocation186_spill] sm:$0xff] %v9139_v22  ;;  %v9145_v58 = vsel %vm1400_vm1, %v1987_v49, 2147483647  ;;  %v2130_v8 = vcvt.f32.s32 %v8347_v47  ;;  %v12725_v59 = vld [vmem:[#allocation127_spill] sm:$0xff] }
 0x2f0   :  { %v9122_v44 = vsel %vm2530_vm6, %v2526_v57, inf  ;;  %12718 = vst [vmem:[#allocation114_spill] sm:$0xff] %v9133_v32  ;;  %v1988_v57 = vsel %vm1860_vm5, %v7679_v40, 8  ;;  %12723 = vst [vmem:[#allocation193_spill] sm:$0xff] %v9145_v58  ;;  %v9153_v3 = vsel %vm1400_vm1, %v2024_v20, 2147483647  ;;  %v9155_v1 = vcvt.s32.f32 %v3650_v9 }
 0x2f1   :  { %3623 = vmin.xlane.f32.xlu1 %v9092_v15  ;;  %3083 = vmin.xlane.f32.xlu0 %v9109_v2  ;;  %v9148_v2 = vcvt.s32.f32 %v3095_v25  ;;  %v3665_v22 = vshra.s32 %v9129_v61, 16  ;;  %v12727_v60 = vld [vmem:[#allocation96_spill] sm:$0xff]  ;;  %v2025_v49 = vsel %vm1897_vm7, %v7679_v40, 8  ;;  %v12728_v47 = vld [vmem:[#allocation115_spill] sm:$0xff]  ;;  %v12729_v25 = vld [vmem:[#allocation190_spill] sm:$0xff]  ;;  %v2556_v20 = vcvt.s32.f32 %v2554_v35 }
 0x2f2   :  { %v9141_v38 = vpop.xlane.xlu0 %2573  ;;  %vm1898_vm9 = vcmp.eq.f32.partialorder %v12727_v60, %v12726_v5  ;;  %vm1861_vm10 = vcmp.eq.f32.partialorder %v12729_v25, %v12728_v47  ;;  %v9168_v9 = vsel %vm1400_vm1, %v1988_v57, 2147483647  ;;  %v3125_v61 = vshra.s32 %v9145_v58, 16 }
 0x2f3   :  { %12722 = vst [vmem:[#allocation185_spill] sm:$0xff] %v9141_v38  ;;  %12724 = vst [vmem:[#allocation97_spill] sm:$0xff] %v9148_v2  ;;  %vm2575_vm8 = vcmp.eq.f32.partialorder %v12725_v59, %v9141_v38  ;;  %v2599_v15 = vand.u32 65535, %v8339_v28  ;;  %v2131_v52 = vshll.u32 %v2130_v8, 16  ;;  %v2115_v47 = vcvt.f32.s32 %v8362_v45  ;;  %v12733_v45 = vld [vmem:[#allocation247_spill] sm:$0xff]  ;;  %v12734_v8 = vld [vmem:[#allocation189_spill] sm:$0xff] }
 0x2f4   :  { %v9158_v21 = vsel %vm2575_vm8, %v2571_v16, inf  ;;  %v9172_v16 = vcvt.s32.f32 %v3110_v50  ;;  %v1989_v35 = vsel %vm1861_vm10, %v7679_v40, 8  ;;  %v9180_v57 = vcvt.s32.f32 %v3665_v22 }
 0x2f5   :  { %3638 = vmin.xlane.f32.xlu1 %v9133_v32  ;;  %3098 = vmin.xlane.f32.xlu0 %v9148_v2  ;;  %v3680_v2 = vshra.s32 %v9153_v3, 16  ;;  %v2026_v28 = vsel %vm1898_vm9, %v7679_v40, 8  ;;  %v9190_v50 = vsel %vm1400_vm1, %v2025_v49, 2147483647  ;;  %vm1862_vm12 = vcmp.eq.f32.partialorder %v12734_v8, %v12733_v45  ;;  %v12738_v8 = vld [vmem:[#allocation122_spill] sm:$0xff] }
 0x2f6   :  { %v2128_v59 = vpop.xlane.xlu1 %2127  ;;  %v9170_v38 = vpop.xlane.xlu0 %2558  ;;  %12731 = vst [vmem:[#allocation192_spill] sm:$0xff] %v9172_v16  ;;  %12732 = vst [vmem:[#allocation96_spill] sm:$0xff] %v9190_v50  ;;  %v3140_v60 = vshra.s32 %v9168_v9, 16  ;;  %v2601_v5 = vcvt.s32.f32 %v2599_v15  ;;  %v2584_v49 = vand.u32 65535, %v8356_v13  ;;  %v9205_v58 = vsel %vm1400_vm1, %v1989_v35, 2147483647 }
 0x2f7   :  { %12730 = vst [vmem:[#allocation127_spill] sm:$0xff] %v9170_v38  ;;  %v2129_v25 = vcvt.f32.s32 %v2128_v59  ;;  %vm2560_vm11 = vcmp.eq.f32.partialorder %v8352_v55, %v9170_v38  ;;  %v9200_v59 = vcvt.s32.f32 %v3125_v61  ;;  %v2116_v45 = vshll.u32 %v2115_v47, 16  ;;  %v12739_v38 = vld [vmem:[#allocation195_spill] sm:$0xff] }
 0x2f8   :  { %v9183_v32 = vsel %vm2560_vm11, %v2556_v20, inf  ;;  %vm1863_vm14 = vcmp.eq.f32.partialorder %v12739_v38, %v12738_v8  ;;  %v9221_v13 = vcvt.s32.f32 %v3680_v2  ;;  %v9226_v35 = vcvt.s32.f32 %v3140_v60  ;;  %v12746_v2 = vld [vmem:[#allocation248_spill] sm:$0xff]  ;;  %v12748_v60 = vld [vmem:[#allocation191_spill] sm:$0xff] }
 0x2f9   :  { %v9194_v55 = vadd.s32 %v2131_v52, %v2129_v25  ;;  %3653 = vmin.xlane.f32.xlu1 %v9155_v1  ;;  %3113 = vmin.xlane.f32.xlu0 %v9172_v16  ;;  %12737 = vst [vmem:[#allocation247_spill] sm:$0xff] %v9200_v59  ;;  %v1990_v25 = vsel %vm1862_vm12, %v7679_v40, 8  ;;  %v9215_v16 = vsel %vm1400_vm1, %v2026_v28, 2147483647  ;;  %v3155_v38 = vshra.s32 %v9205_v58, 16 }
 0x2fa   :  { %v2113_v22 = vpop.xlane.xlu1 %2112  ;;  %v9198_v20 = vpop.xlane.xlu0 %2603  ;;  %12740 = vst [vmem:[#allocation189_spill] sm:$0xff] %v9215_v16  ;;  %12742 = vst [vmem:[#allocation195_spill] sm:$0xff] %v9221_v13  ;;  %v2160_v8 = vcvt.f32.s32 %v8393_v0 }
 0x2fb   :  { %12735 = vst [vmem:[#allocation115_spill] sm:$0xff] %v9194_v55  ;;  %12736 = vst [vmem:[#allocation190_spill] sm:$0xff] %v9198_v20  ;;  %v2114_v52 = vcvt.f32.s32 %v2113_v22  ;;  %vm2605_vm13 = vcmp.eq.f32.partialorder %v8368_v23, %v9198_v20  ;;  %v3695_v23 = vshra.s32 %v9190_v50, 16  ;;  %v2586_v22 = vcvt.s32.f32 %v2584_v49  ;;  %v12747_v20 = vld [vmem:[#allocation131_spill] sm:$0xff] }
 0x2fc   :  { %v9212_v61 = vsel %vm2605_vm13, %v2601_v5, inf  ;;  %12744 = vst [vmem:[#allocation256_spill] sm:$0xff] %v9226_v35  ;;  %v12745_v5 = vld [vmem:[#allocation132_spill] sm:$0xff]  ;;  %vm1864_vm2 = vcmp.eq.f32.partialorder %v12748_v60, %v12747_v20 }
 0x2fd   :  { %v9217_v15 = vadd.s32 %v2116_v45, %v2114_v52  ;;  %3668 = vmin.xlane.f32.xlu1 %v9180_v57  ;;  %3128 = vmin.xlane.f32.xlu0 %v9200_v59  ;;  %v2629_v28 = vand.u32 65535, %v12745_v5  ;;  %v9231_v45 = vsel %vm1400_vm1, %v1990_v25, 2147483647  ;;  %v1991_v52 = vsel %vm1863_vm14, %v7679_v40, 8 }
 0x2fe   :  { %v9224_v47 = vpop.xlane.xlu0 %2588  ;;  %v9243_v49 = vcvt.s32.f32 %v3695_v23  ;;  %v3710_v25 = vshra.s32 %v9215_v16, 16  ;;  %v2614_v5 = vand.u32 65535, %v8385_v17  ;;  %v9248_v0 = vsel %vm1400_vm1, %v1991_v52, 2147483647  ;;  %v12750_v16 = vld [vmem:[#allocation135_spill] sm:$0xff] }
 0x2ff   :  { %12741 = vst [vmem:[#allocation122_spill] sm:$0xff] %v9217_v15  ;;  %12743 = vst [vmem:[#allocation255_spill] sm:$0xff] %v9224_v47  ;;  %vm2590_vm15 = vcmp.eq.f32.partialorder %v12746_v2, %v9224_v47  ;;  %v3170_v47 = vshra.s32 %v9231_v45, 16  ;;  %v2631_v55 = vcvt.s32.f32 %v2629_v28  ;;  %v1992_v17 = vsel %vm1864_vm2, %v7679_v40, 8 }
 0x300   :  { %v9237_v59 = vsel %vm2590_vm15, %v2586_v22, inf  ;;  %v9252_v22 = vcvt.s32.f32 %v3155_v38  ;;  %v12751_v38 = vld [vmem:[#allocation206_spill] sm:$0xff]  ;;  %v3185_v20 = vshra.s32 %v9248_v0, 16 }
 0x301   :  { %3683 = vmin.xlane.f32.xlu1 %v9221_v13  ;;  %3143 = vmin.xlane.f32.xlu0 %v9226_v35  ;;  %v2161_v13 = vshll.u32 %v2160_v8, 16  ;;  %v2145_v35 = vcvt.f32.s32 %v8408_v6  ;;  %vm1867_vm4 = vcmp.eq.f32.partialorder %v12751_v38, %v12750_v16  ;;  %v9270_v6 = vcvt.s32.f32 %v3710_v25 }
 0x302   :  { %v2158_v15 = vpop.xlane.xlu1 %2157  ;;  %v9250_v2 = vpop.xlane.xlu0 %2633  ;;  %v9274_v28 = vcvt.s32.f32 %v3170_v47  ;;  %v2659_v8 = vand.u32 65535, %v8402_v43  ;;  %v9279_v16 = vsel %vm1400_vm1, %v1992_v17, 2147483647  ;;  %v1995_v25 = vsel %vm1867_vm4, %v7679_v40, 8  ;;  %v12758_v17 = vld [vmem:[#allocation136_spill] sm:$0xff] }
 0x303   :  { %12749 = vst [vmem:[#allocation132_spill] sm:$0xff] %v9250_v2  ;;  %v2159_v23 = vcvt.f32.s32 %v2158_v15  ;;  %vm2635_vm3 = vcmp.eq.f32.partialorder %v8398_v41, %v9250_v2 }
 0x304   :  { %v9262_v52 = vsel %vm2635_vm3, %v2631_v55, inf  ;;  %v2616_v55 = vcvt.s32.f32 %v2614_v5  ;;  %v3200_v5 = vshra.s32 %v9279_v16, 16 }
 0x305   :  { %v9266_v50 = vadd.s32 %v2161_v13, %v2159_v23  ;;  %3698 = vmin.xlane.f32.xlu1 %v9243_v49  ;;  %3158 = vmin.xlane.f32.xlu0 %v9252_v22  ;;  %v2146_v13 = vshll.u32 %v2145_v35, 16  ;;  %v12754_v23 = vld [vmem:[#allocation146_spill] sm:$0xff]  ;;  %v9294_v35 = vcvt.s32.f32 %v3185_v20  ;;  %v12761_v20 = vld [vmem:[#allocation75_spill] sm:$0xff] }
 0x306   :  { %v2143_v15 = vpop.xlane.xlu1 %2142  ;;  %v9272_v41 = vpop.xlane.xlu0 %2618  ;;  %vm1869_vm6 = vcmp.eq.f32.partialorder %v12754_v23, %v8423_v30  ;;  %vm1871_vm8 = vcmp.eq.f32.partialorder %v12761_v20, %v8471_v39  ;;  %v2175_v39 = vcvt.f32.s32 %v8455_v11 }
 0x307   :  { %12752 = vst [vmem:[#allocation248_spill] sm:$0xff] %v9266_v50  ;;  %12753 = vst [vmem:[#allocation131_spill] sm:$0xff] %v9272_v41  ;;  %v2144_v60 = vcvt.f32.s32 %v2143_v15  ;;  %vm2620_vm5 = vcmp.eq.f32.partialorder %v8412_v19, %v9272_v41  ;;  %v2661_v19 = vcvt.s32.f32 %v2659_v8  ;;  %v2644_v15 = vand.u32 65535, %v12758_v17 }
 0x308   :  { %v9286_v47 = vsel %vm2620_vm5, %v2616_v55, inf  ;;  %12757 = vst [vmem:[#allocation206_spill] sm:$0xff] %v9294_v35  ;;  %v9299_v41 = vsel %vm1400_vm1, %v1995_v25, 2147483647  ;;  %v1997_v30 = vsel %vm1869_vm6, %v7679_v40, 8  ;;  %v2190_v55 = vcvt.f32.s32 %v8437_v53 }
 0x309   :  { %v9288_v38 = vadd.s32 %v2146_v13, %v2144_v60  ;;  %3713 = vmin.xlane.f32.xlu1 %v9270_v6  ;;  %3173 = vmin.xlane.f32.xlu0 %v9274_v28  ;;  %12759 = vst [vmem:[#allocation146_spill] sm:$0xff] %v9299_v41  ;;  %v12760_v13 = vld [vmem:[#allocation138_spill] sm:$0xff]  ;;  %v2689_v8 = vand.u32 65535, %v8430_v36  ;;  %v9313_v25 = vsel %vm1400_vm1, %v1997_v30, 2147483647  ;;  %v9317_v53 = vcvt.s32.f32 %v3200_v5 }
 0x30a   :  { %v9292_v43 = vpop.xlane.xlu0 %2663  ;;  %12762 = vst [vmem:[#allocation136_spill] sm:$0xff] %v9313_v25  ;;  %v1999_v36 = vsel %vm1871_vm8, %v7679_v40, 8 }
 0x30b   :  { %12755 = vst [vmem:[#allocation191_spill] sm:$0xff] %v9288_v38  ;;  %12756 = vst [vmem:[#allocation135_spill] sm:$0xff] %v9292_v43  ;;  %vm2665_vm7 = vcmp.eq.f32.partialorder %v12760_v13, %v9292_v43  ;;  %v2646_v13 = vcvt.s32.f32 %v2644_v15  ;;  %v2191_v43 = vshll.u32 %v2190_v55, 16  ;;  %v2691_v5 = vcvt.s32.f32 %v2689_v8  ;;  %v12768_v55 = vld [vmem:[#allocation79_spill] sm:$0xff]  ;;  %v12773_v8 = vld [vmem:[#allocation141_spill] sm:$0xff] }
 0x30c   :  { %v9305_v60 = vsel %vm2665_vm7, %v2661_v19, inf  ;;  %12764 = vst [vmem:[#allocation75_spill] sm:$0xff] %v9317_v53  ;;  %v3245_v19 = vshra.s32 %v9299_v41, 16  ;;  %v12767_v41 = vld [vmem:[#allocation140_spill] sm:$0xff]  ;;  %vm1873_vm10 = vcmp.eq.f32.partialorder %v12768_v55, %v8524_v42  ;;  %v12774_v42 = vld [vmem:[#allocation133_spill] sm:$0xff] }
 0x30d   :  { %2337 = vmin.xlane.f32.xlu1 %v8686_v34  ;;  %3188 = vmin.xlane.f32.xlu0 %v9294_v35  ;;  %v12765_v34 = vld [vmem:[#allocation139_spill] sm:$0xff]  ;;  %v2674_v15 = vand.u32 65535, %v12767_v41  ;;  %v12775_v55 = vld [vmem:[#allocation65_spill] sm:$0xff] }
 0x30e   :  { %v2188_v23 = vpop.xlane.xlu1 %2187  ;;  %v9315_v17 = vpop.xlane.xlu0 %2648  ;;  %vm1877_vm12 = vcmp.eq.f32.partialorder %v12775_v55, %v12774_v42  ;;  %v12792_v55 = vld [vmem:[#allocation251_spill] sm:$0xff] }
 0x30f   :  { %12763 = vst [vmem:[#allocation138_spill] sm:$0xff] %v9315_v17  ;;  %v2189_v20 = vcvt.f32.s32 %v2188_v23  ;;  %vm2650_vm9 = vcmp.eq.f32.partialorder %v12765_v34, %v9315_v17  ;;  %v9335_v34 = vcvt.s32.f32 %v3245_v19  ;;  %v12771_v17 = vld [vmem:[#allocation249_spill] sm:$0xff]  ;;  %v2001_v19 = vsel %vm1873_vm10, %v7679_v40, 8 }
 0x310   :  { %v9324_v2 = vsel %vm2650_vm9, %v2646_v13, inf  ;;  %v3275_v13 = vshra.s32 %v9313_v25, 16  ;;  %v12781_v25 = vld [vmem:[#allocation87_spill] sm:$0xff] }
 0x311   :  { %v9326_v30 = vadd.s32 %v2191_v43, %v2189_v20  ;;  %2322 = vmin.xlane.f32.xlu1 %v8711_v10  ;;  %3203 = vmin.xlane.f32.xlu0 %v9317_v53  ;;  %12770 = vst [vmem:[#allocation79_spill] sm:$0xff] %v9335_v34  ;;  %v3259_v43 = vand.u32 65535, %v12771_v17  ;;  %v2176_v20 = vshll.u32 %v2175_v39, 16  ;;  %v9340_v10 = vsel %vm1400_vm1, %v1999_v36, 2147483647  ;;  %v12777_v17 = vld [vmem:[#allocation83_spill] sm:$0xff] }
 0x312   :  { %v2173_v11 = vpop.xlane.xlu1 %2172  ;;  %v9333_v23 = vpop.xlane.xlu0 %2693  ;;  %12772 = vst [vmem:[#allocation249_spill] sm:$0xff] %v9340_v10  ;;  %vm1875_vm13 = vcmp.eq.f32.partialorder %v12777_v17, %v8575_v31  ;;  %v2220_v50 = vcvt.f32.s32 %v12781_v25  ;;  %v12785_v17 = vld [vmem:[#allocation144_spill] sm:$0xff]  ;;  %v12786_v25 = vld [vmem:[#allocation137_spill] sm:$0xff] }
 0x313   :  { %12766 = vst [vmem:[#allocation139_spill] sm:$0xff] %v9326_v30  ;;  %12769 = vst [vmem:[#allocation140_spill] sm:$0xff] %v9333_v23  ;;  %v2174_v30 = vcvt.f32.s32 %v2173_v11  ;;  %vm2695_vm11 = vcmp.eq.f32.partialorder %v12773_v8, %v9333_v23  ;;  %v2676_v11 = vcvt.s32.f32 %v2674_v15  ;;  %v12780_v8 = vld [vmem:[#allocation250_spill] sm:$0xff]  ;;  %v2005_v15 = vsel %vm1877_vm12, %v7679_v40, 8 }
 0x314   :  { %v9344_v41 = vsel %vm2695_vm11, %v2691_v5, inf  ;;  %v3305_v5 = vshra.s32 %v9340_v10, 16  ;;  %v2719_v23 = vand.u32 65535, %v12780_v8  ;;  %v2003_v8 = vsel %vm1875_vm13, %v7679_v40, 8 }
 0x315   :  { %v9349_v38 = vadd.s32 %v2176_v20, %v2174_v30  ;;  %2367 = vmin.xlane.f32.xlu1 %v8740_v51  ;;  %3248 = vmin.xlane.f32.xlu0 %v9335_v34  ;;  %v9362_v30 = vcvt.s32.f32 %v3275_v13  ;;  %v12783_v51 = vld [vmem:[#allocation149_spill] sm:$0xff]  ;;  %v3261_v20 = vcvt.s32.f32 %v3259_v43  ;;  %v9367_v34 = vsel %vm1400_vm1, %v2001_v19, 2147483647  ;;  %v12787_v13 = vld [vmem:[#allocation67_spill] sm:$0xff] }
 0x316   :  { %v9355_v39 = vpop.xlane.xlu1 %3263  ;;  %v9357_v36 = vpop.xlane.xlu0 %2678  ;;  %12784 = vst [vmem:[#allocation250_spill] sm:$0xff] %v9367_v34  ;;  %vm1879_vm2 = vcmp.eq.f32.partialorder %v12787_v13, %v12786_v25  ;;  %v12789_v19 = vld [vmem:[#allocation147_spill] sm:$0xff]  ;;  %v2721_v42 = vcvt.s32.f32 %v2719_v23  ;;  %v2221_v10 = vshll.u32 %v2220_v50, 16  ;;  %v3335_v53 = vshra.s32 %v9367_v34, 16  ;;  %v12801_v34 = vld [vmem:[#allocation78_spill] sm:$0xff] }
 0x317   :  { %12776 = vst [vmem:[#allocation141_spill] sm:$0xff] %v9349_v38  ;;  %12778 = vst [vmem:[#allocation133_spill] sm:$0xff] %v9355_v39  ;;  %vm2680_vm14 = vcmp.eq.f32.partialorder %v12783_v51, %v9357_v36  ;;  %vm3265_vm15 = vcmp.eq.f32.partialorder %v12785_v17, %v9355_v39  ;;  %v9387_v39 = vcvt.s32.f32 %v3305_v5  ;;  %v2007_v23 = vsel %vm1879_vm2, %v7679_v40, 8  ;;  %v12796_v50 = vld [vmem:[#allocation143_spill] sm:$0xff]  ;;  %v12797_v5 = vld [vmem:[#allocation69_spill] sm:$0xff] }
 0x318   :  { %12779 = vst [vmem:[#allocation65_spill] sm:$0xff] %v9357_v36  ;;  %12782 = vst [vmem:[#allocation83_spill] sm:$0xff] %v9362_v30  ;;  %v9369_v31 = vsel %vm2680_vm14, %v2676_v11, inf  ;;  %v9382_v43 = vsel %vm3265_vm15, %v3261_v20, inf  ;;  %v2205_v11 = vcvt.f32.s32 %v12789_v19  ;;  %v2704_v36 = vand.u32 65535, %v12792_v55 }
 0x319   :  { %2352 = vmin.xlane.f32.xlu1 %v8770_v56  ;;  %3278 = vmin.xlane.f32.xlu0 %v9362_v30  ;;  %12788 = vst [vmem:[#allocation87_spill] sm:$0xff] %v9382_v43  ;;  %12791 = vst [vmem:[#allocation144_spill] sm:$0xff] %v9387_v39  ;;  %v12793_v56 = vld [vmem:[#allocation145_spill] sm:$0xff]  ;;  %v9394_v20 = vsel %vm1400_vm1, %v2003_v8, 2147483647  ;;  %vm1881_vm4 = vcmp.eq.f32.partialorder %v12797_v5, %v12796_v50  ;;  %v3289_v30 = vand.u32 65535, %v12801_v34  ;;  %v9415_v13 = vcvt.s32.f32 %v3335_v53 }
 0x31a   :  { %v2218_v51 = vpop.xlane.xlu1 %2217  ;;  %v9385_v17 = vpop.xlane.xlu0 %2723  ;;  %12794 = vst [vmem:[#allocation137_spill] sm:$0xff] %v9394_v20  ;;  %v9399_v19 = vsel %vm1400_vm1, %v2005_v15, 2147483647  ;;  %v2206_v8 = vshll.u32 %v2205_v11, 16  ;;  %v2706_v15 = vcvt.s32.f32 %v2704_v36  ;;  %v3365_v35 = vshra.s32 %v9394_v20, 16  ;;  %v12806_v53 = vld [vmem:[#allocation142_spill] sm:$0xff] }
 0x31b   :  { %12790 = vst [vmem:[#allocation149_spill] sm:$0xff] %v9385_v17  ;;  %v2219_v38 = vcvt.f32.s32 %v2218_v51  ;;  %vm2725_vm3 = vcmp.eq.f32.partialorder %v12793_v56, %v9385_v17  ;;  %12795 = vst [vmem:[#allocation67_spill] sm:$0xff] %v9399_v19  ;;  %v12800_v56 = vld [vmem:[#allocation214_spill] sm:$0xff]  ;;  %v3395_v34 = vshra.s32 %v9399_v19, 16  ;;  %v12807_v36 = vld [vmem:[#allocation68_spill] sm:$0xff] }
 0x31c   :  { %v9396_v43 = vsel %vm2725_vm3, %v2721_v42, inf  ;;  %v2749_v17 = vand.u32 65535, %v12800_v56  ;;  %12802 = vst [vmem:[#allocation145_spill] sm:$0xff] %v9415_v13  ;;  %vm1882_vm6 = vcmp.eq.f32.partialorder %v12807_v36, %v12806_v53  ;;  %v12810_v56 = vld [vmem:[#allocation252_spill] sm:$0xff]  ;;  %v3291_v53 = vcvt.s32.f32 %v3289_v30  ;;  %v12814_v50 = vld [vmem:[#allocation90_spill] sm:$0xff]  ;;  %v12818_v30 = vld [vmem:[#allocation197_spill] sm:$0xff] }
 0x31d   :  { %v9407_v51 = vadd.s32 %v2221_v10, %v2219_v38  ;;  %2397 = vmin.xlane.f32.xlu1 %v8800_v46  ;;  %3308 = vmin.xlane.f32.xlu0 %v9387_v39  ;;  %v12803_v38 = vld [vmem:[#allocation216_spill] sm:$0xff]  ;;  %v9423_v10 = vsel %vm1400_vm1, %v2007_v23, 2147483647  ;;  %v2010_v5 = vsel %vm1882_vm6, %v7679_v40, 8 }
 0x31e   :  { %v2203_v42 = vpop.xlane.xlu1 %2202  ;;  %v9411_v55 = vpop.xlane.xlu0 %2708  ;;  %12804 = vst [vmem:[#allocation143_spill] sm:$0xff] %v9423_v10  ;;  %v12813_v20 = vld [vmem:[#allocation148_spill] sm:$0xff] }
 0x31f   :  { %12798 = vst [vmem:[#allocation147_spill] sm:$0xff] %v9407_v51  ;;  %12799 = vst [vmem:[#allocation251_spill] sm:$0xff] %v9411_v55  ;;  %v2204_v25 = vcvt.f32.s32 %v2203_v42  ;;  %vm2710_vm5 = vcmp.eq.f32.partialorder %v12803_v38, %v9411_v55  ;;  %v2009_v42 = vsel %vm1881_vm4, %v7679_v40, 8  ;;  %v9442_v55 = vcvt.s32.f32 %v3365_v35 }
 0x320   :  { %v9420_v46 = vsel %vm2710_vm5, %v2706_v15, inf  ;;  %v3425_v35 = vshra.s32 %v9423_v10, 16 }
 0x321   :  { %v9425_v11 = vadd.s32 %v2206_v8, %v2204_v25  ;;  %2382 = vmin.xlane.f32.xlu1 %v8830_v63  ;;  %3338 = vmin.xlane.f32.xlu0 %v9415_v13  ;;  %v2751_v8 = vcvt.s32.f32 %v2749_v17  ;;  %v2734_v25 = vand.u32 65535, %v12810_v56  ;;  %v12811_v63 = vld [vmem:[#allocation217_spill] sm:$0xff]  ;;  %12812 = vst [vmem:[#allocation216_spill] sm:$0xff] %v9442_v55  ;;  %v9453_v17 = vcvt.s32.f32 %v3395_v34 }
 0x322   :  { %v9436_v15 = vpop.xlane.xlu1 %3293  ;;  %v9438_v23 = vpop.xlane.xlu0 %2753  ;;  %v2250_v38 = vcvt.f32.s32 %v12811_v63 }
 0x323   :  { %12805 = vst [vmem:[#allocation69_spill] sm:$0xff] %v9425_v11  ;;  %12808 = vst [vmem:[#allocation214_spill] sm:$0xff] %v9436_v15  ;;  %vm2755_vm7 = vcmp.eq.f32.partialorder %v12813_v20, %v9438_v23  ;;  %vm3295_vm8 = vcmp.eq.f32.partialorder %v12814_v50, %v9436_v15  ;;  %v9459_v20 = vsel %vm1400_vm1, %v2009_v42, 2147483647  ;;  %v2736_v15 = vcvt.s32.f32 %v2734_v25  ;;  %v12823_v11 = vld [vmem:[#allocation152_spill] sm:$0xff] }
 0x324   :  { %12809 = vst [vmem:[#allocation78_spill] sm:$0xff] %v9438_v23  ;;  %v9446_v36 = vsel %vm2755_vm7, %v2751_v8, inf  ;;  %12815 = vst [vmem:[#allocation142_spill] sm:$0xff] %v9453_v17  ;;  %v9456_v56 = vsel %vm3295_vm8, %v3291_v53, inf  ;;  %v12819_v8 = vld [vmem:[#allocation101_spill] sm:$0xff]  ;;  %v12821_v23 = vld [vmem:[#allocation198_spill] sm:$0xff]  ;;  %v9478_v25 = vcvt.s32.f32 %v3425_v35 }
 0x325   :  { %2427 = vmin.xlane.f32.xlu1 %v8860_v33  ;;  %3368 = vmin.xlane.f32.xlu0 %v9442_v55  ;;  %12816 = vst [vmem:[#allocation68_spill] sm:$0xff] %v9456_v56  ;;  %12817 = vst [vmem:[#allocation252_spill] sm:$0xff] %v9459_v20  ;;  %vm1899_vm9 = vcmp.eq.f32.partialorder %v12819_v8, %v12818_v30  ;;  %v2779_v33 = vand.u32 65535, %v12821_v23  ;;  %v2251_v13 = vshll.u32 %v2250_v38, 16  ;;  %v12822_v55 = vld [vmem:[#allocation91_spill] sm:$0xff]  ;;  %v3455_v23 = vshra.s32 %v9459_v20, 16 }
 0x326   :  { %v2248_v63 = vpop.xlane.xlu1 %2247  ;;  %v9463_v50 = vpop.xlane.xlu0 %2738  ;;  %v2235_v34 = vcvt.f32.s32 %v12822_v55  ;;  %v9472_v42 = vsel %vm1400_vm1, %v2010_v5, 2147483647  ;;  %12826 = vst [vmem:[#allocation197_spill] sm:$0xff] %v9478_v25  ;;  %v12827_v55 = vld [vmem:[#allocation196_spill] sm:$0xff]  ;;  %v12831_v35 = vld [vmem:[#allocation153_spill] sm:$0xff] }
 0x327   :  { %12820 = vst [vmem:[#allocation217_spill] sm:$0xff] %v9463_v50  ;;  %v2249_v39 = vcvt.f32.s32 %v2248_v63  ;;  %vm2740_vm10 = vcmp.eq.f32.partialorder %v12823_v11, %v9463_v50  ;;  %12824 = vst [vmem:[#allocation148_spill] sm:$0xff] %v9472_v42  ;;  %v12828_v38 = vld [vmem:[#allocation100_spill] sm:$0xff]  ;;  %v2027_v11 = vsel %vm1899_vm9, %v7679_v40, 8  ;;  %v9499_v30 = vcvt.s32.f32 %v3455_v23  ;;  %v12840_v23 = vld [vmem:[#allocation105_spill] sm:$0xff] }
 0x328   :  { %v9469_v53 = vsel %vm2740_vm10, %v2736_v15, inf  ;;  %vm1900_vm11 = vcmp.eq.f32.partialorder %v12828_v38, %v12827_v55  ;;  %v2236_v63 = vshll.u32 %v2235_v34, 16  ;;  %v3470_v8 = vshra.s32 %v9472_v42, 16 }
 0x329   :  { %v9474_v56 = vadd.s32 %v2251_v13, %v2249_v39  ;;  %2412 = vmin.xlane.f32.xlu1 %v8887_v26  ;;  %3398 = vmin.xlane.f32.xlu0 %v9453_v17  ;;  %v2781_v39 = vcvt.s32.f32 %v2779_v33  ;;  %v12830_v13 = vld [vmem:[#allocation218_spill] sm:$0xff]  ;;  %12834 = vst [vmem:[#allocation91_spill] sm:$0xff] %v9499_v30  ;;  %v2028_v33 = vsel %vm1900_vm11, %v7679_v40, 8  ;;  %v9507_v34 = vsel %vm1400_vm1, %v2027_v11, 2147483647  ;;  %v12843_v11 = vld [vmem:[#allocation155_spill] sm:$0xff] }
 0x32a   :  { %v2233_v15 = vpop.xlane.xlu1 %2232  ;;  %v9487_v5 = vpop.xlane.xlu0 %2783  ;;  %v2764_v26 = vand.u32 65535, %v12830_v13  ;;  %12835 = vst [vmem:[#allocation152_spill] sm:$0xff] %v9507_v34  ;;  %v12839_v13 = vld [vmem:[#allocation201_spill] sm:$0xff]  ;;  %v9524_v42 = vsel %vm1400_vm1, %v2028_v33, 2147483647 }
 0x32b   :  { %12825 = vst [vmem:[#allocation90_spill] sm:$0xff] %v9474_v56  ;;  %12829 = vst [vmem:[#allocation101_spill] sm:$0xff] %v9487_v5  ;;  %v2234_v50 = vcvt.f32.s32 %v2233_v15  ;;  %vm2785_vm12 = vcmp.eq.f32.partialorder %v12831_v35, %v9487_v5  ;;  %v12832_v56 = vld [vmem:[#allocation82_spill] sm:$0xff]  ;;  %vm1901_vm13 = vcmp.eq.f32.partialorder %v12840_v23, %v12839_v13 }
 0x32c   :  { %v3319_v51 = vand.u32 65535, %v12832_v56  ;;  %v9493_v17 = vsel %vm2785_vm12, %v2781_v39, inf  ;;  %v2766_v15 = vcvt.s32.f32 %v2764_v26  ;;  %v12842_v5 = vld [vmem:[#allocation202_spill] sm:$0xff]  ;;  %12844 = vst [vmem:[#allocation218_spill] sm:$0xff] %v9524_v42  ;;  %v9528_v26 = vcvt.s32.f32 %v3470_v8 }
 0x32d   :  { %v9495_v20 = vadd.s32 %v2236_v63, %v2234_v50  ;;  %2457 = vmin.xlane.f32.xlu1 %v8914_v54  ;;  %3428 = vmin.xlane.f32.xlu0 %v9478_v25  ;;  %v12838_v54 = vld [vmem:[#allocation219_spill] sm:$0xff]  ;;  %v12841_v63 = vld [vmem:[#allocation156_spill] sm:$0xff]  ;;  %v12852_v25 = vld [vmem:[#allocation86_spill] sm:$0xff] }
 0x32e   :  { %v9509_v56 = vpop.xlane.xlu1 %3323  ;;  %v9511_v50 = vpop.xlane.xlu0 %2768  ;;  %v2809_v39 = vand.u32 65535, %v12838_v54  ;;  %v2280_v35 = vcvt.f32.s32 %v12841_v63  ;;  %v3321_v55 = vcvt.s32.f32 %v3319_v51  ;;  %12845 = vst [vmem:[#allocation153_spill] sm:$0xff] %v9528_v26  ;;  %v3725_v54 = vshra.s32 %v9507_v34, 16  ;;  %v12848_v51 = vld [vmem:[#allocation104_spill] sm:$0xff] }
 0x32f   :  { %12833 = vst [vmem:[#allocation198_spill] sm:$0xff] %v9495_v20  ;;  %12836 = vst [vmem:[#allocation196_spill] sm:$0xff] %v9509_v56  ;;  %vm2770_vm14 = vcmp.eq.f32.partialorder %v12842_v5, %v9511_v50  ;;  %vm3325_vm15 = vcmp.eq.f32.partialorder %v12843_v11, %v9509_v56  ;;  %v12847_v5 = vld [vmem:[#allocation200_spill] sm:$0xff] }
 0x330   :  { %12837 = vst [vmem:[#allocation100_spill] sm:$0xff] %v9511_v50  ;;  %v9519_v38 = vsel %vm2770_vm14, %v2766_v15, inf  ;;  %v9531_v13 = vsel %vm3325_vm15, %v3321_v55, inf  ;;  %vm1902_vm2 = vcmp.eq.f32.partialorder %v12848_v51, %v12847_v5  ;;  %v2029_v15 = vsel %vm1901_vm13, %v7679_v40, 8  ;;  %v12850_v11 = vld [vmem:[#allocation220_spill] sm:$0xff]  ;;  %v12851_v50 = vld [vmem:[#allocation159_spill] sm:$0xff] }
 0x331   :  { %2442 = vmin.xlane.f32.xlu1 %v8941_v7  ;;  %3458 = vmin.xlane.f32.xlu0 %v9499_v30  ;;  %12846 = vst [vmem:[#allocation82_spill] sm:$0xff] %v9531_v13  ;;  %v2811_v33 = vcvt.s32.f32 %v2809_v39  ;;  %v2794_v56 = vand.u32 65535, %v12850_v11  ;;  %v2281_v7 = vshll.u32 %v2280_v35, 16  ;;  %v2265_v30 = vcvt.f32.s32 %v12851_v50  ;;  %v12856_v39 = vld [vmem:[#allocation205_spill] sm:$0xff] }
 0x332   :  { %v2278_v23 = vpop.xlane.xlu1 %2277  ;;  %v9536_v63 = vpop.xlane.xlu0 %2813  ;;  %v3740_v55 = vshra.s32 %v9524_v42, 16  ;;  %v2030_v5 = vsel %vm1902_vm2, %v7679_v40, 8  ;;  %v9547_v51 = vsel %vm1400_vm1, %v2029_v15, 2147483647  ;;  %v9553_v50 = vcvt.s32.f32 %v3725_v54  ;;  %v12857_v35 = vld [vmem:[#allocation109_spill] sm:$0xff] }
 0x333   :  { %12849 = vst [vmem:[#allocation219_spill] sm:$0xff] %v9536_v63  ;;  %v2279_v8 = vcvt.f32.s32 %v2278_v23  ;;  %vm2815_vm3 = vcmp.eq.f32.partialorder %v12852_v25, %v9536_v63  ;;  %12853 = vst [vmem:[#allocation201_spill] sm:$0xff] %v9547_v51  ;;  %vm1903_vm4 = vcmp.eq.f32.partialorder %v12857_v35, %v12856_v39  ;;  %v12858_v25 = vld [vmem:[#allocation118_spill] sm:$0xff]  ;;  %v2796_v63 = vcvt.s32.f32 %v2794_v56  ;;  %v12860_v42 = vld [vmem:[#allocation221_spill] sm:$0xff] }
 0x334   :  { %v9543_v13 = vsel %vm2815_vm3, %v2811_v33, inf  ;;  %12855 = vst [vmem:[#allocation156_spill] sm:$0xff] %v9553_v50  ;;  %v2070_v23 = vcvt.f32.s32 %v12858_v25  ;;  %v2839_v15 = vand.u32 65535, %v12860_v42  ;;  %v2266_v20 = vshll.u32 %v2265_v30, 16  ;;  %v12863_v56 = vld [vmem:[#allocation119_spill] sm:$0xff]  ;;  %v12869_v35 = vld [vmem:[#allocation128_spill] sm:$0xff] }
 0x335   :  { %v9549_v34 = vadd.s32 %v2281_v7, %v2279_v8  ;;  %2487 = vmin.xlane.f32.xlu1 %v8968_v37  ;;  %3473 = vmin.xlane.f32.xlu0 %v9528_v26  ;;  %v12861_v8 = vld [vmem:[#allocation254_spill] sm:$0xff]  ;;  %v12862_v37 = vld [vmem:[#allocation253_spill] sm:$0xff]  ;;  %v9564_v54 = vcvt.s32.f32 %v3740_v55  ;;  %v9569_v10 = vsel %vm1400_vm1, %v2030_v5, 2147483647  ;;  %v2069_v25 = vcvt.f32.s32 %v9012_v29 }
 0x336   :  { %v2263_v33 = vpop.xlane.xlu1 %2262  ;;  %v9558_v11 = vpop.xlane.xlu0 %2798  ;;  %v3349_v26 = vand.u32 65535, %v12862_v37  ;;  %v3755_v42 = vshra.s32 %v9547_v51, 16  ;;  %v2031_v30 = vsel %vm1903_vm4, %v7679_v40, 8  ;;  %v2841_v29 = vcvt.s32.f32 %v2839_v15  ;;  %v12868_v37 = vld [vmem:[#allocation160_spill] sm:$0xff] }
 0x337   :  { %12854 = vst [vmem:[#allocation105_spill] sm:$0xff] %v9549_v34  ;;  %12859 = vst [vmem:[#allocation202_spill] sm:$0xff] %v9558_v11  ;;  %v2264_v7 = vcvt.f32.s32 %v2263_v33  ;;  %vm2800_vm5 = vcmp.eq.f32.partialorder %v12861_v8, %v9558_v11  ;;  %v3770_v51 = vshra.s32 %v9569_v10, 16 }
 0x338   :  { %v9566_v34 = vsel %vm2800_vm5, %v2796_v63, inf  ;;  %v2055_v63 = vcvt.f32.s32 %v12863_v56  ;;  %v3351_v11 = vcvt.s32.f32 %v3349_v26  ;;  %v12872_v26 = vld [vmem:[#allocation108_spill] sm:$0xff] }
 0x339   :  { %v9572_v19 = vadd.s32 %v2266_v20, %v2264_v7  ;;  %2472 = vmin.xlane.f32.xlu1 %v8995_v12  ;;  %3728 = vmin.xlane.f32.xlu0 %v9553_v50  ;;  %v12866_v20 = vld [vmem:[#allocation223_spill] sm:$0xff]  ;;  %v2071_v7 = vshll.u32 %v2070_v23, 16  ;;  %v2054_v50 = vcvt.f32.s32 %v9057_v62  ;;  %v9598_v23 = vcvt.s32.f32 %v3755_v42  ;;  %v12875_v42 = vld [vmem:[#allocation225_spill] sm:$0xff] }
 0x33a   :  { %v9582_v55 = vpop.xlane.xlu1 %3353  ;;  %v9584_v5 = vpop.xlane.xlu0 %2843  ;;  %v2824_v33 = vand.u32 65535, %v12866_v20  ;;  %v12867_v12 = vld [vmem:[#allocation95_spill] sm:$0xff]  ;;  %v12871_v20 = vld [vmem:[#allocation204_spill] sm:$0xff] }
 0x33b   :  { %12864 = vst [vmem:[#allocation155_spill] sm:$0xff] %v9582_v55  ;;  %12865 = vst [vmem:[#allocation200_spill] sm:$0xff] %v9584_v5  ;;  %v2310_v8 = vcvt.f32.s32 %v12867_v12  ;;  %vm2845_vm6 = vcmp.eq.f32.partialorder %v12868_v37, %v9584_v5  ;;  %vm3355_vm7 = vcmp.eq.f32.partialorder %v12869_v35, %v9582_v55  ;;  %v2072_v56 = vadd.s32 %v2071_v7, %v2069_v25  ;;  %v12874_v7 = vld [vmem:[#allocation203_spill] sm:$0xff] }
 0x33c   :  { %v9591_v39 = vsel %vm2845_vm6, %v2841_v29, inf  ;;  %v9600_v15 = vsel %vm3355_vm7, %v3351_v11, inf  ;;  %vm1904_vm8 = vcmp.eq.f32.partialorder %v12872_v26, %v12871_v20  ;;  %v9605_v29 = vsel %vm1400_vm1, %v2031_v30, 2147483647 }
 0x33d   :  { %2517 = vmin.xlane.f32.xlu1 %v9031_v14  ;;  %3743 = vmin.xlane.f32.xlu0 %v9564_v54  ;;  %12870 = vst [vmem:[#allocation104_spill] sm:$0xff] %v9600_v15  ;;  %v2056_v12 = vshll.u32 %v2055_v63, 16  ;;  %v2826_v25 = vcvt.s32.f32 %v2824_v33  ;;  %v2311_v62 = vshll.u32 %v2310_v8, 16  ;;  %v2295_v14 = vcvt.f32.s32 %v12874_v7  ;;  %v12876_v63 = vld [vmem:[#allocation208_spill] sm:$0xff]  ;;  %v12877_v33 = vld [vmem:[#allocation113_spill] sm:$0xff] }
 0x33e   :  { %v2308_v37 = vpop.xlane.xlu1 %2307  ;;  %v9607_v35 = vpop.xlane.xlu0 %2828  ;;  %v2032_v5 = vsel %vm1904_vm8, %v7679_v40, 8  ;;  %vm3964_vm10 = vcmp.eq.s32.totalorder %v7679_v40, %v2072_v56  ;;  %vm1905_vm11 = vcmp.eq.f32.partialorder %v12877_v33, %v12876_v63 }
 0x33f   :  { %12873 = vst [vmem:[#allocation220_spill] sm:$0xff] %v9607_v35  ;;  %v2309_v55 = vcvt.f32.s32 %v2308_v37  ;;  %vm2830_vm9 = vcmp.eq.f32.partialorder %v12875_v42, %v9607_v35  ;;  %v2057_v30 = vadd.s32 %v2056_v12, %v2054_v50  ;;  %v9622_v37 = vcvt.s32.f32 %v3770_v51  ;;  %v12878_v50 = vld [vmem:[#allocation162_spill] sm:$0xff] }
 0x340   :  { %v9612_v11 = vsel %vm2830_vm9, %v2826_v25, inf  ;;  %v3785_v25 = vshra.s32 %v9605_v29, 16  ;;  %v2296_v7 = vshll.u32 %v2295_v14, 16  ;;  %v12880_v12 = vmov 0.0   ;;  %v12888_v14 = vld [vmem:[#allocation228_spill] sm:$0xff] }
 0x341   :  { %v2312_v20 = vadd.s32 %v2311_v62, %v2309_v55  ;;  %2502 = vmin.xlane.f32.xlu1 %v9060_v18  ;;  %3758 = vmin.xlane.f32.xlu0 %v9598_v23  ;;  %v3379_v55 = vand.u32 65535, %v12878_v50  ;;  %v9628_v18 = vsel %vm1400_vm1, %v2032_v5, 2147483647  ;;  %v9631_v62 = vsel %vm3964_vm10, 1.0, %v12880_v12  ;;  %v12883_v5 = vld [vmem:[#allocation207_spill] sm:$0xff]  ;;  %v12886_v50 = vld [vmem:[#allocation98_spill] sm:$0xff] }
 0x342   :  { %v2293_v8 = vpop.xlane.xlu1 %2292  ;;  %v9620_v26 = vpop.xlane.xlu0 %2873  ;;  %12879 = vst [vmem:[#allocation159_spill] sm:$0xff] %v9628_v18  ;;  %12881 = vst [vmem:[#allocation86_spill] sm:$0xff] %v9631_v62  ;;  %v2033_v51 = vsel %vm1905_vm11, %v7679_v40, 8  ;;  %vm3963_vm13 = vcmp.eq.s32.totalorder %v7679_v40, %v2057_v30  ;;  %v3409_v35 = vand.u32 65535, %v12886_v50  ;;  %v9650_v30 = vcvt.s32.f32 %v3785_v25  ;;  %v12896_v62 = vld [vmem:[#allocation66_spill] sm:$0xff] }
 0x343   :  { %vm3980_vm12 = vcmp.eq.s32.totalorder %v7679_v40, %v2312_v20  ;;  %v2294_v56 = vcvt.f32.s32 %v2293_v8  ;;  %v12884_v20 = vld [vmem:[#allocation112_spill] sm:$0xff]  ;;  %v3439_v15 = vand.u32 65535, %v12896_v62 }
 0x344   :  { %v9634_v42 = vsel %vm3980_vm12, 1.0, %v12880_v12  ;;  %vm1906_vm14 = vcmp.eq.f32.partialorder %v12884_v20, %v12883_v5  ;;  %v9659_v5 = vsel %vm3963_vm13, 1.0, %v12880_v12  ;;  %v12901_v62 = vld [vmem:[#allocation116_spill] sm:$0xff] }
 0x345   :  { %12882 = vst [vmem:[#allocation205_spill] sm:$0xff] %v9634_v42  ;;  %v2297_v63 = vadd.s32 %v2296_v7, %v2294_v56  ;;  %2547 = vmin.xlane.f32.xlu1 %v9094_v24  ;;  %3773 = vmin.xlane.f32.xlu0 %v9622_v37  ;;  %v3800_v24 = vshra.s32 %v9628_v18, 16  ;;  %v3381_v7 = vcvt.s32.f32 %v3379_v55  ;;  %v9654_v56 = vsel %vm1400_vm1, %v2033_v51, 2147483647  ;;  %12889 = vst [vmem:[#allocation221_spill] sm:$0xff] %v9659_v5  ;;  %v12892_v51 = vld [vmem:[#allocation210_spill] sm:$0xff] }
 0x346   :  { %v9644_v33 = vpop.xlane.xlu1 %3383  ;;  %v9646_v8 = vpop.xlane.xlu0 %2858  ;;  %12887 = vst [vmem:[#allocation118_spill] sm:$0xff] %v9654_v56  ;;  %v2034_v50 = vsel %vm1906_vm14, %v7679_v40, 8  ;;  %v3411_v42 = vcvt.s32.f32 %v3409_v35  ;;  %v12900_v35 = vld [vmem:[#allocation209_spill] sm:$0xff]  ;;  %v12906_v5 = vld [vmem:[#allocation71_spill] sm:$0xff] }
 0x347   :  { %12885 = vst [vmem:[#allocation109_spill] sm:$0xff] %v9644_v33  ;;  %vm3979_vm15 = vcmp.eq.s32.totalorder %v7679_v40, %v2297_v63  ;;  %vm3385_vm2 = vcmp.eq.f32.partialorder %v12888_v14, %v9644_v33  ;;  %v12893_v63 = vld [vmem:[#allocation117_spill] sm:$0xff]  ;;  %v9678_v18 = vcvt.s32.f32 %v3800_v24  ;;  %vm1908_vm5 = vcmp.eq.f32.partialorder %v12901_v62, %v12900_v35 }
 0x348   :  { %v9662_v20 = vsel %vm3979_vm15, 1.0, %v12880_v12  ;;  %v9667_v25 = vsel %vm3385_vm2, %v3381_v7, inf  ;;  %vm1907_vm3 = vcmp.eq.f32.partialorder %v12893_v63, %v12892_v51  ;;  %v12897_v7 = vld [vmem:[#allocation229_spill] sm:$0xff]  ;;  %v2036_v35 = vsel %vm1908_vm5, %v7679_v40, 8 }
 0x349   :  { %12890 = vst [vmem:[#allocation254_spill] sm:$0xff] %v9662_v20  ;;  %2532 = vmin.xlane.f32.xlu1 %v9122_v44  ;;  %3788 = vmin.xlane.f32.xlu0 %v9650_v30  ;;  %12891 = vst [vmem:[#allocation253_spill] sm:$0xff] %v9667_v25  ;;  %v3815_v44 = vshra.s32 %v9654_v56, 16  ;;  %v9684_v25 = vsel %vm1400_vm1, %v2034_v50, 2147483647  ;;  %v2035_v51 = vsel %vm1907_vm3, %v7679_v40, 8  ;;  %v3441_v20 = vcvt.s32.f32 %v3439_v15 }
 0x34a   :  { %v9673_v14 = vpop.xlane.xlu1 %3413  ;;  %v9675_v33 = vpop.xlane.xlu0 %2888  ;;  %12898 = vst [vmem:[#allocation95_spill] sm:$0xff] %v9684_v25  ;;  %v12909_v15 = vld [vmem:[#allocation211_spill] sm:$0xff]  ;;  %v12910_v62 = vld [vmem:[#allocation121_spill] sm:$0xff] }
 0x34b   :  { %12894 = vst [vmem:[#allocation119_spill] sm:$0xff] %v9673_v14  ;;  %12895 = vst [vmem:[#allocation223_spill] sm:$0xff] %v9675_v33  ;;  %vm3415_vm4 = vcmp.eq.f32.partialorder %v12897_v7, %v9673_v14  ;;  %v12904_v7 = vld [vmem:[#allocation151_spill] sm:$0xff]  ;;  %v9698_v50 = vcvt.s32.f32 %v3815_v44  ;;  %vm1909_vm7 = vcmp.eq.f32.partialorder %v12910_v62, %v12909_v15  ;;  %v12919_v62 = vld [vmem:[#allocation120_spill] sm:$0xff] }
 0x34c   :  { %v9686_v55 = vsel %vm3415_vm4, %v3411_v42, inf  ;;  %v3214_v14 = vand.u32 65535, %v12904_v7  ;;  %v3830_v42 = vshra.s32 %v9684_v25, 16  ;;  %v2037_v15 = vsel %vm1909_vm7, %v7679_v40, 8 }
 0x34d   :  { %12899 = vst [vmem:[#allocation160_spill] sm:$0xff] %v9686_v55  ;;  %2577 = vmin.xlane.f32.xlu1 %v9158_v21  ;;  %3803 = vmin.xlane.f32.xlu0 %v9678_v18  ;;  %12905 = vst [vmem:[#allocation108_spill] sm:$0xff] %v9698_v50  ;;  %v9704_v21 = vsel %vm1400_vm1, %v2035_v51, 2147483647 }
 0x34e   :  { %v9693_v24 = vpop.xlane.xlu1 %3443  ;;  %v9695_v63 = vpop.xlane.xlu0 %2903  ;;  %12907 = vst [vmem:[#allocation203_spill] sm:$0xff] %v9704_v21  ;;  %v3216_v25 = vcvt.s32.f32 %v3214_v14  ;;  %v9718_v51 = vcvt.s32.f32 %v3830_v42  ;;  %v12918_v14 = vld [vmem:[#allocation74_spill] sm:$0xff] }
 0x34f   :  { %12902 = vst [vmem:[#allocation128_spill] sm:$0xff] %v9693_v24  ;;  %12903 = vst [vmem:[#allocation204_spill] sm:$0xff] %v9695_v63  ;;  %vm3445_vm6 = vcmp.eq.f32.partialorder %v12906_v5, %v9693_v24  ;;  %v12913_v5 = vld [vmem:[#allocation99_spill] sm:$0xff]  ;;  %vm1910_vm9 = vcmp.eq.f32.partialorder %v12919_v62, %v12918_v14  ;;  %v12928_v62 = vld [vmem:[#allocation125_spill] sm:$0xff] }
 0x350   :  { %v9706_v55 = vsel %vm3445_vm6, %v3441_v20, inf  ;;  %v3229_v24 = vand.u32 65535, %v12913_v5  ;;  %12914 = vst [vmem:[#allocation162_spill] sm:$0xff] %v9718_v51  ;;  %v3845_v20 = vshra.s32 %v9704_v21, 16  ;;  %v2038_v14 = vsel %vm1910_vm9, %v7679_v40, 8 }
 0x351   :  { %12908 = vst [vmem:[#allocation225_spill] sm:$0xff] %v9706_v55  ;;  %2562 = vmin.xlane.f32.xlu1 %v9183_v32  ;;  %3818 = vmin.xlane.f32.xlu0 %v9698_v50  ;;  %v12915_v55 = vld [vmem:[#allocation168_spill] sm:$0xff]  ;;  %v9724_v32 = vsel %vm1400_vm1, %v2036_v35, 2147483647 }
 0x352   :  { %v9713_v44 = vpop.xlane.xlu1 %3218  ;;  %v9715_v7 = vpop.xlane.xlu0 %2918  ;;  %12916 = vst [vmem:[#allocation207_spill] sm:$0xff] %v9724_v32  ;;  %v3231_v21 = vcvt.s32.f32 %v3229_v24  ;;  %v9738_v35 = vcvt.s32.f32 %v3845_v20  ;;  %v12927_v24 = vld [vmem:[#allocation213_spill] sm:$0xff] }
 0x353   :  { %12911 = vst [vmem:[#allocation208_spill] sm:$0xff] %v9713_v44  ;;  %12912 = vst [vmem:[#allocation113_spill] sm:$0xff] %v9715_v7  ;;  %vm3220_vm8 = vcmp.eq.f32.partialorder %v12915_v55, %v9713_v44  ;;  %v12922_v55 = vld [vmem:[#allocation150_spill] sm:$0xff]  ;;  %vm1911_vm11 = vcmp.eq.f32.partialorder %v12928_v62, %v12927_v24  ;;  %v12937_v62 = vld [vmem:[#allocation124_spill] sm:$0xff] }
 0x354   :  { %v9726_v50 = vsel %vm3220_vm8, %v3216_v25, inf  ;;  %v3484_v44 = vand.u32 65535, %v12922_v55  ;;  %12923 = vst [vmem:[#allocation210_spill] sm:$0xff] %v9738_v35  ;;  %v3860_v25 = vshra.s32 %v9724_v32, 16  ;;  %v2039_v24 = vsel %vm1911_vm11, %v7679_v40, 8 }
 0x355   :  { %12917 = vst [vmem:[#allocation112_spill] sm:$0xff] %v9726_v50  ;;  %2607 = vmin.xlane.f32.xlu1 %v9212_v61  ;;  %3833 = vmin.xlane.f32.xlu0 %v9718_v51  ;;  %v12924_v50 = vld [vmem:[#allocation167_spill] sm:$0xff]  ;;  %v9744_v61 = vsel %vm1400_vm1, %v2037_v15, 2147483647 }
 0x356   :  { %v9733_v42 = vpop.xlane.xlu1 %3233  ;;  %v9735_v5 = vpop.xlane.xlu0 %2933  ;;  %12925 = vst [vmem:[#allocation117_spill] sm:$0xff] %v9744_v61  ;;  %v3486_v32 = vcvt.s32.f32 %v3484_v44  ;;  %v9758_v15 = vcvt.s32.f32 %v3860_v25  ;;  %v12936_v44 = vld [vmem:[#allocation212_spill] sm:$0xff] }
 0x357   :  { %12920 = vst [vmem:[#allocation98_spill] sm:$0xff] %v9733_v42  ;;  %12921 = vst [vmem:[#allocation228_spill] sm:$0xff] %v9735_v5  ;;  %vm3235_vm10 = vcmp.eq.f32.partialorder %v12924_v50, %v9733_v42  ;;  %v12931_v50 = vld [vmem:[#allocation233_spill] sm:$0xff]  ;;  %vm1912_vm13 = vcmp.eq.f32.partialorder %v12937_v62, %v12936_v44  ;;  %v12946_v62 = vld [vmem:[#allocation130_spill] sm:$0xff] }
 0x358   :  { %v9746_v51 = vsel %vm3235_vm10, %v3231_v21, inf  ;;  %v3499_v42 = vand.u32 65535, %v12931_v50  ;;  %12932 = vst [vmem:[#allocation116_spill] sm:$0xff] %v9758_v15  ;;  %v3875_v21 = vshra.s32 %v9744_v61, 16  ;;  %v2040_v44 = vsel %vm1912_vm13, %v7679_v40, 8 }
 0x359   :  { %12926 = vst [vmem:[#allocation66_spill] sm:$0xff] %v9746_v51  ;;  %2592 = vmin.xlane.f32.xlu1 %v9237_v59  ;;  %3848 = vmin.xlane.f32.xlu0 %v9738_v35  ;;  %v12933_v51 = vld [vmem:[#allocation103_spill] sm:$0xff]  ;;  %v9764_v59 = vsel %vm1400_vm1, %v2038_v14, 2147483647 }
 0x35a   :  { %v9753_v20 = vpop.xlane.xlu1 %3488  ;;  %v9755_v55 = vpop.xlane.xlu0 %2948  ;;  %12934 = vst [vmem:[#allocation151_spill] sm:$0xff] %v9764_v59  ;;  %v3501_v61 = vcvt.s32.f32 %v3499_v42  ;;  %v9778_v14 = vcvt.s32.f32 %v3875_v21  ;;  %v12945_v42 = vld [vmem:[#allocation215_spill] sm:$0xff] }
 0x35b   :  { %12929 = vst [vmem:[#allocation229_spill] sm:$0xff] %v9753_v20  ;;  %12930 = vst [vmem:[#allocation209_spill] sm:$0xff] %v9755_v55  ;;  %vm3490_vm12 = vcmp.eq.f32.partialorder %v12933_v51, %v9753_v20  ;;  %v12940_v51 = vld [vmem:[#allocation235_spill] sm:$0xff]  ;;  %vm1913_vm15 = vcmp.eq.f32.partialorder %v12946_v62, %v12945_v42  ;;  %v12955_v62 = vld [vmem:[#allocation129_spill] sm:$0xff] }
 0x35c   :  { %v9766_v35 = vsel %vm3490_vm12, %v3486_v32, inf  ;;  %v3514_v20 = vand.u32 65535, %v12940_v51  ;;  %12941 = vst [vmem:[#allocation99_spill] sm:$0xff] %v9778_v14  ;;  %v3890_v32 = vshra.s32 %v9764_v59, 16  ;;  %v2041_v42 = vsel %vm1913_vm15, %v7679_v40, 8 }
 0x35d   :  { %12935 = vst [vmem:[#allocation71_spill] sm:$0xff] %v9766_v35  ;;  %2637 = vmin.xlane.f32.xlu1 %v9262_v52  ;;  %3863 = vmin.xlane.f32.xlu0 %v9758_v15  ;;  %v12942_v35 = vld [vmem:[#allocation171_spill] sm:$0xff]  ;;  %v9784_v52 = vsel %vm1400_vm1, %v2039_v24, 2147483647 }
 0x35e   :  { %v9773_v25 = vpop.xlane.xlu1 %3503  ;;  %v9775_v50 = vpop.xlane.xlu0 %2963  ;;  %12943 = vst [vmem:[#allocation168_spill] sm:$0xff] %v9784_v52  ;;  %v3516_v59 = vcvt.s32.f32 %v3514_v20  ;;  %v9798_v24 = vcvt.s32.f32 %v3890_v32  ;;  %v12954_v20 = vld [vmem:[#allocation154_spill] sm:$0xff] }
 0x35f   :  { %12938 = vst [vmem:[#allocation211_spill] sm:$0xff] %v9773_v25  ;;  %12939 = vst [vmem:[#allocation121_spill] sm:$0xff] %v9775_v50  ;;  %vm3505_vm14 = vcmp.eq.f32.partialorder %v12942_v35, %v9773_v25  ;;  %v12949_v35 = vld [vmem:[#allocation236_spill] sm:$0xff]  ;;  %vm1914_vm3 = vcmp.eq.f32.partialorder %v12955_v62, %v12954_v20 }
 0x360   :  { %v9786_v15 = vsel %vm3505_vm14, %v3501_v61, inf  ;;  %v3529_v25 = vand.u32 65535, %v12949_v35  ;;  %12950 = vst [vmem:[#allocation167_spill] sm:$0xff] %v9798_v24  ;;  %v3905_v61 = vshra.s32 %v9784_v52, 16  ;;  %v2042_v20 = vsel %vm1914_vm3, %v7679_v40, 8 }
 0x361   :  { %12944 = vst [vmem:[#allocation74_spill] sm:$0xff] %v9786_v15  ;;  %2622 = vmin.xlane.f32.xlu1 %v9286_v47  ;;  %3878 = vmin.xlane.f32.xlu0 %v9778_v14  ;;  %v12951_v15 = vld [vmem:[#allocation106_spill] sm:$0xff]  ;;  %v9804_v47 = vsel %vm1400_vm1, %v2040_v44, 2147483647 }
 0x362   :  { %v9793_v21 = vpop.xlane.xlu1 %3518  ;;  %v9795_v51 = vpop.xlane.xlu0 %2978  ;;  %12952 = vst [vmem:[#allocation213_spill] sm:$0xff] %v9804_v47  ;;  %v3531_v52 = vcvt.s32.f32 %v3529_v25  ;;  %v9818_v44 = vcvt.s32.f32 %v3905_v61 }
 0x363   :  { %12947 = vst [vmem:[#allocation120_spill] sm:$0xff] %v9793_v21  ;;  %12948 = vst [vmem:[#allocation150_spill] sm:$0xff] %v9795_v51  ;;  %vm3520_vm2 = vcmp.eq.f32.partialorder %v12951_v15, %v9793_v21  ;;  %v12957_v15 = vld [vmem:[#allocation77_spill] sm:$0xff] }
 0x364   :  { %v9806_v14 = vsel %vm3520_vm2, %v3516_v59, inf  ;;  %v3544_v21 = vand.u32 65535, %v12957_v15  ;;  %12958 = vst [vmem:[#allocation103_spill] sm:$0xff] %v9818_v44  ;;  %v3920_v59 = vshra.s32 %v9804_v47, 16  ;;  %v12964_v15 = vld [vmem:[#allocation239_spill] sm:$0xff] }
 0x365   :  { %12953 = vst [vmem:[#allocation125_spill] sm:$0xff] %v9806_v14  ;;  %2667 = vmin.xlane.f32.xlu1 %v9305_v60  ;;  %3893 = vmin.xlane.f32.xlu0 %v9798_v24  ;;  %v12959_v14 = vld [vmem:[#allocation240_spill] sm:$0xff]  ;;  %v9824_v60 = vsel %vm1400_vm1, %v2041_v42, 2147483647  ;;  %v3559_v47 = vand.u32 65535, %v12964_v15  ;;  %v12970_v15 = vld [vmem:[#allocation81_spill] sm:$0xff] }
 0x366   :  { %v9813_v32 = vpop.xlane.xlu1 %3533  ;;  %v9815_v35 = vpop.xlane.xlu0 %2993  ;;  %12960 = vst [vmem:[#allocation212_spill] sm:$0xff] %v9824_v60  ;;  %v3546_v62 = vcvt.s32.f32 %v3544_v21  ;;  %v9836_v56 = vcvt.s32.f32 %v3920_v59 }
 0x367   :  { %12956 = vst [vmem:[#allocation233_spill] sm:$0xff] %v9813_v32  ;;  %vm3535_vm4 = vcmp.eq.f32.partialorder %v12959_v14, %v9813_v32  ;;  %v3935_v14 = vshra.s32 %v9824_v60, 16  ;;  %v3561_v59 = vcvt.s32.f32 %v3559_v47  ;;  %v3574_v32 = vand.u32 65535, %v12970_v15 }
 0x368   :  { %v9826_v24 = vsel %vm3535_vm4, %v3531_v52, inf  ;;  %12965 = vst [vmem:[#allocation215_spill] sm:$0xff] %v9836_v56  ;;  %v9842_v52 = vsel %vm1400_vm1, %v2042_v20, 2147483647  ;;  %v12972_v20 = vld [vmem:[#allocation242_spill] sm:$0xff] }
 0x369   :  { %12961 = vst [vmem:[#allocation124_spill] sm:$0xff] %v9826_v24  ;;  %2652 = vmin.xlane.f32.xlu1 %v9324_v2  ;;  %3908 = vmin.xlane.f32.xlu0 %v9818_v44  ;;  %12966 = vst [vmem:[#allocation130_spill] sm:$0xff] %v9842_v52  ;;  %v9853_v60 = vcvt.s32.f32 %v3935_v14  ;;  %v3576_v47 = vcvt.s32.f32 %v3574_v32  ;;  %v12995_v44 = vld [vmem:[#allocation114_spill] sm:$0xff]  ;;  %v13086_v24 = vld [vmem:[#allocation147_spill] sm:$0xff] }
 0x36a   :  { %v9831_v25 = vpop.xlane.xlu1 %3548  ;;  %v9833_v61 = vpop.xlane.xlu0 %3008 }
 0x36b   :  { %12962 = vst [vmem:[#allocation235_spill] sm:$0xff] %v9831_v25  ;;  %12963 = vst [vmem:[#allocation171_spill] sm:$0xff] %v9833_v61  ;;  %vm3550_vm5 = vcmp.eq.f32.partialorder %v8958_v27, %v9831_v25  ;;  %v3950_v27 = vshra.s32 %v9842_v52, 16 }
 0x36c   :  { %v9844_v2 = vsel %vm3550_vm5, %v3546_v62, inf  ;;  %12971 = vst [vmem:[#allocation129_spill] sm:$0xff] %v9853_v60 }
 0x36d   :  { %12967 = vst [vmem:[#allocation236_spill] sm:$0xff] %v9844_v2  ;;  %2697 = vmin.xlane.f32.xlu1 %v9344_v41  ;;  %3923 = vmin.xlane.f32.xlu0 %v9836_v56  ;;  %v12976_v56 = vld [vmem:[#allocation178_spill] sm:$0xff]  ;;  %v9867_v14 = vcvt.s32.f32 %v3950_v27 }
 0x36e   :  { %v9848_v42 = vpop.xlane.xlu1 %3563  ;;  %v9850_v21 = vpop.xlane.xlu0 %3023  ;;  %v3589_v15 = vand.u32 65535, %v12976_v56 }
 0x36f   :  { %12968 = vst [vmem:[#allocation106_spill] sm:$0xff] %v9848_v42  ;;  %12969 = vst [vmem:[#allocation154_spill] sm:$0xff] %v9850_v21  ;;  %vm3565_vm1 = vcmp.eq.f32.partialorder %v12972_v20, %v9848_v42  ;;  %v12981_v42 = vld [vmem:[#allocation245_spill] sm:$0xff] }
 0x370   :  { %v9858_v62 = vsel %vm3565_vm1, %v3561_v59, inf  ;;  %12977 = vst [vmem:[#allocation81_spill] sm:$0xff] %v9867_v14  ;;  %v3591_v20 = vcvt.s32.f32 %v3589_v15  ;;  %v3604_v32 = vand.u32 65535, %v12981_v42 }
 0x371   :  { %12973 = vst [vmem:[#allocation77_spill] sm:$0xff] %v9858_v62  ;;  %2682 = vmin.xlane.f32.xlu1 %v9369_v31  ;;  %3938 = vmin.xlane.f32.xlu0 %v9853_v60  ;;  %v12991_v60 = vld [vmem:[#allocation246_spill] sm:$0xff] }
 0x372   :  { %v9862_v41 = vpop.xlane.xlu1 %3578  ;;  %v9864_v25 = vpop.xlane.xlu0 %3038  ;;  %v13051_v62 = vld [vmem:[#allocation158_spill] sm:$0xff] }
 0x373   :  { %12974 = vst [vmem:[#allocation240_spill] sm:$0xff] %v9862_v41  ;;  %12975 = vst [vmem:[#allocation239_spill] sm:$0xff] %v9864_v25  ;;  %vm3580_vm6 = vcmp.eq.f32.partialorder %v9002_v48, %v9862_v41 }
 0x374   :  { %v9871_v52 = vsel %vm3580_vm6, %v3576_v47, inf  ;;  %v12985_v47 = vld [vmem:[#allocation84_spill] sm:$0xff] }
 0x375   :  { %12978 = vst [vmem:[#allocation242_spill] sm:$0xff] %v9871_v52  ;;  %2727 = vmin.xlane.f32.xlu1 %v9396_v43  ;;  %3953 = vmin.xlane.f32.xlu0 %v9867_v14  ;;  %v3606_v43 = vcvt.s32.f32 %v3604_v32  ;;  %v3619_v41 = vand.u32 65535, %v12985_v47  ;;  %v12986_v14 = vld [vmem:[#allocation181_spill] sm:$0xff] }
 0x376   :  { %v9875_v31 = vpop.xlane.xlu1 %3593  ;;  %v9877_v59 = vpop.xlane.xlu0 %3053 }
 0x377   :  { %12979 = vst [vmem:[#allocation178_spill] sm:$0xff] %v9875_v31  ;;  %12980 = vst [vmem:[#allocation257_spill] sm:$0xff] %v9877_v59  ;;  %vm3595_vm7 = vcmp.eq.f32.partialorder %v9040_v4, %v9875_v31 }
 0x378   :  { %v9882_v56 = vsel %vm3595_vm7, %v3591_v20, inf  ;;  %v3621_v20 = vcvt.s32.f32 %v3619_v41 }
 0x379   :  { %12982 = vst [vmem:[#allocation245_spill] sm:$0xff] %v9882_v56  ;;  %2712 = vmin.xlane.f32.xlu1 %v9420_v46  ;;  %v12990_v46 = vld [vmem:[#allocation182_spill] sm:$0xff]  ;;  %v13059_v56 = vld [vmem:[#allocation232_spill] sm:$0xff] }
 0x37a   :  { %v9885_v48 = vpop.xlane.xlu1 %3608  ;;  %v9887_v27 = vpop.xlane.xlu0 %3068  ;;  %v3634_v31 = vand.u32 65535, %v12990_v46 }
 0x37b   :  { %12983 = vst [vmem:[#allocation258_spill] sm:$0xff] %v9885_v48  ;;  %12984 = vst [vmem:[#allocation259_spill] sm:$0xff] %v9887_v27  ;;  %vm3610_vm8 = vcmp.eq.f32.partialorder %v12986_v14, %v9885_v48 }
 0x37c   :  { %v9892_v15 = vsel %vm3610_vm8, %v3606_v43, inf  ;;  %v3636_v43 = vcvt.s32.f32 %v3634_v31 }
 0x37d   :  { %12987 = vst [vmem:[#allocation84_spill] sm:$0xff] %v9892_v15  ;;  %2757 = vmin.xlane.f32.xlu1 %v9446_v36  ;;  %v12994_v36 = vld [vmem:[#allocation183_spill] sm:$0xff] }
 0x37e   :  { %v9895_v42 = vpop.xlane.xlu1 %3623  ;;  %v9897_v4 = vpop.xlane.xlu0 %3083  ;;  %v3649_v48 = vand.u32 65535, %v12994_v36  ;;  %v13050_v15 = vld [vmem:[#allocation143_spill] sm:$0xff] }
 0x37f   :  { %12988 = vst [vmem:[#allocation181_spill] sm:$0xff] %v9895_v42  ;;  %12989 = vst [vmem:[#allocation260_spill] sm:$0xff] %v9897_v4  ;;  %vm3625_vm9 = vcmp.eq.f32.partialorder %v12991_v60, %v9895_v42 }
 0x380   :  { %v9902_v32 = vsel %vm3625_vm9, %v3621_v20, inf  ;;  %v3651_v20 = vcvt.s32.f32 %v3649_v48 }
 0x381   :  { %12992 = vst [vmem:[#allocation182_spill] sm:$0xff] %v9902_v32  ;;  %2742 = vmin.xlane.f32.xlu1 %v9469_v53  ;;  %v12998_v53 = vld [vmem:[#allocation92_spill] sm:$0xff] }
 0x382   :  { %v9905_v47 = vpop.xlane.xlu1 %3638  ;;  %v9907_v14 = vpop.xlane.xlu0 %3098  ;;  %v3664_v42 = vand.u32 65535, %v12998_v53  ;;  %v3154_v53 = vand.u32 65535, %v9205_v58 }
 0x383   :  { %12993 = vst [vmem:[#allocation246_spill] sm:$0xff] %v9905_v47  ;;  %vm3640_vm10 = vcmp.eq.f32.partialorder %v12995_v44, %v9905_v47  ;;  %v3679_v47 = vand.u32 65535, %v9153_v3  ;;  %v13007_v3 = vld [vmem:[#allocation195_spill] sm:$0xff] }
 0x384   :  { %v9912_v41 = vsel %vm3640_vm10, %v3636_v43, inf  ;;  %v3666_v43 = vcvt.s32.f32 %v3664_v42  ;;  %v13006_v42 = vld [vmem:[#allocation256_spill] sm:$0xff] }
 0x385   :  { %12996 = vst [vmem:[#allocation183_spill] sm:$0xff] %v9912_v41  ;;  %2787 = vmin.xlane.f32.xlu1 %v9493_v17  ;;  %v3139_v17 = vand.u32 65535, %v9168_v9  ;;  %v13043_v41 = vld [vmem:[#allocation70_spill] sm:$0xff] }
 0x386   :  { %v9915_v46 = vpop.xlane.xlu1 %3653  ;;  %v9917_v60 = vpop.xlane.xlu0 %3113  ;;  %v2400_v32 = vcvt.f32.s32 %v13043_v41  ;;  %v13058_v41 = vld [vmem:[#allocation234_spill] sm:$0xff] }
 0x387   :  { %12997 = vst [vmem:[#allocation114_spill] sm:$0xff] %v9915_v46  ;;  %vm3655_vm11 = vcmp.eq.f32.partialorder %v9155_v1, %v9915_v46  ;;  %v3681_v46 = vcvt.s32.f32 %v3679_v47 }
 0x388   :  { %v9922_v31 = vsel %vm3655_vm11, %v3651_v20, inf  ;;  %v2401_v52 = vshll.u32 %v2400_v32, 16 }
 0x389   :  { %12999 = vst [vmem:[#allocation92_spill] sm:$0xff] %v9922_v31  ;;  %2772 = vmin.xlane.f32.xlu1 %v9519_v38  ;;  %v3141_v38 = vcvt.s32.f32 %v3139_v17  ;;  %v13005_v31 = vld [vmem:[#allocation96_spill] sm:$0xff]  ;;  %v13010_v17 = vld [vmem:[#allocation123_spill] sm:$0xff] }
 0x38a   :  { %v9925_v36 = vpop.xlane.xlu1 %3668  ;;  %v9927_v44 = vpop.xlane.xlu0 %3128  ;;  %v3694_v9 = vand.u32 65535, %v13005_v31  ;;  %v3169_v31 = vand.u32 65535, %v9231_v45 }
 0x38b   :  { %13000 = vst [vmem:[#allocation261_spill] sm:$0xff] %v9925_v36  ;;  %13001 = vst [vmem:[#allocation262_spill] sm:$0xff] %v9927_v44  ;;  %vm3670_vm12 = vcmp.eq.f32.partialorder %v9180_v57, %v9925_v36 }
 0x38c   :  { %v9933_v48 = vsel %vm3670_vm12, %v3666_v43, inf }
 0x38d   :  { %13002 = vst [vmem:[#allocation263_spill] sm:$0xff] %v9933_v48  ;;  %2817 = vmin.xlane.f32.xlu1 %v9543_v13  ;;  %v13009_v13 = vld [vmem:[#allocation189_spill] sm:$0xff]  ;;  %v2100_v48 = vcvt.f32.s32 %v13010_v17 }
 0x38e   :  { %v9936_v1 = vpop.xlane.xlu1 %3683  ;;  %v9938_v20 = vpop.xlane.xlu0 %3143  ;;  %v3709_v36 = vand.u32 65535, %v13009_v13 }
 0x38f   :  { %13003 = vst [vmem:[#allocation264_spill] sm:$0xff] %v9936_v1  ;;  %13004 = vst [vmem:[#allocation265_spill] sm:$0xff] %v9938_v20  ;;  %vm3145_vm13 = vcmp.eq.f32.partialorder %v13006_v42, %v9938_v20  ;;  %vm3685_vm14 = vcmp.eq.f32.partialorder %v13007_v3, %v9936_v1  ;;  %v3156_v42 = vcvt.s32.f32 %v3154_v53  ;;  %v3696_v20 = vcvt.s32.f32 %v3694_v9  ;;  %v13017_v53 = vld [vmem:[#allocation64_spill] sm:$0xff] }
 0x390   :  { %v9946_v57 = vsel %vm3145_vm13, %v3141_v38, inf  ;;  %v9948_v43 = vsel %vm3685_vm14, %v3681_v46, inf  ;;  %v13014_v38 = vld [vmem:[#allocation184_spill] sm:$0xff]  ;;  %v3711_v13 = vcvt.s32.f32 %v3709_v36  ;;  %v2101_v17 = vshll.u32 %v2100_v48, 16 }
 0x391   :  { %13008 = vst [vmem:[#allocation96_spill] sm:$0xff] %v9948_v43  ;;  %2802 = vmin.xlane.f32.xlu1 %v9566_v34  ;;  %v2099_v3 = vcvt.f32.s32 %v13014_v38  ;;  %v2869_v9 = vand.u32 65535, %v13017_v53  ;;  %v13021_v38 = vld [vmem:[#allocation186_spill] sm:$0xff] }
 0x392   :  { %v9953_v58 = vpop.xlane.xlu1 %3698  ;;  %v9955_v47 = vpop.xlane.xlu0 %3158  ;;  %v2084_v53 = vcvt.f32.s32 %v13021_v38  ;;  %v13026_v38 = vld [vmem:[#allocation206_spill] sm:$0xff] }
 0x393   :  { %13011 = vst [vmem:[#allocation256_spill] sm:$0xff] %v9953_v58  ;;  %13012 = vst [vmem:[#allocation195_spill] sm:$0xff] %v9955_v47  ;;  %vm3160_vm15 = vcmp.eq.f32.partialorder %v9252_v22, %v9955_v47  ;;  %vm3700_vm2 = vcmp.eq.f32.partialorder %v9243_v49, %v9953_v58  ;;  %v3171_v22 = vcvt.s32.f32 %v3169_v31  ;;  %v3184_v47 = vand.u32 65535, %v9248_v0  ;;  %v13018_v49 = vld [vmem:[#allocation126_spill] sm:$0xff]  ;;  %v13019_v58 = vld [vmem:[#allocation224_spill] sm:$0xff] }
 0x394   :  { %v9962_v46 = vsel %vm3160_vm15, %v3156_v42, inf  ;;  %v9964_v34 = vsel %vm3700_vm2, %v3696_v20, inf  ;;  %v2085_v42 = vcvt.f32.s32 %v13018_v49  ;;  %v2340_v20 = vcvt.f32.s32 %v13019_v58  ;;  %v13022_v0 = vld [vmem:[#allocation226_spill] sm:$0xff]  ;;  %v13024_v49 = vld [vmem:[#allocation161_spill] sm:$0xff] }
 0x395   :  { %13013 = vst [vmem:[#allocation189_spill] sm:$0xff] %v9964_v34  ;;  %2847 = vmin.xlane.f32.xlu1 %v9591_v39  ;;  %v2102_v48 = vadd.s32 %v2101_v17, %v2099_v3  ;;  %vm2875_vm5 = vcmp.eq.f32.partialorder %v13022_v0, %v9620_v26  ;;  %v13023_v31 = vld [vmem:[#allocation222_spill] sm:$0xff]  ;;  %v2325_v34 = vcvt.f32.s32 %v13024_v49 }
 0x396   :  { %v9968_v1 = vpop.xlane.xlu1 %3713  ;;  %v9970_v45 = vpop.xlane.xlu0 %3173  ;;  %v2854_v58 = vand.u32 65535, %v13023_v31  ;;  %v2341_v3 = vshll.u32 %v2340_v20, 16  ;;  %v13027_v49 = vld [vmem:[#allocation94_spill] sm:$0xff]  ;;  %v13029_v20 = vld [vmem:[#allocation227_spill] sm:$0xff] }
 0x397   :  { %13015 = vst [vmem:[#allocation123_spill] sm:$0xff] %v9968_v1  ;;  %13016 = vst [vmem:[#allocation184_spill] sm:$0xff] %v9970_v45  ;;  %vm3175_vm3 = vcmp.eq.f32.partialorder %v9274_v28, %v9970_v45  ;;  %vm3715_vm4 = vcmp.eq.f32.partialorder %v9270_v6, %v9968_v1  ;;  %v2871_v6 = vcvt.s32.f32 %v2869_v9  ;;  %v2086_v1 = vshll.u32 %v2085_v42, 16 }
 0x398   :  { %v9980_v39 = vsel %vm3175_vm3, %v3171_v22, inf  ;;  %v9982_v36 = vsel %vm3715_vm4, %v3711_v13, inf  ;;  %v3199_v22 = vand.u32 65535, %v9279_v16  ;;  %v3186_v13 = vcvt.s32.f32 %v3184_v47 }
 0x399   :  { %13020 = vst [vmem:[#allocation64_spill] sm:$0xff] %v9982_v36  ;;  %2832 = vmin.xlane.f32.xlu1 %v9612_v11  ;;  %v2876_v11 = vsel %vm2875_vm5, %v2871_v6, inf  ;;  %vm3966_vm6 = vcmp.eq.s32.totalorder %v7679_v40, %v2102_v48  ;;  %v2087_v0 = vadd.s32 %v2086_v1, %v2084_v53  ;;  %vm2860_vm7 = vcmp.eq.f32.partialorder %v13027_v49, %v9646_v8  ;;  %v13031_v1 = vld [vmem:[#allocation75_spill] sm:$0xff]  ;;  %v13036_v48 = vld [vmem:[#allocation134_spill] sm:$0xff] }
 0x39a   :  { %v2338_v28 = vpop.xlane.xlu1 %2337  ;;  %v9990_v45 = vpop.xlane.xlu0 %3188  ;;  %v2326_v9 = vshll.u32 %v2325_v34, 16  ;;  %v2856_v42 = vcvt.s32.f32 %v2854_v58  ;;  %v3201_v43 = vcvt.s32.f32 %v3199_v22  ;;  %v10012_v34 = vsel %vm3966_vm6, 1.0, %v12880_v12 }
 0x39b   :  { %13025 = vst [vmem:[#allocation126_spill] sm:$0xff] %v9990_v45  ;;  %v2339_v17 = vcvt.f32.s32 %v2338_v28  ;;  %vm3190_vm1 = vcmp.eq.f32.partialorder %v13026_v38, %v9990_v45  ;;  %v2899_v28 = vand.u32 65535, %v13029_v20  ;;  %v13030_v38 = vld [vmem:[#allocation166_spill] sm:$0xff]  ;;  %13032 = vst [vmem:[#allocation186_spill] sm:$0xff] %v10012_v34  ;;  %vm3965_vm10 = vcmp.eq.s32.totalorder %v7679_v40, %v2087_v0  ;;  %v13037_v20 = vld [vmem:[#allocation165_spill] sm:$0xff] }
 0x39c   :  { %v9995_v36 = vsel %vm3190_vm1, %v3186_v13, inf  ;;  %v2370_v6 = vcvt.f32.s32 %v13030_v38  ;;  %v2861_v53 = vsel %vm2860_vm7, %v2856_v42, inf  ;;  %v2355_v38 = vcvt.f32.s32 %v13037_v20 }
 0x39d   :  { %v2342_v31 = vadd.s32 %v2341_v3, %v2339_v17  ;;  %2877 = vmin.xlane.f32.xlu1 %v2876_v11  ;;  %v13034_v17 = vld [vmem:[#allocation194_spill] sm:$0xff]  ;;  %v2901_v49 = vcvt.s32.f32 %v2899_v28  ;;  %v13039_v28 = vld [vmem:[#allocation199_spill] sm:$0xff] }
 0x39e   :  { %v2323_v16 = vpop.xlane.xlu1 %2322  ;;  %v10000_v47 = vpop.xlane.xlu0 %3203  ;;  %vm2905_vm11 = vcmp.eq.f32.partialorder %v13034_v17, %v9695_v63  ;;  %v2371_v42 = vshll.u32 %v2370_v6, 16  ;;  %vm2890_vm14 = vcmp.eq.f32.partialorder %v13039_v28, %v9675_v33  ;;  %v13042_v11 = vld [vmem:[#allocation67_spill] sm:$0xff]  ;;  %v2356_v45 = vshll.u32 %v2355_v38, 16  ;;  %v13046_v28 = vld [vmem:[#allocation122_spill] sm:$0xff]  ;;  %v13061_v63 = vld [vmem:[#allocation157_spill] sm:$0xff] }
 0x39f   :  { %13028 = vst [vmem:[#allocation224_spill] sm:$0xff] %v10000_v47  ;;  %vm3982_vm8 = vcmp.eq.s32.totalorder %v7679_v40, %v2342_v31  ;;  %v2324_v13 = vcvt.f32.s32 %v2323_v16  ;;  %vm3205_vm9 = vcmp.eq.f32.partialorder %v13031_v1, %v10000_v47  ;;  %v2884_v16 = vand.u32 65535, %v13036_v48  ;;  %v13041_v48 = vld [vmem:[#allocation231_spill] sm:$0xff] }
 0x3a0   :  { %v10007_v3 = vsel %vm3205_vm9, %v3201_v43, inf  ;;  %v10015_v58 = vsel %vm3982_vm8, 1.0, %v12880_v12  ;;  %v2929_v20 = vand.u32 65535, %v13041_v48  ;;  %v3394_v47 = vand.u32 65535, %v13042_v11  ;;  %v13047_v11 = vld [vmem:[#allocation73_spill] sm:$0xff] }
 0x3a1   :  { %13033 = vst [vmem:[#allocation226_spill] sm:$0xff] %v10015_v58  ;;  %v2327_v22 = vadd.s32 %v2326_v9, %v2324_v13  ;;  %2862 = vmin.xlane.f32.xlu1 %v2861_v53  ;;  %v2906_v9 = vsel %vm2905_vm11, %v2901_v49, inf  ;;  %v10028_v13 = vsel %vm3965_vm10, 1.0, %v12880_v12  ;;  %v13038_v53 = vld [vmem:[#allocation115_spill] sm:$0xff]  ;;  %v2886_v49 = vcvt.s32.f32 %v2884_v16 }
 0x3a2   :  { %v2368_v43 = vpop.xlane.xlu1 %2367  ;;  %v10022_v31 = vpop.xlane.xlu0 %3248  ;;  %vm3968_vm13 = vcmp.eq.s32.totalorder %v7679_v40, %v13038_v53  ;;  %vm3967_vm2 = vcmp.eq.s32.totalorder %v7679_v40, %v13046_v28  ;;  %vm2935_vm3 = vcmp.eq.f32.partialorder %v13047_v11, %v9735_v5  ;;  %v10060_v6 = vcvt.s32.f32 %v3394_v47  ;;  %v13052_v11 = vld [vmem:[#allocation252_spill] sm:$0xff]  ;;  %v13069_v58 = vld [vmem:[#allocation139_spill] sm:$0xff] }
 0x3a3   :  { %13035 = vst [vmem:[#allocation222_spill] sm:$0xff] %v10022_v31  ;;  %vm3981_vm12 = vcmp.eq.s32.totalorder %v7679_v40, %v2327_v22  ;;  %v2369_v0 = vcvt.f32.s32 %v2368_v43  ;;  %v2959_v5 = vand.u32 65535, %v13058_v41  ;;  %vm3972_vm9 = vcmp.eq.s32.totalorder %v7679_v40, %v13069_v58  ;;  %v13081_v58 = vld [vmem:[#allocation79_spill] sm:$0xff] }
 0x3a4   :  { %v10031_v1 = vsel %vm3981_vm12, 1.0, %v12880_v12 }
 0x3a5   :  { %v2372_v17 = vadd.s32 %v2371_v42, %v2369_v0  ;;  %2907 = vmin.xlane.f32.xlu1 %v2906_v9  ;;  %v2891_v0 = vsel %vm2890_vm14, %v2886_v49, inf  ;;  %v10046_v9 = vsel %vm3968_vm13, 1.0, %v12880_v12  ;;  %v13049_v49 = vld [vmem:[#allocation230_spill] sm:$0xff] }
 0x3a6   :  { %v2353_v22 = vpop.xlane.xlu1 %2352  ;;  %v10039_v43 = vpop.xlane.xlu0 %3278  ;;  %13044 = vst [vmem:[#allocation206_spill] sm:$0xff] %v10046_v9  ;;  %v2914_v48 = vand.u32 65535, %v13049_v49  ;;  %v13055_v49 = vld [vmem:[#allocation248_spill] sm:$0xff] }
 0x3a7   :  { %13040 = vst [vmem:[#allocation161_spill] sm:$0xff] %v10039_v43  ;;  %vm3984_vm15 = vcmp.eq.s32.totalorder %v7679_v40, %v2372_v17  ;;  %v2354_v42 = vcvt.f32.s32 %v2353_v22  ;;  %v2931_v22 = vcvt.s32.f32 %v2929_v20  ;;  %v10070_v20 = vsel %vm3967_vm2, 1.0, %v12880_v12  ;;  %v13060_v9 = vld [vmem:[#allocation164_spill] sm:$0xff] }
 0x3a8   :  { %v10049_v53 = vsel %vm3984_vm15, 1.0, %v12880_v12  ;;  %13053 = vst [vmem:[#allocation166_spill] sm:$0xff] %v10070_v20  ;;  %vm3970_vm5 = vcmp.eq.s32.totalorder %v7679_v40, %v13055_v49  ;;  %v2916_v28 = vcvt.s32.f32 %v2914_v48  ;;  %v2989_v33 = vand.u32 65535, %v13060_v9 }
 0x3a9   :  { %13045 = vst [vmem:[#allocation94_spill] sm:$0xff] %v10049_v53  ;;  %v2357_v16 = vadd.s32 %v2356_v45, %v2354_v42  ;;  %2892 = vmin.xlane.f32.xlu1 %v2891_v0  ;;  %v2385_v45 = vcvt.f32.s32 %v13051_v62  ;;  %v2936_v0 = vsel %vm2935_vm3, %v2931_v22, inf  ;;  %v13056_v62 = vld [vmem:[#allocation102_spill] sm:$0xff]  ;;  %v2944_v53 = vand.u32 65535, %v13059_v56  ;;  %v13065_v56 = vld [vmem:[#allocation191_spill] sm:$0xff] }
 0x3aa   :  { %v2398_v38 = vpop.xlane.xlu1 %2397  ;;  %v10057_v17 = vpop.xlane.xlu0 %3308  ;;  %vm2920_vm1 = vcmp.eq.f32.partialorder %v13056_v62, %v9715_v7  ;;  %v13062_v62 = vld [vmem:[#allocation172_spill] sm:$0xff]  ;;  %v10093_v48 = vsel %vm3970_vm5, 1.0, %v12880_v12  ;;  %vm3969_vm7 = vcmp.eq.s32.totalorder %v7679_v40, %v13065_v56  ;;  %vm3250_vm2 = vcmp.eq.f32.partialorder %v13081_v58, %v10022_v31 }
 0x3ab   :  { %13048 = vst [vmem:[#allocation227_spill] sm:$0xff] %v10057_v17  ;;  %vm3983_vm4 = vcmp.eq.s32.totalorder %v7679_v40, %v2357_v16  ;;  %v2399_v42 = vcvt.f32.s32 %v2398_v38  ;;  %v2386_v2 = vshll.u32 %v2385_v45, 16  ;;  %v2974_v7 = vand.u32 65535, %v13062_v62  ;;  %13063 = vst [vmem:[#allocation134_spill] sm:$0xff] %v10093_v48 }
 0x3ac   :  { %v10073_v47 = vsel %vm3983_vm4, 1.0, %v12880_v12  ;;  %v2961_v62 = vcvt.s32.f32 %v2959_v5  ;;  %v2946_v16 = vcvt.s32.f32 %v2944_v53  ;;  %v13073_v53 = vld [vmem:[#allocation170_spill] sm:$0xff]  ;;  %vm3974_vm3 = vcmp.eq.s32.totalorder %v7679_v40, %v13086_v24 }
 0x3ad   :  { %13054 = vst [vmem:[#allocation75_spill] sm:$0xff] %v10073_v47  ;;  %v2402_v32 = vadd.s32 %v2401_v52, %v2399_v42  ;;  %2937 = vmin.xlane.f32.xlu1 %v2936_v0  ;;  %v2430_v52 = vcvt.f32.s32 %v13061_v63  ;;  %v2921_v0 = vsel %vm2920_vm1, %v2916_v28, inf  ;;  %v13066_v63 = vld [vmem:[#allocation238_spill] sm:$0xff]  ;;  %v2991_v47 = vcvt.s32.f32 %v2989_v33  ;;  %v13072_v33 = vld [vmem:[#allocation72_spill] sm:$0xff] }
 0x3ae   :  { %v2383_v38 = vpop.xlane.xlu1 %2382  ;;  %v10081_v22 = vpop.xlane.xlu0 %3338  ;;  %vm2965_vm8 = vcmp.eq.f32.partialorder %v13066_v63, %v9775_v50  ;;  %v10114_v63 = vsel %vm3969_vm7, 1.0, %v12880_v12  ;;  %vm2950_vm11 = vcmp.eq.f32.partialorder %v13072_v33, %v9755_v55  ;;  %v13076_v50 = vld [vmem:[#allocation146_spill] sm:$0xff] }
 0x3af   :  { %13057 = vst [vmem:[#allocation194_spill] sm:$0xff] %v10081_v22  ;;  %vm3986_vm6 = vcmp.eq.s32.totalorder %v7679_v40, %v2402_v32  ;;  %v2384_v42 = vcvt.f32.s32 %v2383_v38  ;;  %v13067_v32 = vld [vmem:[#allocation237_spill] sm:$0xff]  ;;  %v2431_v20 = vshll.u32 %v2430_v52, 16  ;;  %13070 = vst [vmem:[#allocation199_spill] sm:$0xff] %v10114_v63  ;;  %v3019_v52 = vand.u32 65535, %v13073_v53  ;;  %v13085_v63 = vld [vmem:[#allocation136_spill] sm:$0xff] }
 0x3b0   :  { %v10096_v41 = vsel %vm3986_vm6, 1.0, %v12880_v12  ;;  %v2415_v38 = vcvt.f32.s32 %v13067_v32  ;;  %v2951_v33 = vsel %vm2950_vm11, %v2946_v16, inf  ;;  %v3274_v34 = vand.u32 65535, %v13085_v63  ;;  %v13087_v63 = vld [vmem:[#allocation76_spill] sm:$0xff] }
 0x3b1   :  { %13064 = vst [vmem:[#allocation165_spill] sm:$0xff] %v10096_v41  ;;  %v2387_v9 = vadd.s32 %v2386_v2, %v2384_v42  ;;  %2922 = vmin.xlane.f32.xlu1 %v2921_v0  ;;  %v2966_v42 = vsel %vm2965_vm8, %v2961_v62, inf  ;;  %v2976_v0 = vcvt.s32.f32 %v2974_v7  ;;  %v3244_v41 = vand.u32 65535, %v13076_v50  ;;  %v13079_v50 = vld [vmem:[#allocation241_spill] sm:$0xff] }
 0x3b2   :  { %v2428_v28 = vpop.xlane.xlu1 %2427  ;;  %v10105_v49 = vpop.xlane.xlu0 %3368  ;;  %v2416_v7 = vshll.u32 %v2415_v38, 16  ;;  %v13078_v38 = vld [vmem:[#allocation142_spill] sm:$0xff]  ;;  %vm2995_vm15 = vcmp.eq.f32.partialorder %v13079_v50, %v9815_v35  ;;  %vm2980_vm5 = vcmp.eq.f32.partialorder %v13087_v63, %v9795_v51 }
 0x3b3   :  { %13068 = vst [vmem:[#allocation115_spill] sm:$0xff] %v10105_v49  ;;  %vm3985_vm10 = vcmp.eq.s32.totalorder %v7679_v40, %v2387_v9  ;;  %v2429_v2 = vcvt.f32.s32 %v2428_v28  ;;  %v13074_v28 = vld [vmem:[#allocation163_spill] sm:$0xff]  ;;  %v13096_v51 = vld [vmem:[#allocation90_spill] sm:$0xff] }
 0x3b4   :  { %v10117_v32 = vsel %vm3985_vm10, 1.0, %v12880_v12  ;;  %v2460_v62 = vcvt.f32.s32 %v13074_v28  ;;  %vm3976_vm10 = vcmp.eq.s32.totalorder %v7679_v40, %v13096_v51 }
 0x3b5   :  { %13071 = vst [vmem:[#allocation231_spill] sm:$0xff] %v10117_v32  ;;  %v2432_v5 = vadd.s32 %v2431_v20, %v2429_v2  ;;  %2967 = vmin.xlane.f32.xlu1 %v2966_v42  ;;  %v10132_v20 = vsel %vm3972_vm9, 1.0, %v12880_v12  ;;  %v13077_v2 = vld [vmem:[#allocation141_spill] sm:$0xff]  ;;  %v3246_v32 = vcvt.s32.f32 %v3244_v41 }
 0x3b6   :  { %v2413_v45 = vpop.xlane.xlu1 %2412  ;;  %v10125_v56 = vpop.xlane.xlu0 %3398  ;;  %vm3971_vm12 = vcmp.eq.s32.totalorder %v7679_v40, %v13077_v2  ;;  %v2461_v16 = vshll.u32 %v2460_v62, 16  ;;  %v2996_v62 = vsel %vm2995_vm15, %v2991_v47, inf  ;;  %v3021_v2 = vcvt.s32.f32 %v3019_v52 }
 0x3b7   :  { %13075 = vst [vmem:[#allocation67_spill] sm:$0xff] %v10125_v56  ;;  %vm3988_vm13 = vcmp.eq.s32.totalorder %v7679_v40, %v2432_v5  ;;  %v2414_v42 = vcvt.f32.s32 %v2413_v45  ;;  %vm3400_vm14 = vcmp.eq.f32.partialorder %v13078_v38, %v10125_v56  ;;  %v13082_v5 = vld [vmem:[#allocation174_spill] sm:$0xff]  ;;  %v13083_v56 = vld [vmem:[#allocation173_spill] sm:$0xff]  ;;  %v3251_v41 = vsel %vm3250_vm2, %v3246_v32, inf }
 0x3b8   :  { %v3401_v53 = vsel %vm3400_vm14, %v10060_v6, inf  ;;  %v10143_v28 = vsel %vm3988_vm13, 1.0, %v12880_v12  ;;  %v3004_v45 = vand.u32 65535, %v13082_v5  ;;  %v2445_v6 = vcvt.f32.s32 %v13083_v56  ;;  %v13090_v38 = vld [vmem:[#allocation249_spill] sm:$0xff] }
 0x3b9   :  { %13080 = vst [vmem:[#allocation70_spill] sm:$0xff] %v10143_v28  ;;  %v2417_v9 = vadd.s32 %v2416_v7, %v2414_v42  ;;  %2952 = vmin.xlane.f32.xlu1 %v2951_v33  ;;  %3402 = vmin.xlane.f32.xlu0 %v3401_v53  ;;  %v10161_v42 = vsel %vm3971_vm12, 1.0, %v12880_v12  ;;  %v13089_v53 = vld [vmem:[#allocation169_spill] sm:$0xff]  ;;  %v3276_v5 = vcvt.s32.f32 %v3274_v34  ;;  %v3304_v31 = vand.u32 65535, %v13090_v38 }
 0x3ba   :  { %v2458_v55 = vpop.xlane.xlu1 %2457  ;;  %v10151_v48 = vpop.xlane.xlu0 %3428  ;;  %v2446_v33 = vshll.u32 %v2445_v6, 16  ;;  %v2490_v50 = vcvt.f32.s32 %v13089_v53  ;;  %v13091_v28 = vld [vmem:[#allocation69_spill] sm:$0xff]  ;;  %v10189_v52 = vsel %vm3974_vm3, 1.0, %v12880_v12  ;;  %v2981_v6 = vsel %vm2980_vm5, %v2976_v0, inf }
 0x3bb   :  { %13084 = vst [vmem:[#allocation122_spill] sm:$0xff] %v10151_v48  ;;  %vm3987_vm4 = vcmp.eq.s32.totalorder %v7679_v40, %v2417_v9  ;;  %v2459_v7 = vcvt.f32.s32 %v2458_v55  ;;  %v13088_v55 = vld [vmem:[#allocation83_spill] sm:$0xff]  ;;  %vm3973_vm6 = vcmp.eq.s32.totalorder %v7679_v40, %v13091_v28  ;;  %v13092_v38 = vld [vmem:[#allocation177_spill] sm:$0xff] }
 0x3bc   :  { %v10172_v9 = vsel %vm3987_vm4, 1.0, %v12880_v12  ;;  %vm3280_vm1 = vcmp.eq.f32.partialorder %v13088_v55, %v10039_v43  ;;  %vm3025_vm8 = vcmp.eq.f32.partialorder %v13092_v38, %v9850_v21  ;;  %v2491_v63 = vshll.u32 %v2490_v50, 16  ;;  %v13099_v28 = vld [vmem:[#allocation145_spill] sm:$0xff]  ;;  %v13103_v21 = vld [vmem:[#allocation198_spill] sm:$0xff] }
 0x3bd   :  { %v2462_v56 = vadd.s32 %v2461_v16, %v2459_v7  ;;  %2997 = vmin.xlane.f32.xlu1 %v2996_v62  ;;  %3252 = vmin.xlane.f32.xlu0 %v3251_v41  ;;  %v3281_v34 = vsel %vm3280_vm1, %v3276_v5, inf  ;;  %v13093_v62 = vld [vmem:[#allocation144_spill] sm:$0xff]  ;;  %v3006_v41 = vcvt.s32.f32 %v3004_v45  ;;  %v13095_v5 = vld [vmem:[#allocation250_spill] sm:$0xff]  ;;  %v10215_v45 = vsel %vm3973_vm6, 1.0, %v12880_v12  ;;  %v13102_v0 = vld [vmem:[#allocation137_spill] sm:$0xff] }
 0x3be   :  { %v2443_v32 = vpop.xlane.xlu1 %2442  ;;  %v10179_v58 = vpop.xlane.xlu0 %3458  ;;  %vm3310_vm9 = vcmp.eq.f32.partialorder %v13093_v62, %v10057_v17  ;;  %v3334_v47 = vand.u32 65535, %v13095_v5  ;;  %vm3340_vm13 = vcmp.eq.f32.partialorder %v13099_v28, %v10081_v22  ;;  %v13101_v62 = vld [vmem:[#allocation176_spill] sm:$0xff]  ;;  %v3364_v17 = vand.u32 65535, %v13102_v0  ;;  %v13104_v0 = vld [vmem:[#allocation179_spill] sm:$0xff]  ;;  %v13107_v28 = vld [vmem:[#allocation110_spill] sm:$0xff] }
 0x3bf   :  { %vm3990_vm7 = vcmp.eq.s32.totalorder %v7679_v40, %v2462_v56  ;;  %v2444_v16 = vcvt.f32.s32 %v2443_v32  ;;  %v13094_v56 = vld [vmem:[#allocation243_spill] sm:$0xff]  ;;  %v3306_v32 = vcvt.s32.f32 %v3304_v31  ;;  %v3026_v31 = vsel %vm3025_vm8, %v3021_v2, inf }
 0x3c0   :  { %v10200_v7 = vsel %vm3990_vm7, 1.0, %v12880_v12  ;;  %v2475_v55 = vcvt.f32.s32 %v13094_v56  ;;  %v3336_v5 = vcvt.s32.f32 %v3334_v47  ;;  %vm3975_vm14 = vcmp.eq.s32.totalorder %v7679_v40, %v13103_v21 }
 0x3c1   :  { %v2447_v24 = vadd.s32 %v2446_v33, %v2444_v16  ;;  %2982 = vmin.xlane.f32.xlu1 %v2981_v6  ;;  %3282 = vmin.xlane.f32.xlu0 %v3281_v34  ;;  %v3311_v50 = vsel %vm3310_vm9, %v3306_v32, inf  ;;  %v13098_v16 = vld [vmem:[#allocation80_spill] sm:$0xff]  ;;  %vm3055_vm2 = vcmp.eq.f32.partialorder %v13104_v0, %v9877_v59  ;;  %v3366_v22 = vcvt.s32.f32 %v3364_v17 }
 0x3c2   :  { %v2488_v53 = vpop.xlane.xlu1 %2487  ;;  %v10217_v33 = vpop.xlane.xlu0 %3473  ;;  %vm3010_vm12 = vcmp.eq.f32.partialorder %v13098_v16, %v9833_v61  ;;  %v2476_v38 = vshll.u32 %v2475_v55, 16  ;;  %v3341_v47 = vsel %vm3340_vm13, %v3336_v5, inf  ;;  %v13108_v61 = vld [vmem:[#allocation105_spill] sm:$0xff]  ;;  %vm3977_vm7 = vcmp.eq.s32.totalorder %v7679_v40, %v9572_v19 }
 0x3c3   :  { %vm3989_vm11 = vcmp.eq.s32.totalorder %v7679_v40, %v2447_v24  ;;  %v2489_v43 = vcvt.f32.s32 %v2488_v53  ;;  %13097 = vst [vmem:[#allocation73_spill] sm:$0xff] %v10217_v33  ;;  %v13100_v24 = vld [vmem:[#allocation244_spill] sm:$0xff]  ;;  %v2520_v53 = vcvt.f32.s32 %v13101_v62  ;;  %v3011_v55 = vsel %vm3010_vm12, %v3006_v41, inf }
 0x3c4   :  { %v10228_v6 = vsel %vm3989_vm11, 1.0, %v12880_v12  ;;  %v3049_v56 = vand.u32 65535, %v13100_v24  ;;  %v2505_v62 = vcvt.f32.s32 %v13107_v28  ;;  %vm3978_vm4 = vcmp.eq.s32.totalorder %v7679_v40, %v13108_v61  ;;  %v13113_v41 = vld [vmem:[#allocation180_spill] sm:$0xff]  ;;  %v13115_v61 = vld [vmem:[#allocation91_spill] sm:$0xff] }
 0x3c5   :  { %v2492_v34 = vadd.s32 %v2491_v63, %v2489_v43  ;;  %3027 = vmin.xlane.f32.xlu1 %v3026_v31  ;;  %3312 = vmin.xlane.f32.xlu0 %v3311_v50  ;;  %v10244_v63 = vsel %vm3976_vm10, 1.0, %v12880_v12  ;;  %v13105_v50 = vld [vmem:[#allocation216_spill] sm:$0xff]  ;;  %v2521_v16 = vshll.u32 %v2520_v53, 16  ;;  %vm3460_vm10 = vcmp.eq.f32.partialorder %v13115_v61, %v10179_v58 }
 0x3c6   :  { %v2473_v32 = vpop.xlane.xlu1 %2472  ;;  %vm3370_vm3 = vcmp.eq.f32.partialorder %v13105_v50, %v10105_v49  ;;  %v3051_v2 = vcvt.s32.f32 %v3049_v56  ;;  %v13109_v56 = vld [vmem:[#allocation85_spill] sm:$0xff]  ;;  %v2506_v50 = vshll.u32 %v2505_v62, 16  ;;  %v3079_v49 = vand.u32 65535, %v13113_v41 }
 0x3c7   :  { %vm3992_vm15 = vcmp.eq.s32.totalorder %v7679_v40, %v2492_v34  ;;  %v2474_v43 = vcvt.f32.s32 %v2473_v32  ;;  %v13106_v34 = vld [vmem:[#allocation107_spill] sm:$0xff]  ;;  %v10263_v32 = vpop.xlane.xlu0 %3728  ;;  %v3371_v17 = vsel %vm3370_vm3, %v3366_v22, inf  ;;  %vm3040_vm1 = vcmp.eq.f32.partialorder %v13109_v56, %v9864_v25  ;;  %v13112_v22 = vld [vmem:[#allocation89_spill] sm:$0xff]  ;;  %v13119_v25 = vld [vmem:[#allocation188_spill] sm:$0xff] }
 0x3c8   :  { %v10255_v31 = vsel %vm3992_vm15, 1.0, %v12880_v12  ;;  %v3034_v24 = vand.u32 65535, %v13106_v34  ;;  %v3056_v53 = vsel %vm3055_vm2, %v3051_v2, inf  ;;  %v2550_v34 = vcvt.f32.s32 %v13112_v22  ;;  %v13114_v62 = vld [vmem:[#allocation93_spill] sm:$0xff]  ;;  %v13118_v2 = vld [vmem:[#allocation148_spill] sm:$0xff] }
 0x3c9   :  { %v2477_v51 = vadd.s32 %v2476_v38, %v2474_v43  ;;  %3012 = vmin.xlane.f32.xlu1 %v3011_v55  ;;  %3342 = vmin.xlane.f32.xlu0 %v3341_v47  ;;  %v10272_v43 = vsel %vm3975_vm14, 1.0, %v12880_v12  ;;  %v13110_v47 = vld [vmem:[#allocation197_spill] sm:$0xff]  ;;  %vm3085_vm9 = vcmp.eq.f32.partialorder %v13114_v62, %v9897_v4  ;;  %v3081_v22 = vcvt.s32.f32 %v3079_v49 }
 0x3ca   :  { %v2518_v5 = vpop.xlane.xlu1 %2517  ;;  %vm3430_vm6 = vcmp.eq.f32.partialorder %v13110_v47, %v10151_v48  ;;  %v2551_v47 = vshll.u32 %v2550_v34, 16  ;;  %v3469_v59 = vand.u32 65535, %v13118_v2  ;;  %v2535_v48 = vcvt.f32.s32 %v13119_v25  ;;  %v13120_v2 = vld [vmem:[#allocation88_spill] sm:$0xff] }
 0x3cb   :  { %vm3991_vm5 = vcmp.eq.s32.totalorder %v7679_v40, %v2477_v51  ;;  %v2519_v38 = vcvt.f32.s32 %v2518_v5  ;;  %v13111_v51 = vand.u32 65535, %v13050_v15  ;;  %v3036_v5 = vcvt.s32.f32 %v3034_v24 }
 0x3cc   :  { %v10283_v55 = vsel %vm3991_vm5, 1.0, %v12880_v12  ;;  %v10300_v15 = vsel %vm3978_vm4, 1.0, %v12880_v12  ;;  %v3086_v34 = vsel %vm3085_vm9, %v3081_v22, inf  ;;  %vm3070_vm12 = vcmp.eq.f32.partialorder %v13120_v2, %v9887_v27 }
 0x3cd   :  { %v2522_v21 = vadd.s32 %v2521_v16, %v2519_v38  ;;  %3057 = vmin.xlane.f32.xlu1 %v3056_v53  ;;  %3372 = vmin.xlane.f32.xlu0 %v3371_v17  ;;  %v3426_v0 = vcvt.s32.f32 %v13111_v51  ;;  %v10302_v38 = vpop.xlane.xlu0 %3743  ;;  %v3041_v24 = vsel %vm3040_vm1, %v3036_v5, inf  ;;  %v13124_v51 = vld [vmem:[#allocation185_spill] sm:$0xff] }
 0x3ce   :  { %v2503_v28 = vpop.xlane.xlu1 %2502  ;;  %v2580_v4 = vcvt.f32.s32 %v13124_v51  ;;  %v13127_v51 = vld [vmem:[#allocation111_spill] sm:$0xff]  ;;  %vm3745_vm2 = vcmp.eq.f32.partialorder %v9564_v54, %v10302_v38 }
 0x3cf   :  { %vm3994_vm8 = vcmp.eq.s32.totalorder %v7679_v40, %v2522_v21  ;;  %v2504_v16 = vcvt.f32.s32 %v2503_v28  ;;  %v3431_v41 = vsel %vm3430_vm6, %v3426_v0, inf  ;;  %v13116_v21 = vand.u32 65535, %v13052_v11  ;;  %v13117_v28 = vld [vmem:[#allocation175_spill] sm:$0xff] }
 0x3d0   :  { %v10313_v53 = vsel %vm3994_vm8, 1.0, %v12880_v12  ;;  %v3064_v5 = vand.u32 65535, %v13117_v28  ;;  %v10329_v11 = vsel %vm3977_vm7, 1.0, %v12880_v12  ;;  %v2536_v28 = vshll.u32 %v2535_v48, 16 }
 0x3d1   :  { %v2507_v17 = vadd.s32 %v2506_v50, %v2504_v16  ;;  %3042 = vmin.xlane.f32.xlu1 %v3041_v24  ;;  %3432 = vmin.xlane.f32.xlu0 %v3431_v41  ;;  %v3456_v56 = vcvt.s32.f32 %v13116_v21  ;;  %v13121_v16 = vld [vmem:[#allocation153_spill] sm:$0xff]  ;;  %v10348_v41 = vpop.xlane.xlu0 %3758  ;;  %v13122_v21 = vld [vmem:[#allocation187_spill] sm:$0xff]  ;;  %v2581_v2 = vshll.u32 %v2580_v4, 16 }
 0x3d2   :  { %v2548_v0 = vpop.xlane.xlu1 %2547  ;;  %vm3475_vm13 = vcmp.eq.f32.partialorder %v13121_v16, %v10217_v33  ;;  %v3066_v61 = vcvt.s32.f32 %v3064_v5  ;;  %vm3760_vm4 = vcmp.eq.f32.partialorder %v9598_v23, %v10348_v41 }
 0x3d3   :  { %vm3993_vm11 = vcmp.eq.s32.totalorder %v7679_v40, %v2507_v17  ;;  %v2549_v50 = vcvt.f32.s32 %v2548_v0  ;;  %v3461_v49 = vsel %vm3460_vm10, %v3456_v56, inf  ;;  %v3471_v17 = vcvt.s32.f32 %v3469_v59  ;;  %v13123_v0 = vld [vmem:[#allocation152_spill] sm:$0xff] }
 0x3d4   :  { %v10340_v25 = vsel %vm3993_vm11, 1.0, %v12880_v12  ;;  %v3109_v56 = vand.u32 65535, %v13122_v21  ;;  %v3724_v22 = vand.u32 65535, %v13123_v0  ;;  %v13126_v59 = vld [vmem:[#allocation192_spill] sm:$0xff]  ;;  %v13128_v0 = vld [vmem:[#allocation218_spill] sm:$0xff] }
 0x3d5   :  { %v10344_v19 = vadd.s32 %v2551_v47, %v2549_v50  ;;  %3087 = vmin.xlane.f32.xlu1 %v3086_v34  ;;  %3462 = vmin.xlane.f32.xlu0 %v3461_v49  ;;  %v3071_v47 = vsel %vm3070_vm12, %v3066_v61, inf  ;;  %v3476_v50 = vsel %vm3475_vm13, %v3471_v17, inf  ;;  %v13125_v34 = vld [vmem:[#allocation156_spill] sm:$0xff]  ;;  %vm3115_vm15 = vcmp.eq.f32.partialorder %v13126_v59, %v9917_v60  ;;  %v13129_v61 = vld [vmem:[#allocation127_spill] sm:$0xff]  ;;  %v10365_v33 = vpop.xlane.xlu0 %3773 }
 0x3d6   :  { %v2533_v62 = vpop.xlane.xlu1 %2532  ;;  %vm3730_vm14 = vcmp.eq.f32.partialorder %v13125_v34, %v10263_v32  ;;  %v3111_v48 = vcvt.s32.f32 %v3109_v56  ;;  %v3726_v21 = vcvt.s32.f32 %v3724_v22  ;;  %v3739_v24 = vand.u32 65535, %v13128_v0  ;;  %v13130_v56 = vld [vmem:[#allocation97_spill] sm:$0xff] }
 0x3d7   :  { %v2534_v16 = vcvt.f32.s32 %v2533_v62  ;;  %v3094_v62 = vand.u32 65535, %v13127_v51  ;;  %v2565_v17 = vcvt.f32.s32 %v13129_v61  ;;  %vm3100_vm3 = vcmp.eq.f32.partialorder %v13130_v56, %v9907_v14  ;;  %v13131_v34 = vld [vmem:[#allocation201_spill] sm:$0xff]  ;;  %v13132_v51 = vld [vmem:[#allocation190_spill] sm:$0xff]  ;;  %v13134_v56 = vld [vmem:[#allocation255_spill] sm:$0xff] }
 0x3d8   :  { %v3741_v4 = vcvt.s32.f32 %v3739_v24  ;;  %v3754_v59 = vand.u32 65535, %v13131_v34  ;;  %v2610_v0 = vcvt.f32.s32 %v13132_v51  ;;  %v13133_v24 = vld [vmem:[#allocation193_spill] sm:$0xff]  ;;  %vm3775_vm5 = vcmp.eq.f32.partialorder %v9622_v37, %v10365_v33  ;;  %v13135_v34 = vld [vmem:[#allocation247_spill] sm:$0xff] }
 0x3d9   :  { %v10358_v49 = vadd.s32 %v2536_v28, %v2534_v16  ;;  %3072 = vmin.xlane.f32.xlu1 %v3071_v47  ;;  %3477 = vmin.xlane.f32.xlu0 %v3476_v50  ;;  %v3116_v28 = vsel %vm3115_vm15, %v3111_v48, inf  ;;  %v3731_v16 = vsel %vm3730_vm14, %v3726_v21, inf  ;;  %v3096_v50 = vcvt.s32.f32 %v3094_v62 }
 0x3da   :  { %v2578_v5 = vpop.xlane.xlu1 %2577  ;;  %v3746_v61 = vsel %vm3745_vm2, %v3741_v4, inf  ;;  %v3756_v62 = vcvt.s32.f32 %v3754_v59  ;;  %vm3130_vm1 = vcmp.eq.f32.partialorder %v13135_v34, %v9927_v44  ;;  %vm3996_vm9 = vcmp.eq.s32.totalorder %v7679_v40, %v10344_v19 }
 0x3db   :  { %v2579_v27 = vcvt.f32.s32 %v2578_v5  ;;  %v2566_v5 = vshll.u32 %v2565_v17, 16  ;;  %v3101_v21 = vsel %vm3100_vm3, %v3096_v50, inf  ;;  %v3769_v17 = vand.u32 65535, %v9569_v10 }
 0x3dc   :  { %v3761_v4 = vsel %vm3760_vm4, %v3756_v62, inf  ;;  %v3784_v10 = vand.u32 65535, %v9605_v29  ;;  %vm3995_vm11 = vcmp.eq.s32.totalorder %v7679_v40, %v10358_v49 }
 0x3dd   :  { %v10369_v47 = vadd.s32 %v2581_v2, %v2579_v27  ;;  %3117 = vmin.xlane.f32.xlu1 %v3116_v28  ;;  %3732 = vmin.xlane.f32.xlu0 %v3731_v16  ;;  %v10379_v27 = vpop.xlane.xlu0 %3788  ;;  %v3124_v28 = vand.u32 65535, %v13133_v24  ;;  %v2611_v16 = vshll.u32 %v2610_v0, 16  ;;  %v3771_v51 = vcvt.s32.f32 %v3769_v17  ;;  %v13137_v17 = vld [vmem:[#allocation159_spill] sm:$0xff] }
 0x3de   :  { %v2563_v22 = vpop.xlane.xlu1 %2562  ;;  %vm3790_vm6 = vcmp.eq.f32.partialorder %v9650_v30, %v10379_v27 }
 0x3df   :  { %v2564_v48 = vcvt.f32.s32 %v2563_v22  ;;  %v2595_v22 = vcvt.f32.s32 %v13134_v56  ;;  %v3776_v62 = vsel %vm3775_vm5, %v3771_v51, inf  ;;  %v13138_v56 = vld [vmem:[#allocation131_spill] sm:$0xff]  ;;  %v13139_v51 = vld [vmem:[#allocation118_spill] sm:$0xff]  ;;  %vm3998_vm13 = vcmp.eq.s32.totalorder %v7679_v40, %v10369_v47 }
 0x3e1   :  { %v10377_v54 = vadd.s32 %v2566_v5, %v2564_v48  ;;  %3102 = vmin.xlane.f32.xlu1 %v3101_v21  ;;  %3747 = vmin.xlane.f32.xlu0 %v3746_v61  ;;  %v3126_v5 = vcvt.s32.f32 %v3124_v28  ;;  %v2596_v0 = vshll.u32 %v2595_v22, 16  ;;  %v13136_v48 = vld [vmem:[#allocation132_spill] sm:$0xff]  ;;  %v3786_v28 = vcvt.s32.f32 %v3784_v10 }
 0x3e2   :  { %v2608_v2 = vpop.xlane.xlu1 %2607  ;;  %v2640_v21 = vcvt.f32.s32 %v13136_v48  ;;  %v2625_v22 = vcvt.f32.s32 %v13138_v56  ;;  %v3814_v10 = vand.u32 65535, %v13139_v51  ;;  %v13140_v48 = vld [vmem:[#allocation135_spill] sm:$0xff] }
 0x3e3   :  { %v2609_v50 = vcvt.f32.s32 %v2608_v2  ;;  %v10393_v2 = vpop.xlane.xlu0 %3803  ;;  %v3131_v37 = vsel %vm3130_vm1, %v3126_v5, inf  ;;  %vm3997_vm15 = vcmp.eq.s32.totalorder %v7679_v40, %v10377_v54 }
 0x3e4   :  { %v2641_v29 = vshll.u32 %v2640_v21, 16  ;;  %vm3805_vm7 = vcmp.eq.f32.partialorder %v9678_v18, %v10393_v2  ;;  %v2670_v21 = vcvt.f32.s32 %v13140_v48  ;;  %v13144_v48 = vld [vmem:[#allocation65_spill] sm:$0xff]  ;;  %v10504_v54 = vsel %vm3997_vm15, 1.0, %v12880_v12 }
 0x3e5   :  { %v10386_v23 = vadd.s32 %v2611_v16, %v2609_v50  ;;  %3147 = vmin.xlane.f32.xlu1 %v9946_v57  ;;  %3762 = vmin.xlane.f32.xlu0 %v3761_v4  ;;  %v3799_v16 = vand.u32 65535, %v13137_v17  ;;  %v3791_v4 = vsel %vm3790_vm6, %v3786_v28, inf  ;;  %v13142_v17 = vld [vmem:[#allocation138_spill] sm:$0xff] }
 0x3e6   :  { %v2593_v59 = vpop.xlane.xlu1 %2592  ;;  %v2671_v28 = vshll.u32 %v2670_v21, 16  ;;  %v2685_v21 = vcvt.f32.s32 %v13144_v48  ;;  %v13150_v48 = vld [vmem:[#allocation78_spill] sm:$0xff] }
 0x3e7   :  { %v2594_v61 = vcvt.f32.s32 %v2593_v59  ;;  %v10406_v30 = vpop.xlane.xlu0 %3818  ;;  %v3801_v5 = vcvt.s32.f32 %v3799_v16  ;;  %v2655_v16 = vcvt.f32.s32 %v13142_v17  ;;  %vm4000_vm3 = vcmp.eq.s32.totalorder %v7679_v40, %v10386_v23 }
 0x3e9   :  { %v10397_v57 = vadd.s32 %v2596_v0, %v2594_v61  ;;  %3132 = vmin.xlane.f32.xlu1 %v3131_v37  ;;  %3777 = vmin.xlane.f32.xlu0 %v3776_v62  ;;  %v2626_v0 = vshll.u32 %v2625_v22, 16  ;;  %v3806_v37 = vsel %vm3805_vm7, %v3801_v5, inf  ;;  %v13141_v62 = vld [vmem:[#allocation108_spill] sm:$0xff] }
 0x3ea   :  { %v2638_v24 = vpop.xlane.xlu1 %2637  ;;  %vm3820_vm8 = vcmp.eq.f32.partialorder %v13141_v62, %v10406_v30  ;;  %v13145_v62 = vld [vmem:[#allocation160_spill] sm:$0xff] }
 0x3eb   :  { %v2639_v50 = vcvt.f32.s32 %v2638_v24  ;;  %v3816_v24 = vcvt.s32.f32 %v3814_v10  ;;  %vm3999_vm5 = vcmp.eq.s32.totalorder %v7679_v40, %v10397_v57 }
 0x3ec   :  { %v10538_v57 = vsel %vm3999_vm5, 1.0, %v12880_v12 }
 0x3ed   :  { %v10403_v34 = vadd.s32 %v2641_v29, %v2639_v50  ;;  %3177 = vmin.xlane.f32.xlu1 %v9980_v39  ;;  %3792 = vmin.xlane.f32.xlu0 %v3791_v4  ;;  %v3821_v56 = vsel %vm3820_vm8, %v3816_v24, inf  ;;  %v2656_v4 = vshll.u32 %v2655_v16, 16  ;;  %v13146_v24 = vld [vmem:[#allocation149_spill] sm:$0xff] }
 0x3ee   :  { %v2623_v59 = vpop.xlane.xlu1 %2622 }
 0x3ef   :  { %v2624_v61 = vcvt.f32.s32 %v2623_v59  ;;  %v13143_v59 = vld [vmem:[#allocation140_spill] sm:$0xff]  ;;  %vm4002_vm6 = vcmp.eq.s32.totalorder %v7679_v40, %v10403_v34 }
 0x3f0   :  { %v2700_v5 = vcvt.f32.s32 %v13143_v59  ;;  %v10556_v34 = vsel %vm4002_vm6, 1.0, %v12880_v12 }
 0x3f1   :  { %v10412_v18 = vadd.s32 %v2626_v0, %v2624_v61  ;;  %3162 = vmin.xlane.f32.xlu1 %v9962_v46  ;;  %3807 = vmin.xlane.f32.xlu0 %v3806_v37  ;;  %13193 = vst [vmem:[#allocation139_spill] sm:$0xff] %v10556_v34 }
 0x3f2   :  { %v2668_v39 = vpop.xlane.xlu1 %2667  ;;  %v2701_v10 = vshll.u32 %v2700_v5, 16 }
 0x3f3   :  { %v2669_v29 = vcvt.f32.s32 %v2668_v39  ;;  %v2686_v39 = vshll.u32 %v2685_v21, 16  ;;  %v2760_v21 = vcvt.f32.s32 %v13150_v48  ;;  %vm4001_vm8 = vcmp.eq.s32.totalorder %v7679_v40, %v10412_v18 }
 0x3f5   :  { %v10416_v22 = vadd.s32 %v2671_v28, %v2669_v29  ;;  %3207 = vmin.xlane.f32.xlu1 %v10007_v3  ;;  %3822 = vmin.xlane.f32.xlu0 %v3821_v56  ;;  %v2730_v28 = vcvt.f32.s32 %v13146_v24  ;;  %v13147_v29 = vld [vmem:[#allocation87_spill] sm:$0xff]  ;;  %v2761_v24 = vshll.u32 %v2760_v21, 16 }
 0x3f6   :  { %v2653_v50 = vpop.xlane.xlu1 %2652 }
 0x3f7   :  { %v2654_v51 = vcvt.f32.s32 %v2653_v50  ;;  %v13148_v50 = vld [vmem:[#allocation251_spill] sm:$0xff] }
 0x3f9   :  { %v10420_v0 = vadd.s32 %v2656_v4, %v2654_v51  ;;  %3192 = vmin.xlane.f32.xlu1 %v9995_v36  ;;  %v2731_v36 = vshll.u32 %v2730_v28, 16  ;;  %v2715_v4 = vcvt.f32.s32 %v13148_v50  ;;  %v13149_v51 = vld [vmem:[#allocation68_spill] sm:$0xff] }
 0x3fa   :  { %v2698_v46 = vpop.xlane.xlu1 %2697 }
 0x3fb   :  { %v2699_v61 = vcvt.f32.s32 %v2698_v46 }
 0x3fd   :  { %v10424_v37 = vadd.s32 %v2701_v10, %v2699_v61  ;;  %3417 = vmin.xlane.f32.xlu1 %v13145_v62  ;;  %v2716_v10 = vshll.u32 %v2715_v4, 16 }
 0x3fe   :  { %v2683_v3 = vpop.xlane.xlu1 %2682 }
 0x3ff   :  { %v2684_v17 = vcvt.f32.s32 %v2683_v3  ;;  %v13151_v3 = vld [vmem:[#allocation82_spill] sm:$0xff]  ;;  %vm4006_vm15 = vcmp.eq.s32.totalorder %v7679_v40, %v10424_v37 }
 0x400   :  { %v10627_v37 = vsel %vm4006_vm15, 1.0, %v12880_v12 }
 0x401   :  { %v10428_v16 = vadd.s32 %v2686_v39, %v2684_v17  ;;  %3267 = vmin.xlane.f32.xlu1 %v13147_v29  ;;  %v13152_v17 = vld [vmem:[#allocation217_spill] sm:$0xff]  ;;  %13225 = vst [vmem:[#allocation173_spill] sm:$0xff] %v10627_v37 }
 0x402   :  { %v2728_v56 = vpop.xlane.xlu1 %2727  ;;  %v2745_v28 = vcvt.f32.s32 %v13152_v17 }
 0x403   :  { %v2729_v59 = vcvt.f32.s32 %v2728_v56  ;;  %v13153_v56 = vld [vmem:[#allocation104_spill] sm:$0xff] }
 0x405   :  { %v10432_v5 = vadd.s32 %v2731_v36, %v2729_v59  ;;  %3297 = vmin.xlane.f32.xlu1 %v13149_v51  ;;  %v2746_v59 = vshll.u32 %v2745_v28, 16  ;;  %v13154_v51 = vld [vmem:[#allocation101_spill] sm:$0xff] }
 0x406   :  { %v2713_v46 = vpop.xlane.xlu1 %2712  ;;  %v2790_v4 = vcvt.f32.s32 %v13154_v51 }
 0x407   :  { %v2714_v61 = vcvt.f32.s32 %v2713_v46  ;;  %v13156_v46 = vld [vmem:[#allocation253_spill] sm:$0xff] }
 0x408   :  { %v2791_v21 = vshll.u32 %v2790_v4, 16  ;;  %v10458_v4 = vsel %vm3996_vm9, 1.0, %v12880_v12 }
 0x409   :  { %v10436_v62 = vadd.s32 %v2716_v10, %v2714_v61  ;;  %3327 = vmin.xlane.f32.xlu1 %v13151_v3  ;;  %v10447_v10 = vpop.xlane.xlu0 %3833  ;;  %v13158_v3 = vld [vmem:[#allocation100_spill] sm:$0xff]  ;;  %13162 = vst [vmem:[#allocation252_spill] sm:$0xff] %v10458_v4 }
 0x40a   :  { %v2758_v39 = vpop.xlane.xlu1 %2757  ;;  %13157 = vst [vmem:[#allocation143_spill] sm:$0xff] %v10447_v10  ;;  %v2775_v17 = vcvt.f32.s32 %v13158_v3 }
 0x40b   :  { %v2759_v29 = vcvt.f32.s32 %v2758_v39 }
 0x40d   :  { %v10440_v50 = vadd.s32 %v2761_v24, %v2759_v29  ;;  %3357 = vmin.xlane.f32.xlu1 %v13153_v56  ;;  %v13159_v29 = vld [vmem:[#allocation225_spill] sm:$0xff]  ;;  %v2776_v56 = vshll.u32 %v2775_v17, 16  ;;  %v10455_v51 = vpop.xlane.xlu0 %3848 }
 0x40e   :  { %v2743_v36 = vpop.xlane.xlu1 %2742  ;;  %13161 = vst [vmem:[#allocation158_spill] sm:$0xff] %v10455_v51 }
 0x40f   :  { %v2744_v44 = vcvt.f32.s32 %v2743_v36  ;;  %v13160_v36 = vld [vmem:[#allocation219_spill] sm:$0xff] }
 0x411   :  { %v10444_v48 = vadd.s32 %v2746_v59, %v2744_v44  ;;  %3387 = vmin.xlane.f32.xlu1 %v13156_v46  ;;  %v2820_v44 = vcvt.f32.s32 %v13160_v36 }
 0x412   :  { %v2788_v61 = vpop.xlane.xlu1 %2787 }
 0x413   :  { %13155 = vst [vmem:[#allocation230_spill] sm:$0xff] %v10444_v48  ;;  %v2789_v39 = vcvt.f32.s32 %v2788_v61  ;;  %v13164_v61 = vld [vmem:[#allocation112_spill] sm:$0xff]  ;;  %v2821_v17 = vshll.u32 %v2820_v44, 16  ;;  %v10486_v48 = vsel %vm3998_vm13, 1.0, %v12880_v12  ;;  %v13174_v44 = vld [vmem:[#allocation254_spill] sm:$0xff]  ;;  %vm4003_vm13 = vcmp.eq.s32.totalorder %v7679_v40, %v10420_v0 }
 0x415   :  { %v2792_v24 = vadd.s32 %v2791_v21, %v2789_v39  ;;  %3447 = vmin.xlane.f32.xlu1 %v13159_v29  ;;  %v13165_v39 = vld [vmem:[#allocation202_spill] sm:$0xff] }
 0x416   :  { %v2773_v28 = vpop.xlane.xlu1 %2772 }
 0x417   :  { %vm4012_vm10 = vcmp.eq.s32.totalorder %v7679_v40, %v2792_v24  ;;  %v2774_v59 = vcvt.f32.s32 %v2773_v28  ;;  %v2805_v24 = vcvt.f32.s32 %v13165_v39  ;;  %v10471_v28 = vsel %vm3995_vm11, 1.0, %v12880_v12 }
 0x418   :  { %v10461_v46 = vsel %vm4012_vm10, 1.0, %v12880_v12  ;;  %13166 = vst [vmem:[#allocation102_spill] sm:$0xff] %v10471_v28  ;;  %vm4004_vm10 = vcmp.eq.s32.totalorder %v7679_v40, %v10416_v22 }
 0x419   :  { %13163 = vst [vmem:[#allocation248_spill] sm:$0xff] %v10461_v46  ;;  %v2777_v19 = vadd.s32 %v2776_v56, %v2774_v59  ;;  %3222 = vmin.xlane.f32.xlu1 %v13164_v61  ;;  %v13168_v56 = vld [vmem:[#allocation66_spill] sm:$0xff]  ;;  %v10481_v59 = vpop.xlane.xlu0 %3863  ;;  %v13176_v46 = vld [vmem:[#allocation220_spill] sm:$0xff] }
 0x41a   :  { %v2818_v3 = vpop.xlane.xlu1 %2817  ;;  %13169 = vst [vmem:[#allocation232_spill] sm:$0xff] %v10481_v59  ;;  %v2835_v4 = vcvt.f32.s32 %v13176_v46 }
 0x41b   :  { %vm4011_vm12 = vcmp.eq.s32.totalorder %v7679_v40, %v2777_v19  ;;  %v2819_v29 = vcvt.f32.s32 %v2818_v3  ;;  %v2806_v19 = vshll.u32 %v2805_v24, 16  ;;  %v13170_v3 = vld [vmem:[#allocation200_spill] sm:$0xff] }
 0x41c   :  { %v10474_v36 = vsel %vm4011_vm12, 1.0, %v12880_v12  ;;  %v2850_v39 = vcvt.f32.s32 %v13170_v3  ;;  %v13173_v3 = vld [vmem:[#allocation221_spill] sm:$0xff] }
 0x41d   :  { %13167 = vst [vmem:[#allocation234_spill] sm:$0xff] %v10474_v36  ;;  %v2822_v49 = vadd.s32 %v2821_v17, %v2819_v29  ;;  %3237 = vmin.xlane.f32.xlu1 %v13168_v56  ;;  %v13172_v29 = vld [vmem:[#allocation71_spill] sm:$0xff]  ;;  %v10501_v28 = vpop.xlane.xlu0 %3878 }
 0x41e   :  { %v2803_v61 = vpop.xlane.xlu1 %2802  ;;  %13177 = vst [vmem:[#allocation157_spill] sm:$0xff] %v10501_v28 }
 0x41f   :  { %vm4014_vm14 = vcmp.eq.s32.totalorder %v7679_v40, %v2822_v49  ;;  %v2804_v21 = vcvt.f32.s32 %v2803_v61  ;;  %v13175_v49 = vpack.i.bf16 %v13173_v3, %v13174_v44  ;;  %v2851_v61 = vshll.u32 %v2850_v39, 16  ;;  %v13178_v44 = vld [vmem:[#allocation74_spill] sm:$0xff] }
 0x420   :  { %v10489_v47 = vsel %vm4014_vm14, 1.0, %v12880_v12  ;;  %v2836_v3 = vshll.u32 %v2835_v4, 16 }
 0x421   :  { %13171 = vst [vmem:[#allocation164_spill] sm:$0xff] %v10489_v47  ;;  %v2807_v17 = vadd.s32 %v2806_v19, %v2804_v21  ;;  %3492 = vmin.xlane.f32.xlu1 %v13172_v29  ;;  %v13180_v29 = vld [vmem:[#allocation205_spill] sm:$0xff]  ;;  %v10520_v47 = vsel %vm4000_vm3, 1.0, %v12880_v12 }
 0x422   :  { %v2848_v56 = vpop.xlane.xlu1 %2847  ;;  %5765 = vxpose.xlu0.b32.start [1/16] (narrow) %v13175_v49, 8  ;;  %v2880_v49 = vcvt.f32.s32 %v9620_v26  ;;  %13182 = vst [vmem:[#allocation172_spill] sm:$0xff] %v10520_v47  ;;  %v10572_v47 = vsel %vm4001_vm8, 1.0, %v12880_v12  ;;  %vm4007_vm8 = vcmp.eq.s32.totalorder %v7679_v40, %v10436_v62 }
 0x423   :  { %vm4013_vm2 = vcmp.eq.s32.totalorder %v7679_v40, %v2807_v17  ;;  %v2849_v36 = vcvt.f32.s32 %v2848_v56  ;;  %v13179_v17 = vld [vmem:[#allocation86_spill] sm:$0xff]  ;;  %13200 = vst [vmem:[#allocation170_spill] sm:$0xff] %v10572_v47 }
 0x424   :  { %v10507_v21 = vsel %vm4013_vm2, 1.0, %v12880_v12  ;;  %v13181_v56 = vpack.i.bf16 %v13179_v17, %v13180_v29  ;;  %v2865_v17 = vcvt.f32.s32 %v9646_v8  ;;  %v13188_v8 = vld [vmem:[#allocation186_spill] sm:$0xff] }
 0x425   :  { %v2852_v19 = vadd.s32 %v2851_v61, %v2849_v36  ;;  %3507 = vmin.xlane.f32.xlu1 %v13178_v44  ;;  %v13184_v61 = vld [vmem:[#allocation125_spill] sm:$0xff]  ;;  %v10530_v44 = vpop.xlane.xlu0 %3893 }
 0x426   :  { %v2833_v39 = vpop.xlane.xlu1 %2832  ;;  %5767 = vxpose.xlu0.b32.cont [2/16] (narrow) %v13181_v56, 8  ;;  %13185 = vst [vmem:[#allocation238_spill] sm:$0xff] %v10530_v44 }
 0x427   :  { %vm4016_vm4 = vcmp.eq.s32.totalorder %v7679_v40, %v2852_v19  ;;  %v2834_v24 = vcvt.f32.s32 %v2833_v39  ;;  %v13186_v19 = vpack.i.bf16 %v10028_v13, %v10031_v1  ;;  %v2881_v39 = vshll.u32 %v2880_v49, 16  ;;  %v13189_v49 = vld [vmem:[#allocation226_spill] sm:$0xff] }
 0x428   :  { %v10523_v23 = vsel %vm4016_vm4, 1.0, %v12880_v12  ;;  %vm4005_vm4 = vcmp.eq.s32.totalorder %v7679_v40, %v10428_v16 }
 0x429   :  { %13183 = vst [vmem:[#allocation191_spill] sm:$0xff] %v10523_v23  ;;  %v2837_v36 = vadd.s32 %v2836_v3, %v2834_v24  ;;  %3522 = vmin.xlane.f32.xlu1 %v13184_v61  ;;  %v13187_v3 = vld [vmem:[#allocation124_spill] sm:$0xff]  ;;  %v2866_v61 = vshll.u32 %v2865_v17, 16  ;;  %v10553_v46 = vpop.xlane.xlu0 %3908 }
 0x42a   :  { %v2878_v26 = vpop.xlane.xlu1 %2877  ;;  %5769 = vxpose.xlu0.b32.cont [3/16] (narrow) %v13186_v19, 8  ;;  %13192 = vst [vmem:[#allocation237_spill] sm:$0xff] %v10553_v46 }
 0x42b   :  { %vm4015_vm1 = vcmp.eq.s32.totalorder %v7679_v40, %v2837_v36  ;;  %v2879_v29 = vcvt.f32.s32 %v2878_v26  ;;  %v13190_v36 = vpack.i.bf16 %v13188_v8, %v13189_v49  ;;  %v13191_v26 = vld [vmem:[#allocation204_spill] sm:$0xff] }
 0x42c   :  { %v10541_v24 = vsel %vm4015_vm1, 1.0, %v12880_v12  ;;  %v2910_v19 = vcvt.f32.s32 %v13191_v26  ;;  %vm4008_vm1 = vcmp.eq.s32.totalorder %v7679_v40, %v10432_v5 }
 0x42d   :  { %v2882_v56 = vadd.s32 %v2881_v39, %v2879_v29  ;;  %3537 = vmin.xlane.f32.xlu1 %v13187_v3  ;;  %v13195_v3 = vld [vmem:[#allocation236_spill] sm:$0xff] }
 0x42e   :  { %v2863_v1 = vpop.xlane.xlu1 %2862  ;;  %5771 = vxpose.xlu0.b32.cont [4/16] (narrow) %v13190_v36, 8  ;;  %v13199_v36 = vld [vmem:[#allocation223_spill] sm:$0xff]  ;;  %v2911_v13 = vshll.u32 %v2910_v19, 16 }
 0x42f   :  { %vm4018_vm7 = vcmp.eq.s32.totalorder %v7679_v40, %v2882_v56  ;;  %v2864_v4 = vcvt.f32.s32 %v2863_v1  ;;  %v13196_v56 = vld [vmem:[#allocation166_spill] sm:$0xff]  ;;  %v13197_v1 = vld [vmem:[#allocation75_spill] sm:$0xff]  ;;  %v2895_v26 = vcvt.f32.s32 %v13199_v36 }
 0x430   :  { %v10559_v39 = vsel %vm4018_vm7, 1.0, %v12880_v12  ;;  %v13198_v49 = vpack.i.bf16 %v13196_v56, %v13197_v1  ;;  %v10582_v56 = vpop.xlane.xlu0 %3923 }
 0x431   :  { %13194 = vst [vmem:[#allocation72_spill] sm:$0xff] %v10559_v39  ;;  %v2867_v29 = vadd.s32 %v2866_v61, %v2864_v4  ;;  %3552 = vmin.xlane.f32.xlu1 %v13195_v3  ;;  %v13202_v61 = vld [vmem:[#allocation77_spill] sm:$0xff]  ;;  %13203 = vst [vmem:[#allocation146_spill] sm:$0xff] %v10582_v56  ;;  %v2896_v17 = vshll.u32 %v2895_v26, 16  ;;  %v13208_v39 = vld [vmem:[#allocation228_spill] sm:$0xff] }
 0x432   :  { %v2908_v8 = vpop.xlane.xlu1 %2907  ;;  %5773 = vxpose.xlu0.b32.cont [5/16] (narrow) %v13198_v49, 8  ;;  %v13207_v49 = vld [vmem:[#allocation95_spill] sm:$0xff]  ;;  %v2940_v34 = vcvt.f32.s32 %v13208_v39  ;;  %v13216_v3 = vld [vmem:[#allocation113_spill] sm:$0xff] }
 0x433   :  { %vm4017_vm9 = vcmp.eq.s32.totalorder %v7679_v40, %v2867_v29  ;;  %v2909_v23 = vcvt.f32.s32 %v2908_v8  ;;  %v13204_v29 = vld [vmem:[#allocation206_spill] sm:$0xff]  ;;  %v3829_v36 = vand.u32 65535, %v13207_v49 }
 0x434   :  { %v10575_v18 = vsel %vm4017_vm9, 1.0, %v12880_v12  ;;  %v13205_v8 = vld [vmem:[#allocation94_spill] sm:$0xff]  ;;  %v2941_v47 = vshll.u32 %v2940_v34, 16  ;;  %v13232_v34 = vld [vmem:[#allocation67_spill] sm:$0xff] }
 0x435   :  { %13201 = vst [vmem:[#allocation163_spill] sm:$0xff] %v10575_v18  ;;  %v2912_v4 = vadd.s32 %v2911_v13, %v2909_v23  ;;  %3567 = vmin.xlane.f32.xlu1 %v13202_v61  ;;  %v13206_v1 = vpack.i.bf16 %v13204_v29, %v13205_v8  ;;  %v10591_v23 = vsel %vm4004_vm10, 1.0, %v12880_v12  ;;  %v13211_v61 = vld [vmem:[#allocation162_spill] sm:$0xff]  ;;  %v3831_v49 = vcvt.s32.f32 %v3829_v36 }
 0x436   :  { %v2893_v19 = vpop.xlane.xlu1 %2892  ;;  %13209 = vst [vmem:[#allocation141_spill] sm:$0xff] %v10591_v23  ;;  %vm3835_vm12 = vcmp.eq.f32.partialorder %v13211_v61, %v10447_v10  ;;  %v13212_v8 = vld [vmem:[#allocation242_spill] sm:$0xff]  ;;  %v2925_v18 = vcvt.f32.s32 %v13216_v3  ;;  %v10608_v10 = vpop.xlane.xlu0 %3938  ;;  %v3405_v23 = vcvt.f32.s32 %v13232_v34  ;;  %vm4010_vm10 = vcmp.eq.s32.totalorder %v7679_v40, %v10440_v50  ;;  %v5913_v50 = vld [vmem:[%s11585_s0 + $0x80] sm:$0xff] }
 0x437   :  { %5775 = vxpose.xlu0.b32.cont [6/16] (narrow) %v13206_v1, 8  ;;  %vm4020_vm11 = vcmp.eq.s32.totalorder %v7679_v40, %v2912_v4  ;;  %v2894_v22 = vcvt.f32.s32 %v2893_v19  ;;  %v13213_v4 = vld [vmem:[#allocation199_spill] sm:$0xff]  ;;  %13217 = vst [vmem:[#allocation241_spill] sm:$0xff] %v10608_v10  ;;  %v3836_v0 = vsel %vm3835_vm12, %v3831_v49, inf  ;;  %v13220_v36 = vld [vmem:[#allocation134_spill] sm:$0xff]  ;;  %v13224_v49 = vld [vmem:[#allocation121_spill] sm:$0xff] }
 0x438   :  { %v10594_v13 = vsel %vm4020_vm11, 1.0, %v12880_v12  ;;  %v13214_v19 = vld [vmem:[#allocation231_spill] sm:$0xff]  ;;  %v2970_v39 = vcvt.f32.s32 %v13224_v49 }
 0x439   :  { %13210 = vst [vmem:[#allocation142_spill] sm:$0xff] %v10594_v13  ;;  %v2897_v29 = vadd.s32 %v2896_v17, %v2894_v22  ;;  %3582 = vmin.xlane.f32.xlu1 %v13212_v8  ;;  %v13215_v1 = vpack.i.bf16 %v13213_v4, %v13214_v19  ;;  %v10611_v17 = vsel %vm4003_vm13, 1.0, %v12880_v12  ;;  %v13223_v4 = vld [vmem:[#allocation203_spill] sm:$0xff] }
 0x43a   :  { %v2938_v26 = vpop.xlane.xlu1 %2937  ;;  %13218 = vst [vmem:[#allocation79_spill] sm:$0xff] %v10611_v17  ;;  %v3844_v19 = vand.u32 65535, %v13223_v4  ;;  %v13231_v4 = vpack.i.bf16 %v10161_v42, %v10172_v9 }
 0x43b   :  { %5777 = vxpose.xlu0.b32.cont [7/16] (narrow) %v13215_v1, 8  ;;  %vm4019_vm14 = vcmp.eq.s32.totalorder %v7679_v40, %v2897_v29  ;;  %v2939_v61 = vcvt.f32.s32 %v2938_v26  ;;  %v13221_v29 = vld [vmem:[#allocation165_spill] sm:$0xff]  ;;  %v2926_v1 = vshll.u32 %v2925_v18, 16  ;;  %v3406_v18 = vshll.u32 %v3405_v23, 16  ;;  %v13241_v23 = vld [vmem:[#allocation84_spill] sm:$0xff] }
 0x43c   :  { %v10614_v22 = vsel %vm4019_vm14, 1.0, %v12880_v12  ;;  %v13222_v26 = vpack.i.bf16 %v13220_v36, %v13221_v29  ;;  %v13228_v36 = vld [vmem:[#allocation245_spill] sm:$0xff]  ;;  %v10640_v29 = vpop.xlane.xlu0 %3953  ;;  %v3846_v49 = vcvt.s32.f32 %v3844_v19  ;;  %v13235_v19 = vld [vmem:[#allocation70_spill] sm:$0xff] }
 0x43d   :  { %13219 = vst [vmem:[#allocation174_spill] sm:$0xff] %v10614_v22  ;;  %v2942_v8 = vadd.s32 %v2941_v47, %v2939_v61  ;;  %3837 = vmin.xlane.f32.xlu1 %v3836_v0  ;;  %v13227_v61 = vld [vmem:[#allocation210_spill] sm:$0xff]  ;;  %13230 = vst [vmem:[#allocation147_spill] sm:$0xff] %v10640_v29  ;;  %v13310_v22 = vld [vmem:[#allocation259_spill] sm:$0xff] }
 0x43e   :  { %v2923_v3 = vpop.xlane.xlu1 %2922  ;;  %vm3850_vm3 = vcmp.eq.f32.partialorder %v13227_v61, %v10455_v51  ;;  %v2971_v61 = vshll.u32 %v2970_v39, 16  ;;  %v3000_v39 = vcvt.f32.s32 %v9815_v35  ;;  %v3075_v17 = vcvt.f32.s32 %v13310_v22  ;;  %v13311_v51 = vld [vmem:[#allocation161_spill] sm:$0xff] }
 0x43f   :  { %5779 = vxpose.xlu0.b32.cont [8/16] (narrow) %v13222_v26, 8  ;;  %vm4022_vm2 = vcmp.eq.s32.totalorder %v7679_v40, %v2942_v8  ;;  %v2924_v13 = vcvt.f32.s32 %v2923_v3  ;;  %v13229_v8 = vld [vmem:[#allocation209_spill] sm:$0xff] }
 0x440   :  { %v10630_v47 = vsel %vm4022_vm2, 1.0, %v12880_v12  ;;  %v2955_v3 = vcvt.f32.s32 %v13229_v8 }
 0x441   :  { %13226 = vst [vmem:[#allocation136_spill] sm:$0xff] %v10630_v47  ;;  %v2927_v0 = vadd.s32 %v2926_v1, %v2924_v13  ;;  %3597 = vmin.xlane.f32.xlu1 %v13228_v36  ;;  %v3851_v13 = vsel %vm3850_vm3, %v3846_v49, inf  ;;  %v10648_v1 = vsel %vm4005_vm4, 1.0, %v12880_v12  ;;  %v13300_v47 = vld [vmem:[#allocation184_spill] sm:$0xff] }
 0x442   :  { %v2968_v26 = vpop.xlane.xlu1 %2967  ;;  %13233 = vst [vmem:[#allocation76_spill] sm:$0xff] %v10648_v1  ;;  %v2956_v9 = vshll.u32 %v2955_v3, 16  ;;  %v10666_v3 = vsel %vm4008_vm1, 1.0, %v12880_v12  ;;  %v3180_v37 = vcvt.f32.s32 %v13300_v47 }
 0x443   :  { %5781 = vxpose.xlu0.b32.cont [9/16] (narrow) %v13231_v4, 8  ;;  %vm4021_vm5 = vcmp.eq.s32.totalorder %v7679_v40, %v2927_v0  ;;  %v2969_v16 = vcvt.f32.s32 %v2968_v26  ;;  %v13236_v0 = vpack.i.bf16 %v10132_v20, %v13235_v19  ;;  %v13237_v4 = vld [vmem:[#allocation207_spill] sm:$0xff]  ;;  %13239 = vst [vmem:[#allocation169_spill] sm:$0xff] %v10666_v3  ;;  %v13242_v19 = vpack.i.bf16 %v10215_v45, %v10228_v6  ;;  %v13256_v45 = vld [vmem:[#allocation6_spill] sm:$0xff]  ;;  %v13291_v3 = vld [vmem:[#allocation133_spill] sm:$0xff] }
 0x444   :  { %v10651_v36 = vsel %vm4021_vm5, 1.0, %v12880_v12  ;;  %v3859_v49 = vand.u32 65535, %v13237_v4  ;;  %v3001_v4 = vshll.u32 %v3000_v39, 16  ;;  %v13246_v39 = vpack.i.bf16 %v10189_v52, %v10200_v7  ;;  %v13250_v7 = vld [vmem:[#allocation99_spill] sm:$0xff] }
 0x445   :  { %13234 = vst [vmem:[#allocation83_spill] sm:$0xff] %v10651_v36  ;;  %v2972_v8 = vadd.s32 %v2971_v61, %v2969_v16  ;;  %3852 = vmin.xlane.f32.xlu1 %v3851_v13  ;;  %v13238_v16 = vld [vmem:[#allocation116_spill] sm:$0xff]  ;;  %vm3880_vm12 = vcmp.eq.f32.partialorder %v13250_v7, %v10501_v28  ;;  %v13255_v7 = vld [vmem:[#allocation7_spill] sm:$0xff] }
 0x446   :  { %v2953_v34 = vpop.xlane.xlu1 %2952  ;;  %v3403_v26 = vpop.xlane.xlu0 %3402  ;;  %vm3865_vm7 = vcmp.eq.f32.partialorder %v13238_v16, %v10481_v59 }
 0x447   :  { %5783 = vxpose.xlu0.b32.cont [10/16] (narrow) %v13236_v0, 8  ;;  %vm4024_vm6 = vcmp.eq.s32.totalorder %v7679_v40, %v2972_v8  ;;  %v2954_v5 = vcvt.f32.s32 %v2953_v34  ;;  %v3404_v61 = vcvt.f32.s32 %v3403_v26  ;;  %v3861_v26 = vcvt.s32.f32 %v3859_v49 }
 0x448   :  { %v10669_v35 = vsel %vm4024_vm6, 1.0, %v12880_v12 }
 0x449   :  { %13240 = vst [vmem:[#allocation249_spill] sm:$0xff] %v10669_v35  ;;  %v2957_v20 = vadd.s32 %v2956_v9, %v2954_v5  ;;  %v10673_v13 = vadd.s32 %v3406_v18, %v3404_v61  ;;  %3612 = vmin.xlane.f32.xlu1 %v13241_v23  ;;  %v3866_v62 = vsel %vm3865_vm7, %v3861_v26, inf  ;;  %v10683_v18 = vsel %vm4007_vm8, 1.0, %v12880_v12  ;;  %v13247_v61 = vld [vmem:[#allocation117_spill] sm:$0xff]  ;;  %v13251_v26 = vld [vmem:[#allocation182_spill] sm:$0xff] }
 0x44a   :  { %v2998_v34 = vpop.xlane.xlu1 %2997  ;;  %v3253_v0 = vpop.xlane.xlu0 %3252  ;;  %13243 = vst [vmem:[#allocation69_spill] sm:$0xff] %v10683_v18  ;;  %v5914_v23 = vld [vmem:[%s11585_s0 + $0x88] sm:$0xff] }
 0x44b   :  { %5785 = vxpose.xlu0.b32.cont [11/16] (narrow) %v13242_v19, 8  ;;  %vm4023_vm9 = vcmp.eq.s32.totalorder %v7679_v40, %v2957_v20  ;;  %v2999_v16 = vcvt.f32.s32 %v2998_v34  ;;  %v3874_v20 = vand.u32 65535, %v13247_v61  ;;  %v5632_v34 = vpack.c.bf16 %v5914_v23, %v5913_v50  ;;  %v13254_v23 = vld [vmem:[#allocation171_spill] sm:$0xff]  ;;  %v13288_v35 = vld [vmem:[#allocation81_spill] sm:$0xff] }
 0x44c   :  { %v10686_v9 = vsel %vm4023_vm9, 1.0, %v12880_v12  ;;  %v10708_v19 = vsel %vm4010_vm10, 1.0, %v12880_v12  ;;  %v3015_v8 = vcvt.f32.s32 %v13254_v23  ;;  %v3254_v42 = vcvt.f32.s32 %v3253_v0  ;;  %v5916_v0 = vld [vmem:[%s11585_s0 + $0x98] sm:$0xff] }
 0x44d   :  { %13244 = vst [vmem:[#allocation177_spill] sm:$0xff] %v10686_v9  ;;  %v3002_v5 = vadd.s32 %v3001_v4, %v2999_v16  ;;  %3867 = vmin.xlane.f32.xlu1 %v3866_v62  ;;  %13248 = vst [vmem:[#allocation243_spill] sm:$0xff] %v10708_v19  ;;  %v13252_v16 = vld [vmem:[#allocation222_spill] sm:$0xff]  ;;  %v3876_v50 = vcvt.s32.f32 %v3874_v20  ;;  %5633 = vmatprep.subr.bf16.mxu1 %v5632_v34  ;;  %v13258_v19 = vpack.i.bf16 %v10244_v63, %v10255_v31  ;;  %v13261_v31 = vld [vmem:[#allocation183_spill] sm:$0xff] }
 0x44e   :  { %v10692_v6 = vpop.xlane.xlu1 %2982  ;;  %v10697_v49 = vpop.xlane.xlu0 %3282  ;;  %v3255_v62 = vcvt.f32.s32 %v13252_v16  ;;  %v3016_v34 = vshll.u32 %v3015_v8, 16  ;;  %vm3955_vm5 = vcmp.eq.f32.partialorder %v13288_v35, %v10640_v29  ;;  %v3825_v29 = vcvt.f32.s32 %v10406_v30 }
 0x44f   :  { %13245 = vst [vmem:[#allocation144_spill] sm:$0xff] %v10692_v6  ;;  %5787 = vxpose.xlu0.b32.cont [12/16] (narrow) %v13246_v39, 8  ;;  %vm4026_vm11 = vcmp.eq.s32.totalorder %v7679_v40, %v3002_v5  ;;  %v13253_v39 = vpack.i.bf16 %v10272_v43, %v10283_v55  ;;  %v3881_v4 = vsel %vm3880_vm12, %v3876_v50, inf  ;;  %v13259_v55 = vld [vmem:[#allocation151_spill] sm:$0xff]  ;;  %v13263_v50 = vld [vmem:[#allocation122_spill] sm:$0xff]  ;;  %vm4053_vm1 = vcmp.eq.s32.totalorder %v7679_v40, %v10673_v13 }
 0x450   :  { %v10711_v52 = vsel %vm4026_vm11, 1.0, %v12880_v12  ;;  %v3256_v16 = vshll.u32 %v3255_v62, 16  ;;  %v3889_v20 = vand.u32 65535, %v13259_v55  ;;  %v13260_v62 = vld [vmem:[#allocation167_spill] sm:$0xff]  ;;  %v3826_v36 = vshll.u32 %v3825_v29, 16 }
 0x451   :  { %13249 = vst [vmem:[#allocation250_spill] sm:$0xff] %v10711_v52  ;;  %3627 = vmin.xlane.f32.xlu1 %v13251_v26  ;;  %v13257_v26 = vpack.c.bf16 %v13255_v7, %v13256_v45  ;;  %v5915_v45 = vld [vmem:[%s11585_s0 + $0x90] sm:$0xff]  ;;  %vm3895_vm13 = vcmp.eq.f32.partialorder %v13260_v62, %v10530_v44  ;;  %v3435_v7 = vcvt.f32.s32 %v13263_v50  ;;  %v3465_v62 = vcvt.f32.s32 %v10179_v58 }
 0x452   :  { %v10719_v5 = vpop.xlane.xlu1 %3027  ;;  %v10724_v61 = vpop.xlane.xlu0 %3312  ;;  %v3257_v23 = vadd.s32 %v3256_v16, %v3254_v42  ;;  %v13262_v42 = vpack.i.bf16 %v10329_v11, %v10340_v25  ;;  %v13265_v16 = vld [vmem:[#allocation10_spill] sm:$0xff]  ;;  %v13267_v25 = vpack.i.bf16 %v10300_v15, %v10313_v53  ;;  %v13269_v53 = vld [vmem:[#allocation103_spill] sm:$0xff]  ;;  %v3181_v6 = vshll.u32 %v3180_v37, 16 }
 0x453   :  { %5789 = vxpose.xlu0.b32.cont [13/16] (narrow) %v13253_v39, 8  ;;  %5635 = vmatpush3.bf16.msra.mxu1 %v13257_v26  ;;  %v13264_v26 = vld [vmem:[#allocation11_spill] sm:$0xff]  ;;  %vm3910_vm2 = vcmp.eq.f32.partialorder %v13269_v53, %v10553_v46  ;;  %v13275_v53 = vld [vmem:[#allocation213_spill] sm:$0xff] }
 0x454   :  { %v13266_v55 = vpack.c.bf16 %v13264_v26, %v13265_v16  ;;  %vm4043_vm15 = vcmp.eq.s32.totalorder %v7679_v40, %v3257_v23  ;;  %v13282_v46 = vld [vmem:[#allocation129_spill] sm:$0xff] }
 0x455   :  { %3882 = vmin.xlane.f32.xlu1 %v3881_v4  ;;  %v5636_v4 = vpack.c.bf16 %v5916_v0, %v5915_v45  ;;  %v13268_v45 = vld [vmem:[#allocation168_spill] sm:$0xff]  ;;  %vm3940_vm4 = vcmp.eq.f32.partialorder %v13282_v46, %v10608_v10  ;;  %v5922_v46 = vld [vmem:[%s11585_s0 + $0xc8] sm:$0xff] }
 0x456   :  { %v3013_v52 = vpop.xlane.xlu1 %3012  ;;  %v10733_v43 = vpop.xlane.xlu0 %3342  ;;  %v3904_v0 = vand.u32 65535, %v13268_v45  ;;  %v13273_v45 = vld [vmem:[#allocation12_spill] sm:$0xff] }
 0x457   :  { %5791 = vxpose.xlu0.b32.cont [14/16] (narrow) %v13258_v19, 8  ;;  %v3014_v39 = vcvt.f32.s32 %v3013_v52  ;;  %v3891_v52 = vcvt.s32.f32 %v3889_v20  ;;  %5637 = vmatprep.subr.bf16.mxu1 %v5636_v4  ;;  %v3436_v4 = vshll.u32 %v3435_v7, 16  ;;  %v13270_v7 = vld [vmem:[#allocation92_spill] sm:$0xff] }
 0x458   :  { %5639 = vmatpush3.bf16.msra.mxu1 %v13266_v55  ;;  %v3906_v16 = vcvt.s32.f32 %v3904_v0  ;;  %v3466_v55 = vshll.u32 %v3465_v62, 16  ;;  %v3735_v0 = vcvt.f32.s32 %v10263_v32  ;;  %v5919_v32 = vld [vmem:[%s11585_s0 + $0xb0] sm:$0xff] }
 0x459   :  { %v3017_v63 = vadd.s32 %v3016_v34, %v3014_v39  ;;  %3642 = vmin.xlane.f32.xlu1 %v13261_v31  ;;  %v3896_v34 = vsel %vm3895_vm13, %v3891_v52, inf  ;;  %v5121_v31 = vsel %vm4043_vm15, 1.0, %v12880_v12  ;;  %v5918_v52 = vld [vmem:[%s11585_s0 + $0xa8] sm:$0xff] }
 0x45a   :  { %v10745_v19 = vpop.xlane.xlu1 %3057  ;;  %v10750_v8 = vpop.xlane.xlu0 %3372 }
 0x45b   :  { %5793 = vxpose.xlu0.b32.cont [15/16] (narrow) %v13262_v42, 8  ;;  %vm4027_vm14 = vcmp.eq.s32.totalorder %v7679_v40, %v3017_v63  ;;  %v5917_v42 = vld [vmem:[%s11585_s0 + $0xa0] sm:$0xff] }
 0x45c   :  { %v5105_v39 = vsel %vm4027_vm14, 1.0, %v12880_v12  ;;  %v5640_v15 = vpack.c.bf16 %v5918_v52, %v5917_v42  ;;  %v3911_v42 = vsel %vm3910_vm2, %v3906_v16, inf }
 0x45d   :  { %3897 = vmin.xlane.f32.xlu1 %v3896_v34  ;;  %v5838_v23 = vpack.i.bf16 %v5105_v39, %v5121_v31  ;;  %v13271_v34 = vld [vmem:[#allocation73_spill] sm:$0xff] }
 0x45e   :  { %v10759_v11 = vpop.xlane.xlu1 %3042  ;;  %v3433_v20 = vpop.xlane.xlu0 %3432  ;;  %5641 = vmatprep.subr.bf16.mxu1 %v5640_v15  ;;  %v3480_v39 = vcvt.f32.s32 %v13271_v34  ;;  %v13276_v15 = vld [vmem:[#allocation215_spill] sm:$0xff] }
 0x45f   :  { %5795 = vxpose.xlu0.b32.end [16/16] (narrow) %v13267_v25, 8  ;;  %v3434_v63 = vcvt.f32.s32 %v3433_v20  ;;  %v13272_v20 = vld [vmem:[#allocation13_spill] sm:$0xff]  ;;  %vm3925_vm3 = vcmp.eq.f32.partialorder %v13276_v15, %v10582_v56  ;;  %v13277_v34 = vld [vmem:[#allocation263_spill] sm:$0xff]  ;;  %v3765_v15 = vcvt.f32.s32 %v10348_v41 }
 0x460   :  { %v13274_v31 = vpack.c.bf16 %v13272_v20, %v13273_v45  ;;  %v3736_v20 = vshll.u32 %v3735_v0, 16  ;;  %v3750_v45 = vcvt.f32.s32 %v10302_v38  ;;  %v13278_v0 = vld [vmem:[#allocation212_spill] sm:$0xff] }
 0x461   :  { %v10775_v50 = vadd.s32 %v3436_v4, %v3434_v63  ;;  %3657 = vmin.xlane.f32.xlu1 %v13270_v7  ;;  %v3481_v7 = vshll.u32 %v3480_v39, 16  ;;  %v5920_v39 = vld [vmem:[%s11585_s0 + $0xb8] sm:$0xff] }
 0x462   :  { %v10778_v58 = vpop.xlane.xlu1 %3087  ;;  %v3463_v26 = vpop.xlane.xlu0 %3462  ;;  %5643 = vmatpush3.bf16.msra.mxu1 %v13274_v31  ;;  %v3751_v38 = vshll.u32 %v3750_v45, 16  ;;  %v3780_v45 = vcvt.f32.s32 %v10365_v33 }
 0x463   :  { %5839 = vxpose.xlu0.b32.start [1/16] (narrow) %v5838_v23, 8  ;;  %v3464_v25 = vcvt.f32.s32 %v3463_v26  ;;  %v3919_v23 = vand.u32 65535, %v13275_v53  ;;  %vm4055_vm7 = vcmp.eq.s32.totalorder %v7679_v40, %v10775_v50  ;;  %v5927_v50 = vld [vmem:[%s11585_s0 + $0xf0] sm:$0xff] }
 0x464   :  { %v3781_v33 = vshll.u32 %v3780_v45, 16 }
 0x465   :  { %v10784_v52 = vadd.s32 %v3466_v55, %v3464_v25  ;;  %3912 = vmin.xlane.f32.xlu1 %v3911_v42  ;;  %v3921_v25 = vcvt.s32.f32 %v3919_v23 }
 0x466   :  { %v10786_v4 = vpop.xlane.xlu1 %3072  ;;  %v3478_v63 = vpop.xlane.xlu0 %3477 }
 0x467   :  { %v3479_v62 = vcvt.f32.s32 %v3478_v63  ;;  %v3926_v42 = vsel %vm3925_vm3, %v3921_v25, inf  ;;  %v5644_v63 = vpack.c.bf16 %v5920_v39, %v5919_v32  ;;  %v13280_v25 = vld [vmem:[#allocation14_spill] sm:$0xff] }
 0x469   :  { %v10792_v26 = vadd.s32 %v3481_v7, %v3479_v62  ;;  %3672 = vmin.xlane.f32.xlu1 %v13277_v34  ;;  %v3934_v62 = vand.u32 65535, %v13278_v0  ;;  %5645 = vmatprep.subr.bf16.mxu1 %v5644_v63  ;;  %v3766_v63 = vshll.u32 %v3765_v15, 16  ;;  %v13284_v15 = vld [vmem:[#allocation130_spill] sm:$0xff] }
 0x46a   :  { %v10795_v16 = vpop.xlane.xlu1 %3117  ;;  %v3733_v55 = vpop.xlane.xlu0 %3732 }
 0x46b   :  { %v3734_v31 = vcvt.f32.s32 %v3733_v55  ;;  %v13279_v55 = vld [vmem:[#allocation15_spill] sm:$0xff]  ;;  %v3936_v39 = vcvt.s32.f32 %v3934_v62 }
 0x46c   :  { %v13281_v56 = vpack.c.bf16 %v13279_v55, %v13280_v25  ;;  %v3949_v55 = vand.u32 65535, %v13284_v15  ;;  %v3795_v25 = vcvt.f32.s32 %v10379_v27  ;;  %v3810_v27 = vcvt.f32.s32 %v10393_v2 }
 0x46d   :  { %v10804_v53 = vadd.s32 %v3736_v20, %v3734_v31  ;;  %3927 = vmin.xlane.f32.xlu1 %v3926_v42  ;;  %v13283_v31 = vld [vmem:[#allocation96_spill] sm:$0xff] }
 0x46e   :  { %v10806_v7 = vpop.xlane.xlu1 %3102  ;;  %v3748_v23 = vpop.xlane.xlu0 %3747  ;;  %5647 = vmatpush3.bf16.msra.mxu1 %v13281_v56  ;;  %v5921_v56 = vld [vmem:[%s11585_s0 + $0xc0] sm:$0xff]  ;;  %v3951_v45 = vcvt.s32.f32 %v3949_v55  ;;  %v3796_v15 = vshll.u32 %v3795_v25, 16 }
 0x46f   :  { %v3749_v34 = vcvt.f32.s32 %v3748_v23  ;;  %v3941_v23 = vsel %vm3940_vm4, %v3936_v39, inf  ;;  %v5648_v0 = vpack.c.bf16 %v5922_v46, %v5921_v56  ;;  %v13286_v39 = vld [vmem:[#allocation18_spill] sm:$0xff] }
 0x470   :  { %v3956_v44 = vsel %vm3955_vm5, %v3951_v45, inf  ;;  %v5923_v45 = vld [vmem:[%s11585_s0 + $0xd0] sm:$0xff] }
 0x471   :  { %v10815_v20 = vadd.s32 %v3751_v38, %v3749_v34  ;;  %3687 = vmin.xlane.f32.xlu1 %v13283_v31  ;;  %5649 = vmatprep.subr.bf16.mxu1 %v5648_v0 }
 0x472   :  { %v10818_v42 = vpop.xlane.xlu1 %3147  ;;  %v3763_v32 = vpop.xlane.xlu0 %3762 }
 0x473   :  { %v3764_v41 = vcvt.f32.s32 %v3763_v32  ;;  %v13285_v32 = vld [vmem:[#allocation19_spill] sm:$0xff] }
 0x474   :  { %v13287_v10 = vpack.c.bf16 %v13285_v32, %v13286_v39  ;;  %v3270_v32 = vcvt.f32.s32 %v13291_v3 }
 0x475   :  { %v10827_v38 = vadd.s32 %v3766_v63, %v3764_v41  ;;  %3942 = vmin.xlane.f32.xlu1 %v3941_v23  ;;  %v13289_v41 = vld [vmem:[#allocation189_spill] sm:$0xff]  ;;  %v13290_v23 = vld [vmem:[#allocation195_spill] sm:$0xff] }
 0x476   :  { %v10829_v34 = vpop.xlane.xlu1 %3132  ;;  %v3778_v62 = vpop.xlane.xlu0 %3777  ;;  %5651 = vmatpush3.bf16.msra.mxu1 %v13287_v10  ;;  %v3165_v56 = vcvt.f32.s32 %v13290_v23  ;;  %v13292_v10 = vld [vmem:[#allocation214_spill] sm:$0xff]  ;;  %v3811_v23 = vshll.u32 %v3810_v27, 16  ;;  %v10850_v25 = vshll.u32 %v3270_v32, 16  ;;  %v13296_v32 = vld [vmem:[#allocation64_spill] sm:$0xff] }
 0x477   :  { %v3779_v31 = vcvt.f32.s32 %v3778_v62  ;;  %v3300_v39 = vcvt.f32.s32 %v13292_v10  ;;  %v13297_v10 = vld [vmem:[#allocation109_spill] sm:$0xff] }
 0x479   :  { %v10838_v63 = vadd.s32 %v3781_v33, %v3779_v31  ;;  %3702 = vmin.xlane.f32.xlu1 %v13289_v41  ;;  %v3166_v33 = vshll.u32 %v3165_v56, 16  ;;  %v10852_v2 = vshll.u32 %v3300_v39, 16  ;;  %v3390_v39 = vcvt.f32.s32 %v13297_v10 }
 0x47a   :  { %v10842_v46 = vpop.xlane.xlu1 %3177  ;;  %v3793_v0 = vpop.xlane.xlu0 %3792 }
 0x47b   :  { %v3794_v62 = vcvt.f32.s32 %v3793_v0  ;;  %v13293_v0 = vld [vmem:[#allocation196_spill] sm:$0xff] }
 0x47c   :  { %v3330_v3 = vcvt.f32.s32 %v13293_v0  ;;  %v13299_v0 = vld [vmem:[#allocation128_spill] sm:$0xff] }
 0x47d   :  { %v10847_v35 = vadd.s32 %v3796_v15, %v3794_v62  ;;  %3957 = vmin.xlane.f32.xlu1 %v3956_v44  ;;  %v5924_v44 = vld [vmem:[%s11585_s0 + $0xd8] sm:$0xff]  ;;  %v3450_v18 = vcvt.f32.s32 %v13299_v0 }
 0x47e   :  { %v3163_v31 = vpop.xlane.xlu1 %3162  ;;  %v3808_v41 = vpop.xlane.xlu0 %3807  ;;  %v5652_v56 = vpack.c.bf16 %v5924_v44, %v5923_v45  ;;  %v13294_v15 = vld [vmem:[#allocation155_spill] sm:$0xff]  ;;  %v13301_v44 = vld [vmem:[#allocation126_spill] sm:$0xff]  ;;  %v10889_v29 = vshll.u32 %v3330_v3, 16 }
 0x47f   :  { %v3164_v9 = vcvt.f32.s32 %v3163_v31  ;;  %v3809_v55 = vcvt.f32.s32 %v3808_v41  ;;  %v3360_v27 = vcvt.f32.s32 %v13294_v15  ;;  %v13298_v31 = vld [vmem:[#allocation119_spill] sm:$0xff]  ;;  %v3195_v15 = vcvt.f32.s32 %v13301_v44 }
 0x480   :  { %v3420_v41 = vcvt.f32.s32 %v13298_v31  ;;  %5653 = vmatprep.subr.bf16.mxu1 %v5652_v56  ;;  %v13306_v31 = vld [vmem:[#allocation154_spill] sm:$0xff]  ;;  %v10887_v56 = vsel %vm4053_vm1, 1.0, %v12880_v12 }
 0x481   :  { %v3167_v30 = vadd.s32 %v3166_v33, %v3164_v9  ;;  %v10864_v62 = vadd.s32 %v3811_v23, %v3809_v55  ;;  %3717 = vmin.xlane.f32.xlu1 %v13296_v32  ;;  %v13302_v33 = vld [vmem:[#allocation23_spill] sm:$0xff]  ;;  %v13303_v23 = vld [vmem:[#allocation22_spill] sm:$0xff]  ;;  %v13305_v32 = vld [vmem:[#allocation208_spill] sm:$0xff]  ;;  %v3030_v0 = vcvt.f32.s32 %v13306_v31  ;;  %v3196_v59 = vshll.u32 %v3195_v15, 16 }
 0x482   :  { %v10871_v28 = vpop.xlane.xlu1 %3207  ;;  %v3823_v45 = vpop.xlane.xlu0 %3822  ;;  %v13304_v55 = vpack.c.bf16 %v13302_v33, %v13303_v23  ;;  %v3225_v10 = vcvt.f32.s32 %v13305_v32  ;;  %v10896_v33 = vshll.u32 %v3360_v27, 16  ;;  %v10898_v23 = vshll.u32 %v3390_v39, 16  ;;  %v13309_v31 = vld [vmem:[#allocation257_spill] sm:$0xff] }
 0x483   :  { %13295 = vst [vmem:[#allocation90_spill] sm:$0xff] %v10864_v62  ;;  %vm4037_vm6 = vcmp.eq.s32.totalorder %v7679_v40, %v3167_v30  ;;  %v3824_v9 = vcvt.f32.s32 %v3823_v45  ;;  %v3179_v30 = vcvt.f32.s32 %v10842_v46  ;;  %v3060_v1 = vcvt.f32.s32 %v13309_v31  ;;  %v5926_v46 = vld [vmem:[%s11585_s0 + $0xe8] sm:$0xff] }
 0x484   :  { %5655 = vmatpush3.bf16.msra.mxu1 %v13304_v55  ;;  %v10881_v47 = vsel %vm4037_vm6, 1.0, %v12880_v12  ;;  %v13308_v55 = vld [vmem:[#allocation239_spill] sm:$0xff]  ;;  %v10908_v39 = vshll.u32 %v3450_v18, 16  ;;  %v10910_v44 = vshll.u32 %v3225_v10, 16  ;;  %v3029_v31 = vcvt.f32.s32 %v10719_v5  ;;  %v13313_v10 = vld [vmem:[#allocation26_spill] sm:$0xff]  ;;  %v13315_v5 = vld [vmem:[#allocation260_spill] sm:$0xff] }
 0x485   :  { %v10892_v45 = vadd.s32 %v3826_v36, %v3824_v9  ;;  %v3045_v32 = vcvt.f32.s32 %v13308_v55  ;;  %v5925_v36 = vld [vmem:[%s11585_s0 + $0xe0] sm:$0xff]  ;;  %v3421_v9 = vshll.u32 %v3420_v41, 16  ;;  %v3031_v55 = vshll.u32 %v3030_v0, 16 }
 0x486   :  { %v3193_v13 = vpop.xlane.xlu1 %3192  ;;  %v5656_v27 = vpack.c.bf16 %v5926_v46, %v5925_v36  ;;  %v3182_v37 = vadd.s32 %v3181_v6, %v3179_v30  ;;  %v3044_v41 = vcvt.f32.s32 %v10759_v11  ;;  %v13312_v36 = vld [vmem:[#allocation27_spill] sm:$0xff]  ;;  %v3061_v0 = vshll.u32 %v3060_v1, 16 }
 0x487   :  { %13307 = vst [vmem:[#allocation80_spill] sm:$0xff] %v10892_v45  ;;  %v3194_v3 = vcvt.f32.s32 %v3193_v13  ;;  %v3046_v13 = vshll.u32 %v3045_v32, 16  ;;  %v3285_v45 = vcvt.f32.s32 %v13311_v51  ;;  %v13314_v46 = vpack.c.bf16 %v13312_v36, %v13313_v10 }
 0x488   :  { %5657 = vmatprep.subr.bf16.mxu1 %v5656_v27  ;;  %v3090_v62 = vcvt.f32.s32 %v13315_v5  ;;  %v3284_v30 = vcvt.f32.s32 %v10697_v49  ;;  %v10932_v51 = vsel %vm4055_vm7, 1.0, %v12880_v12  ;;  %v3032_v11 = vadd.s32 %v3031_v55, %v3029_v31 }
 0x489   :  { %v3197_v15 = vadd.s32 %v3196_v59, %v3194_v3  ;;  %5659 = vmatpush3.bf16.msra.mxu1 %v13314_v46  ;;  %v3105_v59 = vcvt.f32.s32 %v9907_v14  ;;  %vm4038_vm9 = vcmp.eq.s32.totalorder %v7679_v40, %v3182_v37  ;;  %v3076_v3 = vshll.u32 %v3075_v17, 16  ;;  %v13316_v46 = vld [vmem:[#allocation265_spill] sm:$0xff]  ;;  %v13317_v37 = vld [vmem:[#allocation227_spill] sm:$0xff] }
 0x48a   :  { %v3418_v18 = vpop.xlane.xlu1 %3417  ;;  %v3120_v14 = vcvt.f32.s32 %v9917_v60  ;;  %v3286_v49 = vshll.u32 %v3285_v45, 16  ;;  %v3047_v27 = vadd.s32 %v3046_v13, %v3044_v41  ;;  %v10950_v60 = vsel %vm4038_vm9, 1.0, %v12880_v12 }
 0x48b   :  { %vm4039_vm8 = vcmp.eq.s32.totalorder %v7679_v40, %v3197_v15  ;;  %v3419_v6 = vcvt.f32.s32 %v3418_v18  ;;  %v3091_v18 = vshll.u32 %v3090_v62, 16  ;;  %v10945_v31 = vshll.u32 %v3105_v59, 16 }
 0x48c   :  { %v10926_v22 = vsel %vm4039_vm8, 1.0, %v12880_v12  ;;  %v3287_v17 = vadd.s32 %v3286_v49, %v3284_v30  ;;  %vm4028_vm11 = vcmp.eq.s32.totalorder %v7679_v40, %v3032_v11  ;;  %v3059_v45 = vcvt.f32.s32 %v10745_v19  ;;  %v13318_v30 = vld [vmem:[#allocation31_spill] sm:$0xff] }
 0x48d   :  { %v3422_v1 = vadd.s32 %v3421_v9, %v3419_v6  ;;  %v5928_v9 = vld [vmem:[%s11585_s0 + $0xf8] sm:$0xff]  ;;  %v10960_v10 = vshll.u32 %v3120_v14, 16  ;;  %v3150_v5 = vcvt.f32.s32 %v13316_v46  ;;  %v3315_v6 = vcvt.f32.s32 %v13317_v37  ;;  %v5929_v14 = vld [vmem:[%s11585_s0 + $0x180] sm:$0xff] }
 0x48e   :  { %v3268_v15 = vpop.xlane.xlu1 %3267  ;;  %v5660_v55 = vpack.c.bf16 %v5928_v9, %v5927_v50  ;;  %vm4029_vm12 = vcmp.eq.s32.totalorder %v7679_v40, %v3047_v27  ;;  %v3074_v19 = vcvt.f32.s32 %v10786_v4  ;;  %vm4045_vm14 = vcmp.eq.s32.totalorder %v7679_v40, %v3287_v17 }
 0x48f   :  { %vm4054_vm10 = vcmp.eq.s32.totalorder %v7679_v40, %v3422_v1  ;;  %v3269_v36 = vcvt.f32.s32 %v3268_v15  ;;  %v13319_v1 = vld [vmem:[#allocation30_spill] sm:$0xff]  ;;  %v5930_v15 = vld [vmem:[%s11585_s0 + $0x188] sm:$0xff]  ;;  %v3314_v50 = vcvt.f32.s32 %v10724_v61  ;;  %v5106_v4 = vsel %vm4028_vm11, 1.0, %v12880_v12 }
 0x490   :  { %v10953_v62 = vsel %vm4054_vm10, 1.0, %v12880_v12  ;;  %5661 = vmatprep.subr.bf16.mxu1 %v5660_v55  ;;  %v13320_v49 = vpack.c.bf16 %v13318_v30, %v13319_v1  ;;  %v3062_v55 = vadd.s32 %v3061_v0, %v3059_v45  ;;  %v3316_v1 = vshll.u32 %v3315_v6, 16 }
 0x491   :  { %v3272_v13 = vadd.s32 %v10850_v25, %v3269_v36  ;;  %v5860_v41 = vpack.i.bf16 %v10950_v60, %v10953_v62  ;;  %v5664_v36 = vpack.c.bf16 %v5930_v15, %v5929_v14  ;;  %v5107_v61 = vsel %vm4029_vm12, 1.0, %v12880_v12  ;;  %v13360_v62 = vld [vmem:[#allocation53_spill] sm:$0xff] }
 0x492   :  { %v3298_v59 = vpop.xlane.xlu1 %3297  ;;  %5663 = vmatpush3.bf16.msra.mxu1 %v13320_v49  ;;  %v13322_v49 = vld [vmem:[#allocation194_spill] sm:$0xff]  ;;  %v3077_v11 = vadd.s32 %v3076_v3, %v3074_v19  ;;  %v3149_v32 = vcvt.f32.s32 %v10818_v42  ;;  %v3317_v0 = vadd.s32 %v3316_v1, %v3314_v50  ;;  %v3344_v45 = vcvt.f32.s32 %v10733_v43  ;;  %v13323_v19 = vld [vmem:[#allocation224_spill] sm:$0xff] }
 0x493   :  { %vm4044_vm13 = vcmp.eq.s32.totalorder %v7679_v40, %v3272_v13  ;;  %v3299_v25 = vcvt.f32.s32 %v3298_v59  ;;  %v3089_v13 = vcvt.f32.s32 %v10778_v58  ;;  %5665 = vmatprep.subr.bf16.mxu1 %v5664_v36  ;;  %v13321_v59 = vld [vmem:[#allocation262_spill] sm:$0xff]  ;;  %v3345_v14 = vcvt.f32.s32 %v13322_v49 }
 0x494   :  { %v5122_v9 = vsel %vm4044_vm13, 1.0, %v12880_v12  ;;  %v3135_v30 = vcvt.f32.s32 %v13321_v59  ;;  %v5123_v6 = vsel %vm4045_vm14, 1.0, %v12880_v12  ;;  %vm4030_vm2 = vcmp.eq.s32.totalorder %v7679_v40, %v3062_v55 }
 0x495   :  { %v3302_v46 = vadd.s32 %v10852_v2, %v3299_v25  ;;  %v5840_v37 = vpack.i.bf16 %v5106_v4, %v5122_v9  ;;  %v3151_v2 = vshll.u32 %v3150_v5, 16  ;;  %v3092_v25 = vadd.s32 %v3091_v18, %v3089_v13  ;;  %v13324_v4 = vld [vmem:[#allocation115_spill] sm:$0xff] }
 0x496   :  { %v3328_v15 = vpop.xlane.xlu1 %3327  ;;  %v3104_v27 = vcvt.f32.s32 %v10806_v7  ;;  %v5842_v3 = vpack.i.bf16 %v5107_v61, %v5123_v6  ;;  %v3210_v42 = vcvt.f32.s32 %v13323_v19  ;;  %v3346_v36 = vshll.u32 %v3345_v14, 16 }
 0x497   :  { %vm4046_vm15 = vcmp.eq.s32.totalorder %v7679_v40, %v3302_v46  ;;  %v3329_v58 = vcvt.f32.s32 %v3328_v15  ;;  %5841 = vxpose.xlu0.b32.cont [2/16] (narrow) %v5840_v37, 8  ;;  %v3375_v9 = vcvt.f32.s32 %v13324_v4  ;;  %v3136_v50 = vshll.u32 %v3135_v30, 16 }
 0x498   :  { %v5124_v5 = vsel %vm4046_vm15, 1.0, %v12880_v12  ;;  %vm4031_vm3 = vcmp.eq.s32.totalorder %v7679_v40, %v3077_v11  ;;  %v3152_v43 = vadd.s32 %v3151_v2, %v3149_v32  ;;  %vm4047_vm4 = vcmp.eq.s32.totalorder %v7679_v40, %v3317_v0 }
 0x499   :  { %v3332_v17 = vadd.s32 %v10889_v29, %v3329_v58  ;;  %v3347_v18 = vadd.s32 %v3346_v36, %v3344_v45  ;;  %v3209_v7 = vcvt.f32.s32 %v10871_v28  ;;  %v5108_v13 = vsel %vm4030_vm2, 1.0, %v12880_v12  ;;  %v5932_v36 = vld [vmem:[%s11585_s0 + $0x198] sm:$0xff] }
 0x49a   :  { %v3358_v46 = vpop.xlane.xlu1 %3357  ;;  %vm4032_vm5 = vcmp.eq.s32.totalorder %v7679_v40, %v3092_v25  ;;  %v3119_v37 = vcvt.f32.s32 %v10795_v16  ;;  %v3107_v59 = vadd.s32 %v10945_v31, %v3104_v27  ;;  %v5844_v30 = vpack.i.bf16 %v5108_v13, %v5124_v5 }
 0x49b   :  { %5843 = vxpose.xlu0.b32.cont [3/16] (narrow) %v5842_v3, 8  ;;  %v3211_v32 = vshll.u32 %v3210_v42, 16  ;;  %v3376_v1 = vshll.u32 %v3375_v9, 16  ;;  %v3359_v29 = vcvt.f32.s32 %v3358_v46  ;;  %v5109_v14 = vsel %vm4031_vm3, 1.0, %v12880_v12  ;;  %v5931_v42 = vld [vmem:[%s11585_s0 + $0x190] sm:$0xff] }
 0x49c   :  { %vm4036_vm1 = vcmp.eq.s32.totalorder %v7679_v40, %v3152_v43  ;;  %vm4048_vm6 = vcmp.eq.s32.totalorder %v7679_v40, %v3332_v17  ;;  %v5125_v16 = vsel %vm4047_vm4, 1.0, %v12880_v12  ;;  %vm4049_vm7 = vcmp.eq.s32.totalorder %v7679_v40, %v3347_v18  ;;  %v13325_v9 = vld [vmem:[#allocation98_spill] sm:$0xff] }
 0x49d   :  { %v3374_v31 = vcvt.f32.s32 %v10750_v8  ;;  %v3212_v55 = vadd.s32 %v3211_v32, %v3209_v7  ;;  %v5110_v15 = vsel %vm4032_vm5, 1.0, %v12880_v12  ;;  %v3122_v61 = vadd.s32 %v10960_v10, %v3119_v37 }
 0x49e   :  { %v3388_v49 = vpop.xlane.xlu1 %3387  ;;  %vm4033_vm8 = vcmp.eq.s32.totalorder %v7679_v40, %v3107_v59  ;;  %v5846_v58 = vpack.i.bf16 %v5109_v14, %v5125_v16  ;;  %v3134_v2 = vcvt.f32.s32 %v10829_v34  ;;  %v3362_v0 = vadd.s32 %v10896_v33, %v3359_v29  ;;  %v13327_v59 = vld [vmem:[#allocation40_spill] sm:$0xff]  ;;  %v5934_v14 = vld [vmem:[%s11585_s0 + $0x1a8] sm:$0xff] }
 0x49f   :  { %v3389_v28 = vcvt.f32.s32 %v3388_v49  ;;  %5845 = vxpose.xlu0.b32.cont [4/16] (narrow) %v5844_v30, 8  ;;  %v5126_v6 = vsel %vm4048_vm6, 1.0, %v12880_v12  ;;  %v11032_v8 = vsel %vm4036_vm1, 1.0, %v12880_v12  ;;  %vm4040_vm10 = vcmp.eq.s32.totalorder %v7679_v40, %v3212_v55  ;;  %v5933_v49 = vld [vmem:[%s11585_s0 + $0x1a0] sm:$0xff] }
 0x4a0   :  { %v5848_v3 = vpack.i.bf16 %v5110_v15, %v5126_v6  ;;  %v5668_v4 = vpack.c.bf16 %v5932_v36, %v5931_v42  ;;  %v3240_v46 = vcvt.f32.s32 %v13325_v9  ;;  %v3377_v5 = vadd.s32 %v3376_v1, %v3374_v31  ;;  %v13329_v31 = vld [vmem:[#allocation229_spill] sm:$0xff]  ;;  %v13331_v6 = vld [vmem:[#allocation42_spill] sm:$0xff] }
 0x4a1   :  { %v3392_v11 = vadd.s32 %v10898_v23, %v3389_v28  ;;  %v5127_v17 = vsel %vm4049_vm7, 1.0, %v12880_v12  ;;  %v3137_v7 = vadd.s32 %v3136_v50, %v3134_v2  ;;  %vm4050_vm11 = vcmp.eq.s32.totalorder %v7679_v40, %v3362_v0  ;;  %v13326_v50 = vld [vmem:[#allocation41_spill] sm:$0xff] }
 0x4a2   :  { %v3448_v45 = vpop.xlane.xlu1 %3447  ;;  %vm4057_vm13 = vcmp.eq.s32.totalorder %v7679_v40, %v10784_v52  ;;  %vm4034_vm14 = vcmp.eq.s32.totalorder %v7679_v40, %v3122_v61  ;;  %v11063_v37 = vsel %vm4040_vm10, 1.0, %v12880_v12  ;;  %v13328_v30 = vpack.c.bf16 %v13326_v50, %v13327_v59  ;;  %v5935_v61 = vld [vmem:[%s11585_s0 + $0x1b0] sm:$0xff]  ;;  %v5936_v52 = vld [vmem:[%s11585_s0 + $0x1b8] sm:$0xff] }
 0x4a3   :  { %v5796_v25 = vpop.trf.xlu0  ;;  %vm4052_vm9 = vcmp.eq.s32.totalorder %v7679_v40, %v3392_v11  ;;  %v3449_v10 = vcvt.f32.s32 %v3448_v45  ;;  %5847 = vxpose.xlu0.b32.cont [5/16] (narrow) %v5846_v58, 8  ;;  %v5672_v28 = vpack.c.bf16 %v5934_v14, %v5933_v49  ;;  %v3241_v16 = vshll.u32 %v3240_v46, 16  ;;  %v13330_v45 = vld [vmem:[#allocation43_spill] sm:$0xff] }
 0x4a4   :  { %v5800_v27 = vunpack.i.h.bf16 %v5796_v25  ;;  %v11037_v34 = vsel %vm4052_vm9, 1.0, %v12880_v12  ;;  %v5797_v33 = vunpack.i.l.bf16 %v5796_v25  ;;  %v3495_v55 = vcvt.f32.s32 %v13329_v31 }
 0x4a5   :  { %v3452_v23 = vadd.s32 %v10908_v39, %v3449_v10  ;;  %v5856_v19 = vpack.i.bf16 %v11032_v8, %v11037_v34  ;;  %v5111_v39 = vsel %vm4033_vm8, 1.0, %v12880_v12  ;;  %vm4051_vm15 = vcmp.eq.s32.totalorder %v7679_v40, %v3377_v5  ;;  %v5937_v5 = vld [vmem:[%s11585_s0 + $0x1c0] sm:$0xff] }
 0x4a6   :  { %v3223_v43 = vpop.xlane.xlu1 %3222  ;;  %4668 = vmatprep.mubr.f32.mxu1 %v5797_v33  ;;  %v5850_v1 = vpack.i.bf16 %v5111_v39, %v5127_v17  ;;  %vm4035_vm2 = vcmp.eq.s32.totalorder %v7679_v40, %v3137_v7  ;;  %vm4058_vm4 = vcmp.eq.s32.totalorder %v7679_v40, %v10792_v26  ;;  %v5112_v58 = vsel %vm4034_vm14, 1.0, %v12880_v12  ;;  %v13334_v7 = vld [vmem:[#allocation45_spill] sm:$0xff]  ;;  %v5941_v34 = vld [vmem:[%s11585_s0 + $0x1e0] sm:$0xff] }
 0x4a7   :  { %vm4056_vm12 = vcmp.eq.s32.totalorder %v7679_v40, %v3452_v23  ;;  %v3224_v13 = vcvt.f32.s32 %v3223_v43  ;;  %5849 = vxpose.xlu0.b32.cont [6/16] (narrow) %v5848_v3, 8  ;;  %4669 = vmatmul.mubr.f32.vlgmr.msra.gmra.mrb[38].mxu1 %v5800_v27  ;;  %v11099_v0 = vsel %vm4057_vm13, 1.0, %v12880_v12  ;;  %v13332_v25 = vpack.c.bf16 %v13330_v45, %v13331_v6  ;;  %v5938_v26 = vld [vmem:[%s11585_s0 + $0x1c8] sm:$0xff]  ;;  %v13341_v45 = vld [vmem:[#allocation47_spill] sm:$0xff]  ;;  %v13342_v6 = vld [vmem:[#allocation46_spill] sm:$0xff] }
 0x4a8   :  { %v11066_v18 = vsel %vm4056_vm12, 1.0, %v12880_v12  ;;  %5667 = vmatpush3.bf16.msra.mxu1 %v13328_v30  ;;  %v5676_v23 = vpack.c.bf16 %v5936_v52, %v5935_v61  ;;  %v5113_v42 = vsel %vm4035_vm2, 1.0, %v12880_v12  ;;  %v3496_v36 = vshll.u32 %v3495_v55, 16  ;;  %v13338_v55 = vld [vmem:[#allocation102_spill] sm:$0xff] }
 0x4a9   :  { %v3227_v32 = vadd.s32 %v10910_v44, %v3224_v13  ;;  %v5864_v29 = vpack.i.bf16 %v11063_v37, %v11066_v18  ;;  %5669 = vmatprep.subr.bf16.mxu1 %v5668_v4  ;;  %v5128_v44 = vsel %vm4050_vm11, 1.0, %v12880_v12  ;;  %v13333_v4 = vld [vmem:[#allocation211_spill] sm:$0xff]  ;;  %vm4075_vm1 = vcmp.eq.s32.totalorder %v7679_v40, %v10804_v53  ;;  %v13335_v13 = vld [vmem:[#allocation44_spill] sm:$0xff]  ;;  %v5939_v61 = vld [vmem:[%s11585_s0 + $0x1d0] sm:$0xff] }
 0x4aa   :  { %v3238_v15 = vpop.xlane.xlu1 %3237  ;;  %v5852_v27 = vpack.i.bf16 %v5112_v58, %v5128_v44  ;;  %v3510_v9 = vcvt.f32.s32 %v13333_v4  ;;  %v5129_v43 = vsel %vm4051_vm15, 1.0, %v12880_v12  ;;  %v11129_v17 = vsel %vm4058_vm4, 1.0, %v12880_v12  ;;  %v5940_v53 = vld [vmem:[%s11585_s0 + $0x1d8] sm:$0xff]  ;;  %v13345_v4 = vld [vmem:[#allocation252_spill] sm:$0xff]  ;;  %v13372_v37 = vld [vmem:[#allocation178_spill] sm:$0xff] }
 0x4ab   :  { %vm4041_vm3 = vcmp.eq.s32.totalorder %v7679_v40, %v3227_v32  ;;  %v3239_v11 = vcvt.f32.s32 %v3238_v15  ;;  %5851 = vxpose.xlu0.b32.cont [7/16] (narrow) %v5850_v1, 8  ;;  %v13336_v50 = vpack.c.bf16 %v13334_v7, %v13335_v13  ;;  %v5854_v30 = vpack.i.bf16 %v5113_v42, %v5129_v43  ;;  %v13339_v15 = vld [vmem:[#allocation234_spill] sm:$0xff]  ;;  %v13344_v42 = vld [vmem:[#allocation233_spill] sm:$0xff] }
 0x4ac   :  { %v11093_v2 = vsel %vm4041_vm3, 1.0, %v12880_v12  ;;  %5671 = vmatpush3.bf16.msra.mxu1 %v13332_v25  ;;  %v5680_v1 = vpack.c.bf16 %v5938_v26, %v5937_v5  ;;  %v3511_v14 = vshll.u32 %v3510_v9, 16  ;;  %v13340_v44 = vpack.i.bf16 %v13338_v55, %v13339_v15  ;;  %v13346_v9 = vld [vmem:[#allocation248_spill] sm:$0xff]  ;;  %v13348_v13 = vld [vmem:[#allocation49_spill] sm:$0xff]  ;;  %v13354_v15 = vld [vmem:[#allocation51_spill] sm:$0xff] }
 0x4ad   :  { %v3242_v10 = vadd.s32 %v3241_v16, %v3239_v11  ;;  %v5866_v33 = vpack.i.bf16 %v11093_v2, %v11099_v0  ;;  %5673 = vmatprep.subr.bf16.mxu1 %v5672_v28  ;;  %v13337_v28 = vld [vmem:[#allocation120_spill] sm:$0xff]  ;;  %v11154_v58 = vsel %vm4075_vm1, 1.0, %v12880_v12  ;;  %v13343_v25 = vpack.c.bf16 %v13341_v45, %v13342_v6  ;;  %v13377_v0 = vld [vmem:[#allocation139_spill] sm:$0xff] }
 0x4ae   :  { %v3493_v3 = vpop.xlane.xlu1 %3492  ;;  %v3525_v16 = vcvt.f32.s32 %v13337_v28  ;;  %vm4076_vm7 = vcmp.eq.s32.totalorder %v7679_v40, %v10815_v20  ;;  %v5684_v52 = vpack.c.bf16 %v5940_v53, %v5939_v61  ;;  %vm4077_vm9 = vcmp.eq.s32.totalorder %v7679_v40, %v10827_v38  ;;  %v13357_v61 = vld [vmem:[#allocation106_spill] sm:$0xff] }
 0x4af   :  { %vm4042_vm5 = vcmp.eq.s32.totalorder %v7679_v40, %v3242_v10  ;;  %v3494_v46 = vcvt.f32.s32 %v3493_v3  ;;  %5853 = vxpose.xlu0.b32.cont [8/16] (narrow) %v5852_v27, 8  ;;  %v11181_v7 = vsel %vm4076_vm7, 1.0, %v12880_v12  ;;  %v13352_v28 = vpack.i.bf16 %v10881_v47, %v10887_v56 }
 0x4b0   :  { %v11123_v39 = vsel %vm4042_vm5, 1.0, %v12880_v12  ;;  %5675 = vmatpush3.bf16.msra.mxu1 %v13336_v50  ;;  %v3526_v3 = vshll.u32 %v3525_v16, 16  ;;  %v13349_v50 = vld [vmem:[#allocation48_spill] sm:$0xff]  ;;  %v13353_v16 = vpack.i.bf16 %v10504_v54, %v10507_v21  ;;  %v11208_v55 = vsel %vm4077_vm9, 1.0, %v12880_v12  ;;  %v5943_v54 = vld [vmem:[%s11585_s0 + $0x1f0] sm:$0xff]  ;;  %v5944_v21 = vld [vmem:[%s11585_s0 + $0x1f8] sm:$0xff] }
 0x4b1   :  { %v3497_v59 = vadd.s32 %v3496_v36, %v3494_v46  ;;  %v5868_v32 = vpack.i.bf16 %v11123_v39, %v11129_v17  ;;  %5677 = vmatprep.subr.bf16.mxu1 %v5676_v23  ;;  %v3540_v36 = vcvt.f32.s32 %v13344_v42  ;;  %v13347_v46 = vpack.i.bf16 %v13345_v4, %v13346_v9  ;;  %v13381_v39 = vld [vmem:[#allocation79_spill] sm:$0xff]  ;;  %v13382_v17 = vld [vmem:[#allocation174_spill] sm:$0xff] }
 0x4b2   :  { %v3508_v49 = vpop.xlane.xlu1 %3507  ;;  %vm4078_vm11 = vcmp.eq.s32.totalorder %v7679_v40, %v10838_v63  ;;  %v5692_v56 = vpack.c.bf16 %v5944_v21, %v5943_v54  ;;  %v3570_v53 = vcvt.f32.s32 %v13357_v61  ;;  %vm4079_vm13 = vcmp.eq.s32.totalorder %v7679_v40, %v10847_v35  ;;  %v5948_v63 = vld [vmem:[%s11585_s0 + $0x288] sm:$0xff]  ;;  %v13371_v21 = vld [vmem:[#allocation80_spill] sm:$0xff] }
 0x4b3   :  { %vm4059_vm6 = vcmp.eq.s32.totalorder %v7679_v40, %v3497_v59  ;;  %v3509_v31 = vcvt.f32.s32 %v3508_v49  ;;  %5855 = vxpose.xlu0.b32.cont [9/16] (narrow) %v5854_v30, 8  ;;  %v13350_v59 = vpack.c.bf16 %v13348_v13, %v13349_v50  ;;  %v13351_v49 = vld [vmem:[#allocation235_spill] sm:$0xff]  ;;  %v11244_v60 = vsel %vm4078_vm11, 1.0, %v12880_v12  ;;  %v5947_v13 = vld [vmem:[%s11585_s0 + $0x280] sm:$0xff] }
 0x4b4   :  { %5802 = vxpose.xlu1.b32.start [1/16] (narrow) %v13340_v44, 8  ;;  %v11148_v11 = vsel %vm4059_vm6, 1.0, %v12880_v12  ;;  %5679 = vmatpush3.bf16.msra.mxu1 %v13343_v25  ;;  %v13355_v44 = vld [vmem:[#allocation50_spill] sm:$0xff]  ;;  %v5696_v50 = vpack.c.bf16 %v5948_v63, %v5947_v13  ;;  %vm4081_vm3 = vcmp.eq.s32.totalorder %v7679_v40, %v13371_v21  ;;  %v3600_v18 = vcvt.f32.s32 %v13372_v37  ;;  %v13389_v21 = vld [vmem:[#allocation181_spill] sm:$0xff] }
 0x4b5   :  { %v3512_v10 = vadd.s32 %v3511_v14, %v3509_v31  ;;  %v5875_v27 = vpack.i.bf16 %v11148_v11, %v11154_v58  ;;  %5681 = vmatprep.subr.bf16.mxu1 %v5680_v1  ;;  %v3541_v1 = vshll.u32 %v3540_v36, 16  ;;  %v3555_v14 = vcvt.f32.s32 %v13351_v49  ;;  %v13358_v36 = vld [vmem:[#allocation164_spill] sm:$0xff]  ;;  %v13385_v58 = vld [vmem:[#allocation141_spill] sm:$0xff] }
 0x4b6   :  { %v3523_v23 = vpop.xlane.xlu1 %3522  ;;  %v13356_v45 = vpack.c.bf16 %v13354_v15, %v13355_v44  ;;  %v11271_v49 = vsel %vm4079_vm13, 1.0, %v12880_v12  ;;  %v13368_v15 = vld [vmem:[#allocation172_spill] sm:$0xff]  ;;  %v13369_v44 = vld [vmem:[#allocation191_spill] sm:$0xff] }
 0x4b7   :  { %vm4060_vm8 = vcmp.eq.s32.totalorder %v7679_v40, %v3512_v10  ;;  %v3524_v20 = vcvt.f32.s32 %v3523_v23  ;;  %5857 = vxpose.xlu0.b32.cont [10/16] (narrow) %v5856_v19, 8  ;;  %v5942_v19 = vld [vmem:[%s11585_s0 + $0x1e8] sm:$0xff]  ;;  %v3556_v10 = vshll.u32 %v3555_v14, 16  ;;  %v5945_v23 = vld [vmem:[%s11585_s0 + $0x170] sm:$0xff] }
 0x4b8   :  { %5804 = vxpose.xlu1.b32.cont [2/16] (narrow) %v13347_v46, 8  ;;  %v11178_v43 = vsel %vm4060_vm8, 1.0, %v12880_v12  ;;  %5683 = vmatpush3.bf16.msra.mxu1 %v13350_v59  ;;  %v5688_v5 = vpack.c.bf16 %v5942_v19, %v5941_v34  ;;  %v13363_v34 = vld [vmem:[#allocation240_spill] sm:$0xff]  ;;  %v13366_v14 = vld [vmem:[#allocation90_spill] sm:$0xff] }
 0x4b9   :  { %v3527_v30 = vadd.s32 %v3526_v3, %v3524_v20  ;;  %v5877_v8 = vpack.i.bf16 %v11178_v43, %v11181_v7  ;;  %5685 = vmatprep.subr.bf16.mxu1 %v5684_v52  ;;  %v5946_v3 = vld [vmem:[%s11585_s0 + $0x178] sm:$0xff]  ;;  %v13359_v20 = vpack.i.bf16 %v10486_v48, %v13358_v36  ;;  %v3585_v19 = vcvt.f32.s32 %v13363_v34  ;;  %v13390_v43 = vld [vmem:[#allocation144_spill] sm:$0xff] }
 0x4ba   :  { %v3538_v26 = vpop.xlane.xlu1 %3537  ;;  %v5694_v42 = vpack.c.bf16 %v5946_v3, %v5945_v23  ;;  %vm4080_vm15 = vcmp.eq.s32.totalorder %v7679_v40, %v13366_v14  ;;  %v2984_v7 = vcvt.f32.s32 %v13390_v43  ;;  %v13408_v43 = vld [vmem:[#allocation237_spill] sm:$0xff] }
 0x4bb   :  { %vm4061_vm10 = vcmp.eq.s32.totalorder %v7679_v40, %v3527_v30  ;;  %v3539_v38 = vcvt.f32.s32 %v3538_v26  ;;  %5859 = vxpose.xlu0.b32.cont [11/16] (narrow) %v13352_v28, 8  ;;  %v3571_v30 = vshll.u32 %v3570_v53, 16  ;;  %v13365_v26 = vpack.i.bf16 %v10538_v57, %v10541_v24  ;;  %v13373_v53 = vld [vmem:[#allocation170_spill] sm:$0xff] }
 0x4bc   :  { %5806 = vxpose.xlu1.b32.cont [3/16] (narrow) %v13353_v16, 8  ;;  %v11205_v31 = vsel %vm4061_vm10, 1.0, %v12880_v12  ;;  %5687 = vmatpush3.bf16.msra.mxu1 %v13356_v45  ;;  %v13367_v16 = vld [vmem:[#allocation143_spill] sm:$0xff]  ;;  %v13370_v45 = vpack.i.bf16 %v13368_v15, %v13369_v44  ;;  %v11289_v54 = vsel %vm4080_vm15, 1.0, %v12880_v12  ;;  %v13388_v15 = vld [vmem:[#allocation150_spill] sm:$0xff] }
 0x4bd   :  { %v3542_v6 = vadd.s32 %v3541_v1, %v3539_v38  ;;  %v5879_v47 = vpack.i.bf16 %v11205_v31, %v11208_v55  ;;  %5689 = vmatprep.subr.bf16.mxu1 %v5688_v5  ;;  %v13364_v5 = vpack.i.bf16 %v10926_v22, %v10932_v51  ;;  %v3586_v51 = vshll.u32 %v3585_v19, 16  ;;  %v13395_v55 = vld [vmem:[#allocation173_spill] sm:$0xff] }
 0x4be   :  { %v3553_v25 = vpop.xlane.xlu1 %3552  ;;  %v3840_v57 = vcvt.f32.s32 %v13367_v16  ;;  %v2985_v44 = vcvt.f32.s32 %v13388_v15  ;;  %v13407_v15 = vld [vmem:[#allocation114_spill] sm:$0xff] }
 0x4bf   :  { %vm4062_vm12 = vcmp.eq.s32.totalorder %v7679_v40, %v3542_v6  ;;  %v3554_v52 = vcvt.f32.s32 %v3553_v25  ;;  %5861 = vxpose.xlu0.b32.cont [12/16] (narrow) %v5860_v41, 8  ;;  %v13361_v41 = vld [vmem:[#allocation52_spill] sm:$0xff] }
 0x4c0   :  { %5808 = vxpose.xlu1.b32.cont [4/16] (narrow) %v13359_v20, 8  ;;  %v11238_v4 = vsel %vm4062_vm12, 1.0, %v12880_v12  ;;  %v13362_v9 = vpack.c.bf16 %v13360_v62, %v13361_v41  ;;  %v3601_v41 = vshll.u32 %v3600_v18, 16  ;;  %v13392_v18 = vld [vmem:[#allocation83_spill] sm:$0xff] }
 0x4c1   :  { %v3557_v46 = vadd.s32 %v3556_v10, %v3554_v52  ;;  %v5881_v48 = vpack.i.bf16 %v11238_v4, %v11244_v60  ;;  %v13374_v52 = vld [vmem:[#allocation163_spill] sm:$0xff]  ;;  %v13399_v4 = vld [vmem:[#allocation69_spill] sm:$0xff] }
 0x4c2   :  { %5691 = vmatpush3.bf16.msra.mxu1 %v13362_v9  ;;  %v3568_v59 = vpop.xlane.xlu1 %3567  ;;  %v13375_v23 = vpack.i.bf16 %v13373_v53, %v13374_v52  ;;  %v13376_v9 = vld [vmem:[#allocation158_spill] sm:$0xff]  ;;  %v13400_v60 = vld [vmem:[#allocation177_spill] sm:$0xff] }
 0x4c3   :  { %5693 = vmatprep.subr.bf16.mxu1 %v5692_v56  ;;  %vm4063_vm14 = vcmp.eq.s32.totalorder %v7679_v40, %v3557_v46  ;;  %v3569_v35 = vcvt.f32.s32 %v3568_v59  ;;  %5863 = vxpose.xlu0.b32.cont [13/16] (narrow) %v13364_v5, 8  ;;  %v3855_v46 = vcvt.f32.s32 %v13376_v9  ;;  %v13380_v59 = vld [vmem:[#allocation258_spill] sm:$0xff]  ;;  %v13394_v9 = vld [vmem:[#allocation157_spill] sm:$0xff] }
 0x4c4   :  { %5810 = vxpose.xlu1.b32.cont [5/16] (narrow) %v13365_v26, 8  ;;  %v11268_v1 = vsel %vm4063_vm14, 1.0, %v12880_v12 }
 0x4c5   :  { %v3572_v38 = vadd.s32 %v3571_v30, %v3569_v35  ;;  %v5883_v28 = vpack.i.bf16 %v11268_v1, %v11271_v49  ;;  %v3615_v30 = vcvt.f32.s32 %v13380_v59  ;;  %v3856_v34 = vshll.u32 %v3855_v46, 16 }
 0x4c6   :  { %5695 = vmatpush3.bf16.msra.mxu1 %v5694_v42  ;;  %v3583_v22 = vpop.xlane.xlu1 %3582  ;;  %v11307_v42 = vsel %vm4081_vm3, 1.0, %v12880_v12  ;;  %v3885_v46 = vcvt.f32.s32 %v13394_v9 }
 0x4c7   :  { %5697 = vmatprep.subr.bf16.mxu1 %v5696_v50  ;;  %vm4064_vm2 = vcmp.eq.s32.totalorder %v7679_v40, %v3572_v38  ;;  %v3584_v24 = vcvt.f32.s32 %v3583_v22  ;;  %5865 = vxpose.xlu0.b32.cont [14/16] (narrow) %v5864_v29, 8  ;;  %v3841_v29 = vshll.u32 %v3840_v57, 16  ;;  %v3616_v22 = vshll.u32 %v3615_v30, 16 }
 0x4c8   :  { %5812 = vxpose.xlu1.b32.cont [6/16] (narrow) %v13370_v45, 8  ;;  %v11286_v6 = vsel %vm4064_vm2, 1.0, %v12880_v12  ;;  %v3886_v59 = vshll.u32 %v3885_v46, 16  ;;  %v13413_v46 = vld [vmem:[#allocation146_spill] sm:$0xff] }
 0x4c9   :  { %v3587_v56 = vadd.s32 %v3586_v51, %v3584_v24  ;;  %v5885_v25 = vpack.i.bf16 %v11286_v6, %v11289_v54  ;;  %v13384_v51 = vld [vmem:[#allocation232_spill] sm:$0xff] }
 0x4ca   :  { %v3838_v10 = vpop.xlane.xlu1 %3837  ;;  %v3870_v16 = vcvt.f32.s32 %v13384_v51  ;;  %v13404_v51 = vld [vmem:[#allocation169_spill] sm:$0xff] }
 0x4cb   :  { %vm4065_vm4 = vcmp.eq.s32.totalorder %v7679_v40, %v3587_v56  ;;  %v3839_v61 = vcvt.f32.s32 %v3838_v10  ;;  %5867 = vxpose.xlu0.b32.cont [15/16] (narrow) %v5866_v33, 8  ;;  %v13378_v33 = vld [vmem:[#allocation72_spill] sm:$0xff]  ;;  %v3630_v56 = vcvt.f32.s32 %v13389_v21 }
 0x4cc   :  { %5814 = vxpose.xlu1.b32.cont [7/16] (narrow) %v13375_v23, 8  ;;  %v11304_v3 = vsel %vm4065_vm4, 1.0, %v12880_v12  ;;  %v13379_v13 = vpack.i.bf16 %v13377_v0, %v13378_v33  ;;  %v3871_v10 = vshll.u32 %v3870_v16, 16  ;;  %v13405_v16 = vld [vmem:[#allocation249_spill] sm:$0xff] }
 0x4cd   :  { %v3842_v36 = vadd.s32 %v3841_v29, %v3839_v61  ;;  %v5887_v20 = vpack.i.bf16 %v11304_v3, %v11307_v42 }
 0x4ce   :  { %v3598_v62 = vpop.xlane.xlu1 %3597 }
 0x4cf   :  { %v3599_v2 = vcvt.f32.s32 %v3598_v62  ;;  %5869 = vxpose.xlu0.b32.end [16/16] (narrow) %v5868_v32, 8  ;;  %vm4082_vm5 = vcmp.eq.s32.totalorder %v7679_v40, %v3842_v36  ;;  %v13383_v32 = vpack.i.bf16 %v13381_v39, %v13382_v17  ;;  %v2986_v36 = vshll.u32 %v2985_v44, 16 }
 0x4d0   :  { %5816 = vxpose.xlu1.b32.cont [8/16] (narrow) %v13379_v13, 8  ;;  %v11331_v5 = vsel %vm4082_vm5, 1.0, %v12880_v12  ;;  %v3660_v44 = vcvt.f32.s32 %v13407_v15 }
 0x4d1   :  { %v3602_v63 = vadd.s32 %v3601_v41, %v3599_v2  ;;  %v3631_v41 = vshll.u32 %v3630_v56, 16  ;;  %v2987_v31 = vadd.s32 %v2986_v36, %v2984_v7  ;;  %v3915_v7 = vcvt.f32.s32 %v13408_v43 }
 0x4d2   :  { %v3853_v50 = vpop.xlane.xlu1 %3852 }
 0x4d3   :  { %vm4066_vm1 = vcmp.eq.s32.totalorder %v7679_v40, %v3602_v63  ;;  %v3854_v19 = vcvt.f32.s32 %v3853_v50  ;;  %5876 = vxpose.xlu0.b32.start [1/16] (narrow) %v5875_v27, 8  ;;  %v13386_v27 = vld [vmem:[#allocation142_spill] sm:$0xff]  ;;  %vm4025_vm10 = vcmp.eq.s32.totalorder %v7679_v40, %v2987_v31 }
 0x4d4   :  { %5818 = vxpose.xlu1.b32.cont [9/16] (narrow) %v13383_v32, 8  ;;  %v11328_v35 = vsel %vm4066_vm1, 1.0, %v12880_v12  ;;  %v13387_v57 = vpack.i.bf16 %v13385_v58, %v13386_v27  ;;  %v13398_v63 = vld [vmem:[#allocation246_spill] sm:$0xff] }
 0x4d5   :  { %v3857_v26 = vadd.s32 %v3856_v34, %v3854_v19  ;;  %v5889_v14 = vpack.i.bf16 %v11328_v35, %v11331_v5  ;;  %v3645_v50 = vcvt.f32.s32 %v13398_v63  ;;  %v13402_v32 = vld [vmem:[#allocation230_spill] sm:$0xff] }
 0x4d6   :  { %v3613_v38 = vpop.xlane.xlu1 %3612  ;;  %vm4009_vm11 = vcmp.eq.s32.totalorder %v7679_v40, %v13402_v32  ;;  %v13416_v32 = vld [vmem:[#allocation256_spill] sm:$0xff] }
 0x4d7   :  { %v3614_v11 = vcvt.f32.s32 %v3613_v38  ;;  %5878 = vxpose.xlu0.b32.cont [2/16] (narrow) %v5877_v8, 8  ;;  %vm4083_vm6 = vcmp.eq.s32.totalorder %v7679_v40, %v3857_v26  ;;  %v13391_v8 = vld [vmem:[#allocation76_spill] sm:$0xff]  ;;  %v3646_v38 = vshll.u32 %v3645_v50, 16  ;;  %v5087_v27 = vsel %vm4009_vm11, 1.0, %v12880_v12 }
 0x4d8   :  { %5820 = vxpose.xlu1.b32.cont [10/16] (narrow) %v13387_v57, 8  ;;  %v13393_v29 = vpack.i.bf16 %v13391_v8, %v13392_v18  ;;  %v5161_v53 = vsel %vm4083_vm6, 1.0, %v12880_v12  ;;  %v13409_v18 = vld [vmem:[#allocation243_spill] sm:$0xff] }
 0x4d9   :  { %v3617_v24 = vadd.s32 %v3616_v22, %v3614_v11  ;;  %v13403_v22 = vld [vmem:[#allocation238_spill] sm:$0xff]  ;;  %v13406_v11 = vpack.i.bf16 %v13404_v51, %v13405_v16 }
 0x4da   :  { %v3868_v45 = vpop.xlane.xlu1 %3867  ;;  %v3900_v1 = vcvt.f32.s32 %v13403_v22 }
 0x4db   :  { %vm4067_vm7 = vcmp.eq.s32.totalorder %v7679_v40, %v3617_v24  ;;  %v3869_v37 = vcvt.f32.s32 %v3868_v45  ;;  %5880 = vxpose.xlu0.b32.cont [3/16] (narrow) %v5879_v47, 8  ;;  %v13396_v47 = vld [vmem:[#allocation136_spill] sm:$0xff] }
 0x4dc   :  { %5822 = vxpose.xlu1.b32.cont [11/16] (narrow) %v13393_v29, 8  ;;  %v5145_v61 = vsel %vm4067_vm7, 1.0, %v12880_v12  ;;  %v13397_v0 = vpack.i.bf16 %v13395_v55, %v13396_v47  ;;  %v3901_v45 = vshll.u32 %v3900_v1, 16  ;;  %v13410_v29 = vld [vmem:[#allocation250_spill] sm:$0xff] }
 0x4dd   :  { %v3872_v52 = vadd.s32 %v3871_v10, %v3869_v37  ;;  %v5891_v23 = vpack.i.bf16 %v5145_v61, %v5161_v53  ;;  %v3661_v37 = vshll.u32 %v3660_v44, 16  ;;  %v13411_v3 = vpack.i.bf16 %v13409_v18, %v13410_v29  ;;  %v13412_v61 = vld [vmem:[#allocation261_spill] sm:$0xff]  ;;  %v13418_v44 = vld [vmem:[#allocation123_spill] sm:$0xff] }
 0x4de   :  { %v3628_v62 = vpop.xlane.xlu1 %3627  ;;  %v3675_v53 = vcvt.f32.s32 %v13412_v61  ;;  %v5950_v61 = vld [vmem:[%s11585_s0 + $0x208] sm:$0xff] }
 0x4df   :  { %v3629_v2 = vcvt.f32.s32 %v3628_v62  ;;  %5882 = vxpose.xlu0.b32.cont [4/16] (narrow) %v5881_v48, 8  ;;  %vm4084_vm8 = vcmp.eq.s32.totalorder %v7679_v40, %v3872_v52  ;;  %v13401_v48 = vpack.i.bf16 %v13399_v4, %v13400_v60  ;;  %v3916_v52 = vshll.u32 %v3915_v7, 16 }
 0x4e0   :  { %5824 = vxpose.xlu1.b32.cont [12/16] (narrow) %v13397_v0, 8  ;;  %v5162_v19 = vsel %vm4084_vm8, 1.0, %v12880_v12  ;;  %v3676_v9 = vshll.u32 %v3675_v53, 16  ;;  %v13414_v0 = vld [vmem:[#allocation264_spill] sm:$0xff] }
 0x4e1   :  { %v3632_v33 = vadd.s32 %v3631_v41, %v3629_v2  ;;  %v3930_v2 = vcvt.f32.s32 %v13413_v46  ;;  %v5955_v46 = vld [vmem:[%s11585_s0 + $0x2a0] sm:$0xff] }
 0x4e2   :  { %v3883_v13 = vpop.xlane.xlu1 %3882 }
 0x4e3   :  { %vm4068_vm9 = vcmp.eq.s32.totalorder %v7679_v40, %v3632_v33  ;;  %v3884_v30 = vcvt.f32.s32 %v3883_v13  ;;  %5884 = vxpose.xlu0.b32.cont [5/16] (narrow) %v5883_v28, 8  ;;  %v5103_v28 = vsel %vm4025_vm10, 1.0, %v12880_v12  ;;  %v3690_v33 = vcvt.f32.s32 %v13414_v0 }
 0x4e4   :  { %5826 = vxpose.xlu1.b32.cont [13/16] (narrow) %v13401_v48, 8  ;;  %v5146_v34 = vsel %vm4068_vm9, 1.0, %v12880_v12  ;;  %v5829_v24 = vpack.i.bf16 %v5087_v27, %v5103_v28  ;;  %v3931_v13 = vshll.u32 %v3930_v2, 16  ;;  %v13415_v48 = vld [vmem:[#allocation241_spill] sm:$0xff] }
 0x4e5   :  { %v3887_v39 = vadd.s32 %v3886_v59, %v3884_v30  ;;  %v5893_v17 = vpack.i.bf16 %v5146_v34, %v5162_v19  ;;  %v3691_v60 = vshll.u32 %v3690_v33, 16  ;;  %v3945_v34 = vcvt.f32.s32 %v13415_v48  ;;  %v5956_v2 = vld [vmem:[%s11585_s0 + $0x2a8] sm:$0xff]  ;;  %v5959_v33 = vld [vmem:[%s11585_s0 + $0x2b0] sm:$0xff] }
 0x4e6   :  { %v3643_v26 = vpop.xlane.xlu1 %3642  ;;  %v13422_v48 = vld [vmem:[#allocation57_spill] sm:$0xff] }
 0x4e7   :  { %v3644_v49 = vcvt.f32.s32 %v3643_v26  ;;  %5886 = vxpose.xlu0.b32.cont [6/16] (narrow) %v5885_v25, 8  ;;  %vm4085_vm12 = vcmp.eq.s32.totalorder %v7679_v40, %v3887_v39  ;;  %v3705_v26 = vcvt.f32.s32 %v13416_v32 }
 0x4e8   :  { %5828 = vxpose.xlu1.b32.cont [14/16] (narrow) %v13406_v11, 8  ;;  %v5163_v25 = vsel %vm4085_vm12, 1.0, %v12880_v12 }
 0x4e9   :  { %v3647_v58 = vadd.s32 %v3646_v38, %v3644_v49  ;;  %v3946_v38 = vshll.u32 %v3945_v34, 16  ;;  %v3706_v11 = vshll.u32 %v3705_v26, 16  ;;  %v13423_v34 = vld [vmem:[#allocation56_spill] sm:$0xff] }
 0x4ea   :  { %v3898_v57 = vpop.xlane.xlu1 %3897  ;;  %v5963_v26 = vld [vmem:[%s11585_s0 + $0x2e0] sm:$0xff] }
 0x4eb   :  { %vm4069_vm13 = vcmp.eq.s32.totalorder %v7679_v40, %v3647_v58  ;;  %v3899_v6 = vcvt.f32.s32 %v3898_v57  ;;  %5888 = vxpose.xlu0.b32.cont [7/16] (narrow) %v5887_v20, 8  ;;  %v13417_v58 = vld [vmem:[#allocation147_spill] sm:$0xff] }
 0x4ec   :  { %5830 = vxpose.xlu1.b32.cont [15/16] (narrow) %v5829_v24, 8  ;;  %v5147_v54 = vsel %vm4069_vm13, 1.0, %v12880_v12  ;;  %v3960_v27 = vcvt.f32.s32 %v13417_v58  ;;  %v13431_v58 = vld [vmem:[#allocation61_spill] sm:$0xff] }
 0x4ed   :  { %v3902_v21 = vadd.s32 %v3901_v45, %v3899_v6  ;;  %v5895_v56 = vpack.i.bf16 %v5147_v54, %v5163_v25  ;;  %v3720_v45 = vcvt.f32.s32 %v13418_v44 }
 0x4ee   :  { %v3658_v10 = vpop.xlane.xlu1 %3657  ;;  %v3961_v6 = vshll.u32 %v3960_v27, 16  ;;  %v13432_v27 = vld [vmem:[#allocation60_spill] sm:$0xff] }
 0x4ef   :  { %v3659_v8 = vcvt.f32.s32 %v3658_v10  ;;  %5890 = vxpose.xlu0.b32.cont [8/16] (narrow) %v5889_v14, 8  ;;  %vm4086_vm14 = vcmp.eq.s32.totalorder %v7679_v40, %v3902_v21  ;;  %v3721_v43 = vshll.u32 %v3720_v45, 16 }
 0x4f0   :  { %5832 = vxpose.xlu1.b32.end [16/16] (narrow) %v13411_v3, 8  ;;  %v5164_v35 = vsel %vm4086_vm14, 1.0, %v12880_v12 }
 0x4f1   :  { %v3662_v42 = vadd.s32 %v3661_v37, %v3659_v8 }
 0x4f2   :  { %v3913_v20 = vpop.xlane.xlu1 %3912 }
 0x4f3   :  { %vm4070_vm15 = vcmp.eq.s32.totalorder %v7679_v40, %v3662_v42  ;;  %v3914_v36 = vcvt.f32.s32 %v3913_v20  ;;  %5892 = vxpose.xlu0.b32.cont [9/16] (narrow) %v5891_v23, 8  ;;  %v5949_v20 = vld [vmem:[%s11585_s0 + $0x200] sm:$0xff] }
 0x4f4   :  { %v5148_v62 = vsel %vm4070_vm15, 1.0, %v12880_v12  ;;  %v5698_v53 = vpack.c.bf16 %v5950_v61, %v5949_v20  ;;  %v13440_v20 = vld [vmem:[#allocation21_spill] sm:$0xff]  ;;  %v13441_v61 = vld [vmem:[#allocation20_spill] sm:$0xff] }
 0x4f5   :  { %v3917_v5 = vadd.s32 %v3916_v52, %v3914_v36  ;;  %v5897_v14 = vpack.i.bf16 %v5148_v62, %v5164_v35  ;;  %v5951_v35 = vld [vmem:[%s11585_s0 + $0x290] sm:$0xff] }
 0x4f6   :  { %v3673_v41 = vpop.xlane.xlu1 %3672 }
 0x4f7   :  { %v3674_v31 = vcvt.f32.s32 %v3673_v41  ;;  %5894 = vxpose.xlu0.b32.cont [10/16] (narrow) %v5893_v17, 8  ;;  %vm4087_vm2 = vcmp.eq.s32.totalorder %v7679_v40, %v3917_v5  ;;  %v5954_v41 = vld [vmem:[%s11585_s0 + $0x218] sm:$0xff] }
 0x4f8   :  { %v5165_v50 = vsel %vm4087_vm2, 1.0, %v12880_v12 }
 0x4f9   :  { %v3677_v55 = vadd.s32 %v3676_v9, %v3674_v31  ;;  %v5704_v31 = vpack.c.bf16 %v5956_v2, %v5955_v46  ;;  %v13447_v46 = vld [vmem:[#allocation28_spill] sm:$0xff] }
 0x4fa   :  { %v3928_v47 = vpop.xlane.xlu1 %3927 }
 0x4fb   :  { %vm4071_vm3 = vcmp.eq.s32.totalorder %v7679_v40, %v3677_v55  ;;  %v3929_v23 = vcvt.f32.s32 %v3928_v47  ;;  %5896 = vxpose.xlu0.b32.cont [11/16] (narrow) %v5895_v56, 8  ;;  %v5957_v55 = vld [vmem:[%s11585_s0 + $0x220] sm:$0xff]  ;;  %v5958_v47 = vld [vmem:[%s11585_s0 + $0x228] sm:$0xff] }
 0x4fc   :  { %v5149_v63 = vsel %vm4071_vm3, 1.0, %v12880_v12  ;;  %v5706_v0 = vpack.c.bf16 %v5958_v47, %v5957_v55  ;;  %v5978_v55 = vld [vmem:[%s11585_s0 + $0x3d8] sm:$0xff] }
 0x4fd   :  { %v3932_v59 = vadd.s32 %v3931_v13, %v3929_v23  ;;  %v5899_v30 = vpack.i.bf16 %v5149_v63, %v5165_v50  ;;  %v5960_v13 = vld [vmem:[%s11585_s0 + $0x2b8] sm:$0xff]  ;;  %v5961_v63 = vld [vmem:[%s11585_s0 + $0x2c0] sm:$0xff]  ;;  %v5962_v50 = vld [vmem:[%s11585_s0 + $0x2c8] sm:$0xff] }
 0x4fe   :  { %v3688_v4 = vpop.xlane.xlu1 %3687  ;;  %v5708_v23 = vpack.c.bf16 %v5960_v13, %v5959_v33  ;;  %v13450_v33 = vld [vmem:[#allocation32_spill] sm:$0xff] }
 0x4ff   :  { %v3689_v19 = vcvt.f32.s32 %v3688_v4  ;;  %5898 = vxpose.xlu0.b32.cont [12/16] (narrow) %v5897_v14, 8  ;;  %vm4088_vm4 = vcmp.eq.s32.totalorder %v7679_v40, %v3932_v59  ;;  %v5953_v14 = vld [vmem:[%s11585_s0 + $0x210] sm:$0xff]  ;;  %v5712_v59 = vpack.c.bf16 %v5962_v50, %v5961_v63  ;;  %v5980_v63 = vld [vmem:[%s11585_s0 + $0x3e8] sm:$0xff] }
 0x500   :  { %v5166_v49 = vsel %vm4088_vm4, 1.0, %v12880_v12  ;;  %v5702_v9 = vpack.c.bf16 %v5954_v41, %v5953_v14  ;;  %v13420_v4 = vld [vmem:[#allocation54_spill] sm:$0xff]  ;;  %v5976_v14 = vld [vmem:[%s11585_s0 + $0x3c8] sm:$0xff] }
 0x501   :  { %v3692_v39 = vadd.s32 %v3691_v60, %v3689_v19  ;;  %v13424_v19 = vpack.c.bf16 %v13422_v48, %v13423_v34  ;;  %v5982_v48 = vld [vmem:[%s11585_s0 + $0x3f8] sm:$0xff] }
 0x502   :  { %v3943_v17 = vpop.xlane.xlu1 %3942 }
 0x503   :  { %vm4072_vm5 = vcmp.eq.s32.totalorder %v7679_v40, %v3692_v39  ;;  %v3944_v22 = vcvt.f32.s32 %v3943_v17  ;;  %5900 = vxpose.xlu0.b32.cont [13/16] (narrow) %v5899_v30, 8  ;;  %v13419_v30 = vld [vmem:[#allocation55_spill] sm:$0xff]  ;;  %v13425_v39 = vld [vmem:[#allocation9_spill] sm:$0xff]  ;;  %v13426_v17 = vld [vmem:[#allocation8_spill] sm:$0xff] }
 0x504   :  { %v5150_v1 = vsel %vm4072_vm5, 1.0, %v12880_v12  ;;  %v13421_v60 = vpack.c.bf16 %v13419_v30, %v13420_v4  ;;  %v13427_v32 = vpack.c.bf16 %v13425_v39, %v13426_v17  ;;  %v13453_v30 = vld [vmem:[#allocation34_spill] sm:$0xff]  ;;  %v13456_v39 = vld [vmem:[#allocation36_spill] sm:$0xff] }
 0x505   :  { %v3947_v28 = vadd.s32 %v3946_v38, %v3944_v22  ;;  %v5901_v51 = vpack.i.bf16 %v5150_v1, %v5166_v49  ;;  %v5964_v38 = vld [vmem:[%s11585_s0 + $0x2e8] sm:$0xff]  ;;  %v13428_v1 = vld [vmem:[#allocation59_spill] sm:$0xff]  ;;  %v13429_v49 = vld [vmem:[#allocation58_spill] sm:$0xff] }
 0x506   :  { %v3703_v16 = vpop.xlane.xlu1 %3702  ;;  %v5720_v22 = vpack.c.bf16 %v5964_v38, %v5963_v26  ;;  %v13458_v26 = vld [vmem:[#allocation39_spill] sm:$0xff]  ;;  %v13459_v38 = vld [vmem:[#allocation38_spill] sm:$0xff] }
 0x507   :  { %v3704_v57 = vcvt.f32.s32 %v3703_v16  ;;  %5902 = vxpose.xlu0.b32.cont [14/16] (narrow) %v5901_v51, 8  ;;  %vm4089_vm1 = vcmp.eq.s32.totalorder %v7679_v40, %v3947_v28  ;;  %v13430_v28 = vpack.c.bf16 %v13428_v1, %v13429_v49  ;;  %v5965_v51 = vld [vmem:[%s11585_s0 + $0x2f0] sm:$0xff]  ;;  %v5966_v16 = vld [vmem:[%s11585_s0 + $0x2f8] sm:$0xff] }
 0x508   :  { %v5167_v21 = vsel %vm4089_vm1, 1.0, %v12880_v12 }
 0x509   :  { %v3707_v24 = vadd.s32 %v3706_v11, %v3704_v57  ;;  %v5724_v11 = vpack.c.bf16 %v5966_v16, %v5965_v51  ;;  %v13433_v57 = vpack.c.bf16 %v13431_v58, %v13432_v27 }
 0x50a   :  { %v3958_v15 = vpop.xlane.xlu1 %3957 }
 0x50b   :  { %vm4073_vm6 = vcmp.eq.s32.totalorder %v7679_v40, %v3707_v24  ;;  %v3959_v54 = vcvt.f32.s32 %v3958_v15  ;;  %v5967_v24 = vld [vmem:[%s11585_s0 + $0x380] sm:$0xff]  ;;  %v5968_v15 = vld [vmem:[%s11585_s0 + $0x388] sm:$0xff] }
 0x50c   :  { %v5151_v25 = vsel %vm4073_vm6, 1.0, %v12880_v12  ;;  %v5728_v44 = vpack.c.bf16 %v5968_v15, %v5967_v24 }
 0x50d   :  { %v3962_v56 = vadd.s32 %v3961_v6, %v3959_v54  ;;  %v5903_v10 = vpack.i.bf16 %v5151_v25, %v5167_v21  ;;  %v13434_v6 = vld [vmem:[#allocation63_spill] sm:$0xff]  ;;  %v13435_v54 = vld [vmem:[#allocation62_spill] sm:$0xff] }
 0x50e   :  { %v3718_v37 = vpop.xlane.xlu1 %3717  ;;  %v13436_v25 = vpack.c.bf16 %v13434_v6, %v13435_v54  ;;  %v5969_v21 = vld [vmem:[%s11585_s0 + $0x390] sm:$0xff]  ;;  %v4347_v54 = vld [vmem:[#allocation2] sm:$0xff] }
 0x50f   :  { %v3719_v7 = vcvt.f32.s32 %v3718_v37  ;;  %5904 = vxpose.xlu0.b32.cont [15/16] (narrow) %v5903_v10, 8  ;;  %vm4090_vm7 = vcmp.eq.s32.totalorder %v7679_v40, %v3962_v56  ;;  %v5970_v56 = vld [vmem:[%s11585_s0 + $0x398] sm:$0xff]  ;;  %v13437_v37 = vld [vmem:[#allocation17_spill] sm:$0xff] }
 0x510   :  { %v5168_v3 = vsel %vm4090_vm7, 1.0, %v12880_v12  ;;  %v5732_v10 = vpack.c.bf16 %v5970_v56, %v5969_v21 }
 0x511   :  { %v3722_v8 = vadd.s32 %v3721_v43, %v3719_v7  ;;  %v13438_v43 = vld [vmem:[#allocation16_spill] sm:$0xff] }
 0x512   :  { %v13439_v7 = vpack.c.bf16 %v13437_v37, %v13438_v43 }
 0x513   :  { %vm4074_vm8 = vcmp.eq.s32.totalorder %v7679_v40, %v3722_v8  ;;  %v5870_v18 = vpop.trf.xlu0  ;;  %v5971_v8 = vld [vmem:[%s11585_s0 + $0x3a0] sm:$0xff] }
 0x514   :  { %v5152_v29 = vsel %vm4074_vm8, 1.0, %v12880_v12  ;;  %v5871_v36 = vunpack.i.l.bf16 %v5870_v18  ;;  %v5952_v12 = vld [vmem:[%s11585_s0 + $0x298] sm:$0xff]  ;;  %v5874_v45 = vunpack.i.h.bf16 %v5870_v18  ;;  %v5972_v18 = vld [vmem:[%s11585_s0 + $0x3a8] sm:$0xff] }
 0x515   :  { %v5905_v42 = vpack.i.bf16 %v5152_v29, %v5168_v3  ;;  %v5700_v5 = vpack.c.bf16 %v5952_v12, %v5951_v35  ;;  %v5736_v29 = vpack.c.bf16 %v5972_v18, %v5971_v8  ;;  %v13444_v35 = vld [vmem:[#allocation24_spill] sm:$0xff] }
 0x517   :  { %5906 = vxpose.xlu0.b32.end [16/16] (narrow) %v5905_v42, 8 }
 0x534   :  { %v5833_v52 = vpop.trf.xlu1 }
 0x535   :  { %v5837_v62 = vunpack.i.h.bf16 %v5833_v52  ;;  %v5834_v40 = vunpack.i.l.bf16 %v5833_v52  ;;  %v5973_v52 = vld [vmem:[%s11585_s0 + $0x3b0] sm:$0xff] }
 0x537   :  { %4738 = vmatprep.mubr.f32.mxu1 %v5834_v40  ;;  %v13443_v40 = vld [vmem:[#allocation25_spill] sm:$0xff] }
 0x538   :  { %4739 = vmatmul.mubr.f32.vlgmr.msra.gmra.mrb[40].mxu1 %v5837_v62  ;;  %v13445_v12 = vpack.c.bf16 %v13443_v40, %v13444_v35 }
 0x539   :  { %5699 = vmatpush3.bf16.msra.mxu1 %v5698_v53  ;;  %4808 = vmatprep.mubr.f32.mxu1 %v5871_v36  ;;  %v13442_v53 = vpack.c.bf16 %v13440_v20, %v13441_v61  ;;  %v5974_v36 = vld [vmem:[%s11585_s0 + $0x3b8] sm:$0xff] }
 0x53a   :  { %5701 = vmatprep.subr.bf16.mxu1 %v5700_v5  ;;  %v5740_v62 = vpack.c.bf16 %v5974_v36, %v5973_v52  ;;  %v5975_v5 = vld [vmem:[%s11585_s0 + $0x3c0] sm:$0xff] }
 0x53b   :  { %v5744_v41 = vpack.c.bf16 %v5976_v14, %v5975_v5 }
 0x53d   :  { %5703 = vmatpush3.bf16.msra.mxu1 %v5702_v9  ;;  %v13446_v9 = vld [vmem:[#allocation29_spill] sm:$0xff] }
 0x53e   :  { %5705 = vmatprep.subr.bf16.mxu1 %v5704_v31  ;;  %v13448_v2 = vpack.c.bf16 %v13446_v9, %v13447_v46  ;;  %v5977_v31 = vld [vmem:[%s11585_s0 + $0x3d0] sm:$0xff] }
 0x53f   :  { %v5748_v47 = vpack.c.bf16 %v5978_v55, %v5977_v31 }
 0x541   :  { %5707 = vmatpush3.bf16.msra.mxu1 %v5706_v0  ;;  %v13449_v0 = vld [vmem:[#allocation33_spill] sm:$0xff] }
 0x542   :  { %5709 = vmatprep.subr.bf16.mxu1 %v5708_v23  ;;  %v13451_v13 = vpack.c.bf16 %v13449_v0, %v13450_v33  ;;  %v5979_v23 = vld [vmem:[%s11585_s0 + $0x3e0] sm:$0xff] }
 0x543   :  { %v5752_v50 = vpack.c.bf16 %v5980_v63, %v5979_v23 }
 0x545   :  { %5711 = vmatpush3.bf16.msra.mxu1 %v13421_v60  ;;  %v5981_v60 = vld [vmem:[%s11585_s0 + $0x3f0] sm:$0xff]  ;;  %s6008_s0 = smov [#allocation3]  }
 0x546   :  { %5713 = vmatprep.subr.bf16.mxu1 %v5712_v59  ;;  %v13452_v59 = vld [vmem:[#allocation35_spill] sm:$0xff]  ;;  %v5756_v34 = vpack.c.bf16 %v5982_v48, %v5981_v60  ;;  %s4897_s17 = sshll.u32 %s6008_s0, 4  ;;  %s4898_s17 = int_to_ptr.vmem [resolvable:$true] %s4897_s17 }
 0x547   :  { %v13454_v4 = vpack.c.bf16 %v13452_v59, %v13453_v30  ;;  %s5983_s18 = scalar_lea.vmem %s4898_s17, 128  ;;  %p5988_p1 = scmp.lt.s32.totalorder %s4898_s17, %s4898_s17 }
 0x548   :  { %p5984_p0 = scmp.ne.s32.totalorder %s4898_s17, %s5983_s18  ;;  %p5989_p2 = scmp.lt.s32.totalorder %s5983_s18, %s5983_s18 }
 0x549   :  { %5715 = vmatpush3.bf16.msra.mxu1 %v13424_v19  ;;  %v13455_v19 = vld [vmem:[#allocation37_spill] sm:$0xff] }
 0x54a   :  { %5717 = vmatprep.subr.bf16.mxu1 %v13427_v32  ;;  %v13457_v17 = vpack.c.bf16 %v13455_v19, %v13456_v39  ;;  %p5990_p3 = por %p5989_p2, %p5988_p1 }
 0x54c   :  { %p5991_p4 = pnand %p5990_p3, %p5984_p0 }
 0x54d   :  { %5719 = vmatpush3.bf16.msra.mxu1 %v13430_v28 }
 0x54e   :  { %5721 = vmatprep.subr.bf16.mxu1 %v5720_v22  ;;  %v13460_v22 = vpack.c.bf16 %v13458_v26, %v13459_v38 }
 0x551   :  { %5723 = vmatpush3.bf16.msra.mxu1 %v13433_v57 }
 0x552   :  { %5725 = vmatprep.subr.bf16.mxu1 %v5724_v11 }
 0x555   :  { %5727 = vmatpush3.bf16.msra.mxu1 %v13436_v25 }
 0x556   :  { %5729 = vmatprep.subr.bf16.mxu1 %v5728_v44 }
 0x558   :  { %4809 = vmatmul.mubr.f32.vlgmr.msra.gmra.mrb[42].mxu1 %v5874_v45 }
 0x559   :  { %5731 = vmatpush3.bf16.msra.mxu1 %v13439_v7 }
 0x55a   :  { %5733 = vmatprep.subr.bf16.mxu1 %v5732_v10 }
 0x55b   :  { %v5907_v3 = vpop.trf.xlu0 }
 0x55c   :  { %v5908_v42 = vunpack.i.l.bf16 %v5907_v3  ;;  %v5911_v32 = vunpack.i.h.bf16 %v5907_v3 }
 0x55d   :  { %5735 = vmatpush3.bf16.msra.mxu1 %v13442_v53 }
 0x55e   :  { %5737 = vmatprep.subr.bf16.mxu1 %v5736_v29  ;;  %4878 = vmatprep.mubr.f32.mxu1 %v5908_v42 }
 0x561   :  { %5739 = vmatpush3.bf16.msra.mxu1 %v13445_v12 }
 0x562   :  { %5741 = vmatprep.subr.bf16.mxu1 %v5740_v62 }
 0x565   :  { %5743 = vmatpush3.bf16.msra.mxu1 %v13448_v2 }
 0x566   :  { %5745 = vmatprep.subr.bf16.mxu1 %v5744_v41 }
 0x569   :  { %5747 = vmatpush3.bf16.msra.mxu1 %v13451_v13 }
 0x56a   :  { %5749 = vmatprep.subr.bf16.mxu1 %v5748_v47 }
 0x56d   :  { %5751 = vmatpush3.bf16.msra.mxu1 %v13454_v4 }
 0x56e   :  { %5753 = vmatprep.subr.bf16.mxu1 %v5752_v50 }
 0x571   :  { %5755 = vmatpush3.bf16.msra.mxu1 %v13457_v17 }
 0x572   :  { %5757 = vmatprep.subr.bf16.mxu1 %v5756_v34 }
 0x575   :  { %5759 = vmatpush3.bf16.msra.mxu1 %v13460_v22 }
 0x578   :  { %4879 = vmatmul.mubr.f32.vlgmr.msra.gmra.mrb[44].mxu1 %v5911_v32 }
 0x57a   :  { %v5330_v1 = vpop.f32.mrb[38].mxu1 }
 0x57b   :  { %v5331_v49 = vpop.f32.mrb[39].mxu1 }
 0x57c   :  { %v5332_v28 = vadd.f32 %v5331_v49, %v5330_v1 }
 0x60b   :  { %v5365_v51 = vpop.f32.mrb[40].mxu1 }
 0x60c   :  { %v5366_v16 = vpop.f32.mrb[41].mxu1 }
 0x60d   :  { %v5367_v11 = vadd.f32 %v5366_v16, %v5365_v51 }
 0x60f   :  { %v4741_v58 = vadd.f32 %v5367_v11, %v5332_v28 }
 0x62b   :  { %v5400_v27 = vpop.f32.mrb[42].mxu1 }
 0x62c   :  { %v5401_v57 = vpop.f32.mrb[43].mxu1 }
 0x62d   :  { %v5402_v24 = vadd.f32 %v5401_v57, %v5400_v27 }
 0x62f   :  { %v4811_v15 = vadd.f32 %v5402_v24, %v4741_v58 }
 0x64b   :  { %v5435_v44 = vpop.f32.mrb[44].mxu1 }
 0x64c   :  { %v5436_v45 = vpop.f32.mrb[45].mxu1 }
 0x64d   :  { %v5437_v6 = vadd.f32 %v5436_v45, %v5435_v44 }
 0x64f   :  { %v4881_v25 = vadd.f32 %v5437_v6, %v4811_v15 }
 0x651   :  { %v4884_v21 = vadd.f32 %v4881_v25, %v4347_v54 }
 0x653   :  { %4885 = vst.msk [vmem:[#allocation2] sm:$0xff] %vm41_vm0, %v4884_v21 }
 0x65a   :  { %v4889_v56 = vld [vmem:[#allocation2] sm:$0xff] }
 0x65b   :  { %4890 = vst.msk [vmem:[#allocation3] sm:$0xff] %vm41_vm0, %v4889_v56 }
 0x65c   :  { %5994 = shalt.err (!%p5991_p4)
}
 0x65d   :  { %s5995_s20 = scalar_lea.hbm %s11588_s3, 128 }
 0x65e   :  { %p5996_p5 = scmp.ne.s32.totalorder %s11588_s3, %s5995_s20  ;;  %p5999_p6 = scmp.lt.u32.totalorder %s5995_s20, %s11588_s3 }
 0x660   :  { %p6001_p7 = pnand %p5999_p6, %p5996_p5 }
 0x662   :  { %6004 = shalt.err (!%p6001_p7)
}
 0x663   :  { %4900 = dma.vmem_to_hbm [thread:$0]  %s4898_s17, 128, %s11588_s3, [#allocation4]  }
 0x664   :  { %6005 = dma.done.wait [#allocation4], 128  }
 0x665   :  { %6006 = vsyncadd [#allocation4], 4294967168 }
 0x666   :  { %4904 = vsyncpa [#allocation4], 1 }

</bundles_post_ra>
